<compile_context>
chip_gen: v6e
topology: v6e:2x2x1
jax: 0.10.0
libtpu: 0.0.40
codegen_flags: <defaults>
</compile_context>

<pallas_src>
import functools

import jax
import jax.numpy as jnp
from jax import lax
from jax.experimental import pallas as pl
from jax.experimental.pallas import tpu as pltpu


def _uniform_u32(shape, row0_i32, seed_i32):
    """Counter-based uniform uint32 bits (murmur3-finalizer style hash).

    Works identically on TPU Mosaic and in interpret mode; depends only on the
    global (row, col) element position and the seed, so the mask is invariant
    to the grid/tile decomposition.
    """
    rows = (lax.broadcasted_iota(jnp.int32, shape, 0) + row0_i32).astype(jnp.uint32)
    cols = lax.broadcasted_iota(jnp.int32, shape, 1).astype(jnp.uint32)
    seed = seed_i32.astype(jnp.uint32)
    x = rows * jnp.uint32(0x9E3779B1)
    x = x ^ (cols * jnp.uint32(0x85EBCA77))
    x = x ^ (seed * jnp.uint32(0xC2B2AE3D))
    x = x ^ (x >> 16)
    x = x * jnp.uint32(0x7FEB352D)
    x = x ^ (x >> 15)
    x = x * jnp.uint32(0x846CA68B)
    x = x ^ (x >> 16)
    return x


def attn_dropout_kernel(scale_ref, seed_ref, q_ref, k_ref, v_ref, o_ref, *,
                        dropout_p, tq, qk_precision):
    # q_ref/o_ref: (1, TQ, D) tiles; k_ref/v_ref: (1, S, D) resident tiles.
    q = q_ref[0]                                   # (TQ, D)
    k = k_ref[0]                                   # (S, D)
    v = v_ref[0]                                   # (S, D)

    # qk = Q @ K^T via NT contraction (last dim of both) — no K transpose.
    qk = lax.dot_general(
        q, k,
        dimension_numbers=(((1,), (1,)), ((), ())),
        preferred_element_type=jnp.float32,
        precision=qk_precision,
    )                                              # (TQ, S)

    # scale + numerically-stable softmax pieces.
    scaled = qk * scale_ref[0]
    m = jnp.max(scaled, axis=-1, keepdims=True)
    e = jnp.exp(scaled - m)
    s = jnp.sum(e, axis=-1, keepdims=True)

    if 0.0 < dropout_p < 1.0:
        # Fold the 1/(1-p) keep-scale into the softmax reciprocal (EUP slot).
        inv = pl.reciprocal(s * jnp.float32(1.0 - dropout_p), approx=True)
        p_scaled = e * inv
        # Global first-row index of this (batch, q-tile) grid point.
        row0 = (pl.program_id(0) * pl.num_programs(1) + pl.program_id(1)) * tq
        bits = _uniform_u32(p_scaled.shape, row0, seed_ref[0])
        # keep iff bits >= p * 2^32  (keep probability = 1 - p).
        thresh = jnp.uint32(min(int(dropout_p * (2 ** 32)), 2 ** 32 - 1))
        probs = jnp.where(bits >= thresh, p_scaled, 0.0)
    else:
        probs = e * pl.reciprocal(s, approx=True)

    # P @ V on the MXU with bf16 operands, f32 accumulation.
    v_bf16 = v if v.dtype == jnp.bfloat16 else v.astype(jnp.bfloat16)
    out = jnp.dot(probs.astype(jnp.bfloat16), v_bf16,
                  preferred_element_type=jnp.float32)   # (TQ, D)
    o_ref[0] = out.astype(o_ref.dtype)


def sdp_attention(query, key, value, scale_factor, dropout_p, seed=0, tq=64):
    """query/key/value: (B, S, D), f32 or bf16.  scale_factor: scalar or (1,)."""
    B, S, D = query.shape
    assert key.shape == (B, S, D) and value.shape == (B, S, D)
    dropout_p = float(dropout_p)

    # F.dropout with p>=1 (training mode, the module's default) zeroes the
    # attention probabilities deterministically -> the output is all zeros.
    if dropout_p >= 1.0:
        return jnp.zeros_like(query)

    # Query-row tiling (>=2 steps per TensorCore at S=256) so Q prefetch and
    # O writeback overlap compute; K/V have a constant index map along the
    # q-tile axis and stay resident in VMEM.
    if S % tq != 0:
        tq = S
    n_q = S // tq

    scale_arr = jnp.asarray(scale_factor, dtype=jnp.float32).reshape((1,))
    seed_arr = jnp.asarray([seed], dtype=jnp.int32)

    def build(fast):
        kernel = functools.partial(
            attn_dropout_kernel,
            dropout_p=dropout_p,
            tq=tq,
            qk_precision=lax.Precision.HIGHEST if fast else None,
        )
        # K/V are resident across the q-tile axis: request single buffering so
        # the default double-buffer does not waste VMEM (biggest effect on
        # v5e scoped VMEM and v7x's 64 MiB per TC).
        kv_kwargs = {}
        if fast and hasattr(pl, "Buffered"):
            kv_kwargs = dict(pipeline_mode=pl.Buffered(1))
        grid_spec = pltpu.PrefetchScalarGridSpec(
            num_scalar_prefetch=2,                  # scale_factor, seed -> SMEM
            grid=(B, n_q),
            in_specs=[
                pl.BlockSpec((1, tq, D), lambda b, qi, scale, seed: (b, qi, 0)),           # Q
                pl.BlockSpec((1, S, D), lambda b, qi, scale, seed: (b, 0, 0), **kv_kwargs),  # K
                pl.BlockSpec((1, S, D), lambda b, qi, scale, seed: (b, 0, 0), **kv_kwargs),  # V
            ],
            out_specs=pl.BlockSpec((1, tq, D), lambda b, qi, scale, seed: (b, qi, 0)),
        )
        return pl.pallas_call(
            kernel,
            out_shape=jax.ShapeDtypeStruct((B, S, D), query.dtype),
            grid_spec=grid_spec,
            compiler_params=pltpu.CompilerParams(
                dimension_semantics=("parallel", "parallel"),
                vmem_limit_bytes=32 * 1024 * 1024,
            ),
        )

    try:
        # Fast build: single-buffered resident K/V + explicit f32 QK^T.
        return build(True)(scale_arr, seed_arr, query, key, value)
    except Exception:
        # Conservative fallback if the fast build fails to lower on this
        # backend (default buffering, default matmul precision).
        return build(False)(scale_arr, seed_arr, query, key, value)


if __name__ == "__main__":
    # Small shapes consistent with the module's (1, 256, 2048): B=1, S=256, D=512.
    B, S, D = 1, 256, 512
    k0, k1, k2 = jax.random.split(jax.random.PRNGKey(0), 3)
    query = jax.random.normal(k0, (B, S, D), dtype=jnp.float32)
    key = jax.random.normal(k1, (B, S, D), dtype=jnp.float32)
    value = jax.random.normal(k2, (B, S, D), dtype=jnp.float32)
    scale_factor = jnp.array([5000.0], dtype=jnp.float32)
    dropout_p = 1   # same as the PyTorch script

    # p >= 1 path (what the PyTorch module exercises): deterministic zeros.
    out = jax.block_until_ready(sdp_attention(query, key, value, scale_factor, dropout_p))
    assert out.shape == (B, S, D)
    assert bool(jnp.all(out == 0.0))

    # p = 0 path: run the Pallas kernel and compare against a pure-JAX reference.
    out_p0 = jax.block_until_ready(sdp_attention(query, key, value, scale_factor, 0.0))
    qk = jnp.einsum("bqd,bkd->bqk", query, key) * scale_factor[0]
    ref = jnp.einsum("bqk,bkd->bqd", jax.nn.softmax(qk, axis=-1), value)
    # P@V runs in bf16 inside the kernel (and the softmax uses an approx
    # reciprocal) -> bf16-level tolerance.
    assert jnp.allclose(out_p0, ref, atol=3e-2, rtol=3e-2), \
        float(jnp.max(jnp.abs(out_p0 - ref)))

    # 0 < p < 1 path: make sure it runs and produces finite values.
    out_p5 = jax.block_until_ready(sdp_attention(query, key, value, scale_factor, 0.5, seed=7))
    assert out_p5.shape == (B, S, D)
    assert bool(jnp.all(jnp.isfinite(out_p5)))

    print("KERNEL_OK")
</pallas_src>

<mosaic_0001>
module attributes {stable_mosaic.version = 11 : i64} {
  func.func @attn_dropout_kernel(%arg0: i32, %arg1: i32, %arg2: memref<1xf32, #tpu.memory_space<smem>>, %arg3: memref<1xi32, #tpu.memory_space<smem>>, %arg4: memref<1x64x512xf32, #tpu.memory_space<vmem>>, %arg5: memref<1x256x512xf32, #tpu.memory_space<vmem>>, %arg6: memref<1x256x512xf32, #tpu.memory_space<vmem>>, %arg7: memref<1x64x512xf32, #tpu.memory_space<vmem>>) attributes {dimension_semantics = [#tpu.dimension_semantics<parallel>, #tpu.dimension_semantics<parallel>], iteration_bounds = array<i64: 1, 4>, scalar_prefetch = 2 : i64, scratch_operands = 0 : i64, tpu.core_type = #tpu.core_type<tc>, window_params = [{transform_indices = @transform_0, window_bounds = array<i64: 1, 64, 512>}, {pipeline_mode = #tpu.pipeline_mode<synchronous>, transform_indices = @transform_1, window_bounds = array<i64: 1, 256, 512>}, {pipeline_mode = #tpu.pipeline_mode<synchronous>, transform_indices = @transform_2, window_bounds = array<i64: 1, 256, 512>}, {transform_indices = @transform_3, window_bounds = array<i64: 1, 64, 512>}]} {
    %c0 = arith.constant 0 : index
    %c0_0 = arith.constant 0 : index
    %c0_1 = arith.constant 0 : index
    %0 = vector.load %arg4[%c0, %c0_0, %c0_1] : memref<1x64x512xf32, #tpu.memory_space<vmem>>, vector<1x64x512xf32>
    %1 = vector.shape_cast %0 : vector<1x64x512xf32> to vector<64x512xf32>
    %c0_2 = arith.constant 0 : index
    %c0_3 = arith.constant 0 : index
    %c0_4 = arith.constant 0 : index
    %2 = vector.load %arg5[%c0_2, %c0_3, %c0_4] : memref<1x256x512xf32, #tpu.memory_space<vmem>>, vector<1x256x512xf32>
    %3 = vector.shape_cast %2 : vector<1x256x512xf32> to vector<256x512xf32>
    %c0_5 = arith.constant 0 : index
    %c0_6 = arith.constant 0 : index
    %c0_7 = arith.constant 0 : index
    %4 = vector.load %arg6[%c0_5, %c0_6, %c0_7] : memref<1x256x512xf32, #tpu.memory_space<vmem>>, vector<1x256x512xf32>
    %5 = vector.shape_cast %4 : vector<1x256x512xf32> to vector<256x512xf32>
    %cst = arith.constant dense<0.000000e+00> : vector<64x256xf32>
    %6 = tpu.matmul %1, %3, %cst {dimension_numbers = #tpu.dot_dimension_numbers<[1], [1], [0], [0], [0, 0, 1, 0], [], []>, precision = #tpu.contract_precision<fp32>} : vector<64x512xf32>, vector<256x512xf32>, vector<64x256xf32> -> vector<64x256xf32>
    %c0_8 = arith.constant 0 : index
    %7 = memref.load %arg2[%c0_8] : memref<1xf32, #tpu.memory_space<smem>>
    %8 = vector.broadcast %7 : f32 to vector<64x256xf32>
    %9 = arith.mulf %6, %8 : vector<64x256xf32>
    %cst_9 = arith.constant dense<0xFF800000> : vector<64xf32>
    %10 = vector.multi_reduction <maximumf>, %9, %cst_9 [1] : vector<64x256xf32> to vector<64xf32>
    %11 = vector.shape_cast %10 : vector<64xf32> to vector<64x1xf32>
    %12 = vector.broadcast %11 : vector<64x1xf32> to vector<64x256xf32>
    %13 = arith.subf %9, %12 : vector<64x256xf32>
    %14 = math.exp %13 : vector<64x256xf32>
    %cst_10 = arith.constant dense<0.000000e+00> : vector<64xf32>
    %15 = vector.multi_reduction <add>, %14, %cst_10 [1] : vector<64x256xf32> to vector<64xf32>
    %16 = vector.shape_cast %15 : vector<64xf32> to vector<64x1xf32>
    %17 = tpu.reciprocal %16 {approx = true} : vector<64x1xf32> -> vector<64x1xf32>
    %18 = vector.broadcast %17 : vector<64x1xf32> to vector<64x256xf32>
    %19 = arith.mulf %14, %18 : vector<64x256xf32>
    %20 = arith.truncf %5 : vector<256x512xf32> to vector<256x512xbf16>
    %21 = arith.truncf %19 : vector<64x256xf32> to vector<64x256xbf16>
    %cst_11 = arith.constant dense<0.000000e+00> : vector<64x512xf32>
    %22 = tpu.matmul %21, %20, %cst_11 {dimension_numbers = #tpu.dot_dimension_numbers<[1], [0], [0], [1], [0, 0, 1, 1], [], []>} : vector<64x256xbf16>, vector<256x512xbf16>, vector<64x512xf32> -> vector<64x512xf32>
    %c0_12 = arith.constant 0 : index
    %c0_13 = arith.constant 0 : index
    %c0_14 = arith.constant 0 : index
    %23 = vector.load %arg7[%c0_12, %c0_13, %c0_14] : memref<1x64x512xf32, #tpu.memory_space<vmem>>, vector<1x64x512xf32>
    %24 = vector.shape_cast %23 : vector<1x64x512xf32> to vector<64x512xf32>
    %25 = vector.shape_cast %22 : vector<64x512xf32> to vector<1x64x512xf32>
    tpu.vector_store %arg7[%c0_12, %c0_13, %c0_14], %25 {strides = array<i32>} : memref<1x64x512xf32, #tpu.memory_space<vmem>>, vector<1x64x512xf32>,
    return
  }
  func.func @transform_0(%arg0: i32, %arg1: i32, %arg2: memref<1xf32, #tpu.memory_space<smem>>, %arg3: memref<1xi32, #tpu.memory_space<smem>>) -> (i32, i32, i32) {
    %c0_i32 = arith.constant 0 : i32
    %c0_i32_0 = arith.constant 0 : i32
    return %arg0, %arg1, %c0_i32 : i32, i32, i32
  }
  func.func @transform_1(%arg0: i32, %arg1: i32, %arg2: memref<1xf32, #tpu.memory_space<smem>>, %arg3: memref<1xi32, #tpu.memory_space<smem>>) -> (i32, i32, i32) {
    %c0_i32 = arith.constant 0 : i32
    %c0_i32_0 = arith.constant 0 : i32
    %c0_i32_1 = arith.constant 0 : i32
    return %arg0, %c0_i32, %c0_i32_0 : i32, i32, i32
  }
  func.func @transform_2(%arg0: i32, %arg1: i32, %arg2: memref<1xf32, #tpu.memory_space<smem>>, %arg3: memref<1xi32, #tpu.memory_space<smem>>) -> (i32, i32, i32) {
    %c0_i32 = arith.constant 0 : i32
    %c0_i32_0 = arith.constant 0 : i32
    %c0_i32_1 = arith.constant 0 : i32
    return %arg0, %c0_i32, %c0_i32_0 : i32, i32, i32
  }
  func.func @transform_3(%arg0: i32, %arg1: i32, %arg2: memref<1xf32, #tpu.memory_space<smem>>, %arg3: memref<1xi32, #tpu.memory_space<smem>>) -> (i32, i32, i32) {
    %c0_i32 = arith.constant 0 : i32
    %c0_i32_0 = arith.constant 0 : i32
    return %arg0, %arg1, %c0_i32 : i32, i32, i32
  }
}

module attributes {stable_mosaic.version = 11 : i64} {
  func.func @attn_dropout_kernel(%arg0: i32, %arg1: i32, %arg2: memref<1xf32, #tpu.memory_space<smem>>, %arg3: memref<1xi32, #tpu.memory_space<smem>>, %arg4: memref<1x64x512xf32, #tpu.memory_space<vmem>>, %arg5: memref<1x256x512xf32, #tpu.memory_space<vmem>>, %arg6: memref<1x256x512xf32, #tpu.memory_space<vmem>>, %arg7: memref<1x64x512xf32, #tpu.memory_space<vmem>>) attributes {dimension_semantics = [#tpu.dimension_semantics<parallel>, #tpu.dimension_semantics<parallel>], iteration_bounds = array<i64: 1, 4>, scalar_prefetch = 2 : i64, scratch_operands = 0 : i64, tpu.core_type = #tpu.core_type<tc>, window_params = [{transform_indices = @transform_0, window_bounds = array<i64: 1, 64, 512>}, {transform_indices = @transform_1, window_bounds = array<i64: 1, 256, 512>}, {transform_indices = @transform_2, window_bounds = array<i64: 1, 256, 512>}, {transform_indices = @transform_3, window_bounds = array<i64: 1, 64, 512>}]} {
    %c0 = arith.constant 0 : index
    %c0_0 = arith.constant 0 : index
    %c0_1 = arith.constant 0 : index
    %0 = vector.load %arg4[%c0, %c0_0, %c0_1] : memref<1x64x512xf32, #tpu.memory_space<vmem>>, vector<1x64x512xf32>
    %1 = vector.shape_cast %0 : vector<1x64x512xf32> to vector<64x512xf32>
    %c0_2 = arith.constant 0 : index
    %c0_3 = arith.constant 0 : index
    %c0_4 = arith.constant 0 : index
    %2 = vector.load %arg5[%c0_2, %c0_3, %c0_4] : memref<1x256x512xf32, #tpu.memory_space<vmem>>, vector<1x256x512xf32>
    %3 = vector.shape_cast %2 : vector<1x256x512xf32> to vector<256x512xf32>
    %c0_5 = arith.constant 0 : index
    %c0_6 = arith.constant 0 : index
    %c0_7 = arith.constant 0 : index
    %4 = vector.load %arg6[%c0_5, %c0_6, %c0_7] : memref<1x256x512xf32, #tpu.memory_space<vmem>>, vector<1x256x512xf32>
    %5 = vector.shape_cast %4 : vector<1x256x512xf32> to vector<256x512xf32>
    %cst = arith.constant dense<0.000000e+00> : vector<64x256xf32>
    %6 = tpu.matmul %1, %3, %cst {dimension_numbers = #tpu.dot_dimension_numbers<[1], [1], [0], [0], [0, 0, 1, 0], [], []>} : vector<64x512xf32>, vector<256x512xf32>, vector<64x256xf32> -> vector<64x256xf32>
    %c0_8 = arith.constant 0 : index
    %7 = memref.load %arg2[%c0_8] : memref<1xf32, #tpu.memory_space<smem>>
    %8 = vector.broadcast %7 : f32 to vector<64x256xf32>
    %9 = arith.mulf %6, %8 : vector<64x256xf32>
    %cst_9 = arith.constant dense<0xFF800000> : vector<64xf32>
    %10 = vector.multi_reduction <maximumf>, %9, %cst_9 [1] : vector<64x256xf32> to vector<64xf32>
    %11 = vector.shape_cast %10 : vector<64xf32> to vector<64x1xf32>
    %12 = vector.broadcast %11 : vector<64x1xf32> to vector<64x256xf32>
    %13 = arith.subf %9, %12 : vector<64x256xf32>
    %14 = math.exp %13 : vector<64x256xf32>
    %cst_10 = arith.constant dense<0.000000e+00> : vector<64xf32>
    %15 = vector.multi_reduction <add>, %14, %cst_10 [1] : vector<64x256xf32> to vector<64xf32>
    %16 = vector.shape_cast %15 : vector<64xf32> to vector<64x1xf32>
    %17 = tpu.reciprocal %16 {approx = true} : vector<64x1xf32> -> vector<64x1xf32>
    %18 = vector.broadcast %17 : vector<64x1xf32> to vector<64x256xf32>
    %19 = arith.mulf %14, %18 : vector<64x256xf32>
    %20 = arith.truncf %5 : vector<256x512xf32> to vector<256x512xbf16>
    %21 = arith.truncf %19 : vector<64x256xf32> to vector<64x256xbf16>
    %cst_11 = arith.constant dense<0.000000e+00> : vector<64x512xf32>
    %22 = tpu.matmul %21, %20, %cst_11 {dimension_numbers = #tpu.dot_dimension_numbers<[1], [0], [0], [1], [0, 0, 1, 1], [], []>} : vector<64x256xbf16>, vector<256x512xbf16>, vector<64x512xf32> -> vector<64x512xf32>
    %c0_12 = arith.constant 0 : index
    %c0_13 = arith.constant 0 : index
    %c0_14 = arith.constant 0 : index
    %23 = vector.load %arg7[%c0_12, %c0_13, %c0_14] : memref<1x64x512xf32, #tpu.memory_space<vmem>>, vector<1x64x512xf32>
    %24 = vector.shape_cast %23 : vector<1x64x512xf32> to vector<64x512xf32>
    %25 = vector.shape_cast %22 : vector<64x512xf32> to vector<1x64x512xf32>
    tpu.vector_store %arg7[%c0_12, %c0_13, %c0_14], %25 {strides = array<i32>} : memref<1x64x512xf32, #tpu.memory_space<vmem>>, vector<1x64x512xf32>,
    return
  }
  func.func @transform_0(%arg0: i32, %arg1: i32, %arg2: memref<1xf32, #tpu.memory_space<smem>>, %arg3: memref<1xi32, #tpu.memory_space<smem>>) -> (i32, i32, i32) {
    %c0_i32 = arith.constant 0 : i32
    %c0_i32_0 = arith.constant 0 : i32
    return %arg0, %arg1, %c0_i32 : i32, i32, i32
  }
  func.func @transform_1(%arg0: i32, %arg1: i32, %arg2: memref<1xf32, #tpu.memory_space<smem>>, %arg3: memref<1xi32, #tpu.memory_space<smem>>) -> (i32, i32, i32) {
    %c0_i32 = arith.constant 0 : i32
    %c0_i32_0 = arith.constant 0 : i32
    %c0_i32_1 = arith.constant 0 : i32
    return %arg0, %c0_i32, %c0_i32_0 : i32, i32, i32
  }
  func.func @transform_2(%arg0: i32, %arg1: i32, %arg2: memref<1xf32, #tpu.memory_space<smem>>, %arg3: memref<1xi32, #tpu.memory_space<smem>>) -> (i32, i32, i32) {
    %c0_i32 = arith.constant 0 : i32
    %c0_i32_0 = arith.constant 0 : i32
    %c0_i32_1 = arith.constant 0 : i32
    return %arg0, %c0_i32, %c0_i32_0 : i32, i32, i32
  }
  func.func @transform_3(%arg0: i32, %arg1: i32, %arg2: memref<1xf32, #tpu.memory_space<smem>>, %arg3: memref<1xi32, #tpu.memory_space<smem>>) -> (i32, i32, i32) {
    %c0_i32 = arith.constant 0 : i32
    %c0_i32_0 = arith.constant 0 : i32
    return %arg0, %arg1, %c0_i32 : i32, i32, i32
  }
}

</mosaic_0001>

<bundles_post_ra>
// kernel: tpu_custom_call.1
= control target key start
LH: loop header
LB: loop body
LE: loop exit
PB: predicated region body
PF: predicated region fallthrough
CT: control target
= control target key end

     0   :  { %s7991_s0 = inlined_call_operand.<no memory space> [shape: f32[1], index: 0, kind: input, shape index: {}]   ;;  %s7992_s1 = inlined_call_operand.<no memory space> [shape: s32[1], index: 1, kind: input, shape index: {}]   ;;  %s7993_s2 = inlined_call_operand.hbm [shape: f32[1,256,512], index: 2, kind: input, shape index: {}]   ;;  %s7994_s3 = inlined_call_operand.hbm [shape: f32[1,256,512], index: 3, kind: input, shape index: {}]   ;;  %s7995_s4 = inlined_call_operand.hbm [shape: f32[1,256,512], index: 4, kind: input, shape index: {}]   ;;  %s7996_s5 = inlined_call_operand.hbm [shape: f32[1,256,512], index: 5, kind: output, shape index: {}]  }
   0x1   :  { %10 = sst [smem:[#allocation3]] %s7991_s0 }
   0x2   :  { %12 = vsyncpa [#allocation6], 0 }
   0x3   :  { %14 = vsyncpa [#allocation6 + $0x1], 0 }
   0x4   :  { %15 = vsyncpa [#allocation9], 0 }
   0x5   :  { %16 = vsyncpa [#allocation7], 0 }
   0x6   :  { %18 = vsyncpa [#allocation7 + $0x1], 0  ;;  %s4865_s1 = smov 0   ;;  %s4867_s20 = smov 0  }
   0x7   :  { %s4869_s21 = smov 0   ;;  %s4871_s22 = smov 0  }
   0x8   :  { %s4873_s23 = smov 0   ;;  %s4875_s24 = smov 0  }
   0x9 LB: > { %s4498_s0 = sadd.s32 4294967295, %s4822_s24   ;;  %s4499_s25 = sadd.s32 4294967294, %s4822_s24   ;;  %s4822_s24 = sphi %s4875_s24, %s24_s24   ;;  %s4818_s23 = sphi %s4873_s23, %s9594_s23   ;;  %s4814_s22 = sphi %s4871_s22, %s9593_s22   ;;  %s4810_s21 = sphi %s4869_s21, %s9592_s21   ;;  %s4806_s20 = sphi %s4867_s20, %s9591_s20   ;;  %s4802_s1 = sphi %s4865_s1, %s9590_s1  }
   0xa   : > { %p58_p0 = scmp.ne.s32.totalorder %s4806_s20, %s4802_s1  ;;  %p4899_p1 = scmp.eq.s32.totalorder %s4498_s0, 0 }
   0xb   : > { %p4903_p2 = scmp.eq.s32.totalorder %s4498_s0, 3  ;;  %p142_p3 = scmp.eq.s32.totalorder %s4499_s25, 3 }
   0xc   : > { %p4909_p4 = por %p4899_p1, %p58_p0  ;;  %p4500_p5 = scmp.ge.s32.totalorder %s4822_s24, 1 }
   0xd   : > { %p4914_p6 = por %p142_p3, %p58_p0  ;;  %p149_p7 = scmp.lt.s32.totalorder %s4822_s24, 5 }
   0xe   : > { %s4824_s6 = smov [#allocation8]   ;;  %s4825_s9 = smov [#allocation10]  }
   0xf   : > { %s8556_s29 = scalar_select %p4914_p6, 1, 0 }
  0x10   : > { %p4919_p8 = pnand %p4500_p5, %p149_p7  ;;  %s164_s7 = sshll.u32 %s4824_s6, 4  ;;  %s165_s7 = int_to_ptr.vmem [resolvable:$true] %s164_s7 }
  0x11   : > { %s180_s10 = sshll.u32 %s4825_s9, 4  ;;  %s4669_s11 = scalar_lea.vmem %s165_s7, 16384  ;;  %s181_s10 = int_to_ptr.vmem [resolvable:$true] %s180_s10 }
  0x12   : > { %p4535_p9 = pneg %p4919_p8  ;;  %p4670_p12 = scmp.ne.s32.totalorder %s165_s7, %s4669_s11 }
  0x13   : > { %p4677_p3 = scmp.lt.s32.totalorder %s165_s7, %s165_s7  ;;  %p4678_p5 = scmp.lt.s32.totalorder %s4669_s11, %s4669_s11 }
  0x14   : > { %p4927_p10 = pnand %p4535_p9, %p4899_p1 }
  0x15   : > { %p4679_p7 = por %p4678_p5, %p4677_p3 }
  0x16   : > { %p4660_p11 = pneg %p4927_p10 }
  0x18   : > { %p4672_p13 = pnand %p4670_p12, %p4660_p11 }
  0x1a   : > { %p4673_p0 = pneg %p4672_p13 }
  0x1c   : > { %p4680_p9 = pnand %p4679_p7, %p4673_p0 }
  0x1e   : > { %4683 = shalt.err (!%p4680_p9)
}
  0x1f   : > { %s7997_s12 = smov 512   ;;  %s4827_s13 = smov 32  }
  0x20   : > { %4538 = dma.hbm_to_vmem [thread:$0]  (!%p4927_p10), %s7994_s3, 16384, %s165_s7, [#allocation9], %s7997_s12, %s7997_s12, %s4827_s13  }
  0x21   : > { %s4695_s16 = scalar_lea.vmem %s181_s10, 16384  ;;  %p4703_p0 = scmp.lt.s32.totalorder %s181_s10, %s181_s10 }
  0x22   : > { %p4696_p12 = scmp.ne.s32.totalorder %s181_s10, %s4695_s16  ;;  %p4704_p5 = scmp.lt.s32.totalorder %s4695_s16, %s4695_s16 }
  0x24   : > { %p4698_p13 = pnand %p4696_p12, %p4660_p11  ;;  %p4705_p7 = por %p4704_p5, %p4703_p0 }
  0x26   : > { %p4699_p3 = pneg %p4698_p13 }
  0x28   : > { %p4706_p9 = pnand %p4705_p7, %p4699_p3 }
  0x2a   : > { %4709 = shalt.err (!%p4706_p9)
}
  0x2b   : > { %4541 = dma.hbm_to_vmem [thread:$0]  (!%p4927_p10), %s7995_s4, 16384, %s181_s10, [#allocation9], %s7997_s12, %s7997_s12, %s4827_s13  }
  0x2c   : > { %s33_s19 = sadd.s32 1, %s4818_s23  ;;  %s45_s0 = sadd.s32 1, %s4810_s21 }
  0x2d   : > { %p34_p11 = scmp.ge.s32.totalorder %s33_s19, 4  ;;  %p52_p12 = scmp.ne.s32.totalorder %s4810_s21, %s4806_s20 }
  0x2e   : > { %p53_p13 = scmp.eq.s32.totalorder %s4822_s24, 0  ;;  %p4552_p3 = scmp.lt.s32.totalorder %s4822_s24, 4 }
  0x2f   : > { %s9596_s19 = smov (%p34_p11, %s33_s19), 0  ;;  %p4965_p5 = por %p4903_p2, %p52_p12 }
  0x30   : > { %p54_p0 = por %p53_p13, %p52_p12  ;;  %s41_s6 = ssub.s32 %s4818_s23, %s9596_s19 }
  0x31   : > { %s194_s7 = sand.u32 1, %s4810_s21   ;;  %p43_p7 = scmp.eq.s32.totalorder %s41_s6, 0 }
  0x32   : > { %s4504_s8 = sshll.u32 %s194_s7, 8  ;;  %s4520_s9 = sshll.u32 %s4818_s23, 12 }
  0x33   : > { %s4974_s10 = scalar_select %p43_p7, %s4810_s21, %s45_s0  }
  0x34   : > { %s207_s15 = scalar_lea.hbm %s7993_s2, %s4520_s9  ;;  %s198_s16 = scalar_lea.vmem [#allocation5], %s4504_s8 }
  0x35   : > { %s208_s17 = sshll.u32 %s198_s16, 4  ;;  %p4981_p10 = pnand %p4552_p3, %p54_p0  ;;  %s209_s17 = int_to_ptr.vmem [resolvable:$true] %s208_s17 }
  0x36   : > { %s195_s18 = scalar_lea.sflag [#allocation6], %s194_s7  ;;  %s4723_s6 = scalar_lea.vmem %s209_s17, 4096 }
  0x37   : > { %p4712_p2 = pneg %p4981_p10  ;;  %p4724_p9 = scmp.ne.s32.totalorder %s209_s17, %s4723_s6 }
  0x38   : > { %s4828_s0 = smov [#allocation5]  }
  0x39   : > { %p4726_p11 = pnand %p4724_p9, %p4712_p2  ;;  %s4728_s12 = sshll.u32 %s4828_s0, 4  ;;  %s4729_s12 = int_to_ptr.vmem [resolvable:$false] %s4728_s12 }
  0x3a   : > { %s4730_s9 = scalar_lea.vmem %s4729_s12, 8192  ;;  %p4731_p13 = scmp.lt.s32.totalorder %s209_s17, %s4729_s12 }
  0x3b   : > { %p4727_p12 = pneg %p4726_p11  ;;  %p4732_p7 = scmp.lt.s32.totalorder %s4730_s9, %s4723_s6 }
  0x3d   : > { %p4733_p6 = por %p4732_p7, %p4731_p13 }
  0x3f   : > { %p4734_p3 = pnand %p4733_p6, %p4727_p12 }
  0x41   : > { %4737 = shalt.err (!%p4734_p3)
}
  0x42   : > { %s8561_s8 = smov 512   ;;  %220 = sbr.rel (%p4919_p8) target bundleno = 1615 (0x64f), region = 32 }
  0x43   : > { %4545 = dma.hbm_to_vmem [thread:$0]  (!%p4981_p10), %s207_s15, 4096, %s209_s17, %s195_s18, %s8561_s8, %s8561_s8, %s4827_s13  }
  0x47   : > { %s4995_s7 = sand.u32 1, %s4806_s20  }
  0x48   : > { %s4509_s12 = sshll.u32 %s4995_s7, 8  ;;  %s223_s11 = scalar_lea.sflag [#allocation6], %s4995_s7 }
  0x49   : > { %s5001_s14 = scalar_lea.vmem [#allocation5], %s4509_s12 }
  0x4a   : > { %4789 = dma.done.wait (%p4909_p4), %s223_s11, 4096  }
  0x4b   : > { %4791 = vsyncadd (%p4909_p4), %s223_s11, 4294963200 }
  0x4c   : > { %4793 = dma.done.wait (%p4899_p1), [#allocation9], 32768  }
  0x4d   : > { %4795 = vsyncadd (%p4899_p1), [#allocation9], 4294934528  ;;  %v352_v0 = vld [vmem:[#allocation8 + $0x1e8] sm:$0xff]  ;;  %v351_v1 = vld [vmem:[#allocation8 + $0x1e0] sm:$0xff]  ;;  %s3983_s26 = sld [smem:[#allocation3]]  ;;  %s7903_s28 = scalar_lea.vmem [#allocation11], %s4509_s12 }
  0x4e   : > { %v348_v2 = vld [vmem:[#allocation8 + $0x1c8] sm:$0xff]  ;;  %v5011_v3 = vand.u32 4294901760, %v352_v0  ;;  %v5013_v4 = vand.u32 4294901760, %v351_v1  ;;  %v347_v6 = vld [vmem:[#allocation8 + $0x1c0] sm:$0xff]  ;;  %s4522_s30 = sshll.u32 %s4814_s22, 12  ;;  %s4388_s13 = sshll.u32 %s7903_s28, 4  ;;  %s7940_s13 = int_to_ptr.vmem [resolvable:$true] %s4388_s13 }
  0x4f   : > { %v5015_v5 = vand.u32 4294901760, %v348_v2  ;;  %v344_v7 = vld [vmem:[#allocation8 + $0x1a8] sm:$0xff]  ;;  %v343_v8 = vld [vmem:[#allocation8 + $0x1a0] sm:$0xff]  ;;  %v5017_v9 = vand.u32 4294901760, %v347_v6  ;;  %s7938_s17 = scalar_lea.hbm %s7996_s5, %s4522_s30  ;;  %s4372_s22 = scalar_lea.sflag [#allocation7], %s4995_s7 }
  0x50   : > { %v5019_v10 = vand.u32 4294901760, %v344_v7  ;;  %v5021_v11 = vand.u32 4294901760, %v343_v8  ;;  %v340_v12 = vld [vmem:[#allocation8 + $0x188] sm:$0xff]  ;;  %v339_v13 = vld [vmem:[#allocation8 + $0x180] sm:$0xff]  ;;  %548 = vmatprep.subr.mxu0 %v5011_v3  ;;  %v5025_v15 = vsub.f32 %v352_v0, %v5011_v3  ;;  %v5028_v16 = vsub.f32 %v351_v1, %v5013_v4  ;;  %s4738_s27 = scalar_lea.vmem %s7940_s13, 4096  ;;  %s4829_s18 = smov [#allocation11]  }
  0x51   : > { %v336_v14 = vld [vmem:[#allocation8 + $0x168] sm:$0xff]  ;;  %v5030_v17 = vand.u32 4294901760, %v340_v12  ;;  %v5033_v18 = vsub.f32 %v348_v2, %v5015_v5  ;;  %v335_v19 = vld [vmem:[#allocation8 + $0x160] sm:$0xff]  ;;  %550 = vmatpush1.xpose.msra.mxu0 %v5013_v4  ;;  %v5036_v20 = vand.u32 4294901760, %v339_v13  ;;  %v5039_v21 = vsub.f32 %v347_v6, %v5017_v9  ;;  %p4739_p1 = scmp.ne.s32.totalorder %s7940_s13, %s4738_s27  ;;  %s4742_s6 = sshll.u32 %s4829_s18, 4  ;;  %s4743_s6 = int_to_ptr.vmem [resolvable:$false] %s4742_s6 }
  0x52   : > { %8562 = vst [vmem:[#allocation15_spill] sm:$0xff] %v5025_v15  ;;  %8563 = vst [vmem:[#allocation16_spill] sm:$0xff] %v5028_v16  ;;  %v5042_v22 = vsub.f32 %v344_v7, %v5019_v10  ;;  %552 = vmatprep.subr.mxu0 %v5015_v5  ;;  %v8014_v23 = vand.u32 4294901760, %v5025_v15  ;;  %v8013_v24 = vand.u32 4294901760, %v5028_v16  ;;  %v5048_v26 = vand.u32 4294901760, %v336_v14  ;;  %v332_v27 = vld [vmem:[#allocation8 + $0x148] sm:$0xff]  ;;  %p4745_p8 = scmp.lt.s32.totalorder %s7940_s13, %s4743_s6 }
  0x53   : > { %8564 = vst [vmem:[#allocation17_spill] sm:$0xff] %v5033_v18  ;;  %v8012_v25 = vand.u32 4294901760, %v5033_v18  ;;  %v8010_v28 = vand.u32 4294901760, %v5039_v21  ;;  %v5052_v30 = vand.u32 4294901760, %v335_v19  ;;  %v5055_v31 = vsub.f32 %v343_v8, %v5021_v11  ;;  %v331_v40 = vld [vmem:[#allocation8 + $0x140] sm:$0xff]  ;;  %v328_v46 = vld [vmem:[#allocation8 + $0x128] sm:$0xff]  ;;  %p4740_p4 = pnand %p4739_p1, %p4965_p5 }
  0x54   : > { %v8009_v29 = vand.u32 4294901760, %v5042_v22  ;;  %v807_v32 = vsub.f32 %v5025_v15, %v8014_v23  ;;  %v813_v33 = vsub.f32 %v5028_v16, %v8013_v24  ;;  %v5067_v35 = vsub.f32 %v340_v12, %v5030_v17  ;;  %v327_v53 = vld [vmem:[#allocation8 + $0x120] sm:$0xff]  ;;  %v324_v58 = vld [vmem:[#allocation8 + $0x108] sm:$0xff]  ;;  %s4744_s0 = scalar_lea.vmem %s4743_s6, 8192 }
  0x55   : > { %v819_v34 = vsub.f32 %v5033_v18, %v8012_v25  ;;  %554 = vmatpush1.xpose.msra.mxu0 %v5017_v9  ;;  %v825_v36 = vsub.f32 %v5039_v21, %v8010_v28  ;;  %v8007_v38 = vand.u32 4294901760, %v5055_v31  ;;  %v5077_v39 = vand.u32 4294901760, %v332_v27  ;;  %v323_v2 = vld [vmem:[#allocation8 + $0x100] sm:$0xff]  ;;  %v320_v12 = vld [vmem:[#allocation8 + $0xe8] sm:$0xff]  ;;  %p4741_p6 = pneg %p4740_p4  ;;  %p4746_p0 = scmp.lt.s32.totalorder %s4744_s0, %s4738_s27 }
  0x56   : > { %v831_v37 = vsub.f32 %v5042_v22, %v8009_v29  ;;  %556 = vmatprep.subr.mxu0 %v5019_v10  ;;  %v808_v41 = vand.u32 4294901760, %v807_v32  ;;  %v814_v42 = vand.u32 4294901760, %v813_v33  ;;  %v8006_v44 = vand.u32 4294901760, %v5067_v35 }
  0x57   : > { %v820_v43 = vand.u32 4294901760, %v819_v34  ;;  %v5082_v45 = vsub.f32 %v339_v13, %v5036_v20  ;;  %v826_v47 = vand.u32 4294901760, %v825_v36  ;;  %v5084_v48 = vand.u32 4294901760, %v331_v40  ;;  %v319_v34 = vld [vmem:[#allocation8 + $0xe0] sm:$0xff]  ;;  %p4747_p10 = por %p4746_p0, %p4745_p8 }
  0x58   : > { %809 = vmatprep.subr.mxu1 %v808_v41  ;;  %v5087_v49 = vsub.f32 %v336_v14, %v5048_v26  ;;  %v832_v50 = vand.u32 4294901760, %v831_v37  ;;  %v837_v51 = vsub.f32 %v5055_v31, %v8007_v38  ;;  %v5095_v54 = vsub.f32 %v335_v19, %v5052_v30 }
  0x59   : > { %558 = vmatpush1.xpose.msra.mxu0 %v5021_v11  ;;  %815 = vmatpush1.xpose.msra.mxu1 %v814_v42  ;;  %v8004_v52 = vand.u32 4294901760, %v5082_v45  ;;  %v843_v55 = vsub.f32 %v5067_v35, %v8006_v44  ;;  %v5101_v56 = vand.u32 4294901760, %v328_v46  ;;  %v5105_v59 = vsub.f32 %v332_v27, %v5077_v39  ;;  %v316_v42 = vld [vmem:[#allocation8 + $0xc8] sm:$0xff]  ;;  %v307_v44 = vld [vmem:[#allocation8 + $0x80] sm:$0xff]  ;;  %p4748_p2 = pnand %p4747_p10, %p4741_p6 }
  0x5a   : > { %560 = vmatprep.subr.mxu0 %v5030_v17  ;;  %821 = vmatprep.subr.mxu1 %v820_v43  ;;  %v8003_v57 = vand.u32 4294901760, %v5087_v49  ;;  %v5107_v60 = vand.u32 4294901760, %v327_v53  ;;  %v5110_v61 = vsub.f32 %v331_v40, %v5084_v48  ;;  %v838_v62 = vand.u32 4294901760, %v837_v51 }
  0x5b   : > { %v849_v63 = vsub.f32 %v5082_v45, %v8004_v52  ;;  %v8001_v0 = vand.u32 4294901760, %v5095_v54  ;;  %v5117_v1 = vand.u32 4294901760, %v324_v58  ;;  %v844_v6 = vand.u32 4294901760, %v843_v55  ;;  %v315_v55 = vld [vmem:[#allocation8 + $0xc0] sm:$0xff] }
  0x5c   : > { %8565 = vst [vmem:[#allocation18_spill] sm:$0xff] %v5107_v60  ;;  %v855_v7 = vsub.f32 %v5087_v49, %v8003_v57  ;;  %v8000_v8 = vand.u32 4294901760, %v5105_v59  ;;  %v5125_v13 = vsub.f32 %v328_v46, %v5101_v56  ;;  %v5127_v14 = vand.u32 4294901760, %v323_v2 }
  0x5d   : > { %562 = vmatpush1.xpose.msra.mxu0 %v5036_v20  ;;  %827 = vmatpush1.xpose.msra.mxu1 %v826_v47  ;;  %8566 = vst [vmem:[#allocation19_spill] sm:$0xff] %v5117_v1  ;;  %v7998_v19 = vand.u32 4294901760, %v5110_v61  ;;  %v850_v27 = vand.u32 4294901760, %v849_v63  ;;  %v861_v32 = vsub.f32 %v5095_v54, %v8001_v0  ;;  %v5134_v33 = vand.u32 4294901760, %v320_v12  ;;  %v308_v0 = vld [vmem:[#allocation8 + $0x88] sm:$0xff] }
  0x5e   : > { %564 = vmatprep.subr.mxu0 %v5048_v26  ;;  %833 = vmatprep.subr.mxu1 %v832_v50  ;;  %8567 = vst [vmem:[#allocation20_spill] sm:$0xff] %v5127_v14  ;;  %v5137_v36 = vsub.f32 %v327_v53, %v5107_v60  ;;  %v856_v37 = vand.u32 4294901760, %v855_v7  ;;  %v867_v40 = vsub.f32 %v5105_v59, %v8000_v8  ;;  %v7999_v41 = vand.u32 4294901760, %v5125_v13  ;;  %v312_v7 = vld [vmem:[#allocation8 + $0xa8] sm:$0xff] }
  0x5f   : > { %8568 = vst [vmem:[#allocation21_spill] sm:$0xff] %v5134_v33  ;;  %v5145_v43 = vsub.f32 %v324_v58, %v5117_v1  ;;  %v873_v46 = vsub.f32 %v5110_v61, %v7998_v19  ;;  %v5150_v47 = vand.u32 4294901760, %v319_v34  ;;  %v862_v50 = vand.u32 4294901760, %v861_v32 }
  0x60   : > { %v8002_v51 = vand.u32 4294901760, %v5137_v36  ;;  %v5154_v53 = vand.u32 4294901760, %v316_v42  ;;  %v868_v58 = vand.u32 4294901760, %v867_v40  ;;  %v879_v63 = vsub.f32 %v5125_v13, %v7999_v41  ;;  %v311_v41 = vld [vmem:[#allocation8 + $0xa0] sm:$0xff] }
  0x61   : > { %566 = vmatpush1.xpose.msra.mxu0 %v5052_v30  ;;  %839 = vmatpush1.xpose.msra.mxu1 %v838_v62  ;;  %8569 = vst [vmem:[#allocation22_spill] sm:$0xff] %v5150_v47  ;;  %v5157_v62 = vsub.f32 %v323_v2, %v5127_v14  ;;  %v874_v32 = vand.u32 4294901760, %v873_v46  ;;  %v5167_v19 = vand.u32 4294901760, %v315_v55  ;;  %v5174_v40 = vand.u32 4294901760, %v312_v7 }
  0x62   : > { %568 = vmatprep.subr.mxu0 %v5077_v39  ;;  %845 = vmatprep.subr.mxu1 %v844_v6  ;;  %8570 = vst [vmem:[#allocation23_spill] sm:$0xff] %v5154_v53  ;;  %v8005_v6 = vand.u32 4294901760, %v5145_v43  ;;  %v885_v2 = vsub.f32 %v5137_v36, %v8002_v51  ;;  %v5177_v8 = vsub.f32 %v319_v34, %v5150_v47  ;;  %v5187_v57 = vand.u32 4294901760, %v311_v41 }
  0x63   : > { %8571 = vst [vmem:[#allocation24_spill] sm:$0xff] %v5167_v19  ;;  %8572 = vst [vmem:[#allocation25_spill] sm:$0xff] %v5174_v40  ;;  %v5185_v51 = vsub.f32 %v316_v42, %v5154_v53  ;;  %v5190_v52 = vsub.f32 %v315_v55, %v5167_v19  ;;  %v5205_v38 = vsub.f32 %v312_v7, %v5174_v40 }
  0x64   : > { %8573 = vst [vmem:[#allocation26_spill] sm:$0xff] %v5177_v8  ;;  %v891_v46 = vsub.f32 %v5145_v43, %v8005_v6  ;;  %8575 = vst [vmem:[#allocation28_spill] sm:$0xff] %v5187_v57  ;;  %v886_v34 = vand.u32 4294901760, %v885_v2  ;;  %v5197_v6 = vand.u32 4294901760, %v308_v0  ;;  %v304_v2 = vld [vmem:[#allocation8 + $0x68] sm:$0xff]  ;;  %v5217_v25 = vsub.f32 %v311_v41, %v5187_v57 }
  0x65   : > { %570 = vmatpush1.xpose.msra.mxu0 %v5084_v48  ;;  %851 = vmatpush1.xpose.msra.mxu1 %v850_v27  ;;  %v5165_v27 = vsub.f32 %v320_v12, %v5134_v33  ;;  %v880_v12 = vand.u32 4294901760, %v879_v63  ;;  %8574 = vst [vmem:[#allocation27_spill] sm:$0xff] %v5185_v51  ;;  %8576 = vst [vmem:[#allocation29_spill] sm:$0xff] %v5190_v52  ;;  %v8015_v63 = vand.u32 4294901760, %v5177_v8  ;;  %v8019_v29 = vand.u32 4294901760, %v5190_v52 }
  0x66   : > { %572 = vmatprep.subr.mxu0 %v5101_v56  ;;  %857 = vmatprep.subr.mxu1 %v856_v37  ;;  %v8008_v37 = vand.u32 4294901760, %v5157_v62  ;;  %8577 = vst [vmem:[#allocation30_spill] sm:$0xff] %v5197_v6  ;;  %v892_v42 = vand.u32 4294901760, %v891_v46  ;;  %8578 = vst [vmem:[#allocation31_spill] sm:$0xff] %v5205_v38  ;;  %v5214_v46 = vand.u32 4294901760, %v304_v2  ;;  %v5225_v23 = vsub.f32 %v308_v0, %v5197_v6 }
  0x67   : > { %8581 = vst [vmem:[#allocation34_spill] sm:$0xff] %v5217_v25 }
  0x68   : > { %8580 = vst [vmem:[#allocation33_spill] sm:$0xff] %v5214_v46  ;;  %8582 = vst [vmem:[#allocation35_spill] sm:$0xff] %v5225_v23 }
  0x69   : > { %574 = vmatpush1.xpose.msra.mxu0 %v5107_v60  ;;  %863 = vmatpush1.xpose.msra.mxu1 %v862_v50  ;;  %v8011_v50 = vand.u32 4294901760, %v5165_v27 }
  0x6a   : > { %576 = vmatprep.subr.mxu0 %v5117_v1  ;;  %869 = vmatprep.subr.mxu1 %v868_v58  ;;  %v897_v58 = vsub.f32 %v5157_v62, %v8008_v37  ;;  %v5207_v37 = vand.u32 4294901760, %v307_v44 }
  0x6b   : > { %v903_v55 = vsub.f32 %v5165_v27, %v8011_v50  ;;  %v303_v50 = vld [vmem:[#allocation8 + $0x60] sm:$0xff] }
  0x6c   : > { %8579 = vst [vmem:[#allocation32_spill] sm:$0xff] %v5207_v37  ;;  %v898_v28 = vand.u32 4294901760, %v897_v58  ;;  %v300_v58 = vld [vmem:[#allocation8 + $0x48] sm:$0xff]  ;;  %v5230_v41 = vand.u32 4294901760, %v303_v50 }
  0x6d   : > { %578 = vmatpush1.xpose.msra.mxu0 %v5127_v14  ;;  %875 = vmatpush1.xpose.msra.mxu1 %v874_v32  ;;  %v8018_v32 = vand.u32 4294901760, %v5185_v51  ;;  %v904_v7 = vand.u32 4294901760, %v903_v55 }
  0x6e   : > { %580 = vmatprep.subr.mxu0 %v5134_v33  ;;  %881 = vmatprep.subr.mxu1 %v880_v12  ;;  %v909_v12 = vsub.f32 %v5177_v8, %v8015_v63  ;;  %v921_v63 = vsub.f32 %v5190_v52, %v8019_v29  ;;  %8583 = vst [vmem:[#allocation36_spill] sm:$0xff] %v5230_v41  ;;  %v8586_v29 = vand.u32 4294901760, %v5205_v38 }
  0x6f   : > { %v915_v24 = vsub.f32 %v5185_v51, %v8018_v32  ;;  %v299_v32 = vld [vmem:[#allocation8 + $0x40] sm:$0xff] }
  0x70   : > { %v922_v55 = vand.u32 4294901760, %v921_v63  ;;  %v5247_v33 = vand.u32 4294901760, %v299_v32 }
  0x71   : > { %582 = vmatpush1.xpose.msra.mxu0 %v5150_v47  ;;  %887 = vmatpush1.xpose.msra.mxu1 %v886_v34  ;;  %v5237_v34 = vsub.f32 %v307_v44, %v5207_v37  ;;  %v916_v0 = vand.u32 4294901760, %v915_v24  ;;  %v927_v47 = vsub.f32 %v5205_v38, %v8586_v29  ;;  %v8589_v44 = vand.u32 4294901760, %v5217_v25  ;;  %v295_v29 = vld [vmem:[#allocation8 + $0x20] sm:$0xff]  ;;  %v292_v38 = vld [vmem:[#allocation8 + $0x8] sm:$0xff] }
  0x72   : > { %584 = vmatprep.subr.mxu0 %v5154_v53  ;;  %893 = vmatprep.subr.mxu1 %v892_v42  ;;  %v910_v42 = vand.u32 4294901760, %v909_v12  ;;  %v5234_v53 = vand.u32 4294901760, %v300_v58  ;;  %v5245_v12 = vsub.f32 %v304_v2, %v5214_v46  ;;  %8588 = vst [vmem:[#allocation40_spill] sm:$0xff] %v5247_v33  ;;  %v8592_v2 = vand.u32 4294901760, %v5225_v23 }
  0x73   : > { %8585 = vst [vmem:[#allocation38_spill] sm:$0xff] %v5237_v34  ;;  %v933_v24 = vsub.f32 %v5217_v25, %v8589_v44  ;;  %v928_v63 = vand.u32 4294901760, %v927_v47  ;;  %v5270_v25 = vsub.f32 %v299_v32, %v5247_v33  ;;  %v8596_v47 = vand.u32 4294901760, %v5237_v34 }
  0x74   : > { %8584 = vst [vmem:[#allocation37_spill] sm:$0xff] %v5234_v53  ;;  %8587 = vst [vmem:[#allocation39_spill] sm:$0xff] %v5245_v12  ;;  %v5265_v44 = vsub.f32 %v300_v58, %v5234_v53  ;;  %v8598_v32 = vand.u32 4294901760, %v5245_v12 }
  0x75   : > { %586 = vmatpush1.xpose.msra.mxu0 %v5167_v19  ;;  %899 = vmatpush1.xpose.msra.mxu1 %v898_v28  ;;  %v296_v28 = vld [vmem:[#allocation8 + $0x28] sm:$0xff]  ;;  %v5257_v19 = vsub.f32 %v303_v50, %v5230_v41  ;;  %8595 = vst [vmem:[#allocation45_spill] sm:$0xff] %v5270_v25  ;;  %v934_v50 = vand.u32 4294901760, %v933_v24 }
  0x76   : > { %588 = vmatprep.subr.mxu0 %v5174_v40  ;;  %905 = vmatprep.subr.mxu1 %v904_v7  ;;  %v5254_v40 = vand.u32 4294901760, %v296_v28  ;;  %8593 = vst [vmem:[#allocation43_spill] sm:$0xff] %v5265_v44  ;;  %v5267_v7 = vand.u32 4294901760, %v295_v29  ;;  %v416_v24 = vld [vmem:[#allocation8 + $0x3e8] sm:$0xff] }
  0x77   : > { %8591 = vst [vmem:[#allocation42_spill] sm:$0xff] %v5257_v19 }
  0x78   : > { %8590 = vst [vmem:[#allocation41_spill] sm:$0xff] %v5254_v40  ;;  %8594 = vst [vmem:[#allocation44_spill] sm:$0xff] %v5267_v7 }
  0x79   : > { %590 = vmatpush1.xpose.msra.mxu0 %v5187_v57  ;;  %911 = vmatpush1.xpose.msra.mxu1 %v910_v42  ;;  %v939_v42 = vsub.f32 %v5225_v23, %v8592_v2  ;;  %v5277_v57 = vand.u32 4294901760, %v292_v38  ;;  %v951_v23 = vsub.f32 %v5245_v12, %v8598_v32  ;;  %v415_v32 = vld [vmem:[#allocation8 + $0x3e0] sm:$0xff]  ;;  %v8604_v2 = vand.u32 4294901760, %v5265_v44 }
  0x7a   : > { %592 = vmatprep.subr.mxu0 %v5197_v6  ;;  %917 = vmatprep.subr.mxu1 %v916_v0  ;;  %v945_v0 = vsub.f32 %v5237_v34, %v8596_v47  ;;  %v291_v6 = vld [vmem:[#allocation8] sm:$0xff]  ;;  %v5294_v34 = vand.u32 4294901760, %v416_v24 }
  0x7b   : > { %8597 = vst [vmem:[#allocation46_spill] sm:$0xff] %v5277_v57  ;;  %v940_v58 = vand.u32 4294901760, %v939_v42  ;;  %v5287_v47 = vand.u32 4294901760, %v291_v6  ;;  %v5305_v12 = vsub.f32 %v292_v38, %v5277_v57 }
  0x7c   : > { %8602 = vst [vmem:[#allocation49_spill] sm:$0xff] %v5294_v34 }
  0x7d   : > { %594 = vmatpush1.xpose.msra.mxu0 %v5207_v37  ;;  %923 = vmatpush1.xpose.msra.mxu1 %v922_v55  ;;  %v5285_v37 = vsub.f32 %v296_v28, %v5254_v40  ;;  %8600 = vst [vmem:[#allocation48_spill] sm:$0xff] %v5287_v47  ;;  %v5297_v55 = vsub.f32 %v295_v29, %v5267_v7  ;;  %v952_v28 = vand.u32 4294901760, %v951_v23  ;;  %8605 = vst [vmem:[#allocation51_spill] sm:$0xff] %v5305_v12 }
  0x7e   : > { %596 = vmatprep.subr.mxu0 %v5214_v46  ;;  %929 = vmatprep.subr.mxu1 %v928_v63  ;;  %v946_v46 = vand.u32 4294901760, %v945_v0  ;;  %v8601_v63 = vand.u32 4294901760, %v5257_v19  ;;  %v412_v0 = vld [vmem:[#allocation8 + $0x3c8] sm:$0xff]  ;;  %v5310_v29 = vand.u32 4294901760, %v415_v32 }
  0x7f   : > { %8599 = vst [vmem:[#allocation47_spill] sm:$0xff] %v5285_v37  ;;  %8603 = vst [vmem:[#allocation50_spill] sm:$0xff] %v5297_v55 }
  0x80   : > { %v957_v42 = vsub.f32 %v5257_v19, %v8601_v63  ;;  %v8606_v63 = vand.u32 4294901760, %v5270_v25  ;;  %8607 = vst [vmem:[#allocation52_spill] sm:$0xff] %v5310_v29 }
  0x81   : > { %598 = vmatpush1.xpose.msra.mxu0 %v5230_v41  ;;  %935 = vmatpush1.xpose.msra.mxu1 %v934_v50  ;;  %v963_v41 = vsub.f32 %v5265_v44, %v8604_v2  ;;  %v411_v2 = vld [vmem:[#allocation8 + $0x3c0] sm:$0xff]  ;;  %v5317_v50 = vsub.f32 %v291_v6, %v5287_v47  ;;  %v8613_v6 = vand.u32 4294901760, %v5297_v55 }
  0x82   : > { %600 = vmatprep.subr.mxu0 %v5234_v53  ;;  %941 = vmatprep.subr.mxu1 %v940_v58  ;;  %v969_v19 = vsub.f32 %v5270_v25, %v8606_v63  ;;  %v958_v23 = vand.u32 4294901760, %v957_v42  ;;  %v5314_v53 = vand.u32 4294901760, %v412_v0  ;;  %v8610_v63 = vand.u32 4294901760, %v5285_v37 }
  0x83   : > { %8609 = vst [vmem:[#allocation54_spill] sm:$0xff] %v5317_v50  ;;  %v964_v38 = vand.u32 4294901760, %v963_v41  ;;  %v5325_v42 = vsub.f32 %v416_v24, %v5294_v34  ;;  %v5327_v44 = vand.u32 4294901760, %v411_v2  ;;  %v981_v41 = vsub.f32 %v5297_v55, %v8613_v6 }
  0x84   : > { %8608 = vst [vmem:[#allocation53_spill] sm:$0xff] %v5314_v53  ;;  %v975_v25 = vsub.f32 %v5285_v37, %v8610_v63  ;;  %v970_v58 = vand.u32 4294901760, %v969_v19  ;;  %v407_v63 = vld [vmem:[#allocation8 + $0x3a0] sm:$0xff]  ;;  %v8616_v24 = vand.u32 4294901760, %v5305_v12  ;;  %v404_v37 = vld [vmem:[#allocation8 + $0x388] sm:$0xff]  ;;  %v5345_v6 = vsub.f32 %v412_v0, %v5314_v53 }
  0x85   : > { %602 = vmatpush1.xpose.msra.mxu0 %v5247_v33  ;;  %947 = vmatpush1.xpose.msra.mxu1 %v946_v46  ;;  %v408_v46 = vld [vmem:[#allocation8 + $0x3a8] sm:$0xff]  ;;  %8611 = vst [vmem:[#allocation55_spill] sm:$0xff] %v5325_v42  ;;  %8612 = vst [vmem:[#allocation56_spill] sm:$0xff] %v5327_v44  ;;  %v5337_v33 = vsub.f32 %v415_v32, %v5310_v29  ;;  %v5350_v55 = vsub.f32 %v411_v2, %v5327_v44  ;;  %v982_v32 = vand.u32 4294901760, %v981_v41 }
  0x86   : > { %604 = vmatprep.subr.mxu0 %v5254_v40  ;;  %953 = vmatprep.subr.mxu1 %v952_v28  ;;  %v5334_v40 = vand.u32 4294901760, %v408_v46  ;;  %v976_v19 = vand.u32 4294901760, %v975_v25  ;;  %8617 = vst [vmem:[#allocation59_spill] sm:$0xff] %v5345_v6  ;;  %v5347_v28 = vand.u32 4294901760, %v407_v63  ;;  %v8620_v25 = vand.u32 4294901760, %v5317_v50  ;;  %v400_v41 = vld [vmem:[#allocation8 + $0x368] sm:$0xff] }
  0x87   : > { %8615 = vst [vmem:[#allocation58_spill] sm:$0xff] %v5337_v33  ;;  %8619 = vst [vmem:[#allocation61_spill] sm:$0xff] %v5350_v55 }
  0x88   : > { %8614 = vst [vmem:[#allocation57_spill] sm:$0xff] %v5334_v40  ;;  %8618 = vst [vmem:[#allocation60_spill] sm:$0xff] %v5347_v28 }
  0x89   : > { %606 = vmatpush1.xpose.msra.mxu0 %v5267_v7  ;;  %959 = vmatpush1.xpose.msra.mxu1 %v958_v23  ;;  %v987_v23 = vsub.f32 %v5305_v12, %v8616_v24  ;;  %v5357_v7 = vand.u32 4294901760, %v404_v37  ;;  %v5365_v12 = vsub.f32 %v408_v46, %v5334_v40  ;;  %v5369_v24 = vsub.f32 %v407_v63, %v5347_v28 }
  0x8a   : > { %608 = vmatprep.subr.mxu0 %v5277_v57  ;;  %965 = vmatprep.subr.mxu1 %v964_v38  ;;  %v993_v38 = vsub.f32 %v5317_v50, %v8620_v25  ;;  %v8622_v57 = vand.u32 4294901760, %v5325_v42  ;;  %v8628_v63 = vand.u32 4294901760, %v5345_v6 }
  0x8b   : > { %8621 = vst [vmem:[#allocation62_spill] sm:$0xff] %v5357_v7  ;;  %v988_v0 = vand.u32 4294901760, %v987_v23  ;;  %8623 = vst [vmem:[#allocation63_spill] sm:$0xff] %v5365_v12  ;;  %v8625_v23 = vand.u32 4294901760, %v5337_v33 }
  0x8c   : > { %v999_v2 = vsub.f32 %v5325_v42, %v8622_v57  ;;  %8624 = vst [vmem:[#allocation64_spill] sm:$0xff] %v5369_v24  ;;  %v1011_v25 = vsub.f32 %v5345_v6, %v8628_v63  ;;  %v5385_v42 = vsub.f32 %v404_v37, %v5357_v7 }
  0x8d   : > { %610 = vmatpush1.xpose.msra.mxu0 %v5287_v47  ;;  %971 = vmatpush1.xpose.msra.mxu1 %v970_v58  ;;  %v403_v58 = vld [vmem:[#allocation8 + $0x380] sm:$0xff]  ;;  %v1005_v57 = vsub.f32 %v5337_v33, %v8625_v23  ;;  %v8630_v23 = vand.u32 4294901760, %v5350_v55 }
  0x8e   : > { %612 = vmatprep.subr.mxu0 %v5294_v34  ;;  %977 = vmatprep.subr.mxu1 %v976_v19  ;;  %v994_v19 = vand.u32 4294901760, %v993_v38  ;;  %v5375_v47 = vand.u32 4294901760, %v403_v58  ;;  %v5377_v34 = vand.u32 4294901760, %v400_v41  ;;  %v1000_v46 = vand.u32 4294901760, %v999_v2  ;;  %v396_v38 = vld [vmem:[#allocation8 + $0x348] sm:$0xff]  ;;  %8629 = vst [vmem:[#allocation67_spill] sm:$0xff] %v5385_v42 }
  0x8f   : > { %v1017_v33 = vsub.f32 %v5350_v55, %v8630_v23  ;;  %v5395_v63 = vand.u32 4294901760, %v396_v38  ;;  %v1012_v37 = vand.u32 4294901760, %v1011_v25  ;;  %v8634_v23 = vand.u32 4294901760, %v5365_v12 }
  0x90   : > { %8626 = vst [vmem:[#allocation65_spill] sm:$0xff] %v5375_v47  ;;  %8627 = vst [vmem:[#allocation66_spill] sm:$0xff] %v5377_v34  ;;  %v5398_v6 = vsub.f32 %v403_v58, %v5375_v47  ;;  %v8637_v58 = vand.u32 4294901760, %v5369_v24 }
  0x91   : > { %614 = vmatpush2.xpose.msra.mxu0 %v5310_v29  ;;  %983 = vmatpush1.xpose.msra.mxu1 %v982_v32  ;;  %v399_v32 = vld [vmem:[#allocation8 + $0x360] sm:$0xff]  ;;  %8632 = vst [vmem:[#allocation69_spill] sm:$0xff] %v5395_v63  ;;  %v1023_v50 = vsub.f32 %v5365_v12, %v8634_v23  ;;  %v1018_v14 = vand.u32 4294901760, %v1017_v33 }
  0x92   : > { %616 = vmatprep.subr.mxu0 %v5314_v53  ;;  %989 = vmatprep.subr.mxu1 %v988_v0  ;;  %v260_v53 = vld [vmem:[%s5001_s14 + $0x8] sm:$0xff]  ;;  %v1006_v0 = vand.u32 4294901760, %v1005_v57  ;;  %v5393_v2 = vand.u32 4294901760, %v399_v32  ;;  %v395_v29 = vld [vmem:[#allocation8 + $0x340] sm:$0xff]  ;;  %8633 = vst [vmem:[#allocation70_spill] sm:$0xff] %v5398_v6  ;;  %v5406_v57 = vsub.f32 %v400_v41, %v5377_v34  ;;  %v1029_v52 = vsub.f32 %v5369_v24, %v8637_v58 }
  0x93   : > { %v5408_v55 = vand.u32 4294901760, %v260_v53  ;;  %v391_v23 = vld [vmem:[#allocation8 + $0x320] sm:$0xff]  ;;  %v1024_v58 = vand.u32 4294901760, %v1023_v50  ;;  %v8642_v24 = vand.u32 4294901760, %v5385_v42  ;;  %v8646_v50 = vand.u32 4294901760, %v5398_v6 }
  0x94   : > { %8631 = vst [vmem:[#allocation68_spill] sm:$0xff] %v5393_v2  ;;  %8635 = vst [vmem:[#allocation71_spill] sm:$0xff] %v5406_v57  ;;  %v5420_v41 = vsub.f32 %v399_v32, %v5393_v2  ;;  %v1030_v12 = vand.u32 4294901760, %v1029_v52 }
  0x95   : > { %618 = vmatpush2.xpose.msra.mxu0 %v5327_v44  ;;  %995 = vmatpush1.xpose.msra.mxu1 %v994_v19  ;;  %v392_v19 = vld [vmem:[#allocation8 + $0x328] sm:$0xff]  ;;  %8636 = vst [vmem:[#allocation72_spill] sm:$0xff] %v5408_v55  ;;  %v5423_v33 = vsub.f32 %v260_v53, %v5408_v55  ;;  %v5435_v53 = vand.u32 4294901760, %v391_v23 }
  0x96   : > { %620 = vmatprep.subr.mxu0 %v5334_v40  ;;  %1001 = vmatprep.subr.mxu1 %v1000_v46  ;;  %v5413_v40 = vand.u32 4294901760, %v395_v29  ;;  %v5417_v46 = vand.u32 4294901760, %v392_v19  ;;  %8640 = vst [vmem:[#allocation75_spill] sm:$0xff] %v5420_v41  ;;  %v388_v44 = vld [vmem:[#allocation8 + $0x308] sm:$0xff] }
  0x97   : > { %8641 = vst [vmem:[#allocation76_spill] sm:$0xff] %v5423_v33  ;;  %v8114_v32 = vand.u32 4294901760, %v5423_v33  ;;  %1189 = vmatprep.mubr.f32.mxu1 %v5408_v55  ;;  %8644 = vst [vmem:[#allocation78_spill] sm:$0xff] %v5435_v53  ;;  %v5437_v1 = vand.u32 4294901760, %v388_v44 }
  0x98   : > { %8638 = vst [vmem:[#allocation73_spill] sm:$0xff] %v5413_v40  ;;  %8639 = vst [vmem:[#allocation74_spill] sm:$0xff] %v5417_v46  ;;  %v5445_v25 = vsub.f32 %v395_v29, %v5413_v40 }
  0x99   : > { %622 = vmatpush2.xpose.msra.mxu0 %v5347_v28  ;;  %1007 = vmatpush2.xpose.msra.mxu1 %v1006_v0  ;;  %v1035_v0 = vsub.f32 %v5385_v42, %v8642_v24  ;;  %v5431_v28 = vsub.f32 %v396_v38, %v5395_v63  ;;  %8645 = vst [vmem:[#allocation79_spill] sm:$0xff] %v5437_v1  ;;  %v387_v38 = vld [vmem:[#allocation8 + $0x300] sm:$0xff] }
  0x9a   : > { %624 = vmatprep.subr.mxu0 %v5357_v7  ;;  %1013 = vmatprep.subr.mxu1 %v1012_v37  ;;  %v1041_v24 = vsub.f32 %v5398_v6, %v8646_v50  ;;  %8647 = vst [vmem:[#allocation80_spill] sm:$0xff] %v5445_v25  ;;  %v678_v52 = vsub.f32 %v5423_v33, %v8114_v32  ;;  %v384_v7 = vld [vmem:[#allocation8 + $0x2e8] sm:$0xff]  ;;  %v5458_v6 = vand.u32 4294901760, %v387_v38 }
  0x9b   : > { %8643 = vst [vmem:[#allocation77_spill] sm:$0xff] %v5431_v28  ;;  %v1036_v55 = vand.u32 4294901760, %v1035_v0  ;;  %v5456_v37 = vsub.f32 %v392_v19, %v5417_v46  ;;  %v5461_v42 = vsub.f32 %v391_v23, %v5435_v53  ;;  %v8652_v0 = vand.u32 4294901760, %v5420_v41  ;;  %v383_v19 = vld [vmem:[#allocation8 + $0x2e0] sm:$0xff] }
  0x9c   : > { %v679_v29 = vand.u32 4294901760, %v678_v52  ;;  %8650 = vst [vmem:[#allocation82_spill] sm:$0xff] %v5458_v6  ;;  %v5468_v50 = vand.u32 4294901760, %v384_v7  ;;  %v8654_v23 = vand.u32 4294901760, %v5431_v28 }
  0x9d   : > { %626 = vmatpush2.xpose.msra.mxu0 %v5375_v47  ;;  %1019 = vmatpush2.xpose.msra.mxu1 %v1018_v14  ;;  %v8648_v14 = vand.u32 4294901760, %v5406_v57  ;;  %8649 = vst [vmem:[#allocation81_spill] sm:$0xff] %v5456_v37  ;;  %8651 = vst [vmem:[#allocation83_spill] sm:$0xff] %v5461_v42 }
  0x9e   : > { %628 = vmatprep.subr.mxu0 %v5377_v34  ;;  %1025 = vmatprep.subr.mxu1 %v1024_v58  ;;  %v1042_v58 = vand.u32 4294901760, %v1041_v24  ;;  %8653 = vst [vmem:[#allocation84_spill] sm:$0xff] %v5468_v50  ;;  %v1059_v34 = vsub.f32 %v5431_v28, %v8654_v23  ;;  %v380_v24 = vld [vmem:[#allocation8 + $0x2c8] sm:$0xff]  ;;  %v5488_v28 = vsub.f32 %v387_v38, %v5458_v6 }
  0x9f   : > { %v1047_v47 = vsub.f32 %v5406_v57, %v8648_v14  ;;  %v1053_v14 = vsub.f32 %v5420_v41, %v8652_v0  ;;  %680 = vmatprep.mubr.f32.mxu0 %v679_v29  ;;  %v5478_v0 = vand.u32 4294901760, %v383_v19  ;;  %v5485_v23 = vand.u32 4294901760, %v380_v24  ;;  %v263_v57 = vld [vmem:[%s5001_s14 + $0x20] sm:$0xff] }
  0xa0   : > { %8659 = vst [vmem:[#allocation88_spill] sm:$0xff] %v5488_v28  ;;  %v8660_v29 = vand.u32 4294901760, %v5456_v37 }
  0xa1   : > { %630 = vmatpush2.xpose.msra.mxu0 %v5393_v2  ;;  %1031 = vmatpush2.xpose.msra.mxu1 %v1030_v12  ;;  %v1048_v52 = vand.u32 4294901760, %v1047_v47  ;;  %v5476_v2 = vsub.f32 %v388_v44, %v5437_v1  ;;  %8656 = vst [vmem:[#allocation86_spill] sm:$0xff] %v5478_v0  ;;  %v8657_v47 = vand.u32 4294901760, %v5445_v25  ;;  %8658 = vst [vmem:[#allocation87_spill] sm:$0xff] %v5485_v23  ;;  %v379_v12 = vld [vmem:[#allocation8 + $0x2c0] sm:$0xff]  ;;  %v1060_v44 = vand.u32 4294901760, %v1059_v34 }
  0xa2   : > { %632 = vmatprep.subr.mxu0 %v5395_v63  ;;  %1037 = vmatprep.subr.mxu1 %v1036_v55  ;;  %v1054_v55 = vand.u32 4294901760, %v1053_v14  ;;  %v1071_v32 = vsub.f32 %v5456_v37, %v8660_v29  ;;  %v376_v14 = vld [vmem:[#allocation8 + $0x2a8] sm:$0xff]  ;;  %v5501_v38 = vand.u32 4294901760, %v379_v12  ;;  %v375_v29 = vld [vmem:[#allocation8 + $0x2a0] sm:$0xff] }
  0xa3   : > { %8655 = vst [vmem:[#allocation85_spill] sm:$0xff] %v5476_v2  ;;  %v1065_v63 = vsub.f32 %v5445_v25, %v8657_v47  ;;  %v8662_v47 = vand.u32 4294901760, %v5461_v42  ;;  %v5518_v37 = vand.u32 4294901760, %v375_v29 }
  0xa4   : > { %8663 = vst [vmem:[#allocation90_spill] sm:$0xff] %v5501_v38 }
  0xa5   : > { %634 = vmatpush2.xpose.msra.mxu0 %v5413_v40  ;;  %1043 = vmatpush2.xpose.msra.mxu1 %v1042_v58  ;;  %v5496_v40 = vsub.f32 %v384_v7, %v5468_v50  ;;  %v1077_v25 = vsub.f32 %v5461_v42, %v8662_v47  ;;  %v1066_v34 = vand.u32 4294901760, %v1065_v63  ;;  %v5508_v58 = vsub.f32 %v383_v19, %v5478_v0 }
  0xa6   : > { %636 = vmatprep.subr.mxu0 %v5417_v46  ;;  %1049 = vmatprep.subr.mxu1 %v1048_v52  ;;  %v5505_v46 = vand.u32 4294901760, %v376_v14  ;;  %v1072_v7 = vand.u32 4294901760, %v1071_v32  ;;  %v8666_v47 = vand.u32 4294901760, %v5476_v2  ;;  %v5516_v63 = vsub.f32 %v380_v24, %v5485_v23  ;;  %8668 = vst [vmem:[#allocation94_spill] sm:$0xff] %v5518_v37  ;;  %v368_v24 = vld [vmem:[#allocation8 + $0x268] sm:$0xff] }
  0xa7   : > { %8661 = vst [vmem:[#allocation89_spill] sm:$0xff] %v5496_v40  ;;  %8665 = vst [vmem:[#allocation92_spill] sm:$0xff] %v5508_v58  ;;  %v1078_v52 = vand.u32 4294901760, %v1077_v25  ;;  %v8669_v19 = vand.u32 4294901760, %v5488_v28 }
  0xa8   : > { %8664 = vst [vmem:[#allocation91_spill] sm:$0xff] %v5505_v46  ;;  %v1083_v42 = vsub.f32 %v5476_v2, %v8666_v47  ;;  %8667 = vst [vmem:[#allocation93_spill] sm:$0xff] %v5516_v63  ;;  %v371_v47 = vld [vmem:[#allocation8 + $0x280] sm:$0xff]  ;;  %v5548_v2 = vsub.f32 %v375_v29, %v5518_v37  ;;  %v8678_v41 = vand.u32 4294901760, %v5516_v63 }
  0xa9   : > { %638 = vmatpush2.xpose.msra.mxu0 %v5435_v53  ;;  %1055 = vmatpush2.xpose.msra.mxu1 %v1054_v55  ;;  %v372_v55 = vld [vmem:[#allocation8 + $0x288] sm:$0xff]  ;;  %v1089_v32 = vsub.f32 %v5488_v28, %v8669_v19  ;;  %v5528_v53 = vsub.f32 %v379_v12, %v5501_v38  ;;  %v5536_v19 = vsub.f32 %v376_v14, %v5505_v46  ;;  %v5540_v28 = vand.u32 4294901760, %v368_v24 }
  0xaa   : > { %640 = vmatprep.subr.mxu0 %v5437_v1  ;;  %1061 = vmatprep.subr.mxu1 %v1060_v44  ;;  %v5525_v1 = vand.u32 4294901760, %v372_v55  ;;  %v1084_v25 = vand.u32 4294901760, %v1083_v42  ;;  %v5538_v44 = vand.u32 4294901760, %v371_v47  ;;  %8677 = vst [vmem:[#allocation100_spill] sm:$0xff] %v5548_v2  ;;  %v364_v14 = vld [vmem:[#allocation8 + $0x248] sm:$0xff] }
  0xab   : > { %8671 = vst [vmem:[#allocation96_spill] sm:$0xff] %v5528_v53  ;;  %8673 = vst [vmem:[#allocation97_spill] sm:$0xff] %v5536_v19  ;;  %v1090_v12 = vand.u32 4294901760, %v1089_v32 }
  0xac   : > { %8670 = vst [vmem:[#allocation95_spill] sm:$0xff] %v5525_v1  ;;  %8674 = vst [vmem:[#allocation98_spill] sm:$0xff] %v5538_v44  ;;  %v5568_v32 = vsub.f32 %v371_v47, %v5538_v44 }
  0xad   : > { %642 = vmatpush2.xpose.msra.mxu0 %v5458_v6  ;;  %1067 = vmatpush2.xpose.msra.mxu1 %v1066_v34  ;;  %v8672_v6 = vand.u32 4294901760, %v5496_v40  ;;  %8675 = vst [vmem:[#allocation99_spill] sm:$0xff] %v5540_v28 }
  0xae   : > { %644 = vmatprep.subr.mxu0 %v5468_v50  ;;  %1073 = vmatprep.subr.mxu1 %v1072_v7  ;;  %v8676_v7 = vand.u32 4294901760, %v5508_v58  ;;  %v5560_v50 = vand.u32 4294901760, %v364_v14  ;;  %8683 = vst [vmem:[#allocation104_spill] sm:$0xff] %v5568_v32 }
  0xaf   : > { %v1095_v34 = vsub.f32 %v5496_v40, %v8672_v6  ;;  %v367_v6 = vld [vmem:[#allocation8 + $0x260] sm:$0xff] }
  0xb0   : > { %v1101_v42 = vsub.f32 %v5508_v58, %v8676_v7  ;;  %v5558_v7 = vand.u32 4294901760, %v367_v6  ;;  %8681 = vst [vmem:[#allocation103_spill] sm:$0xff] %v5560_v50  ;;  %v264_v58 = vld [vmem:[%s5001_s14 + $0x28] sm:$0xff] }
  0xb1   : > { %646 = vmatpush2.xpose.msra.mxu0 %v5478_v0  ;;  %1079 = vmatpush2.xpose.msra.mxu1 %v1078_v52  ;;  %v1096_v40 = vand.u32 4294901760, %v1095_v34  ;;  %v1107_v52 = vsub.f32 %v5516_v63, %v8678_v41  ;;  %v5556_v0 = vsub.f32 %v372_v55, %v5525_v1  ;;  %v363_v41 = vld [vmem:[#allocation8 + $0x240] sm:$0xff]  ;;  %v8684_v63 = vand.u32 4294901760, %v5536_v19 }
  0xb2   : > { %648 = vmatprep.subr.mxu0 %v5485_v23  ;;  %1085 = vmatprep.subr.mxu1 %v1084_v25  ;;  %8680 = vst [vmem:[#allocation102_spill] sm:$0xff] %v5558_v7  ;;  %v1102_v29 = vand.u32 4294901760, %v1101_v42  ;;  %v8682_v25 = vand.u32 4294901760, %v5528_v53  ;;  %v5578_v23 = vand.u32 4294901760, %v363_v41  ;;  %v5581_v47 = vsub.f32 %v367_v6, %v5558_v7 }
  0xb3   : > { %8679 = vst [vmem:[#allocation101_spill] sm:$0xff] %v5556_v0  ;;  %v1108_v55 = vand.u32 4294901760, %v1107_v52  ;;  %v8688_v52 = vand.u32 4294901760, %v5548_v2 }
  0xb4   : > { %v1113_v34 = vsub.f32 %v5528_v53, %v8682_v25  ;;  %v360_v25 = vld [vmem:[#allocation8 + $0x228] sm:$0xff]  ;;  %8686 = vst [vmem:[#allocation106_spill] sm:$0xff] %v5578_v23  ;;  %8687 = vst [vmem:[#allocation107_spill] sm:$0xff] %v5581_v47 }
  0xb5   : > { %650 = vmatpush2.xpose.msra.mxu0 %v5501_v38  ;;  %1091 = vmatpush2.xpose.msra.mxu1 %v1090_v12  ;;  %v1119_v12 = vsub.f32 %v5536_v19, %v8684_v63  ;;  %v5576_v38 = vsub.f32 %v368_v24, %v5540_v28  ;;  %v1125_v63 = vsub.f32 %v5548_v2, %v8688_v52  ;;  %v259_v19 = vld [vmem:[%s5001_s14] sm:$0xff]  ;;  %v356_v2 = vld [vmem:[#allocation8 + $0x208] sm:$0xff] }
  0xb6   : > { %652 = vmatprep.subr.mxu0 %v5505_v46  ;;  %1097 = vmatprep.subr.mxu1 %v1096_v40  ;;  %v1114_v40 = vand.u32 4294901760, %v1113_v34  ;;  %v359_v46 = vld [vmem:[#allocation8 + $0x220] sm:$0xff]  ;;  %v5589_v24 = vsub.f32 %v364_v14, %v5560_v50  ;;  %v5596_v34 = vand.u32 4294901760, %v360_v25  ;;  %v5602_v53 = vand.u32 4294901760, %v259_v19 }
  0xb7   : > { %8685 = vst [vmem:[#allocation105_spill] sm:$0xff] %v5576_v38  ;;  %v1120_v6 = vand.u32 4294901760, %v1119_v12  ;;  %v5599_v42 = vand.u32 4294901760, %v359_v46  ;;  %v8694_v12 = vand.u32 4294901760, %v5568_v32  ;;  %v355_v52 = vld [vmem:[#allocation8 + $0x200] sm:$0xff] }
  0xb8   : > { %8689 = vst [vmem:[#allocation108_spill] sm:$0xff] %v5589_v24  ;;  %8691 = vst [vmem:[#allocation109_spill] sm:$0xff] %v5596_v34  ;;  %v5628_v51 = vand.u32 4294901760, %v355_v52 }
  0xb9   : > { %654 = vmatpush2.xpose.msra.mxu0 %v5518_v37  ;;  %1103 = vmatpush2.xpose.msra.mxu1 %v1102_v29  ;;  %v8690_v37 = vand.u32 4294901760, %v5556_v0  ;;  %8692 = vst [vmem:[#allocation110_spill] sm:$0xff] %v5599_v42  ;;  %8693 = vst [vmem:[#allocation111_spill] sm:$0xff] %v5602_v53 }
  0xba   : > { %656 = vmatprep.subr.mxu0 %v5525_v1  ;;  %1109 = vmatprep.subr.mxu1 %v1108_v55  ;;  %v1126_v55 = vand.u32 4294901760, %v1125_v63  ;;  %v5618_v63 = vand.u32 4294901760, %v356_v2  ;;  %v5623_v1 = vand.u32 4294901760, %v264_v58  ;;  %8701 = vst [vmem:[#allocation116_spill] sm:$0xff] %v5628_v51 }
  0xbb   : > { %v1131_v29 = vsub.f32 %v5556_v0, %v8690_v37  ;;  %v1137_v37 = vsub.f32 %v5568_v32, %v8694_v12  ;;  %v5611_v0 = vsub.f32 %v363_v41, %v5578_v23  ;;  %v5621_v12 = vsub.f32 %v360_v25, %v5596_v34 }
  0xbc   : > { %8697 = vst [vmem:[#allocation113_spill] sm:$0xff] %v5618_v63  ;;  %8699 = vst [vmem:[#allocation115_spill] sm:$0xff] %v5623_v1  ;;  %v8700_v41 = vand.u32 4294901760, %v5581_v47 }
  0xbd   : > { %658 = vmatpush2.xpose.msra.mxu0 %v5538_v44  ;;  %1115 = vmatpush2.xpose.msra.mxu1 %v1114_v40  ;;  %8695 = vst [vmem:[#allocation112_spill] sm:$0xff] %v5611_v0  ;;  %v1132_v14 = vand.u32 4294901760, %v1131_v29  ;;  %v8696_v44 = vand.u32 4294901760, %v5576_v38  ;;  %8698 = vst [vmem:[#allocation114_spill] sm:$0xff] %v5621_v12  ;;  %v5633_v29 = vand.u32 4294901760, %v263_v57  ;;  %v1138_v25 = vand.u32 4294901760, %v1137_v37 }
  0xbe   : > { %660 = vmatprep.subr.mxu0 %v5540_v28  ;;  %1121 = vmatprep.subr.mxu1 %v1120_v6  ;;  %v1149_v32 = vsub.f32 %v5581_v47, %v8700_v41  ;;  %v5631_v6 = vsub.f32 %v259_v19, %v5602_v53  ;;  %v8704_v28 = vand.u32 4294901760, %v5589_v24  ;;  %v5642_v47 = vsub.f32 %v359_v46, %v5599_v42  ;;  %v267_v19 = vld [vmem:[%s5001_s14 + $0x40] sm:$0xff] }
  0xbf   : > { %v1143_v40 = vsub.f32 %v5576_v38, %v8696_v44  ;;  %8703 = vst [vmem:[#allocation118_spill] sm:$0xff] %v5633_v29  ;;  %v268_v44 = vld [vmem:[%s5001_s14 + $0x48] sm:$0xff]  ;;  %v271_v41 = vld [vmem:[%s5001_s14 + $0x60] sm:$0xff]  ;;  %v5659_v33 = vsub.f32 %v263_v57, %v5633_v29  ;;  %v8713_v57 = vand.u32 4294901760, %v5621_v12 }
  0xc0   : > { %8702 = vst [vmem:[#allocation117_spill] sm:$0xff] %v5631_v6  ;;  %v1155_v38 = vsub.f32 %v5589_v24, %v8704_v28  ;;  %8705 = vst [vmem:[#allocation119_spill] sm:$0xff] %v5642_v47  ;;  %v5653_v37 = vand.u32 4294901760, %v268_v44  ;;  %v272_v28 = vld [vmem:[%s5001_s14 + $0x68] sm:$0xff]  ;;  %v1150_v24 = vand.u32 4294901760, %v1149_v32  ;;  %v5669_v32 = vsub.f32 %v355_v52, %v5628_v51 }
  0xc1   : > { %662 = vmatpush2.xpose.msra.mxu0 %v5558_v7  ;;  %1127 = vmatpush2.xpose.msra.mxu1 %v1126_v55  ;;  %v1144_v60 = vand.u32 4294901760, %v1143_v40  ;;  %v5648_v7 = vsub.f32 %v356_v2, %v5618_v63  ;;  %v5651_v55 = vsub.f32 %v264_v58, %v5623_v1  ;;  %8709 = vst [vmem:[#allocation123_spill] sm:$0xff] %v5659_v33  ;;  %v8711_v58 = vand.u32 4294901760, %v5611_v0 }
  0xc2   : > { %664 = vmatprep.subr.mxu0 %v5560_v50  ;;  %1133 = vmatprep.subr.mxu1 %v1132_v14  ;;  %8708 = vst [vmem:[#allocation122_spill] sm:$0xff] %v5653_v37  ;;  %v5661_v14 = vand.u32 4294901760, %v267_v19  ;;  %v1156_v2 = vand.u32 4294901760, %v1155_v38  ;;  %8712 = vst [vmem:[#allocation125_spill] sm:$0xff] %v5669_v32  ;;  %v1167_v46 = vsub.f32 %v5621_v12, %v8713_v57  ;;  %v5676_v38 = vand.u32 4294901760, %v272_v28  ;;  %v276_v57 = vld [vmem:[%s5001_s14 + $0x88] sm:$0xff] }
  0xc3   : > { %8706 = vst [vmem:[#allocation120_spill] sm:$0xff] %v5648_v7  ;;  %8707 = vst [vmem:[#allocation121_spill] sm:$0xff] %v5651_v55  ;;  %v1161_v40 = vsub.f32 %v5611_v0, %v8711_v58  ;;  %v5682_v8 = vsub.f32 %v268_v44, %v5653_v37  ;;  %v8717_v52 = vand.u32 4294901760, %v5631_v6  ;;  %v8719_v12 = vand.u32 4294901760, %v5642_v47  ;;  %v275_v0 = vld [vmem:[%s5001_s14 + $0x80] sm:$0xff] }
  0xc4   : > { %8710 = vst [vmem:[#allocation124_spill] sm:$0xff] %v5661_v14  ;;  %8714 = vst [vmem:[#allocation126_spill] sm:$0xff] %v5676_v38  ;;  %v5689_v50 = vsub.f32 %v267_v19, %v5661_v14  ;;  %v8720_v19 = vand.u32 4294901760, %v5648_v7 }
  0xc5   : > { %666 = vmatpush2.xpose.msra.mxu0 %v5578_v23  ;;  %1139 = vmatpush2.xpose.msra.mxu1 %v1138_v25  ;;  %v5678_v23 = vand.u32 4294901760, %v271_v41  ;;  %8716 = vst [vmem:[#allocation128_spill] sm:$0xff] %v5682_v8  ;;  %v1162_v25 = vand.u32 4294901760, %v1161_v40  ;;  %v1173_v58 = vsub.f32 %v5642_v47, %v8719_v12  ;;  %v8722_v12 = vand.u32 4294901760, %v5651_v55 }
  0xc6   : > { %668 = vmatprep.subr.mxu0 %v5596_v34  ;;  %1145 = vmatprep.subr.mxu1 %v1144_v60  ;;  %v684_v60 = vsub.f32 %v5631_v6, %v8717_v52  ;;  %8718 = vst [vmem:[#allocation129_spill] sm:$0xff] %v5689_v50  ;;  %v1168_v52 = vand.u32 4294901760, %v1167_v46  ;;  %v1179_v34 = vsub.f32 %v5648_v7, %v8720_v19  ;;  %v280_v7 = vld [vmem:[%s5001_s14 + $0xa8] sm:$0xff] }
  0xc7   : > { %8715 = vst [vmem:[#allocation127_spill] sm:$0xff] %v5678_v23  ;;  %v5706_v40 = vsub.f32 %v271_v41, %v5678_v23  ;;  %v694_v44 = vsub.f32 %v5651_v55, %v8722_v12  ;;  %v1174_v41 = vand.u32 4294901760, %v1173_v58  ;;  %v8726_v12 = vand.u32 4294901760, %v5669_v32  ;;  %v279_v55 = vld [vmem:[%s5001_s14 + $0xa0] sm:$0xff] }
  0xc8   : > { %v685_v46 = vand.u32 4294901760, %v684_v60  ;;  %v1180_v60 = vand.u32 4294901760, %v1179_v34  ;;  %v5743_v19 = vand.u32 4294901760, %v279_v55 }
  0xc9   : > { %670 = vmatpush2.xpose.msra.mxu0 %v5599_v42  ;;  %1151 = vmatpush2.xpose.msra.mxu1 %v1150_v24  ;;  %v5703_v24 = vsub.f32 %v272_v28, %v5676_v38  ;;  %v5718_v28 = vand.u32 4294901760, %v275_v0  ;;  %v1185_v42 = vsub.f32 %v5669_v32, %v8726_v12  ;;  %v5735_v12 = vand.u32 4294901760, %v280_v7 }
  0xca   : > { %672 = vmatprep.subr.mxu0 %v5618_v63  ;;  %1157 = vmatprep.subr.mxu1 %v1156_v2  ;;  %v5712_v63 = vand.u32 4294901760, %v276_v57  ;;  %v8724_v2 = vand.u32 4294901760, %v5659_v33  ;;  %8730 = vst [vmem:[#allocation134_spill] sm:$0xff] %v5743_v19 }
  0xcb   : > { %8721 = vst [vmem:[#allocation130_spill] sm:$0xff] %v5703_v24  ;;  %8725 = vst [vmem:[#allocation132_spill] sm:$0xff] %v5718_v28 }
  0xcc   : > { %8723 = vst [vmem:[#allocation131_spill] sm:$0xff] %v5712_v63  ;;  %v700_v6 = vsub.f32 %v5659_v33, %v8724_v2  ;;  %v695_v33 = vand.u32 4294901760, %v694_v44  ;;  %v5733_v58 = vsub.f32 %v276_v57, %v5712_v63  ;;  %8728 = vst [vmem:[#allocation133_spill] sm:$0xff] %v5735_v12  ;;  %v5741_v2 = vsub.f32 %v275_v0, %v5718_v28  ;;  %v284_v44 = vld [vmem:[%s5001_s14 + $0xc8] sm:$0xff]  ;;  %v283_v57 = vld [vmem:[%s5001_s14 + $0xc0] sm:$0xff] }
  0xcd   : > { %674 = vmatpush2.xpose.msra.mxu0 %v5628_v51  ;;  %1163 = vmatpush2.xpose.msra.mxu1 %v1162_v25  ;;  %v8727_v51 = vand.u32 4294901760, %v5682_v8  ;;  %v8732_v0 = vand.u32 4294901760, %v5706_v40 }
  0xce   : > { %1169 = vmatprep.subr.mxu1 %v1168_v52  ;;  %1255 = vmatprep.subr.mxu0 %v5025_v15  ;;  %v701_v52 = vand.u32 4294901760, %v700_v6  ;;  %v8729_v15 = vand.u32 4294901760, %v5689_v50  ;;  %v8731_v6 = vand.u32 4294901760, %v5703_v24 }
  0xcf   : > { %v710_v25 = vsub.f32 %v5682_v8, %v8727_v51  ;;  %v1186_v51 = vand.u32 4294901760, %v1185_v42  ;;  %v5757_v42 = vsub.f32 %v280_v7, %v5735_v12  ;;  %v5759_v8 = vand.u32 4294901760, %v284_v44 }
  0xd0   : > { %686 = vmatmul.mubr.f32.vlgmr.msra.gmra.mxu0 %v685_v46  ;;  %v716_v34 = vsub.f32 %v5689_v50, %v8729_v15  ;;  %v726_v15 = vsub.f32 %v5703_v24, %v8731_v6  ;;  %v732_v46 = vsub.f32 %v5706_v40, %v8732_v0  ;;  %v5765_v6 = vand.u32 4294901760, %v283_v57  ;;  %v288_v24 = vld [vmem:[%s5001_s14 + $0xe8] sm:$0xff] }
  0xd1   : > { %1175 = vmatpush2.xpose.msra.mxu1 %v1174_v41  ;;  %1258 = vmatpush1.xpose.msra.mxu0 %v5028_v16  ;;  %v711_v50 = vand.u32 4294901760, %v710_v25  ;;  %v8231_v41 = vand.u32 4294901760, %v5733_v58  ;;  %8733 = vst [vmem:[#allocation135_spill] sm:$0xff] %v5759_v8  ;;  %v5763_v16 = vsub.f32 %v279_v55, %v5743_v19  ;;  %v8235_v55 = vand.u32 4294901760, %v5757_v42 }
  0xd2   : > { %1181 = vmatprep.subr.mxu1 %v1180_v60  ;;  %1261 = vmatprep.subr.mxu0 %v5033_v18  ;;  %v717_v60 = vand.u32 4294901760, %v716_v34  ;;  %v8230_v18 = vand.u32 4294901760, %v5741_v2  ;;  %8734 = vst [vmem:[#allocation136_spill] sm:$0xff] %v5765_v6  ;;  %v727_v7 = vand.u32 4294901760, %v726_v15  ;;  %v733_v25 = vand.u32 4294901760, %v732_v46 }
  0xd3   : > { %696 = vmatprep.mubr.f32.mxu0 %v695_v33  ;;  %v287_v33 = vld [vmem:[%s5001_s14 + $0xe0] sm:$0xff]  ;;  %v5777_v34 = vsub.f32 %v284_v44, %v5759_v8  ;;  %v5787_v0 = vsub.f32 %v283_v57, %v5765_v6 }
  0xd4   : > { %702 = vmatmul.mubr.f32.gmra.mxu0 %v701_v52  ;;  %v742_v52 = vsub.f32 %v5733_v58, %v8231_v41  ;;  %v748_v15 = vsub.f32 %v5741_v2, %v8230_v18  ;;  %v5789_v46 = vand.u32 4294901760, %v287_v33 }
  0xd5   : > { %1187 = vmatpush2.xpose.msra.mxu1 %v1186_v51  ;;  %1264 = vmatpush1.xpose.msra.mxu0 %v5039_v21  ;;  %v5779_v51 = vand.u32 4294901760, %v288_v24  ;;  %v8239_v57 = vand.u32 4294901760, %v5777_v34 }
  0xd6   : > { %1267 = vmatprep.subr.mxu0 %v5042_v22  ;;  %1527 = vmatprep.subr.mxu1 %v5011_v3  ;;  %8736 = vst [vmem:[#allocation138_spill] sm:$0xff] %v5789_v46  ;;  %v743_v44 = vand.u32 4294901760, %v742_v52  ;;  %v749_v41 = vand.u32 4294901760, %v748_v15  ;;  %v5809_v52 = vsub.f32 %v287_v33, %v5789_v46 }
  0xd7   : > { %712 = vmatprep.mubr.f32.mxu0 %v711_v50  ;;  %8735 = vst [vmem:[#allocation137_spill] sm:$0xff] %v5779_v51  ;;  %v8234_v50 = vand.u32 4294901760, %v5763_v16  ;;  %v5801_v18 = vsub.f32 %v288_v24, %v5779_v51 }
  0xd8   : > { %1191 = vmatmul.mubr.f32.vlgmr.msra.gmra.mxu1 %v5602_v53  ;;  %718 = vmatmul.mubr.f32.gmra.mxu0 %v717_v60  ;;  %v758_v60 = vsub.f32 %v5757_v42, %v8235_v55  ;;  %v8236_v55 = vand.u32 4294901760, %v5809_v52 }
  0xd9   : > { %1270 = vmatpush1.xpose.msra.mxu0 %v5055_v31  ;;  %1529 = vmatpush1.xpose.msra.mxu1 %v5013_v4  ;;  %v764_v53 = vsub.f32 %v5763_v16, %v8234_v50  ;;  %v8237_v15 = vand.u32 4294901760, %v5801_v18 }
  0xda   : > { %1273 = vmatprep.subr.mxu0 %v5067_v35  ;;  %1531 = vmatprep.subr.mxu1 %v5015_v5  ;;  %v759_v24 = vand.u32 4294901760, %v758_v60  ;;  %v796_v60 = vsub.f32 %v5809_v52, %v8236_v55  ;;  %v8745_v55 = vld [vmem:[#allocation21_spill] sm:$0xff] }
  0xdb   : > { %1197 = vmatprep.mubr.f32.mxu1 %v5623_v1  ;;  %728 = vmatprep.mubr.f32.mxu0 %v727_v7  ;;  %v8238_v7 = vand.u32 4294901760, %v5787_v0  ;;  %v765_v33 = vand.u32 4294901760, %v764_v53  ;;  %v790_v53 = vsub.f32 %v5801_v18, %v8237_v15  ;;  %v8764_v1 = vld [vmem:[#allocation36_spill] sm:$0xff] }
  0xdc   : > { %1199 = vmatmul.mubr.f32.gmra.mxu1 %v5633_v29  ;;  %734 = vmatmul.mubr.f32.gmra.mxu0 %v733_v25  ;;  %v774_v25 = vsub.f32 %v5777_v34, %v8239_v57  ;;  %v8748_v57 = vld [vmem:[#allocation22_spill] sm:$0xff] }
  0xdd   : > { %1276 = vmatpush1.xpose.msra.mxu0 %v5082_v45  ;;  %1533 = vmatpush1.xpose.msra.mxu1 %v5017_v9  ;;  %v780_v50 = vsub.f32 %v5787_v0, %v8238_v7  ;;  %v8747_v7 = vld [vmem:[#allocation34_spill] sm:$0xff] }
  0xde   : > { %1279 = vmatprep.subr.mxu0 %v5087_v49  ;;  %1535 = vmatprep.subr.mxu1 %v5019_v10  ;;  %v8763_v29 = vld [vmem:[#allocation50_spill] sm:$0xff] }
  0xdf   : > { %1205 = vmatprep.mubr.f32.mxu1 %v5653_v37  ;;  %744 = vmatprep.mubr.f32.mxu0 %v743_v44  ;;  %v775_v44 = vand.u32 4294901760, %v774_v25  ;;  %v8737_v25 = vld [vmem:[#allocation76_spill] sm:$0xff]  ;;  %v8762_v37 = vld [vmem:[#allocation33_spill] sm:$0xff] }
  0xe0   : > { %1207 = vmatmul.mubr.f32.gmra.mxu1 %v5661_v14  ;;  %750 = vmatmul.mubr.f32.gmra.mxu0 %v749_v41  ;;  %v781_v41 = vand.u32 4294901760, %v780_v50  ;;  %v797_v50 = vand.u32 4294901760, %v796_v60  ;;  %v8742_v60 = vld [vmem:[#allocation29_spill] sm:$0xff]  ;;  %v8746_v15 = vand.u32 4294901760, %v8737_v25  ;;  %v8761_v14 = vld [vmem:[#allocation47_spill] sm:$0xff] }
  0xe1   : > { %1282 = vmatpush1.xpose.msra.mxu0 %v5095_v54  ;;  %1537 = vmatpush1.xpose.msra.mxu1 %v5021_v11 }
  0xe2   : > { %1285 = vmatprep.subr.mxu0 %v5105_v59  ;;  %1539 = vmatprep.subr.mxu1 %v5030_v17 }
  0xe3   : > { %1213 = vmatprep.mubr.f32.mxu1 %v5676_v38  ;;  %760 = vmatprep.mubr.f32.mxu0 %v759_v24  ;;  %v791_v24 = vand.u32 4294901760, %v790_v53  ;;  %v8740_v53 = vld [vmem:[#allocation27_spill] sm:$0xff]  ;;  %v8760_v38 = vld [vmem:[#allocation32_spill] sm:$0xff] }
  0xe4   : > { %1215 = vmatmul.mubr.f32.gmra.mxu1 %v5678_v23  ;;  %766 = vmatmul.mubr.f32.gmra.mxu0 %v765_v33  ;;  %v8738_v33 = vld [vmem:[#allocation26_spill] sm:$0xff]  ;;  %v8759_v23 = vld [vmem:[#allocation45_spill] sm:$0xff] }
  0xe5   : > { %1288 = vmatpush1.xpose.msra.mxu0 %v5110_v61  ;;  %1541 = vmatpush1.xpose.msra.mxu1 %v5036_v20 }
  0xe6   : > { %1291 = vmatprep.subr.mxu0 %v5125_v13  ;;  %1543 = vmatprep.subr.mxu1 %v5048_v26 }
  0xe7   : > { %1221 = vmatprep.mubr.f32.mxu1 %v5712_v63  ;;  %776 = vmatprep.mubr.f32.mxu0 %v775_v44  ;;  %v8739_v44 = vld [vmem:[#allocation18_spill] sm:$0xff] }
  0xe8   : > { %1223 = vmatmul.mubr.f32.gmra.mxu1 %v5718_v28  ;;  %782 = vmatmul.mubr.f32.gmra.mxu0 %v781_v41  ;;  %v8741_v41 = vld [vmem:[#allocation19_spill] sm:$0xff]  ;;  %v8755_v28 = vld [vmem:[#allocation42_spill] sm:$0xff] }
  0xe9   : > { %1294 = vmatpush1.xpose.msra.mxu0 %v5137_v36  ;;  %1545 = vmatpush1.xpose.msra.mxu1 %v5052_v30  ;;  %v8758_v63 = vld [vmem:[#allocation30_spill] sm:$0xff] }
  0xea   : > { %1297 = vmatprep.subr.mxu0 %v5145_v43  ;;  %1547 = vmatprep.subr.mxu1 %v5077_v39 }
  0xeb   : > { %1229 = vmatprep.mubr.f32.mxu1 %v5735_v12  ;;  %792 = vmatprep.mubr.f32.mxu0 %v791_v24  ;;  %v8743_v24 = vld [vmem:[#allocation20_spill] sm:$0xff]  ;;  %v8754_v12 = vld [vmem:[#allocation25_spill] sm:$0xff] }
  0xec   : > { %1231 = vmatmul.mubr.f32.gmra.mxu1 %v5743_v19  ;;  %798 = vmatmul.mubr.f32.gmra.mxu0 %v797_v50  ;;  %v8744_v50 = vld [vmem:[#allocation31_spill] sm:$0xff] }
  0xed   : > { %1300 = vmatpush1.xpose.msra.mxu0 %v5157_v62  ;;  %1549 = vmatpush1.xpose.msra.mxu1 %v5084_v48  ;;  %v8753_v19 = vld [vmem:[#allocation39_spill] sm:$0xff] }
  0xee   : > { %1303 = vmatprep.subr.mxu0 %v5165_v27  ;;  %1551 = vmatprep.subr.mxu1 %v5101_v56 }
  0xef   : > { %1237 = vmatprep.mubr.f32.mxu1 %v5759_v8  ;;  %1447 = vmatprep.mubr.f32.mxu0 %v8737_v25  ;;  %v8752_v8 = vld [vmem:[#allocation24_spill] sm:$0xff] }
  0xf0   : > { %1239 = vmatmul.mubr.f32.gmra.mxu1 %v5765_v6  ;;  %v8749_v6 = vld [vmem:[#allocation35_spill] sm:$0xff]  ;;  %v8756_v25 = vld [vmem:[#allocation28_spill] sm:$0xff] }
  0xf1   : > { %1306 = vmatpush1.xpose.msra.mxu0 %v8738_v33  ;;  %1553 = vmatpush1.xpose.msra.mxu1 %v8739_v44 }
  0xf2   : > { %1309 = vmatprep.subr.mxu0 %v8740_v53  ;;  %1555 = vmatprep.subr.mxu1 %v8741_v41 }
  0xf3   : > { %1245 = vmatprep.mubr.f32.mxu1 %v5779_v51  ;;  %v8750_v51 = vld [vmem:[#allocation23_spill] sm:$0xff] }
  0xf4   : > { %1247 = vmatmul.mubr.f32.gmra.mxu1 %v5789_v46  ;;  %v8751_v46 = vld [vmem:[#allocation38_spill] sm:$0xff] }
  0xf5   : > { %1312 = vmatpush1.xpose.msra.mxu0 %v8742_v60  ;;  %1557 = vmatpush1.xpose.msra.mxu1 %v8743_v24 }
  0xf6   : > { %1315 = vmatprep.subr.mxu0 %v8744_v50  ;;  %1559 = vmatprep.subr.mxu1 %v8745_v55 }
  0xf7   : > { %1657 = vmatprep.mubr.f32.mxu1 %v8746_v15  ;;  %v8757_v15 = vld [vmem:[#allocation43_spill] sm:$0xff] }
  0xf9   : > { %1318 = vmatpush1.xpose.msra.mxu0 %v8747_v7  ;;  %1561 = vmatpush1.xpose.msra.mxu1 %v8748_v57 }
  0xfa   : > { %1321 = vmatprep.subr.mxu0 %v8749_v6  ;;  %1563 = vmatprep.subr.mxu1 %v8750_v51 }
  0xfd   : > { %1324 = vmatpush1.xpose.msra.mxu0 %v8751_v46  ;;  %1565 = vmatpush1.xpose.msra.mxu1 %v8752_v8 }
  0xfe   : > { %1327 = vmatprep.subr.mxu0 %v8753_v19  ;;  %1567 = vmatprep.subr.mxu1 %v8754_v12  ;;  %v8765_v12 = vld [vmem:[#allocation51_spill] sm:$0xff] }
 0x101   : > { %1330 = vmatpush1.xpose.msra.mxu0 %v8755_v28  ;;  %1569 = vmatpush1.xpose.msra.mxu1 %v8756_v25  ;;  %v8766_v28 = vld [vmem:[#allocation37_spill] sm:$0xff]  ;;  %v8767_v25 = vld [vmem:[#allocation54_spill] sm:$0xff] }
 0x102   : > { %1333 = vmatprep.subr.mxu0 %v8757_v15  ;;  %1571 = vmatprep.subr.mxu1 %v8758_v63  ;;  %v8768_v15 = vld [vmem:[#allocation40_spill] sm:$0xff]  ;;  %v8769_v63 = vld [vmem:[#allocation55_spill] sm:$0xff] }
 0x105   : > { %1336 = vmatpush1.xpose.msra.mxu0 %v8759_v23  ;;  %1573 = vmatpush1.xpose.msra.mxu1 %v8760_v38  ;;  %v8770_v23 = vld [vmem:[#allocation41_spill] sm:$0xff]  ;;  %v8771_v38 = vld [vmem:[#allocation58_spill] sm:$0xff] }
 0x106   : > { %1339 = vmatprep.subr.mxu0 %v8761_v14  ;;  %1575 = vmatprep.subr.mxu1 %v8762_v37  ;;  %v8772_v14 = vld [vmem:[#allocation44_spill] sm:$0xff]  ;;  %v8773_v37 = vld [vmem:[#allocation59_spill] sm:$0xff] }
 0x109   : > { %1342 = vmatpush1.xpose.msra.mxu0 %v8763_v29  ;;  %1577 = vmatpush1.xpose.msra.mxu1 %v8764_v1  ;;  %v8774_v29 = vld [vmem:[#allocation46_spill] sm:$0xff]  ;;  %v8775_v1 = vld [vmem:[#allocation61_spill] sm:$0xff] }
 0x10a   : > { %1345 = vmatprep.subr.mxu0 %v8765_v12  ;;  %1579 = vmatprep.subr.mxu1 %v8766_v28  ;;  %v8776_v12 = vld [vmem:[#allocation48_spill] sm:$0xff]  ;;  %v8777_v28 = vld [vmem:[#allocation63_spill] sm:$0xff] }
 0x10d   : > { %1348 = vmatpush1.xpose.msra.mxu0 %v8767_v25  ;;  %1581 = vmatpush1.xpose.msra.mxu1 %v8768_v15  ;;  %v8778_v25 = vld [vmem:[#allocation49_spill] sm:$0xff]  ;;  %v8779_v15 = vld [vmem:[#allocation64_spill] sm:$0xff] }
 0x10e   : > { %1351 = vmatprep.subr.mxu0 %v8769_v63  ;;  %1583 = vmatprep.subr.mxu1 %v8770_v23  ;;  %v8780_v63 = vld [vmem:[#allocation52_spill] sm:$0xff]  ;;  %v8781_v23 = vld [vmem:[#allocation67_spill] sm:$0xff] }
 0x111   : > { %1354 = vmatpush2.xpose.msra.mxu0 %v8771_v38  ;;  %1585 = vmatpush1.xpose.msra.mxu1 %v8772_v14  ;;  %v8782_v38 = vld [vmem:[#allocation53_spill] sm:$0xff]  ;;  %v8783_v14 = vld [vmem:[#allocation70_spill] sm:$0xff] }
 0x112   : > { %1357 = vmatprep.subr.mxu0 %v8773_v37  ;;  %1587 = vmatprep.subr.mxu1 %v8774_v29  ;;  %v8784_v37 = vld [vmem:[#allocation56_spill] sm:$0xff]  ;;  %v8785_v29 = vld [vmem:[#allocation71_spill] sm:$0xff] }
 0x115   : > { %1360 = vmatpush2.xpose.msra.mxu0 %v8775_v1  ;;  %1589 = vmatpush1.xpose.msra.mxu1 %v8776_v12  ;;  %v8786_v1 = vld [vmem:[#allocation57_spill] sm:$0xff]  ;;  %v8787_v12 = vld [vmem:[#allocation75_spill] sm:$0xff] }
 0x116   : > { %1363 = vmatprep.subr.mxu0 %v8777_v28  ;;  %1591 = vmatprep.subr.mxu1 %v8778_v25  ;;  %v8788_v28 = vld [vmem:[#allocation60_spill] sm:$0xff]  ;;  %v8789_v25 = vld [vmem:[#allocation77_spill] sm:$0xff] }
 0x119   : > { %1366 = vmatpush2.xpose.msra.mxu0 %v8779_v15  ;;  %1593 = vmatpush2.xpose.msra.mxu1 %v8780_v63  ;;  %v8790_v15 = vld [vmem:[#allocation62_spill] sm:$0xff]  ;;  %v8791_v63 = vld [vmem:[#allocation80_spill] sm:$0xff] }
 0x11a   : > { %1369 = vmatprep.subr.mxu0 %v8781_v23  ;;  %1595 = vmatprep.subr.mxu1 %v8782_v38  ;;  %v8792_v23 = vld [vmem:[#allocation65_spill] sm:$0xff] }
 0x11b   : > { %v8793_v38 = vld [vmem:[#allocation81_spill] sm:$0xff] }
 0x11d   : > { %1372 = vmatpush2.xpose.msra.mxu0 %v8783_v14  ;;  %1597 = vmatpush2.xpose.msra.mxu1 %v8784_v37  ;;  %v8794_v14 = vld [vmem:[#allocation66_spill] sm:$0xff]  ;;  %v8795_v37 = vld [vmem:[#allocation83_spill] sm:$0xff] }
 0x11e   : > { %1375 = vmatprep.subr.mxu0 %v8785_v29  ;;  %1599 = vmatprep.subr.mxu1 %v8786_v1  ;;  %v8796_v29 = vld [vmem:[#allocation68_spill] sm:$0xff]  ;;  %v8797_v1 = vld [vmem:[#allocation85_spill] sm:$0xff] }
 0x121   : > { %1378 = vmatpush2.xpose.msra.mxu0 %v8787_v12  ;;  %1601 = vmatpush2.xpose.msra.mxu1 %v8788_v28  ;;  %v8798_v12 = vld [vmem:[#allocation69_spill] sm:$0xff]  ;;  %v8799_v28 = vld [vmem:[#allocation88_spill] sm:$0xff] }
 0x122   : > { %1381 = vmatprep.subr.mxu0 %v8789_v25  ;;  %1603 = vmatprep.subr.mxu1 %v8790_v15  ;;  %v8800_v25 = vld [vmem:[#allocation73_spill] sm:$0xff] }
 0x123   : > { %v8801_v15 = vld [vmem:[#allocation89_spill] sm:$0xff] }
 0x125   : > { %1384 = vmatpush2.xpose.msra.mxu0 %v8791_v63  ;;  %1605 = vmatpush2.xpose.msra.mxu1 %v8792_v23  ;;  %v8802_v63 = vld [vmem:[#allocation74_spill] sm:$0xff]  ;;  %v8803_v23 = vld [vmem:[#allocation92_spill] sm:$0xff] }
 0x126   : > { %1387 = vmatprep.subr.mxu0 %v8793_v38  ;;  %1607 = vmatprep.subr.mxu1 %v8794_v14  ;;  %v8804_v38 = vld [vmem:[#allocation78_spill] sm:$0xff]  ;;  %v8805_v14 = vld [vmem:[#allocation93_spill] sm:$0xff] }
 0x129   : > { %1390 = vmatpush2.xpose.msra.mxu0 %v8795_v37  ;;  %1609 = vmatpush2.xpose.msra.mxu1 %v8796_v29  ;;  %v8806_v37 = vld [vmem:[#allocation79_spill] sm:$0xff]  ;;  %v8807_v29 = vld [vmem:[#allocation96_spill] sm:$0xff] }
 0x12a   : > { %1393 = vmatprep.subr.mxu0 %v8797_v1  ;;  %1611 = vmatprep.subr.mxu1 %v8798_v12  ;;  %v8808_v1 = vld [vmem:[#allocation82_spill] sm:$0xff]  ;;  %v8809_v12 = vld [vmem:[#allocation97_spill] sm:$0xff] }
 0x12d   : > { %1396 = vmatpush2.xpose.msra.mxu0 %v8799_v28  ;;  %1613 = vmatpush2.xpose.msra.mxu1 %v8800_v25  ;;  %v8810_v28 = vld [vmem:[#allocation84_spill] sm:$0xff] }
 0x12e   : > { %1399 = vmatprep.subr.mxu0 %v8801_v15  ;;  %1615 = vmatprep.subr.mxu1 %v8802_v63  ;;  %v8811_v25 = vld [vmem:[#allocation100_spill] sm:$0xff]  ;;  %v8812_v15 = vld [vmem:[#allocation86_spill] sm:$0xff]  ;;  %v8813_v63 = vld [vmem:[#allocation101_spill] sm:$0xff] }
 0x131   : > { %1402 = vmatpush2.xpose.msra.mxu0 %v8803_v23  ;;  %1617 = vmatpush2.xpose.msra.mxu1 %v8804_v38  ;;  %v8814_v23 = vld [vmem:[#allocation87_spill] sm:$0xff]  ;;  %v8815_v38 = vld [vmem:[#allocation104_spill] sm:$0xff] }
 0x132   : > { %1405 = vmatprep.subr.mxu0 %v8805_v14  ;;  %1619 = vmatprep.subr.mxu1 %v8806_v37  ;;  %v8816_v14 = vld [vmem:[#allocation90_spill] sm:$0xff]  ;;  %v8817_v37 = vld [vmem:[#allocation105_spill] sm:$0xff] }
 0x135   : > { %1408 = vmatpush2.xpose.msra.mxu0 %v8807_v29  ;;  %1621 = vmatpush2.xpose.msra.mxu1 %v8808_v1  ;;  %v8818_v29 = vld [vmem:[#allocation91_spill] sm:$0xff] }
 0x136   : > { %1411 = vmatprep.subr.mxu0 %v8809_v12  ;;  %1623 = vmatprep.subr.mxu1 %v8810_v28  ;;  %v8819_v1 = vld [vmem:[#allocation107_spill] sm:$0xff]  ;;  %v8820_v12 = vld [vmem:[#allocation94_spill] sm:$0xff]  ;;  %v8821_v28 = vld [vmem:[#allocation108_spill] sm:$0xff] }
 0x139   : > { %1414 = vmatpush2.xpose.msra.mxu0 %v8811_v25  ;;  %1625 = vmatpush2.xpose.msra.mxu1 %v8812_v15  ;;  %v8822_v25 = vld [vmem:[#allocation95_spill] sm:$0xff]  ;;  %v8823_v15 = vld [vmem:[#allocation112_spill] sm:$0xff] }
 0x13a   : > { %1417 = vmatprep.subr.mxu0 %v8813_v63  ;;  %1627 = vmatprep.subr.mxu1 %v8814_v23  ;;  %v8824_v63 = vld [vmem:[#allocation98_spill] sm:$0xff] }
 0x13b   : > { %v8825_v23 = vld [vmem:[#allocation114_spill] sm:$0xff] }
 0x13d   : > { %1420 = vmatpush2.xpose.msra.mxu0 %v8815_v38  ;;  %1629 = vmatpush2.xpose.msra.mxu1 %v8816_v14  ;;  %v8826_v38 = vld [vmem:[#allocation99_spill] sm:$0xff] }
 0x13e   : > { %1423 = vmatprep.subr.mxu0 %v8817_v37  ;;  %1631 = vmatprep.subr.mxu1 %v8818_v29  ;;  %v8827_v37 = vld [vmem:[#allocation102_spill] sm:$0xff]  ;;  %v8828_v29 = vld [vmem:[#allocation120_spill] sm:$0xff] }
 0x141   : > { %1426 = vmatpush2.xpose.msra.mxu0 %v8819_v1  ;;  %1633 = vmatpush2.xpose.msra.mxu1 %v8820_v12  ;;  %v8829_v1 = vld [vmem:[#allocation103_spill] sm:$0xff] }
 0x142   : > { %1429 = vmatprep.subr.mxu0 %v8821_v28  ;;  %1635 = vmatprep.subr.mxu1 %v8822_v25  ;;  %v8830_v28 = vld [vmem:[#allocation106_spill] sm:$0xff]  ;;  %v8831_v25 = vld [vmem:[#allocation109_spill] sm:$0xff] }
 0x145   : > { %1432 = vmatpush2.xpose.msra.mxu0 %v8823_v15  ;;  %1637 = vmatpush2.xpose.msra.mxu1 %v8824_v63  ;;  %v8832_v15 = vld [vmem:[#allocation15_spill] sm:$0xff] }
 0x146   : > { %1435 = vmatprep.subr.mxu0 %v8825_v23  ;;  %1639 = vmatprep.subr.mxu1 %v8826_v38  ;;  %v8833_v63 = vand.u32 4294901760, %v8832_v15  ;;  %v8834_v23 = vld [vmem:[#allocation117_spill] sm:$0xff]  ;;  %v8835_v38 = vld [vmem:[#allocation110_spill] sm:$0xff]  ;;  %v8845_v15 = vld [vmem:[#allocation128_spill] sm:$0xff] }
 0x149   : > { %1438 = vmatpush2.xpose.msra.mxu0 %v5642_v47  ;;  %1641 = vmatpush2.xpose.msra.mxu1 %v8827_v37  ;;  %v8836_v47 = vld [vmem:[#allocation16_spill] sm:$0xff]  ;;  %v8838_v37 = vld [vmem:[#allocation121_spill] sm:$0xff] }
 0x14a   : > { %1441 = vmatprep.subr.mxu0 %v8828_v29  ;;  %1643 = vmatprep.subr.mxu1 %v8829_v1  ;;  %v8837_v12 = vand.u32 4294901760, %v8836_v47  ;;  %v8839_v29 = vld [vmem:[#allocation113_spill] sm:$0xff] }
 0x14b   : > { %v8840_v1 = vld [vmem:[#allocation17_spill] sm:$0xff] }
 0x14c   : > { %v8847_v47 = vld [vmem:[#allocation129_spill] sm:$0xff] }
 0x14d   : > { %1444 = vmatpush2.xpose.msra.mxu0 %v5669_v32  ;;  %1645 = vmatpush2.xpose.msra.mxu1 %v8830_v28  ;;  %v8841_v32 = vand.u32 4294901760, %v8840_v1  ;;  %v8842_v28 = vld [vmem:[#allocation123_spill] sm:$0xff]  ;;  %v8849_v1 = vand.u32 4294901760, %v5055_v31  ;;  %v8854_v31 = vand.u32 4294901760, %v5082_v45  ;;  %v8858_v45 = vand.u32 4294901760, %v5095_v54 }
 0x14e   : > { %1647 = vmatprep.subr.mxu1 %v8831_v25  ;;  %1754 = vmatprep.subr.mxu0 %v8833_v63  ;;  %v8843_v25 = vld [vmem:[#allocation116_spill] sm:$0xff]  ;;  %v8844_v63 = vand.u32 4294901760, %v5039_v21  ;;  %v8851_v21 = vand.u32 4294901760, %v8838_v37  ;;  %v8862_v54 = vand.u32 4294901760, %v5110_v61  ;;  %v8866_v61 = vand.u32 4294901760, %v5137_v36 }
 0x14f   : > { %v8870_v36 = vand.u32 4294901760, %v5157_v62  ;;  %v8877_v62 = vand.u32 4294901760, %v8740_v53  ;;  %v8901_v53 = vld [vmem:[#allocation51_spill] sm:$0xff] }
 0x150   : > { %1450 = vmatmul.mubr.f32.vlgmr.msra.gmra.mxu0 %v8834_v23 }
 0x151   : > { %1649 = vmatpush2.xpose.msra.mxu1 %v8835_v38  ;;  %1758 = vmatpush1.xpose.msra.mxu0 %v8837_v12  ;;  %v8846_v38 = vand.u32 4294901760, %v5042_v22  ;;  %v8848_v12 = vand.u32 4294901760, %v8834_v23  ;;  %v8852_v22 = vand.u32 4294901760, %v5067_v35  ;;  %v8856_v35 = vand.u32 4294901760, %v5087_v49 }
 0x152   : > { %1457 = vmatprep.mubr.f32.mxu0 %v8838_v37  ;;  %1651 = vmatprep.subr.mxu1 %v8839_v29  ;;  %v8860_v49 = vand.u32 4294901760, %v5105_v59  ;;  %v8864_v59 = vand.u32 4294901760, %v5125_v13  ;;  %v8868_v13 = vand.u32 4294901760, %v5145_v43  ;;  %v8872_v23 = vand.u32 4294901760, %v5165_v27  ;;  %v8873_v43 = vld [vmem:[#allocation72_spill] sm:$0xff] }
 0x153   : > { %1762 = vmatprep.subr.mxu0 %v8841_v32  ;;  %v8850_v32 = vld [vmem:[#allocation130_spill] sm:$0xff]  ;;  %v8879_v27 = vand.u32 4294901760, %v8742_v60  ;;  %v8880_v37 = vand.u32 4294901760, %v8744_v50  ;;  %v8903_v60 = vld [vmem:[#allocation37_spill] sm:$0xff] }
 0x154   : > { %1460 = vmatmul.mubr.f32.gmra.mxu0 %v8842_v28 }
 0x155   : > { %1653 = vmatpush2.xpose.msra.mxu1 %v8843_v25  ;;  %1766 = vmatpush1.xpose.msra.mxu0 %v8844_v63  ;;  %v8906_v63 = vld [vmem:[#allocation40_spill] sm:$0xff] }
 0x156   : > { %1467 = vmatprep.mubr.f32.mxu0 %v8845_v15  ;;  %1770 = vmatprep.subr.mxu0 %v8846_v38  ;;  %v8882_v38 = vand.u32 4294901760, %v8749_v6 }
 0x157   : > { %2073 = vmatprep.subr.mxu1 %v5011_v3  ;;  %v8853_v3 = vand.u32 4294901760, %v8842_v28  ;;  %v8884_v28 = vand.u32 4294901760, %v8753_v19 }
 0x158   : > { %1470 = vmatmul.mubr.f32.gmra.mxu0 %v8847_v47  ;;  %1661 = vmatmul.mubr.f32.vlgmr.msra.gmra.mxu1 %v8848_v12  ;;  %v8909_v12 = vld [vmem:[#allocation41_spill] sm:$0xff] }
 0x159   : > { %1774 = vmatpush1.xpose.msra.mxu0 %v8849_v1  ;;  %2075 = vmatpush1.xpose.msra.mxu1 %v5013_v4  ;;  %v8855_v4 = vand.u32 4294901760, %v8845_v15  ;;  %v8907_v15 = vld [vmem:[#allocation55_spill] sm:$0xff] }
 0x15a   : > { %1477 = vmatprep.mubr.f32.mxu0 %v8850_v32  ;;  %1669 = vmatprep.mubr.f32.mxu1 %v8851_v21 }
 0x15b   : > { %1778 = vmatprep.subr.mxu0 %v8852_v22  ;;  %2077 = vmatprep.subr.mxu1 %v5015_v5  ;;  %v8857_v5 = vand.u32 4294901760, %v8847_v47  ;;  %v8908_v47 = vand.u32 4294901760, %v8907_v15  ;;  %v8912_v22 = vld [vmem:[#allocation44_spill] sm:$0xff]  ;;  %v8943_v15 = vld [vmem:[#allocation81_spill] sm:$0xff] }
 0x15c   : > { %1480 = vmatmul.mubr.f32.gmra.mxu0 %v5706_v40  ;;  %1673 = vmatmul.mubr.f32.gmra.mxu1 %v8853_v3  ;;  %v8913_v3 = vld [vmem:[#allocation59_spill] sm:$0xff] }
 0x15d   : > { %1782 = vmatpush1.xpose.msra.mxu0 %v8854_v31  ;;  %2079 = vmatpush1.xpose.msra.mxu1 %v5017_v9  ;;  %v8859_v9 = vand.u32 4294901760, %v8850_v32  ;;  %v8910_v32 = vld [vmem:[#allocation58_spill] sm:$0xff]  ;;  %v8914_v31 = vand.u32 4294901760, %v8913_v3  ;;  %v8946_v3 = vld [vmem:[#allocation83_spill] sm:$0xff] }
 0x15e   : > { %1487 = vmatprep.mubr.f32.mxu0 %v5733_v58  ;;  %1681 = vmatprep.mubr.f32.mxu1 %v8855_v4  ;;  %v8911_v21 = vand.u32 4294901760, %v8910_v32  ;;  %v8915_v4 = vld [vmem:[#allocation46_spill] sm:$0xff] }
 0x15f   : > { %1786 = vmatprep.subr.mxu0 %v8856_v35  ;;  %2081 = vmatprep.subr.mxu1 %v5019_v10  ;;  %v8861_v10 = vand.u32 4294901760, %v5706_v40  ;;  %v8883_v40 = vand.u32 4294901760, %v8751_v46 }
 0x160   : > { %1490 = vmatmul.mubr.f32.gmra.mxu0 %v5741_v2  ;;  %1685 = vmatmul.mubr.f32.gmra.mxu1 %v8857_v5 }
 0x161   : > { %1790 = vmatpush1.xpose.msra.mxu0 %v8858_v45  ;;  %2083 = vmatpush1.xpose.msra.mxu1 %v5021_v11  ;;  %v8863_v11 = vand.u32 4294901760, %v5733_v58  ;;  %v8886_v58 = vld [vmem:[#allocation42_spill] sm:$0xff]  ;;  %v8916_v45 = vld [vmem:[#allocation61_spill] sm:$0xff] }
 0x162   : > { %1497 = vmatprep.mubr.f32.mxu0 %v5757_v42  ;;  %1693 = vmatprep.mubr.f32.mxu1 %v8859_v9  ;;  %v8917_v9 = vand.u32 4294901760, %v8916_v45 }
 0x163   : > { %1794 = vmatprep.subr.mxu0 %v8860_v49  ;;  %2085 = vmatprep.subr.mxu1 %v5030_v17  ;;  %v8865_v17 = vand.u32 4294901760, %v5741_v2  ;;  %v8885_v2 = vld [vmem:[#allocation25_spill] sm:$0xff]  ;;  %v8918_v49 = vld [vmem:[#allocation48_spill] sm:$0xff] }
 0x164   : > { %1500 = vmatmul.mubr.f32.gmra.mxu0 %v5763_v16  ;;  %1697 = vmatmul.mubr.f32.gmra.mxu1 %v8861_v10  ;;  %v8919_v10 = vld [vmem:[#allocation63_spill] sm:$0xff] }
 0x165   : > { %1798 = vmatpush1.xpose.msra.mxu0 %v8862_v54  ;;  %2087 = vmatpush1.xpose.msra.mxu1 %v5036_v20  ;;  %v8867_v20 = vand.u32 4294901760, %v5757_v42  ;;  %v8887_v42 = vand.u32 4294901760, %v8886_v58  ;;  %v8920_v54 = vand.u32 4294901760, %v8919_v10 }
 0x166   : > { %1507 = vmatprep.mubr.f32.mxu0 %v5777_v34  ;;  %1705 = vmatprep.mubr.f32.mxu1 %v8863_v11  ;;  %v8921_v11 = vld [vmem:[#allocation49_spill] sm:$0xff] }
 0x167   : > { %1802 = vmatprep.subr.mxu0 %v8864_v59  ;;  %2089 = vmatprep.subr.mxu1 %v5048_v26  ;;  %v8869_v26 = vand.u32 4294901760, %v5763_v16  ;;  %v8875_v16 = vand.u32 4294901760, %v8738_v33 }
 0x168   : > { %1510 = vmatmul.mubr.f32.gmra.mxu0 %v5787_v0  ;;  %1709 = vmatmul.mubr.f32.gmra.mxu1 %v8865_v17 }
 0x169   : > { %1806 = vmatpush1.xpose.msra.mxu0 %v8866_v61  ;;  %2091 = vmatpush1.xpose.msra.mxu1 %v5052_v30  ;;  %v8871_v30 = vand.u32 4294901760, %v5777_v34  ;;  %v8889_v34 = vld [vmem:[#allocation43_spill] sm:$0xff] }
 0x16a   : > { %1517 = vmatprep.mubr.f32.mxu0 %v5801_v18  ;;  %1717 = vmatprep.mubr.f32.mxu1 %v8867_v20  ;;  %v8890_v6 = vand.u32 4294901760, %v8889_v34 }
 0x16b   : > { %1810 = vmatprep.subr.mxu0 %v8868_v13  ;;  %2093 = vmatprep.subr.mxu1 %v5077_v39  ;;  %v8874_v39 = vand.u32 4294901760, %v5787_v0  ;;  %v8891_v0 = vld [vmem:[#allocation30_spill] sm:$0xff]  ;;  %v8922_v13 = vld [vmem:[#allocation64_spill] sm:$0xff] }
 0x16c   : > { %1520 = vmatmul.mubr.f32.gmra.mxu0 %v5809_v52  ;;  %1721 = vmatmul.mubr.f32.gmra.mxu1 %v8869_v26  ;;  %v8923_v26 = vand.u32 4294901760, %v8922_v13 }
 0x16d   : > { %1814 = vmatpush1.xpose.msra.mxu0 %v8870_v36  ;;  %2095 = vmatpush1.xpose.msra.mxu1 %v5084_v48  ;;  %v8876_v48 = vand.u32 4294901760, %v5801_v18  ;;  %v8881_v18 = vand.u32 4294901760, %v8747_v7  ;;  %v8897_v7 = vld [vmem:[#allocation33_spill] sm:$0xff]  ;;  %v8924_v36 = vld [vmem:[#allocation52_spill] sm:$0xff] }
 0x16e   : > { %1729 = vmatprep.mubr.f32.mxu1 %v8871_v30  ;;  %1818 = vmatprep.subr.mxu0 %v8872_v23  ;;  %v8925_v23 = vld [vmem:[#allocation67_spill] sm:$0xff] }
 0x16f   : > { %2097 = vmatprep.subr.mxu1 %v5101_v56  ;;  %2008 = vmatprep.mubr.f32.mxu0 %v8873_v43  ;;  %v8878_v56 = vand.u32 4294901760, %v5809_v52  ;;  %v8898_v52 = vld [vmem:[#allocation50_spill] sm:$0xff] }
 0x170   : > { %1733 = vmatmul.mubr.f32.gmra.mxu1 %v8874_v39  ;;  %v8899_v33 = vand.u32 4294901760, %v8898_v52  ;;  %v8927_v39 = vld [vmem:[#allocation53_spill] sm:$0xff] }
 0x171   : > { %1822 = vmatpush1.xpose.msra.mxu0 %v8875_v16  ;;  %2099 = vmatpush1.xpose.msra.mxu1 %v8739_v44  ;;  %v8900_v44 = vld [vmem:[#allocation36_spill] sm:$0xff] }
 0x172   : > { %1741 = vmatprep.mubr.f32.mxu1 %v8876_v48  ;;  %1826 = vmatprep.subr.mxu0 %v8877_v62 }
 0x173   : > { %2101 = vmatprep.subr.mxu1 %v8741_v41  ;;  %v8902_v41 = vand.u32 4294901760, %v8901_v53 }
 0x174   : > { %1745 = vmatmul.mubr.f32.gmra.mxu1 %v8878_v56 }
 0x175   : > { %1830 = vmatpush1.xpose.msra.mxu0 %v8879_v27  ;;  %2103 = vmatpush1.xpose.msra.mxu1 %v8743_v24  ;;  %v8904_v24 = vld [vmem:[#allocation54_spill] sm:$0xff] }
 0x176   : > { %1834 = vmatprep.subr.mxu0 %v8880_v37  ;;  %2105 = vmatprep.subr.mxu1 %v8745_v55  ;;  %v8888_v55 = vld [vmem:[#allocation28_spill] sm:$0xff]  ;;  %v8905_v50 = vand.u32 4294901760, %v8904_v24  ;;  %v8928_v27 = vld [vmem:[#allocation70_spill] sm:$0xff] }
 0x177   : > { %2201 = vmatprep.mubr.f32.mxu1 %v8873_v43  ;;  %v8926_v43 = vand.u32 4294901760, %v8925_v23  ;;  %v8929_v37 = vand.u32 4294901760, %v8928_v27  ;;  %v8960_v27 = vld [vmem:[#allocation78_spill] sm:$0xff] }
 0x179   : > { %1838 = vmatpush1.xpose.msra.mxu0 %v8881_v18  ;;  %2107 = vmatpush1.xpose.msra.mxu1 %v8748_v57  ;;  %v8894_v57 = vld [vmem:[#allocation32_spill] sm:$0xff] }
 0x17a   : > { %1842 = vmatprep.subr.mxu0 %v8882_v38  ;;  %2109 = vmatprep.subr.mxu1 %v8750_v51  ;;  %v8892_v51 = vld [vmem:[#allocation45_spill] sm:$0xff]  ;;  %v8930_v18 = vld [vmem:[#allocation56_spill] sm:$0xff] }
 0x17b   : > { %v8893_v46 = vand.u32 4294901760, %v8892_v51 }
 0x17d   : > { %1846 = vmatpush1.xpose.msra.mxu0 %v8883_v40  ;;  %2111 = vmatpush1.xpose.msra.mxu1 %v8752_v8  ;;  %v8895_v8 = vld [vmem:[#allocation47_spill] sm:$0xff] }
 0x17e   : > { %1850 = vmatprep.subr.mxu0 %v8884_v28  ;;  %2113 = vmatprep.subr.mxu1 %v8885_v2  ;;  %v8896_v19 = vand.u32 4294901760, %v8895_v8  ;;  %v8931_v40 = vld [vmem:[#allocation71_spill] sm:$0xff]  ;;  %v8933_v2 = vld [vmem:[#allocation57_spill] sm:$0xff] }
 0x17f   : > { %v8932_v28 = vand.u32 4294901760, %v8931_v40  ;;  %v8937_v8 = vld [vmem:[#allocation77_spill] sm:$0xff] }
 0x181   : > { %1854 = vmatpush1.xpose.msra.mxu0 %v8887_v42  ;;  %2115 = vmatpush1.xpose.msra.mxu1 %v8888_v55 }
 0x182   : > { %1858 = vmatprep.subr.mxu0 %v8890_v6  ;;  %2117 = vmatprep.subr.mxu1 %v8891_v0  ;;  %v8934_v0 = vld [vmem:[#allocation75_spill] sm:$0xff] }
 0x183   : > { %v8935_v51 = vand.u32 4294901760, %v8934_v0 }
 0x185   : > { %1862 = vmatpush1.xpose.msra.mxu0 %v8893_v46  ;;  %2119 = vmatpush1.xpose.msra.mxu1 %v8894_v57  ;;  %v8936_v46 = vld [vmem:[#allocation60_spill] sm:$0xff] }
 0x186   : > { %1866 = vmatprep.subr.mxu0 %v8896_v19  ;;  %2121 = vmatprep.subr.mxu1 %v8897_v7  ;;  %v8938_v19 = vand.u32 4294901760, %v8937_v8  ;;  %v8939_v7 = vld [vmem:[#allocation62_spill] sm:$0xff]  ;;  %v8967_v8 = vld [vmem:[#allocation97_spill] sm:$0xff] }
 0x189   : > { %1870 = vmatpush1.xpose.msra.mxu0 %v8899_v33  ;;  %2123 = vmatpush1.xpose.msra.mxu1 %v8900_v44 }
 0x18a   : > { %1874 = vmatprep.subr.mxu0 %v8902_v41  ;;  %2125 = vmatprep.subr.mxu1 %v8903_v60  ;;  %v8940_v60 = vld [vmem:[#allocation80_spill] sm:$0xff] }
 0x18b   : > { %v8941_v24 = vand.u32 4294901760, %v8940_v60 }
 0x18d   : > { %1878 = vmatpush1.xpose.msra.mxu0 %v8905_v50  ;;  %2127 = vmatpush1.xpose.msra.mxu1 %v8906_v63  ;;  %v8942_v50 = vld [vmem:[#allocation65_spill] sm:$0xff] }
 0x18e   : > { %1882 = vmatprep.subr.mxu0 %v8908_v47  ;;  %2129 = vmatprep.subr.mxu1 %v8909_v12  ;;  %v8944_v47 = vand.u32 4294901760, %v8943_v15  ;;  %v8945_v12 = vld [vmem:[#allocation66_spill] sm:$0xff] }
 0x190   : > { %v687_v1 = vpop.f32.mrf.mxu0 }
 0x191   : > { %1886 = vmatpush2.xpose.msra.mxu0 %v8911_v21  ;;  %2131 = vmatpush1.xpose.msra.mxu1 %v8912_v22 }
 0x192   : > { %1890 = vmatprep.subr.mxu0 %v8914_v31  ;;  %2133 = vmatprep.subr.mxu1 %v8915_v4  ;;  %v689_v35 = vpop.f32.mrf.mxu0  ;;  %v8947_v31 = vand.u32 4294901760, %v8946_v3  ;;  %v8948_v4 = vld [vmem:[#allocation68_spill] sm:$0xff] }
 0x194   : > { %v703_v5 = vpop.f32.mrf.mxu0 }
 0x195   : > { %1894 = vmatpush2.xpose.msra.mxu0 %v8917_v9  ;;  %2135 = vmatpush1.xpose.msra.mxu1 %v8918_v49  ;;  %v8951_v9 = vld [vmem:[#allocation69_spill] sm:$0xff] }
 0x196   : > { %1898 = vmatprep.subr.mxu0 %v8920_v54  ;;  %2137 = vmatprep.subr.mxu1 %v8921_v11  ;;  %v705_v59 = vpop.f32.mrf.mxu0 }
 0x198   : > { %v1192_v17 = vpop.f32.mrf.mxu1  ;;  %v719_v61 = vpop.f32.mrf.mxu0 }
 0x199   : > { %v6112_v20 = vadd.f32 %v1192_v17, %v687_v1  ;;  %1902 = vmatpush2.xpose.msra.mxu0 %v8923_v26  ;;  %2139 = vmatpush2.xpose.msra.mxu1 %v8924_v36  ;;  %v8955_v26 = vld [vmem:[#allocation89_spill] sm:$0xff] }
 0x19a   : > { %v1194_v30 = vpop.f32.mrf.mxu1  ;;  %1906 = vmatprep.subr.mxu0 %v8926_v43  ;;  %2141 = vmatprep.subr.mxu1 %v8927_v39  ;;  %v721_v16 = vpop.f32.mrf.mxu0  ;;  %v8956_v36 = vand.u32 4294901760, %v8955_v26 }
 0x19b   : > { %v6120_v48 = vadd.f32 %v1194_v30, %v689_v35  ;;  %v8957_v30 = vld [vmem:[#allocation74_spill] sm:$0xff] }
 0x19c   : > { %v1200_v62 = vpop.f32.mrf.mxu1  ;;  %v735_v56 = vpop.f32.mrf.mxu0 }
 0x19d   : > { %1910 = vmatpush2.xpose.msra.mxu0 %v8929_v37  ;;  %2143 = vmatpush2.xpose.msra.mxu1 %v8930_v18  ;;  %v6125_v38 = vadd.f32 %v1200_v62, %v703_v5  ;;  %v8949_v5 = vld [vmem:[#allocation85_spill] sm:$0xff]  ;;  %v8958_v62 = vld [vmem:[#allocation92_spill] sm:$0xff] }
 0x19e   : > { %1914 = vmatprep.subr.mxu0 %v8932_v28  ;;  %2145 = vmatprep.subr.mxu1 %v8933_v2  ;;  %v1202_v58 = vpop.f32.mrf.mxu1  ;;  %v737_v42 = vpop.f32.mrf.mxu0  ;;  %v8950_v45 = vand.u32 4294901760, %v8949_v5  ;;  %v8961_v18 = vld [vmem:[#allocation93_spill] sm:$0xff]  ;;  %v8963_v28 = vld [vmem:[#allocation79_spill] sm:$0xff] }
 0x19f   : > { %v6130_v55 = vadd.f32 %v1202_v58, %v705_v59  ;;  %v8952_v59 = vld [vmem:[#allocation88_spill] sm:$0xff]  ;;  %v8962_v40 = vand.u32 4294901760, %v8961_v18 }
 0x1a0   : > { %v1208_v34 = vpop.f32.mrf.mxu1  ;;  %v751_v6 = vpop.f32.mrf.mxu0  ;;  %v8953_v17 = vand.u32 4294901760, %v8952_v59  ;;  %v8989_v59 = vld [vmem:[#allocation98_spill] sm:$0xff] }
 0x1a1   : > { %1918 = vmatpush2.xpose.msra.mxu0 %v8935_v51  ;;  %2147 = vmatpush2.xpose.msra.mxu1 %v8936_v46  ;;  %v6135_v57 = vadd.f32 %v1208_v34, %v719_v61  ;;  %v8954_v61 = vld [vmem:[#allocation73_spill] sm:$0xff]  ;;  %v8966_v51 = vld [vmem:[#allocation82_spill] sm:$0xff] }
 0x1a2   : > { %1922 = vmatprep.subr.mxu0 %v8938_v19  ;;  %2149 = vmatprep.subr.mxu1 %v8939_v7  ;;  %v1210_v52 = vpop.f32.mrf.mxu1  ;;  %v753_v33 = vpop.f32.mrf.mxu0  ;;  %v8968_v19 = vand.u32 4294901760, %v8967_v8  ;;  %v8969_v7 = vld [vmem:[#allocation84_spill] sm:$0xff] }
 0x1a3   : > { %v6140_v44 = vadd.f32 %v1210_v52, %v721_v16  ;;  %v8970_v52 = vld [vmem:[#allocation100_spill] sm:$0xff] }
 0x1a4   : > { %v1216_v53 = vpop.f32.mrf.mxu1  ;;  %v767_v41 = vpop.f32.mrf.mxu0 }
 0x1a5   : > { %1926 = vmatpush2.xpose.msra.mxu0 %v8941_v24  ;;  %2151 = vmatpush2.xpose.msra.mxu1 %v8942_v50  ;;  %v6145_v63 = vadd.f32 %v1216_v53, %v735_v56  ;;  %v8959_v56 = vand.u32 4294901760, %v8958_v62  ;;  %v8972_v53 = vld [vmem:[#allocation86_spill] sm:$0xff]  ;;  %v8975_v24 = vld [vmem:[#allocation87_spill] sm:$0xff]  ;;  %v8976_v50 = vld [vmem:[#allocation104_spill] sm:$0xff] }
 0x1a6   : > { %1930 = vmatprep.subr.mxu0 %v8944_v47  ;;  %2153 = vmatprep.subr.mxu1 %v8945_v12  ;;  %v1218_v1 = vpop.f32.mrf.mxu1  ;;  %v769_v22 = vpop.f32.mrf.mxu0  ;;  %v8977_v15 = vand.u32 4294901760, %v8976_v50  ;;  %v8978_v47 = vld [vmem:[#allocation105_spill] sm:$0xff]  ;;  %v8994_v62 = vld [vmem:[#allocation119_spill] sm:$0xff] }
 0x1a7   : > { %v6150_v32 = vadd.f32 %v1218_v1, %v737_v42  ;;  %v8979_v12 = vand.u32 4294901760, %v8978_v47  ;;  %v8980_v1 = vld [vmem:[#allocation91_spill] sm:$0xff] }
 0x1a8   : > { %v1224_v21 = vpop.f32.mrf.mxu1  ;;  %v783_v54 = vpop.f32.mrf.mxu0 }
 0x1a9   : > { %1934 = vmatpush2.xpose.msra.mxu0 %v8947_v31  ;;  %2155 = vmatpush2.xpose.msra.mxu1 %v8948_v4  ;;  %v6155_v35 = vadd.f32 %v1224_v21, %v751_v6  ;;  %v8964_v6 = vld [vmem:[#allocation96_spill] sm:$0xff]  ;;  %v354_v21 = vld [vmem:[#allocation8 + $0x1f8] sm:$0xff] }
 0x1aa   : > { %1938 = vmatprep.subr.mxu0 %v8950_v45  ;;  %2157 = vmatprep.subr.mxu1 %v8951_v9  ;;  %v1226_v49 = vpop.f32.mrf.mxu1  ;;  %v785_v39 = vpop.f32.mrf.mxu0  ;;  %v8965_v0 = vand.u32 4294901760, %v8964_v6  ;;  %v8983_v31 = vld [vmem:[#allocation94_spill] sm:$0xff]  ;;  %v8984_v4 = vld [vmem:[#allocation108_spill] sm:$0xff]  ;;  %v8986_v45 = vld [vmem:[#allocation95_spill] sm:$0xff] }
 0x1ab   : > { %v6160_v10 = vadd.f32 %v1226_v49, %v753_v33  ;;  %v8971_v33 = vand.u32 4294901760, %v8970_v52  ;;  %v8985_v5 = vand.u32 4294901760, %v8984_v4  ;;  %v353_v9 = vld [vmem:[#allocation8 + $0x1f0] sm:$0xff]  ;;  %v6208_v49 = vand.u32 4294901760, %v354_v21  ;;  %v9002_v52 = vld [vmem:[#allocation106_spill] sm:$0xff] }
 0x1ac   : > { %v1232_v11 = vpop.f32.mrf.mxu1  ;;  %v799_v42 = vpop.f32.mrf.mxu0 }
 0x1ad   : > { %1942 = vmatpush2.xpose.msra.mxu0 %v8953_v17  ;;  %2159 = vmatpush2.xpose.msra.mxu1 %v8954_v61  ;;  %v6165_v13 = vadd.f32 %v1232_v11, %v767_v41  ;;  %v8973_v41 = vld [vmem:[#allocation101_spill] sm:$0xff]  ;;  %v6213_v17 = vand.u32 4294901760, %v353_v9  ;;  %v8990_v61 = vld [vmem:[#allocation114_spill] sm:$0xff] }
 0x1ae   : > { %1946 = vmatprep.subr.mxu0 %v8956_v36  ;;  %2161 = vmatprep.subr.mxu1 %v8957_v30  ;;  %v1234_v23 = vpop.f32.mrf.mxu1  ;;  %v8974_v60 = vand.u32 4294901760, %v8973_v41  ;;  %v8991_v26 = vand.u32 4294901760, %v8990_v61  ;;  %v8992_v36 = vld [vmem:[#allocation99_spill] sm:$0xff]  ;;  %v349_v30 = vld [vmem:[#allocation8 + $0x1d0] sm:$0xff] }
 0x1af   : > { %v6170_v43 = vadd.f32 %v1234_v23, %v769_v22  ;;  %v8981_v22 = vld [vmem:[#allocation107_spill] sm:$0xff]  ;;  %v6227_v18 = vsub.f32 %v353_v9, %v6213_v17 }
 0x1b0   : > { %v1240_v16 = vpop.f32.mrf.mxu1  ;;  %v8982_v3 = vand.u32 4294901760, %v8981_v22 }
 0x1b1   : > { %1950 = vmatpush2.xpose.msra.mxu0 %v8959_v56  ;;  %2163 = vmatpush2.xpose.msra.mxu1 %v8960_v27  ;;  %v6175_v37 = vadd.f32 %v1240_v16, %v783_v54  ;;  %v8987_v54 = vld [vmem:[#allocation112_spill] sm:$0xff]  ;;  %v346_v16 = vld [vmem:[#allocation8 + $0x1b8] sm:$0xff]  ;;  %v8995_v56 = vand.u32 4294901760, %v8994_v62  ;;  %v8275_v41 = vand.u32 4294901760, %v6227_v18 }
 0x1b2   : > { %1954 = vmatprep.subr.mxu0 %v8962_v40  ;;  %2165 = vmatprep.subr.mxu1 %v8963_v28  ;;  %v1242_v2 = vpop.f32.mrf.mxu1  ;;  %v8988_v11 = vand.u32 4294901760, %v8987_v54  ;;  %v8996_v27 = vld [vmem:[#allocation102_spill] sm:$0xff]  ;;  %v6229_v40 = vand.u32 4294901760, %v349_v30  ;;  %v8997_v28 = vld [vmem:[#allocation120_spill] sm:$0xff]  ;;  %v6234_v6 = vand.u32 4294901760, %v346_v16 }
 0x1b3   : > { %v6180_v58 = vadd.f32 %v1242_v2, %v785_v39  ;;  %v6221_v39 = vsub.f32 %v354_v21, %v6208_v49  ;;  %v8998_v2 = vand.u32 4294901760, %v8997_v28  ;;  %v9006_v21 = vld [vmem:[#allocation111_spill] sm:$0xff]  ;;  %v2531_v4 = vsub.f32 %v6227_v18, %v8275_v41 }
 0x1b4   : > { %v1248_v34 = vpop.f32.mrf.mxu1  ;;  %v9024_v41 = vld [vmem:[#allocation131_spill] sm:$0xff] }
 0x1b5   : > { %1958 = vmatpush2.xpose.msra.mxu0 %v8965_v0  ;;  %2167 = vmatpush2.xpose.msra.mxu1 %v8966_v51  ;;  %v6185_v46 = vadd.f32 %v1248_v34, %v799_v42  ;;  %8993 = vst [vmem:[#allocation76_spill] sm:$0xff] %v6221_v39  ;;  %v8999_v42 = vld [vmem:[#allocation103_spill] sm:$0xff]  ;;  %v345_v34 = vld [vmem:[#allocation8 + $0x1b0] sm:$0xff]  ;;  %v8277_v0 = vand.u32 4294901760, %v6221_v39  ;;  %v342_v51 = vld [vmem:[#allocation8 + $0x198] sm:$0xff] }
 0x1b6   : > { %1962 = vmatprep.subr.mxu0 %v8968_v19  ;;  %2169 = vmatprep.subr.mxu1 %v8969_v7  ;;  %v9000_v19 = vld [vmem:[#allocation125_spill] sm:$0xff]  ;;  %v6251_v50 = vand.u32 4294901760, %v342_v51 }
 0x1b7   : > { %v9001_v7 = vand.u32 4294901760, %v9000_v19  ;;  %v9015_v19 = vld [vmem:[#allocation124_spill] sm:$0xff] }
 0x1b8   : > { %9005 = vst [vmem:[#allocation18_spill] sm:$0xff] %v6251_v50  ;;  %v6277_v54 = vsub.f32 %v342_v51, %v6251_v50 }
 0x1b9   : > { %1966 = vmatpush2.xpose.msra.mxu0 %v8971_v33  ;;  %2171 = vmatpush2.xpose.msra.mxu1 %v8972_v53  ;;  %v6244_v33 = vsub.f32 %v349_v30, %v6229_v40  ;;  %v6246_v53 = vand.u32 4294901760, %v345_v34  ;;  %v2532_v30 = vand.u32 4294901760, %v2531_v4  ;;  %v9017_v4 = vld [vmem:[#allocation126_spill] sm:$0xff] }
 0x1ba   : > { %1970 = vmatprep.subr.mxu0 %v8974_v60  ;;  %2173 = vmatprep.subr.mxu1 %v8975_v24  ;;  %v341_v60 = vld [vmem:[#allocation8 + $0x190] sm:$0xff]  ;;  %v8272_v28 = vand.u32 4294901760, %v6277_v54 }
 0x1bb   : > { %9003 = vst [vmem:[#allocation26_spill] sm:$0xff] %v6246_v53  ;;  %v9004_v24 = vld [vmem:[#allocation109_spill] sm:$0xff]  ;;  %v6261_v22 = vand.u32 4294901760, %v341_v60 }
 0x1bd   : > { %1974 = vmatpush2.xpose.msra.mxu0 %v8977_v15  ;;  %2175 = vmatpush2.xpose.msra.mxu1 %v8816_v14  ;;  %v350_v14 = vld [vmem:[#allocation8 + $0x1d8] sm:$0xff]  ;;  %v2525_v15 = vsub.f32 %v6221_v39, %v8277_v0  ;;  %9007 = vst [vmem:[#allocation27_spill] sm:$0xff] %v6261_v22 }
 0x1be   : > { %1978 = vmatprep.subr.mxu0 %v8979_v12  ;;  %2177 = vmatprep.subr.mxu1 %v8980_v1  ;;  %v6218_v23 = vand.u32 4294901760, %v350_v14  ;;  %v338_v12 = vld [vmem:[#allocation8 + $0x178] sm:$0xff]  ;;  %v6258_v1 = vsub.f32 %v346_v16, %v6234_v6 }
 0x1bf   : > { %v6274_v9 = vand.u32 4294901760, %v338_v12  ;;  %v322_v0 = vld [vmem:[#allocation8 + $0xf8] sm:$0xff] }
 0x1c0   : > { %v6238_v8 = vsub.f32 %v350_v14, %v6218_v23  ;;  %v337_v14 = vld [vmem:[#allocation8 + $0x170] sm:$0xff]  ;;  %v8271_v61 = vand.u32 4294901760, %v6258_v1 }
 0x1c1   : > { %1982 = vmatpush2.xpose.msra.mxu0 %v8982_v3  ;;  %2179 = vmatpush2.xpose.msra.mxu1 %v8983_v31  ;;  %v9008_v3 = vld [vmem:[#allocation110_spill] sm:$0xff]  ;;  %v6266_v31 = vsub.f32 %v345_v34, %v6246_v53  ;;  %9010 = vst [vmem:[#allocation19_spill] sm:$0xff] %v6274_v9  ;;  %v6293_v62 = vand.u32 4294901760, %v337_v14 }
 0x1c2   : > { %1986 = vmatprep.subr.mxu0 %v8985_v5  ;;  %2181 = vmatprep.subr.mxu1 %v8986_v45  ;;  %v8274_v47 = vand.u32 4294901760, %v6238_v8  ;;  %v8273_v5 = vand.u32 4294901760, %v6244_v33  ;;  %v9009_v45 = vld [vmem:[#allocation115_spill] sm:$0xff]  ;;  %v2549_v34 = vsub.f32 %v6258_v1, %v8271_v61 }
 0x1c3   : > { %9012 = vst [vmem:[#allocation29_spill] sm:$0xff] %v6293_v62  ;;  %v9021_v61 = vld [vmem:[#allocation127_spill] sm:$0xff] }
 0x1c4   : > { %v2543_v16 = vsub.f32 %v6244_v33, %v8273_v5 }
 0x1c5   : > { %1990 = vmatpush2.xpose.msra.mxu0 %v8988_v11  ;;  %2183 = vmatpush2.xpose.msra.mxu1 %v8989_v59  ;;  %v2526_v11 = vand.u32 4294901760, %v2525_v15  ;;  %v2537_v59 = vsub.f32 %v6238_v8, %v8274_v47  ;;  %v6313_v15 = vsub.f32 %v337_v14, %v6293_v62  ;;  %v2550_v14 = vand.u32 4294901760, %v2549_v34  ;;  %v325_v47 = vld [vmem:[#allocation8 + $0x110] sm:$0xff] }
 0x1c6   : > { %1994 = vmatprep.subr.mxu0 %v8991_v26  ;;  %2185 = vmatprep.subr.mxu1 %v8992_v36  ;;  %v9011_v26 = vld [vmem:[#allocation118_spill] sm:$0xff]  ;;  %v6286_v36 = vsub.f32 %v341_v60, %v6261_v22 }
 0x1c7   : > { %v262_v60 = vld [vmem:[%s5001_s14 + $0x18] sm:$0xff] }
 0x1c9   : > { %1998 = vmatpush2.xpose.msra.mxu0 %v8995_v56  ;;  %2187 = vmatpush2.xpose.msra.mxu1 %v8996_v27  ;;  %v8270_v56 = vand.u32 4294901760, %v6266_v31  ;;  %v9013_v27 = vld [vmem:[#allocation122_spill] sm:$0xff] }
 0x1ca   : > { %2002 = vmatprep.subr.mxu0 %v8998_v2  ;;  %2189 = vmatprep.subr.mxu1 %v8999_v42  ;;  %v333_v2 = vld [vmem:[#allocation8 + $0x150] sm:$0xff]  ;;  %v2538_v42 = vand.u32 4294901760, %v2537_v59 }
 0x1cb   : > { %v329_v59 = vld [vmem:[#allocation8 + $0x130] sm:$0xff] }
 0x1cd   : > { %2006 = vmatpush2.xpose.msra.mxu0 %v9001_v7  ;;  %2191 = vmatpush2.xpose.msra.mxu1 %v9002_v52  ;;  %v8276_v7 = vand.u32 4294901760, %v6286_v36  ;;  %v330_v52 = vld [vmem:[#allocation8 + $0x138] sm:$0xff] }
 0x1ce   : > { %2193 = vmatprep.subr.mxu1 %v9004_v24  ;;  %2266 = vmatprep.subr.mxu0 %v6208_v49  ;;  %v2544_v24 = vand.u32 4294901760, %v2543_v16 }
 0x1d0   : > { %2010 = vmatmul.mubr.f32.vlgmr.msra.gmra.mxu0 %v9006_v21 }
 0x1d1   : > { %2195 = vmatpush2.xpose.msra.mxu1 %v9008_v3  ;;  %2268 = vmatpush1.xpose.msra.mxu0 %v6213_v17  ;;  %v6318_v3 = vand.u32 4294901760, %v333_v2 }
 0x1d2   : > { %2016 = vmatprep.mubr.f32.mxu0 %v9009_v45  ;;  %2197 = vmatprep.subr.mxu1 %v8839_v29  ;;  %v334_v29 = vld [vmem:[#allocation8 + $0x158] sm:$0xff] }
 0x1d3   : > { %2270 = vmatprep.subr.mxu0 %v6218_v23  ;;  %v6305_v51 = vand.u32 4294901760, %v334_v29  ;;  %9016 = vst [vmem:[#allocation31_spill] sm:$0xff] %v6318_v3  ;;  %v6341_v34 = vsub.f32 %v333_v2, %v6318_v3 }
 0x1d4   : > { %2018 = vmatmul.mubr.f32.gmra.mxu0 %v9011_v26 }
 0x1d5   : > { %2199 = vmatpush2.xpose.msra.mxu1 %v8843_v25  ;;  %2272 = vmatpush1.xpose.msra.mxu0 %v6229_v40  ;;  %v6300_v25 = vsub.f32 %v338_v12, %v6274_v9  ;;  %9014 = vst [vmem:[#allocation20_spill] sm:$0xff] %v6305_v51  ;;  %v2555_v12 = vsub.f32 %v6266_v31, %v8270_v56  ;;  %v6332_v56 = vand.u32 4294901760, %v262_v60  ;;  %9022 = vst [vmem:[#allocation35_spill] sm:$0xff] %v6341_v34 }
 0x1d6   : > { %2024 = vmatprep.mubr.f32.mxu0 %v9013_v27  ;;  %2274 = vmatprep.subr.mxu0 %v6234_v6  ;;  %v6330_v16 = vsub.f32 %v334_v29, %v6305_v51  ;;  %v6343_v29 = vand.u32 4294901760, %v329_v59 }
 0x1d7   : > { %2527 = vmatprep.subr.mxu1 %v2526_v11  ;;  %v8278_v11 = vand.u32 4294901760, %v6300_v25  ;;  %9020 = vst [vmem:[#allocation22_spill] sm:$0xff] %v6332_v56  ;;  %v6359_v5 = vsub.f32 %v262_v60, %v6332_v56 }
 0x1d8   : > { %2026 = vmatmul.mubr.f32.gmra.mxu0 %v9015_v19  ;;  %2203 = vmatmul.mubr.f32.vlgmr.msra.gmra.mxu1 %v9006_v21  ;;  %v2561_v21 = vsub.f32 %v6277_v54, %v8272_v28  ;;  %9019 = vst [vmem:[#allocation34_spill] sm:$0xff] %v6330_v16  ;;  %v326_v28 = vld [vmem:[#allocation8 + $0x118] sm:$0xff]  ;;  %9023 = vst [vmem:[#allocation23_spill] sm:$0xff] %v6343_v29 }
 0x1d9   : > { %2276 = vmatpush1.xpose.msra.mxu0 %v6246_v53  ;;  %2533 = vmatpush1.xpose.msra.mxu1 %v2532_v30  ;;  %v6327_v30 = vand.u32 4294901760, %v330_v52  ;;  %v6352_v2 = vand.u32 4294901760, %v326_v28  ;;  %9027 = vst [vmem:[#allocation39_spill] sm:$0xff] %v6359_v5  ;;  %v9035_v53 = vld [vmem:[#allocation134_spill] sm:$0xff] }
 0x1da   : > { %2032 = vmatprep.mubr.f32.mxu0 %v9017_v4  ;;  %2209 = vmatprep.mubr.f32.mxu1 %v9009_v45  ;;  %v2567_v45 = vsub.f32 %v6286_v36, %v8276_v7  ;;  %v2573_v7 = vsub.f32 %v6300_v25, %v8278_v11  ;;  %v6363_v11 = vand.u32 4294901760, %v325_v47 }
 0x1db   : > { %2278 = vmatprep.subr.mxu0 %v6251_v50  ;;  %2539 = vmatprep.subr.mxu1 %v2538_v42  ;;  %9018 = vst [vmem:[#allocation21_spill] sm:$0xff] %v6327_v30  ;;  %v2556_v42 = vand.u32 4294901760, %v2555_v12  ;;  %9025 = vst [vmem:[#allocation38_spill] sm:$0xff] %v6352_v2  ;;  %v6356_v12 = vsub.f32 %v330_v52, %v6327_v30  ;;  %v9033_v50 = vld [vmem:[#allocation133_spill] sm:$0xff]  ;;  %v6383_v60 = vsub.f32 %v326_v28, %v6352_v2 }
 0x1dc   : > { %2034 = vmatmul.mubr.f32.gmra.mxu0 %v9021_v61  ;;  %2211 = vmatmul.mubr.f32.gmra.mxu1 %v9011_v26  ;;  %v2562_v26 = vand.u32 4294901760, %v2561_v21  ;;  %v2568_v21 = vand.u32 4294901760, %v2567_v45  ;;  %9029 = vst [vmem:[#allocation90_spill] sm:$0xff] %v6363_v11 }
 0x1dd   : > { %2280 = vmatpush1.xpose.msra.mxu0 %v6261_v22  ;;  %2545 = vmatpush1.xpose.msra.mxu1 %v2544_v24  ;;  %9026 = vst [vmem:[#allocation24_spill] sm:$0xff] %v6356_v12  ;;  %v9031_v24 = vand.u32 4294901760, %v6313_v15  ;;  %v321_v22 = vld [vmem:[#allocation8 + $0xf0] sm:$0xff] }
 0x1de   : > { %2040 = vmatprep.mubr.f32.mxu0 %v9024_v41  ;;  %2217 = vmatprep.mubr.f32.mxu1 %v9013_v27  ;;  %v9028_v27 = vld [vmem:[#allocation132_spill] sm:$0xff] }
 0x1df   : > { %2282 = vmatprep.subr.mxu0 %v6274_v9  ;;  %2551 = vmatprep.subr.mxu1 %v2550_v14  ;;  %v6367_v14 = vsub.f32 %v329_v59, %v6343_v29  ;;  %v2579_v52 = vsub.f32 %v6313_v15, %v9031_v24  ;;  %v6373_v9 = vand.u32 4294901760, %v322_v0  ;;  %v9034_v59 = vand.u32 4294901760, %v6330_v16  ;;  %v318_v24 = vld [vmem:[#allocation8 + $0xd8] sm:$0xff] }
 0x1e0   : > { %2042 = vmatmul.mubr.f32.gmra.mxu0 %v9028_v27  ;;  %2219 = vmatmul.mubr.f32.gmra.mxu1 %v9015_v19  ;;  %v2574_v19 = vand.u32 4294901760, %v2573_v7  ;;  %v6389_v7 = vsub.f32 %v325_v47, %v6363_v11  ;;  %v6403_v47 = vand.u32 4294901760, %v318_v24 }
 0x1e1   : > { %2284 = vmatpush1.xpose.msra.mxu0 %v6293_v62  ;;  %2557 = vmatpush1.xpose.msra.mxu1 %v2556_v42  ;;  %9030 = vst [vmem:[#allocation15_spill] sm:$0xff] %v6367_v14  ;;  %9032 = vst [vmem:[#allocation117_spill] sm:$0xff] %v6373_v9  ;;  %v2585_v45 = vsub.f32 %v6330_v16, %v9034_v59  ;;  %v9037_v59 = vand.u32 4294901760, %v6341_v34  ;;  %v6399_v62 = vsub.f32 %v322_v0, %v6373_v9  ;;  %v9043_v16 = vld [vmem:[#allocation136_spill] sm:$0xff] }
 0x1e2   : > { %2048 = vmatprep.mubr.f32.mxu0 %v9033_v50  ;;  %2225 = vmatprep.mubr.f32.mxu1 %v9017_v4  ;;  %v6391_v4 = vand.u32 4294901760, %v321_v22  ;;  %9040 = vst [vmem:[#allocation113_spill] sm:$0xff] %v6403_v47  ;;  %v9042_v0 = vand.u32 4294901760, %v6359_v5 }
 0x1e3   : > { %2286 = vmatprep.subr.mxu0 %v6305_v51  ;;  %2563 = vmatprep.subr.mxu1 %v2562_v26  ;;  %v2580_v26 = vand.u32 4294901760, %v2579_v52  ;;  %v2591_v28 = vsub.f32 %v6341_v34, %v9037_v59  ;;  %9038 = vst [vmem:[#allocation121_spill] sm:$0xff] %v6399_v62  ;;  %v9039_v51 = vld [vmem:[#allocation135_spill] sm:$0xff]  ;;  %v9041_v52 = vand.u32 4294901760, %v6356_v12 }
 0x1e4   : > { %2050 = vmatmul.mubr.f32.gmra.mxu0 %v9035_v53  ;;  %2227 = vmatmul.mubr.f32.gmra.mxu1 %v9021_v61  ;;  %9036 = vst [vmem:[#allocation16_spill] sm:$0xff] %v6391_v4  ;;  %v317_v61 = vld [vmem:[#allocation8 + $0xd0] sm:$0xff]  ;;  %v2396_v34 = vsub.f32 %v6359_v5, %v9042_v0 }
 0x1e5   : > { %2288 = vmatpush1.xpose.msra.mxu0 %v6318_v3  ;;  %2569 = vmatpush1.xpose.msra.mxu1 %v2568_v21  ;;  %v2586_v21 = vand.u32 4294901760, %v2585_v45  ;;  %v2597_v59 = vsub.f32 %v6356_v12, %v9041_v52  ;;  %v314_v3 = vld [vmem:[#allocation8 + $0xb8] sm:$0xff]  ;;  %v2592_v45 = vand.u32 4294901760, %v2591_v28  ;;  %v9045_v52 = vand.u32 4294901760, %v6367_v14  ;;  %v9047_v5 = vld [vmem:[#allocation137_spill] sm:$0xff] }
 0x1e6   : > { %2056 = vmatprep.mubr.f32.mxu0 %v9039_v51  ;;  %2233 = vmatprep.mubr.f32.mxu1 %v9024_v41  ;;  %v6416_v41 = vsub.f32 %v321_v22, %v6391_v4  ;;  %v6428_v22 = vand.u32 4294901760, %v314_v3  ;;  %v9050_v28 = vand.u32 4294901760, %v6383_v60  ;;  %v2397_v0 = vand.u32 4294901760, %v2396_v34 }
 0x1e7   : > { %2290 = vmatprep.subr.mxu0 %v6327_v30  ;;  %2575 = vmatprep.subr.mxu1 %v2574_v19  ;;  %v2603_v42 = vsub.f32 %v6367_v14, %v9045_v52  ;;  %v6423_v30 = vand.u32 4294901760, %v317_v61  ;;  %v6431_v19 = vsub.f32 %v318_v24, %v6403_v47  ;;  %v9051_v14 = vld [vmem:[#allocation138_spill] sm:$0xff]  ;;  %v309_v24 = vld [vmem:[#allocation8 + $0x90] sm:$0xff] }
 0x1e8   : > { %2058 = vmatmul.mubr.f32.gmra.mxu0 %v9043_v16  ;;  %2235 = vmatmul.mubr.f32.gmra.mxu1 %v9028_v27  ;;  %9044 = vst [vmem:[#allocation17_spill] sm:$0xff] %v6416_v41  ;;  %9048 = vst [vmem:[#allocation116_spill] sm:$0xff] %v6428_v22  ;;  %v313_v27 = vld [vmem:[#allocation8 + $0xb0] sm:$0xff]  ;;  %v2609_v52 = vsub.f32 %v6383_v60, %v9050_v28  ;;  %v9054_v28 = vand.u32 4294901760, %v6399_v62 }
 0x1e9   : > { %2292 = vmatpush1.xpose.msra.mxu0 %v6343_v29  ;;  %2581 = vmatpush1.xpose.msra.mxu1 %v2580_v26  ;;  %9046 = vst [vmem:[#allocation123_spill] sm:$0xff] %v6423_v30  ;;  %9049 = vst [vmem:[#allocation128_spill] sm:$0xff] %v6431_v19  ;;  %v2598_v26 = vand.u32 4294901760, %v2597_v59  ;;  %v310_v29 = vld [vmem:[#allocation8 + $0x98] sm:$0xff]  ;;  %v6445_v59 = vsub.f32 %v317_v61, %v6423_v30 }
 0x1ea   : > { %2064 = vmatprep.mubr.f32.mxu0 %v9047_v5  ;;  %2241 = vmatprep.mubr.f32.mxu1 %v9033_v50  ;;  %v9052_v50 = vand.u32 4294901760, %v6389_v7  ;;  %v2621_v34 = vsub.f32 %v6399_v62, %v9054_v28  ;;  %v2610_v61 = vand.u32 4294901760, %v2609_v52  ;;  %v305_v52 = vld [vmem:[#allocation8 + $0x70] sm:$0xff] }
 0x1eb   : > { %2294 = vmatprep.subr.mxu0 %v6352_v2  ;;  %2587 = vmatprep.subr.mxu1 %v2586_v21  ;;  %v2604_v21 = vand.u32 4294901760, %v2603_v42  ;;  %9053 = vst [vmem:[#allocation129_spill] sm:$0xff] %v6445_v59  ;;  %v6450_v2 = vand.u32 4294901760, %v313_v27  ;;  %v6458_v42 = vsub.f32 %v314_v3, %v6428_v22  ;;  %v6468_v3 = vand.u32 4294901760, %v309_v24 }
 0x1ec   : > { %2066 = vmatmul.mubr.f32.gmra.mxu0 %v9051_v14  ;;  %2243 = vmatmul.mubr.f32.gmra.mxu1 %v9035_v53  ;;  %v2615_v12 = vsub.f32 %v6389_v7, %v9052_v50  ;;  %v6454_v53 = vand.u32 4294901760, %v310_v29 }
 0x1ed   : > { %2296 = vmatpush1.xpose.msra.mxu0 %v6363_v11  ;;  %2593 = vmatpush1.xpose.msra.mxu1 %v2592_v45  ;;  %9055 = vst [vmem:[#allocation130_spill] sm:$0xff] %v6450_v2  ;;  %9057 = vst [vmem:[#allocation25_spill] sm:$0xff] %v6458_v42  ;;  %v306_v45 = vld [vmem:[#allocation8 + $0x78] sm:$0xff]  ;;  %v9058_v11 = vand.u32 4294901760, %v6416_v41  ;;  %v6466_v50 = vsub.f32 %v313_v27, %v6450_v2 }
 0x1ee   : > { %2249 = vmatprep.mubr.f32.mxu1 %v9039_v51  ;;  %2298 = vmatprep.subr.mxu0 %v6373_v9  ;;  %9056 = vst [vmem:[#allocation72_spill] sm:$0xff] %v6454_v53  ;;  %v2616_v28 = vand.u32 4294901760, %v2615_v12  ;;  %v2622_v9 = vand.u32 4294901760, %v2621_v34  ;;  %9060 = vst [vmem:[#allocation28_spill] sm:$0xff] %v6468_v3  ;;  %v6476_v12 = vand.u32 4294901760, %v306_v45  ;;  %v6480_v27 = vsub.f32 %v310_v29, %v6454_v53 }
 0x1ef   : > { %2599 = vmatprep.subr.mxu1 %v2598_v26  ;;  %2398 = vmatprep.mubr.f32.mxu0 %v2397_v0  ;;  %v2627_v51 = vsub.f32 %v6416_v41, %v9058_v11  ;;  %9059 = vst [vmem:[#allocation42_spill] sm:$0xff] %v6466_v50  ;;  %v6483_v26 = vand.u32 4294901760, %v305_v52 }
 0x1f0   : > { %2251 = vmatmul.mubr.f32.gmra.mxu1 %v9043_v16  ;;  %v9061_v16 = vand.u32 4294901760, %v6431_v19  ;;  %9062 = vst [vmem:[#allocation43_spill] sm:$0xff] %v6476_v12  ;;  %9063 = vst [vmem:[#allocation30_spill] sm:$0xff] %v6480_v27 }
 0x1f1   : > { %2300 = vmatpush1.xpose.msra.mxu0 %v6391_v4  ;;  %2605 = vmatpush1.xpose.msra.mxu1 %v2604_v21  ;;  %v302_v21 = vld [vmem:[#allocation8 + $0x58] sm:$0xff]  ;;  %v2628_v34 = vand.u32 4294901760, %v2627_v51  ;;  %9064 = vst [vmem:[#allocation45_spill] sm:$0xff] %v6483_v26  ;;  %v9068_v51 = vand.u32 4294901760, %v6458_v42 }
 0x1f2   : > { %2257 = vmatprep.mubr.f32.mxu1 %v9047_v5  ;;  %2302 = vmatprep.subr.mxu0 %v6403_v47  ;;  %v2633_v11 = vsub.f32 %v6431_v19, %v9061_v16  ;;  %v6487_v5 = vsub.f32 %v309_v24, %v6468_v3  ;;  %v9066_v16 = vand.u32 4294901760, %v6445_v59  ;;  %v6493_v29 = vand.u32 4294901760, %v302_v21  ;;  %v298_v4 = vld [vmem:[#allocation8 + $0x38] sm:$0xff] }
 0x1f3   : > { %2611 = vmatprep.subr.mxu1 %v2610_v61  ;;  %v301_v61 = vld [vmem:[#allocation8 + $0x50] sm:$0xff] }
 0x1f4   : > { %2259 = vmatmul.mubr.f32.gmra.mxu1 %v9051_v14  ;;  %9065 = vst [vmem:[#allocation32_spill] sm:$0xff] %v6487_v5  ;;  %v2639_v0 = vsub.f32 %v6445_v59, %v9066_v16  ;;  %9067 = vst [vmem:[#allocation47_spill] sm:$0xff] %v6493_v29  ;;  %v2634_v14 = vand.u32 4294901760, %v2633_v11  ;;  %v6505_v16 = vsub.f32 %v305_v52, %v6483_v26  ;;  %v6507_v47 = vand.u32 4294901760, %v301_v61  ;;  %v6604_v59 = vpop.f32.mrf.mxu0 }
 0x1f5   : > { %2304 = vmatpush1.xpose.msra.mxu0 %v6423_v30  ;;  %2617 = vmatpush1.xpose.msra.mxu1 %v2616_v28  ;;  %v2645_v28 = vsub.f32 %v6458_v42, %v9068_v51  ;;  %v6501_v30 = vsub.f32 %v306_v45, %v6476_v12  ;;  %v9072_v11 = vand.u32 4294901760, %v6466_v50  ;;  %v8333_v24 = vand.u32 4294901760, %v6487_v5  ;;  %v294_v42 = vld [vmem:[#allocation8 + $0x18] sm:$0xff]  ;;  %9099 = vst [vmem:[#allocation70_spill] sm:$0xff] %v6604_v59 }
 0x1f6   : > { %2306 = vmatprep.subr.mxu0 %v6428_v22  ;;  %2623 = vmatprep.subr.mxu1 %v2622_v9  ;;  %9070 = vst [vmem:[#allocation50_spill] sm:$0xff] %v6505_v16  ;;  %9071 = vst [vmem:[#allocation36_spill] sm:$0xff] %v6507_v47  ;;  %v2640_v9 = vand.u32 4294901760, %v2639_v0  ;;  %v6515_v45 = vsub.f32 %v302_v21, %v6493_v29 }
 0x1f7   : > { %9069 = vst [vmem:[#allocation33_spill] sm:$0xff] %v6501_v30  ;;  %2907 = vmatprep.mubr.f32.mxu1 %v6332_v56  ;;  %v2651_v51 = vsub.f32 %v6466_v50, %v9072_v11  ;;  %v2646_v52 = vand.u32 4294901760, %v2645_v28  ;;  %v9074_v56 = vand.u32 4294901760, %v6480_v27  ;;  %v6525_v11 = vsub.f32 %v301_v61, %v6507_v47 }
 0x1f8   : > { %9073 = vst [vmem:[#allocation51_spill] sm:$0xff] %v6515_v45  ;;  %v2663_v28 = vsub.f32 %v6487_v5, %v8333_v24  ;;  %v9078_v61 = vand.u32 4294901760, %v6501_v30  ;;  %v9081_v24 = vand.u32 4294901760, %v6505_v16 }
 0x1f9   : > { %2308 = vmatpush1.xpose.msra.mxu0 %v6450_v2  ;;  %2629 = vmatpush1.xpose.msra.mxu1 %v2628_v34  ;;  %v2657_v22 = vsub.f32 %v6480_v27, %v9074_v56  ;;  %v6521_v2 = vand.u32 4294901760, %v298_v4  ;;  %v297_v34 = vld [vmem:[#allocation8 + $0x30] sm:$0xff]  ;;  %9076 = vst [vmem:[#allocation54_spill] sm:$0xff] %v6525_v11  ;;  %v6539_v27 = vand.u32 4294901760, %v294_v42 }
 0x1fa   : > { %2310 = vmatprep.subr.mxu0 %v6454_v53  ;;  %2635 = vmatprep.subr.mxu1 %v2634_v14  ;;  %v2652_v14 = vand.u32 4294901760, %v2651_v51  ;;  %v6532_v56 = vand.u32 4294901760, %v297_v34  ;;  %v2669_v21 = vsub.f32 %v6501_v30, %v9078_v61  ;;  %v2675_v5 = vsub.f32 %v6505_v16, %v9081_v24 }
 0x1fb   : > { %9075 = vst [vmem:[#allocation37_spill] sm:$0xff] %v6521_v2  ;;  %v2658_v0 = vand.u32 4294901760, %v2657_v22  ;;  %9079 = vst [vmem:[#allocation55_spill] sm:$0xff] %v6539_v27  ;;  %v6542_v51 = vsub.f32 %v298_v4, %v6521_v2  ;;  %v2664_v22 = vand.u32 4294901760, %v2663_v28  ;;  %v9083_v61 = vand.u32 4294901760, %v6515_v45 }
 0x1fc   : > { %9077 = vst [vmem:[#allocation40_spill] sm:$0xff] %v6532_v56  ;;  %v2670_v30 = vand.u32 4294901760, %v2669_v21  ;;  %v2676_v28 = vand.u32 4294901760, %v2675_v5  ;;  %v9087_v16 = vand.u32 4294901760, %v6525_v11 }
 0x1fd   : > { %2312 = vmatpush1.xpose.msra.mxu0 %v6468_v3  ;;  %2641 = vmatpush1.xpose.msra.mxu1 %v2640_v9  ;;  %v293_v9 = vld [vmem:[#allocation8 + $0x10] sm:$0xff]  ;;  %9080 = vst [vmem:[#allocation41_spill] sm:$0xff] %v6542_v51  ;;  %v418_v3 = vld [vmem:[#allocation8 + $0x3f8] sm:$0xff]  ;;  %v9090_v5 = vand.u32 4294901760, %v6542_v51 }
 0x1fe   : > { %2314 = vmatprep.subr.mxu0 %v6476_v12  ;;  %2647 = vmatprep.subr.mxu1 %v2646_v52  ;;  %v6550_v52 = vsub.f32 %v297_v34, %v6532_v56  ;;  %v2681_v12 = vsub.f32 %v6515_v45, %v9083_v61  ;;  %v6555_v4 = vand.u32 4294901760, %v293_v9  ;;  %v6558_v24 = vand.u32 4294901760, %v418_v3  ;;  %v414_v34 = vld [vmem:[#allocation8 + $0x3d8] sm:$0xff]  ;;  %v413_v45 = vld [vmem:[#allocation8 + $0x3d0] sm:$0xff] }
 0x1ff   : > { %v2687_v61 = vsub.f32 %v6525_v11, %v9087_v16  ;;  %v2693_v16 = vsub.f32 %v6542_v51, %v9090_v5  ;;  %v6578_v11 = vand.u32 4294901760, %v414_v34  ;;  %v409_v51 = vld [vmem:[#allocation8 + $0x3b0] sm:$0xff] }
 0x200   : > { %9082 = vst [vmem:[#allocation58_spill] sm:$0xff] %v6550_v52  ;;  %9084 = vst [vmem:[#allocation44_spill] sm:$0xff] %v6555_v4  ;;  %v9096_v5 = vand.u32 4294901760, %v6550_v52 }
 0x201   : > { %2316 = vmatpush1.xpose.msra.mxu0 %v6483_v26  ;;  %2653 = vmatpush1.xpose.msra.mxu1 %v2652_v14  ;;  %9085 = vst [vmem:[#allocation59_spill] sm:$0xff] %v6558_v24  ;;  %v417_v26 = vld [vmem:[#allocation8 + $0x3f0] sm:$0xff]  ;;  %v6562_v14 = vsub.f32 %v294_v42, %v6539_v27  ;;  %v410_v42 = vld [vmem:[#allocation8 + $0x3b8] sm:$0xff]  ;;  %9091 = vst [vmem:[#allocation63_spill] sm:$0xff] %v6578_v11  ;;  %v2688_v53 = vand.u32 4294901760, %v2687_v61 }
 0x202   : > { %2318 = vmatprep.subr.mxu0 %v6493_v29  ;;  %2659 = vmatprep.subr.mxu1 %v2658_v0  ;;  %v2682_v29 = vand.u32 4294901760, %v2681_v12  ;;  %v6569_v0 = vsub.f32 %v293_v9, %v6555_v4  ;;  %v6571_v21 = vand.u32 4294901760, %v417_v26  ;;  %v6582_v9 = vsub.f32 %v418_v3, %v6558_v24  ;;  %v406_v61 = vld [vmem:[#allocation8 + $0x398] sm:$0xff] }
 0x203   : > { %9086 = vst [vmem:[#allocation46_spill] sm:$0xff] %v6562_v14  ;;  %v2694_v3 = vand.u32 4294901760, %v2693_v16  ;;  %v9097_v50 = vand.u32 4294901760, %v6562_v14  ;;  %v6609_v12 = vand.u32 4294901760, %v409_v51 }
 0x204   : > { %9088 = vst [vmem:[#allocation61_spill] sm:$0xff] %v6569_v0  ;;  %9089 = vst [vmem:[#allocation48_spill] sm:$0xff] %v6571_v21  ;;  %v9103_v16 = vand.u32 4294901760, %v6569_v0  ;;  %v9104_v59 = vand.u32 4294901760, %v6582_v9 }
 0x205   : > { %2320 = vmatpush1.xpose.msra.mxu0 %v6507_v47  ;;  %2665 = vmatpush1.xpose.msra.mxu1 %v2664_v22  ;;  %9092 = vst [vmem:[#allocation49_spill] sm:$0xff] %v6582_v9  ;;  %v6584_v22 = vand.u32 4294901760, %v413_v45  ;;  %v6586_v47 = vand.u32 4294901760, %v410_v42  ;;  %9101 = vst [vmem:[#allocation71_spill] sm:$0xff] %v6609_v12 }
 0x206   : > { %2322 = vmatprep.subr.mxu0 %v6521_v2  ;;  %2671 = vmatprep.subr.mxu1 %v2670_v30  ;;  %v6590_v30 = vsub.f32 %v417_v26, %v6571_v21  ;;  %v2699_v2 = vsub.f32 %v6550_v52, %v9096_v5  ;;  %v6602_v26 = vsub.f32 %v414_v34, %v6578_v11 }
 0x207   : > { %9093 = vst [vmem:[#allocation64_spill] sm:$0xff] %v6584_v22  ;;  %9094 = vst [vmem:[#allocation52_spill] sm:$0xff] %v6586_v47  ;;  %v6607_v5 = vsub.f32 %v413_v45, %v6584_v22  ;;  %v2711_v34 = vsub.f32 %v6569_v0, %v9103_v16  ;;  %v6627_v52 = vsub.f32 %v409_v51, %v6609_v12 }
 0x208   : > { %9095 = vst [vmem:[#allocation67_spill] sm:$0xff] %v6590_v30  ;;  %9098 = vst [vmem:[#allocation53_spill] sm:$0xff] %v6602_v26  ;;  %v9109_v0 = vand.u32 4294901760, %v6602_v26 }
 0x209   : > { %2324 = vmatpush1.xpose.msra.mxu0 %v6532_v56  ;;  %2677 = vmatpush1.xpose.msra.mxu1 %v2676_v28  ;;  %v2705_v56 = vsub.f32 %v6562_v14, %v9097_v50  ;;  %9100 = vst [vmem:[#allocation56_spill] sm:$0xff] %v6607_v5  ;;  %v2700_v50 = vand.u32 4294901760, %v2699_v2  ;;  %v6623_v14 = vand.u32 4294901760, %v406_v61  ;;  %v402_v2 = vld [vmem:[#allocation8 + $0x378] sm:$0xff]  ;;  %9106 = vst [vmem:[#allocation60_spill] sm:$0xff] %v6627_v52  ;;  %v9119_v19 = vand.u32 4294901760, %v6627_v52 }
 0x20a   : > { %2326 = vmatprep.subr.mxu0 %v6539_v27  ;;  %2683 = vmatprep.subr.mxu1 %v2682_v29  ;;  %v6612_v29 = vsub.f32 %v410_v42, %v6586_v47  ;;  %v405_v27 = vld [vmem:[#allocation8 + $0x390] sm:$0xff]  ;;  %v2717_v42 = vsub.f32 %v6582_v9, %v9104_v59  ;;  %v2712_v59 = vand.u32 4294901760, %v2711_v34  ;;  %v2729_v28 = vsub.f32 %v6602_v26, %v9109_v0  ;;  %v398_v34 = vld [vmem:[#allocation8 + $0x358] sm:$0xff] }
 0x20b   : > { %v2706_v45 = vand.u32 4294901760, %v2705_v56  ;;  %9105 = vst [vmem:[#allocation75_spill] sm:$0xff] %v6623_v14  ;;  %v6629_v16 = vand.u32 4294901760, %v405_v27  ;;  %v397_v26 = vld [vmem:[#allocation8 + $0x350] sm:$0xff] }
 0x20c   : > { %9102 = vst [vmem:[#allocation57_spill] sm:$0xff] %v6612_v29  ;;  %v2718_v51 = vand.u32 4294901760, %v2717_v42 }
 0x20d   : > { %2328 = vmatpush1.xpose.msra.mxu0 %v6555_v4  ;;  %2689 = vmatpush1.xpose.msra.mxu1 %v2688_v53  ;;  %9107 = vst [vmem:[#allocation77_spill] sm:$0xff] %v6629_v16 }
 0x20e   : > { %2330 = vmatprep.subr.mxu0 %v6558_v24  ;;  %2695 = vmatprep.subr.mxu1 %v2694_v3  ;;  %v9108_v24 = vand.u32 4294901760, %v6590_v30  ;;  %v6642_v3 = vand.u32 4294901760, %v402_v2 }
 0x210   : > { %v1451_v4 = vpop.f32.mrf.mxu0  ;;  %v2723_v53 = vsub.f32 %v6590_v30, %v9108_v24  ;;  %9110 = vst [vmem:[#allocation62_spill] sm:$0xff] %v6642_v3  ;;  %v6649_v24 = vsub.f32 %v405_v27, %v6629_v16  ;;  %v6662_v27 = vpop.f32.mrf.mxu1 }
 0x211   : > { %v1452_v56 = vadd.f32 %v1451_v4, %v6112_v20  ;;  %2332 = vmatpush2.xpose.msra.mxu0 %v6571_v21  ;;  %2701 = vmatpush1.xpose.msra.mxu1 %v2700_v50  ;;  %v401_v20 = vld [vmem:[#allocation8 + $0x370] sm:$0xff]  ;;  %v6645_v4 = vsub.f32 %v406_v61, %v6623_v14  ;;  %9116 = vst [vmem:[#allocation66_spill] sm:$0xff] %v6662_v27 }
 0x212   : > { %v1453_v9 = vpop.f32.mrf.mxu0  ;;  %2334 = vmatprep.subr.mxu0 %v6578_v11  ;;  %2707 = vmatprep.subr.mxu1 %v2706_v45  ;;  %9112 = vst [vmem:[#allocation65_spill] sm:$0xff] %v6649_v24  ;;  %v9113_v45 = vand.u32 4294901760, %v6607_v5  ;;  %v9114_v11 = vand.u32 4294901760, %v6612_v29 }
 0x213   : > { %9111 = vst [vmem:[#allocation80_spill] sm:$0xff] %v6645_v4  ;;  %v1454_v50 = vadd.f32 %v1453_v9, %v6120_v48  ;;  %v2724_v48 = vand.u32 4294901760, %v2723_v53  ;;  %v6660_v9 = vand.u32 4294901760, %v401_v20  ;;  %v394_v53 = vld [vmem:[#allocation8 + $0x338] sm:$0xff] }
 0x214   : > { %v1461_v21 = vpop.f32.mrf.mxu0  ;;  %v2735_v42 = vsub.f32 %v6607_v5, %v9113_v45  ;;  %v2741_v0 = vsub.f32 %v6612_v29, %v9114_v11  ;;  %v2730_v45 = vand.u32 4294901760, %v2729_v28  ;;  %v6665_v5 = vand.u32 4294901760, %v398_v34 }
 0x215   : > { %v1462_v61 = vadd.f32 %v1461_v21, %v6125_v38  ;;  %2336 = vmatpush2.xpose.msra.mxu0 %v6584_v22  ;;  %2713 = vmatpush1.xpose.msra.mxu1 %v2712_v59  ;;  %9115 = vst [vmem:[#allocation81_spill] sm:$0xff] %v6660_v9  ;;  %v6669_v38 = vsub.f32 %v402_v2, %v6642_v3  ;;  %v393_v2 = vld [vmem:[#allocation8 + $0x330] sm:$0xff] }
 0x216   : > { %v1463_v30 = vpop.f32.mrf.mxu0  ;;  %2338 = vmatprep.subr.mxu0 %v6586_v47  ;;  %2719 = vmatprep.subr.mxu1 %v2718_v51  ;;  %9117 = vst [vmem:[#allocation83_spill] sm:$0xff] %v6665_v5  ;;  %v2736_v29 = vand.u32 4294901760, %v2735_v42  ;;  %v2742_v27 = vand.u32 4294901760, %v2741_v0  ;;  %v2747_v51 = vsub.f32 %v6627_v52, %v9119_v19  ;;  %v390_v42 = vld [vmem:[#allocation8 + $0x318] sm:$0xff]  ;;  %v9123_v19 = vand.u32 4294901760, %v6645_v4 }
 0x217   : > { %9118 = vst [vmem:[#allocation68_spill] sm:$0xff] %v6669_v38  ;;  %v1464_v21 = vadd.f32 %v1463_v30, %v6130_v55  ;;  %v6681_v55 = vsub.f32 %v401_v20, %v6660_v9  ;;  %v6683_v30 = vand.u32 4294901760, %v397_v26  ;;  %v6693_v20 = vsub.f32 %v398_v34, %v6665_v5 }
 0x218   : > { %v1471_v59 = vpop.f32.mrf.mxu0  ;;  %v1662_v22 = vpop.f32.mrf.mxu1  ;;  %v2748_v52 = vand.u32 4294901760, %v2747_v51 }
 0x219   : > { %v1472_v47 = vadd.f32 %v1471_v59, %v6135_v57  ;;  %v6677_v11 = vadd.f32 %v1662_v22, %v1452_v56  ;;  %2340 = vmatpush2.xpose.msra.mxu0 %v6609_v12  ;;  %2725 = vmatpush2.xpose.msra.mxu1 %v2724_v48  ;;  %9121 = vst [vmem:[#allocation69_spill] sm:$0xff] %v6681_v55  ;;  %9122 = vst [vmem:[#allocation88_spill] sm:$0xff] %v6683_v30  ;;  %v6689_v22 = vand.u32 4294901760, %v394_v53 }
 0x21a   : > { %v1473_v0 = vpop.f32.mrf.mxu0  ;;  %v1664_v41 = vpop.f32.mrf.mxu1  ;;  %2342 = vmatprep.subr.mxu0 %v6623_v14  ;;  %2731 = vmatprep.subr.mxu1 %v2730_v45  ;;  %v2753_v57 = vsub.f32 %v6645_v4, %v9123_v19  ;;  %9125 = vst [vmem:[#allocation89_spill] sm:$0xff] %v6693_v20  ;;  %v9126_v45 = vand.u32 4294901760, %v6649_v24  ;;  %v6703_v19 = vand.u32 4294901760, %v390_v42 }
 0x21b   : > { %9120 = vst [vmem:[#allocation85_spill] sm:$0xff] %v6677_v11  ;;  %9124 = vst [vmem:[#allocation73_spill] sm:$0xff] %v6689_v22  ;;  %v1474_v48 = vadd.f32 %v1473_v0, %v6140_v44  ;;  %v6696_v59 = vadd.f32 %v1664_v41, %v1454_v50  ;;  %v6701_v11 = vand.u32 4294901760, %v393_v2  ;;  %v6710_v44 = vsub.f32 %v397_v26, %v6683_v30  ;;  %v389_v50 = vld [vmem:[#allocation8 + $0x310] sm:$0xff] }
 0x21c   : > { %v1481_v28 = vpop.f32.mrf.mxu0  ;;  %v1674_v12 = vpop.f32.mrf.mxu1  ;;  %v2759_v14 = vsub.f32 %v6649_v24, %v9126_v45  ;;  %9128 = vst [vmem:[#allocation92_spill] sm:$0xff] %v6703_v19  ;;  %v2754_v0 = vand.u32 4294901760, %v2753_v57  ;;  %v9130_v45 = vand.u32 4294901760, %v6669_v38  ;;  %v6727_v57 = vand.u32 4294901760, %v389_v50 }
 0x21d   : > { %9127 = vst [vmem:[#allocation74_spill] sm:$0xff] %v6701_v11  ;;  %v1482_v56 = vadd.f32 %v1481_v28, %v6145_v63  ;;  %v6706_v4 = vadd.f32 %v1674_v12, %v1462_v61  ;;  %2344 = vmatpush2.xpose.msra.mxu0 %v6629_v16  ;;  %2737 = vmatpush2.xpose.msra.mxu1 %v2736_v29  ;;  %9129 = vst [vmem:[#allocation78_spill] sm:$0xff] %v6710_v44  ;;  %v386_v28 = vld [vmem:[#allocation8 + $0x2f8] sm:$0xff] }
 0x21e   : > { %v1483_v34 = vpop.f32.mrf.mxu0  ;;  %v1676_v51 = vpop.f32.mrf.mxu1  ;;  %2346 = vmatprep.subr.mxu0 %v6642_v3  ;;  %2743 = vmatprep.subr.mxu1 %v2742_v27  ;;  %v2765_v63 = vsub.f32 %v6669_v38, %v9130_v45  ;;  %v6719_v29 = vsub.f32 %v394_v53, %v6689_v22  ;;  %v2760_v24 = vand.u32 4294901760, %v2759_v14  ;;  %v6725_v27 = vsub.f32 %v393_v2, %v6701_v11  ;;  %v385_v2 = vld [vmem:[#allocation8 + $0x2f0] sm:$0xff]  ;;  %v382_v14 = vld [vmem:[#allocation8 + $0x2d8] sm:$0xff] }
 0x21f   : > { %v1484_v26 = vadd.f32 %v1483_v34, %v6150_v32  ;;  %v6722_v61 = vadd.f32 %v1676_v51, %v1464_v21  ;;  %9133 = vst [vmem:[#allocation96_spill] sm:$0xff] %v6727_v57  ;;  %v6730_v45 = vsub.f32 %v390_v42, %v6703_v19  ;;  %v9135_v32 = vand.u32 4294901760, %v6681_v55 }
 0x220   : > { %9131 = vst [vmem:[#allocation93_spill] sm:$0xff] %v6719_v29  ;;  %v1491_v41 = vpop.f32.mrf.mxu0  ;;  %v1686_v16 = vpop.f32.mrf.mxu1  ;;  %9132 = vst [vmem:[#allocation79_spill] sm:$0xff] %v6725_v27  ;;  %v2766_v42 = vand.u32 4294901760, %v2765_v63 }
 0x221   : > { %9134 = vst [vmem:[#allocation82_spill] sm:$0xff] %v6730_v45  ;;  %v1492_v12 = vadd.f32 %v1491_v41, %v6155_v35  ;;  %v6733_v53 = vadd.f32 %v1686_v16, %v1472_v47  ;;  %2348 = vmatpush2.xpose.msra.mxu0 %v6660_v9  ;;  %2749 = vmatpush2.xpose.msra.mxu1 %v2748_v52  ;;  %v9136_v35 = vand.u32 4294901760, %v6693_v20  ;;  %v6744_v16 = vand.u32 4294901760, %v386_v28 }
 0x222   : > { %v2771_v21 = vsub.f32 %v6681_v55, %v9135_v32  ;;  %v1493_v34 = vpop.f32.mrf.mxu0  ;;  %v1688_v51 = vpop.f32.mrf.mxu1  ;;  %2350 = vmatprep.subr.mxu0 %v6665_v5  ;;  %2755 = vmatprep.subr.mxu1 %v2754_v0  ;;  %v8420_v52 = vand.u32 4294901760, %v6719_v29  ;;  %v6751_v55 = vsub.f32 %v389_v50, %v6727_v57  ;;  %v6753_v0 = vand.u32 4294901760, %v385_v2 }
 0x223   : > { %v2777_v47 = vsub.f32 %v6693_v20, %v9136_v35  ;;  %9137 = vst [vmem:[#allocation97_spill] sm:$0xff] %v6744_v16  ;;  %v1494_v41 = vadd.f32 %v1493_v34, %v6160_v10  ;;  %v6748_v32 = vadd.f32 %v1688_v51, %v1474_v48  ;;  %v9140_v48 = vand.u32 4294901760, %v6710_v44 }
 0x224   : > { %v1501_v9 = vpop.f32.mrf.mxu0  ;;  %v1698_v3 = vpop.f32.mrf.mxu1  ;;  %9138 = vst [vmem:[#allocation84_spill] sm:$0xff] %v6751_v55  ;;  %9139 = vst [vmem:[#allocation100_spill] sm:$0xff] %v6753_v0  ;;  %v2772_v10 = vand.u32 4294901760, %v2771_v21 }
 0x225   : > { %v1502_v5 = vadd.f32 %v1501_v9, %v6165_v13  ;;  %v6758_v20 = vadd.f32 %v1698_v3, %v1482_v56  ;;  %2352 = vmatpush2.xpose.msra.mxu0 %v6683_v30  ;;  %2761 = vmatpush2.xpose.msra.mxu1 %v2760_v24  ;;  %v2783_v34 = vsub.f32 %v6710_v44, %v9140_v48  ;;  %v2778_v63 = vand.u32 4294901760, %v2777_v47  ;;  %v381_v9 = vld [vmem:[#allocation8 + $0x2d0] sm:$0xff]  ;;  %v378_v48 = vld [vmem:[#allocation8 + $0x2b8] sm:$0xff] }
 0x226   : > { %v1503_v50 = vpop.f32.mrf.mxu0  ;;  %v1700_v51 = vpop.f32.mrf.mxu1  ;;  %2354 = vmatprep.subr.mxu0 %v6689_v22  ;;  %2767 = vmatprep.subr.mxu1 %v2766_v42  ;;  %v2789_v13 = vsub.f32 %v6719_v29, %v8420_v52  ;;  %v6768_v3 = vand.u32 4294901760, %v382_v14  ;;  %v6771_v24 = vsub.f32 %v386_v28, %v6744_v16  ;;  %v6777_v42 = vsub.f32 %v385_v2, %v6753_v0  ;;  %v377_v28 = vld [vmem:[#allocation8 + $0x2b0] sm:$0xff] }
 0x227   : > { %v1504_v56 = vadd.f32 %v1503_v50, %v6170_v43  ;;  %v6774_v21 = vadd.f32 %v1700_v51, %v1484_v26  ;;  %v9144_v47 = vand.u32 4294901760, %v6725_v27  ;;  %v9145_v22 = vand.u32 4294901760, %v6730_v45 }
 0x228   : > { %9141 = vst [vmem:[#allocation86_spill] sm:$0xff] %v6768_v3  ;;  %9142 = vst [vmem:[#allocation101_spill] sm:$0xff] %v6771_v24  ;;  %v1511_v35 = vpop.f32.mrf.mxu0  ;;  %v1710_v30 = vpop.f32.mrf.mxu1  ;;  %v2784_v50 = vand.u32 4294901760, %v2783_v34  ;;  %v6790_v2 = vand.u32 4294901760, %v381_v9 }
 0x229   : > { %9143 = vst [vmem:[#allocation87_spill] sm:$0xff] %v6777_v42  ;;  %v2795_v52 = vsub.f32 %v6725_v27, %v9144_v47  ;;  %v2801_v29 = vsub.f32 %v6730_v45, %v9145_v22  ;;  %v1512_v43 = vadd.f32 %v1511_v35, %v6175_v37  ;;  %v6787_v26 = vadd.f32 %v1710_v30, %v1492_v12  ;;  %v374_v35 = vld [vmem:[#allocation8 + $0x298] sm:$0xff] }
 0x22a   : > { %2356 = vmatpush2.xpose.msra.mxu0 %v6701_v11  ;;  %2773 = vmatpush2.xpose.msra.mxu1 %v2772_v10  ;;  %9147 = vst [vmem:[#allocation105_spill] sm:$0xff] %v6790_v2  ;;  %v1513_v51 = vpop.f32.mrf.mxu0  ;;  %v1712_v44 = vpop.f32.mrf.mxu1  ;;  %v2790_v47 = vand.u32 4294901760, %v2789_v13  ;;  %v6793_v27 = vand.u32 4294901760, %v378_v48  ;;  %v6797_v37 = vsub.f32 %v382_v14, %v6768_v3  ;;  %v373_v14 = vld [vmem:[#allocation8 + $0x290] sm:$0xff] }
 0x22b   : > { %9146 = vst [vmem:[#allocation104_spill] sm:$0xff] %v6787_v26  ;;  %2358 = vmatprep.subr.mxu0 %v6703_v19  ;;  %2779 = vmatprep.subr.mxu1 %v2778_v63  ;;  %v1514_v30 = vadd.f32 %v1513_v51, %v6180_v58  ;;  %v6800_v12 = vadd.f32 %v1712_v44, %v1494_v41  ;;  %v2796_v11 = vand.u32 4294901760, %v2795_v52  ;;  %v2802_v45 = vand.u32 4294901760, %v2801_v29  ;;  %v370_v51 = vld [vmem:[#allocation8 + $0x278] sm:$0xff] }
 0x22c   : > { %9148 = vst [vmem:[#allocation91_spill] sm:$0xff] %v6793_v27  ;;  %9149 = vst [vmem:[#allocation107_spill] sm:$0xff] %v6797_v37  ;;  %v1521_v10 = vpop.f32.mrf.mxu0  ;;  %v1722_v34 = vpop.f32.mrf.mxu1  ;;  %v9150_v63 = vand.u32 4294901760, %v6751_v55  ;;  %v8437_v19 = vand.u32 4294901760, %v6777_v42  ;;  %v6811_v58 = vsub.f32 %v381_v9, %v6790_v2  ;;  %v6813_v44 = vand.u32 4294901760, %v377_v28 }
 0x22d   : > { %v1522_v22 = vadd.f32 %v1521_v10, %v6185_v46  ;;  %v6807_v26 = vadd.f32 %v1722_v34, %v1502_v5  ;;  %v9153_v52 = vand.u32 4294901760, %v6771_v24  ;;  %v6819_v46 = vand.u32 4294901760, %v374_v35 }
 0x22e   : > { %v2807_v13 = vsub.f32 %v6751_v55, %v9150_v63  ;;  %2360 = vmatpush2.xpose.msra.mxu0 %v6727_v57  ;;  %2785 = vmatpush2.xpose.msra.mxu1 %v2784_v50  ;;  %9151 = vst [vmem:[#allocation94_spill] sm:$0xff] %v6811_v58  ;;  %9152 = vst [vmem:[#allocation108_spill] sm:$0xff] %v6813_v44  ;;  %v1724_v29 = vpop.f32.mrf.mxu1  ;;  %v6823_v50 = vsub.f32 %v378_v48, %v6793_v27  ;;  %v6830_v63 = vand.u32 4294901760, %v373_v14 }
 0x22f   : > { %2362 = vmatprep.subr.mxu0 %v6744_v16  ;;  %2791 = vmatprep.subr.mxu1 %v2790_v47  ;;  %v2813_v41 = vsub.f32 %v6771_v24, %v9153_v52  ;;  %9154 = vst [vmem:[#allocation95_spill] sm:$0xff] %v6819_v46  ;;  %v6825_v9 = vadd.f32 %v1724_v29, %v1504_v56  ;;  %v369_v16 = vld [vmem:[#allocation8 + $0x270] sm:$0xff]  ;;  %v6839_v48 = vand.u32 4294901760, %v370_v51  ;;  %v366_v56 = vld [vmem:[#allocation8 + $0x258] sm:$0xff] }
 0x230   : > { %9155 = vst [vmem:[#allocation112_spill] sm:$0xff] %v6823_v50  ;;  %v1734_v10 = vpop.f32.mrf.mxu1  ;;  %v2808_v34 = vand.u32 4294901760, %v2807_v13  ;;  %v2819_v47 = vsub.f32 %v6777_v42, %v8437_v19  ;;  %9156 = vst [vmem:[#allocation98_spill] sm:$0xff] %v6830_v63  ;;  %v6836_v5 = vsub.f32 %v377_v28, %v6813_v44  ;;  %v9159_v19 = vand.u32 4294901760, %v6797_v37 }
 0x231   : > { %v6832_v52 = vadd.f32 %v1734_v10, %v1512_v43  ;;  %9158 = vst [vmem:[#allocation99_spill] sm:$0xff] %v6839_v48  ;;  %v2814_v29 = vand.u32 4294901760, %v2813_v41  ;;  %v8446_v10 = vand.u32 4294901760, %v6823_v50  ;;  %v365_v41 = vld [vmem:[#allocation8 + $0x250] sm:$0xff] }
 0x232   : > { %2364 = vmatpush2.xpose.msra.mxu0 %v6753_v0  ;;  %2797 = vmatpush2.xpose.msra.mxu1 %v2796_v11  ;;  %9157 = vst [vmem:[#allocation114_spill] sm:$0xff] %v6836_v5  ;;  %v1736_v13 = vpop.f32.mrf.mxu1  ;;  %v2825_v43 = vsub.f32 %v6797_v37, %v9159_v19  ;;  %v6847_v11 = vsub.f32 %v374_v35, %v6819_v46  ;;  %v6851_v0 = vand.u32 4294901760, %v369_v16  ;;  %v2820_v42 = vand.u32 4294901760, %v2819_v47  ;;  %v270_v37 = vld [vmem:[%s5001_s14 + $0x58] sm:$0xff] }
 0x233   : > { %2366 = vmatprep.subr.mxu0 %v6768_v3  ;;  %2803 = vmatprep.subr.mxu1 %v2802_v45  ;;  %v6849_v28 = vadd.f32 %v1736_v13, %v1514_v30  ;;  %v6854_v3 = vsub.f32 %v373_v14, %v6830_v63  ;;  %v9165_v19 = vand.u32 4294901760, %v6811_v58  ;;  %v6864_v13 = vsub.f32 %v370_v51, %v6839_v48 }
 0x234   : > { %9160 = vst [vmem:[#allocation119_spill] sm:$0xff] %v6847_v11  ;;  %9162 = vst [vmem:[#allocation120_spill] sm:$0xff] %v6851_v0  ;;  %v1746_v57 = vpop.f32.mrf.mxu1  ;;  %v2826_v14 = vand.u32 4294901760, %v2825_v43  ;;  %v6874_v47 = vsub.f32 %v369_v16, %v6851_v0  ;;  %v6876_v51 = vand.u32 4294901760, %v365_v41  ;;  %v9170_v43 = vand.u32 4294901760, %v6836_v5 }
 0x235   : > { %9161 = vst [vmem:[#allocation102_spill] sm:$0xff] %v6849_v28  ;;  %9163 = vst [vmem:[#allocation103_spill] sm:$0xff] %v6854_v3  ;;  %v6856_v45 = vadd.f32 %v1746_v57, %v1522_v22  ;;  %v2831_v35 = vsub.f32 %v6811_v58, %v9165_v19  ;;  %v2837_v57 = vsub.f32 %v6823_v50, %v8446_v10  ;;  %v6870_v22 = vand.u32 4294901760, %v366_v56  ;;  %v362_v19 = vld [vmem:[#allocation8 + $0x238] sm:$0xff] }
 0x236   : > { %2368 = vmatpush2.xpose.msra.mxu0 %v6790_v2  ;;  %2809 = vmatpush2.xpose.msra.mxu1 %v2808_v34  ;;  %9166 = vst [vmem:[#allocation106_spill] sm:$0xff] %v6864_v13  ;;  %9168 = vst [vmem:[#allocation111_spill] sm:$0xff] %v6874_v47  ;;  %v2843_v10 = vsub.f32 %v6836_v5, %v9170_v43  ;;  %v261_v34 = vld [vmem:[%s5001_s14 + $0x10] sm:$0xff]  ;;  %v9171_v2 = vand.u32 4294901760, %v6847_v11  ;;  %v6889_v30 = vand.u32 4294901760, %v362_v19 }
 0x237   : > { %9164 = vst [vmem:[#allocation125_spill] sm:$0xff] %v6856_v45  ;;  %2370 = vmatprep.subr.mxu0 %v6793_v27  ;;  %2815 = vmatprep.subr.mxu1 %v2814_v29  ;;  %9167 = vst [vmem:[#allocation109_spill] sm:$0xff] %v6870_v22  ;;  %v2832_v29 = vand.u32 4294901760, %v2831_v35  ;;  %v2838_v16 = vand.u32 4294901760, %v2837_v57  ;;  %v6892_v35 = vsub.f32 %v366_v56, %v6870_v22  ;;  %v358_v27 = vld [vmem:[#allocation8 + $0x218] sm:$0xff]  ;;  %v9177_v56 = vand.u32 4294901760, %v6864_v13 }
 0x238   : > { %9169 = vst [vmem:[#allocation110_spill] sm:$0xff] %v6876_v51  ;;  %v2849_v50 = vsub.f32 %v6847_v11, %v9171_v2  ;;  %9172 = vst [vmem:[#allocation115_spill] sm:$0xff] %v6889_v30  ;;  %v6897_v5 = vsub.f32 %v365_v41, %v6876_v51  ;;  %v2844_v2 = vand.u32 4294901760, %v2843_v10  ;;  %v265_v41 = vld [vmem:[%s5001_s14 + $0x30] sm:$0xff]  ;;  %v6918_v10 = vsub.f32 %v362_v19, %v6889_v30 }
 0x239   : > { %9173 = vst [vmem:[#allocation118_spill] sm:$0xff] %v6892_v35  ;;  %v2861_v11 = vsub.f32 %v6864_v13, %v9177_v56  ;;  %v9182_v56 = vand.u32 4294901760, %v6874_v47 }
 0x23a   : > { %2372 = vmatpush2.xpose.msra.mxu0 %v6813_v44  ;;  %2821 = vmatpush2.xpose.msra.mxu1 %v2820_v42  ;;  %v361_v42 = vld [vmem:[#allocation8 + $0x230] sm:$0xff]  ;;  %v266_v44 = vld [vmem:[%s5001_s14 + $0x38] sm:$0xff]  ;;  %9174 = vst [vmem:[#allocation122_spill] sm:$0xff] %v6897_v5  ;;  %9181 = vst [vmem:[#allocation132_spill] sm:$0xff] %v6918_v10 }
 0x23b   : > { %2374 = vmatprep.subr.mxu0 %v6819_v46  ;;  %2827 = vmatprep.subr.mxu1 %v2826_v14  ;;  %v9175_v14 = vand.u32 4294901760, %v6854_v3  ;;  %v6902_v46 = vand.u32 4294901760, %v261_v34  ;;  %v6908_v43 = vand.u32 4294901760, %v361_v42  ;;  %v6910_v58 = vand.u32 4294901760, %v266_v44 }
 0x23c   : > { %v2867_v13 = vsub.f32 %v6874_v47, %v9182_v56  ;;  %v269_v56 = vld [vmem:[%s5001_s14 + $0x50] sm:$0xff] }
 0x23d   : > { %v2855_v57 = vsub.f32 %v6854_v3, %v9175_v14  ;;  %9176 = vst [vmem:[#allocation124_spill] sm:$0xff] %v6902_v46  ;;  %9178 = vst [vmem:[#allocation126_spill] sm:$0xff] %v6908_v43  ;;  %v2850_v14 = vand.u32 4294901760, %v2849_v50  ;;  %v6914_v3 = vand.u32 4294901760, %v358_v27  ;;  %v6926_v50 = vsub.f32 %v261_v34, %v6902_v46 }
 0x23e   : > { %2376 = vmatpush2.xpose.msra.mxu0 %v6830_v63  ;;  %2833 = vmatpush2.xpose.msra.mxu1 %v2832_v29  ;;  %9179 = vst [vmem:[#allocation127_spill] sm:$0xff] %v6910_v58  ;;  %v357_v29 = vld [vmem:[#allocation8 + $0x210] sm:$0xff]  ;;  %v2862_v63 = vand.u32 4294901760, %v2861_v11  ;;  %v6932_v19 = vsub.f32 %v361_v42, %v6908_v43  ;;  %v9188_v34 = vand.u32 4294901760, %v6892_v35  ;;  %v6948_v42 = vand.u32 4294901760, %v270_v37 }
 0x23f   : > { %2378 = vmatprep.subr.mxu0 %v6839_v48  ;;  %2839 = vmatprep.subr.mxu1 %v2838_v16  ;;  %9180 = vst [vmem:[#allocation131_spill] sm:$0xff] %v6914_v3  ;;  %v2856_v24 = vand.u32 4294901760, %v2855_v57  ;;  %9183 = vst [vmem:[#allocation133_spill] sm:$0xff] %v6926_v50  ;;  %v6928_v16 = vand.u32 4294901760, %v265_v41  ;;  %v6934_v48 = vand.u32 4294901760, %v357_v29  ;;  %v6937_v57 = vsub.f32 %v266_v44, %v6910_v58 }
 0x240   : > { %9185 = vst [vmem:[#allocation135_spill] sm:$0xff] %v6932_v19  ;;  %v2873_v55 = vsub.f32 %v6892_v35, %v9188_v34  ;;  %v6946_v11 = vsub.f32 %v358_v27, %v6914_v3  ;;  %9190 = vst [vmem:[#allocation139_spill] sm:$0xff] %v6948_v42  ;;  %v2868_v47 = vand.u32 4294901760, %v2867_v13  ;;  %v9191_v44 = vand.u32 4294901760, %v6897_v5  ;;  %v278_v13 = vld [vmem:[%s5001_s14 + $0x98] sm:$0xff] }
 0x241   : > { %9184 = vst [vmem:[#allocation134_spill] sm:$0xff] %v6928_v16  ;;  %9186 = vst [vmem:[#allocation136_spill] sm:$0xff] %v6934_v48  ;;  %v6958_v34 = vand.u32 4294901760, %v269_v56  ;;  %v6963_v27 = vsub.f32 %v357_v29, %v6934_v48  ;;  %v6975_v29 = vsub.f32 %v270_v37, %v6948_v42  ;;  %v9199_v28 = vand.u32 4294901760, %v6926_v50 }
 0x242   : > { %2380 = vmatpush2.xpose.msra.mxu0 %v6851_v0  ;;  %2845 = vmatpush2.xpose.msra.mxu1 %v2844_v2  ;;  %9187 = vst [vmem:[#allocation137_spill] sm:$0xff] %v6937_v57  ;;  %9189 = vst [vmem:[#allocation138_spill] sm:$0xff] %v6946_v11  ;;  %v274_v0 = vld [vmem:[%s5001_s14 + $0x78] sm:$0xff]  ;;  %v2879_v45 = vsub.f32 %v6897_v5, %v9191_v44  ;;  %v273_v2 = vld [vmem:[%s5001_s14 + $0x70] sm:$0xff]  ;;  %v9201_v37 = vand.u32 4294901760, %v6932_v19 }
 0x243   : > { %2382 = vmatprep.subr.mxu0 %v6870_v22  ;;  %2851 = vmatprep.subr.mxu1 %v2850_v14  ;;  %v6956_v14 = vsub.f32 %v265_v41, %v6928_v16  ;;  %9193 = vst [vmem:[#allocation141_spill] sm:$0xff] %v6958_v34  ;;  %9194 = vst [vmem:[#allocation142_spill] sm:$0xff] %v6963_v27  ;;  %v6967_v44 = vand.u32 4294901760, %v274_v0  ;;  %v2874_v41 = vand.u32 4294901760, %v2873_v55  ;;  %v9196_v22 = vand.u32 4294901760, %v6918_v10  ;;  %v277_v55 = vld [vmem:[%s5001_s14 + $0x90] sm:$0xff] }
 0x244   : > { %9197 = vst [vmem:[#allocation144_spill] sm:$0xff] %v6975_v29  ;;  %v2880_v35 = vand.u32 4294901760, %v2879_v45 }
 0x245   : > { %9192 = vst [vmem:[#allocation140_spill] sm:$0xff] %v6956_v14  ;;  %9195 = vst [vmem:[#allocation143_spill] sm:$0xff] %v6967_v44  ;;  %v2885_v5 = vsub.f32 %v6918_v10, %v9196_v22  ;;  %v2891_v22 = vsub.f32 %v6932_v19, %v9201_v37  ;;  %v282_v10 = vld [vmem:[%s5001_s14 + $0xb8] sm:$0xff]  ;;  %v281_v19 = vld [vmem:[%s5001_s14 + $0xb0] sm:$0xff] }
 0x246   : > { %2384 = vmatpush2.xpose.msra.mxu0 %v6876_v51  ;;  %2857 = vmatpush2.xpose.msra.mxu1 %v2856_v24  ;;  %v6977_v51 = vand.u32 4294901760, %v273_v2  ;;  %v9202_v24 = vand.u32 4294901760, %v6937_v57 }
 0x247   : > { %2386 = vmatprep.subr.mxu0 %v6889_v30  ;;  %2863 = vmatprep.subr.mxu1 %v2862_v63  ;;  %v2402_v30 = vsub.f32 %v6926_v50, %v9199_v28  ;;  %v6985_v63 = vsub.f32 %v269_v56, %v6958_v34  ;;  %v6996_v28 = vsub.f32 %v274_v0, %v6967_v44  ;;  %v2886_v56 = vand.u32 4294901760, %v2885_v5 }
 0x248   : > { %9198 = vst [vmem:[#allocation145_spill] sm:$0xff] %v6977_v51  ;;  %v2412_v45 = vsub.f32 %v6937_v57, %v9202_v24  ;;  %v7004_v50 = vand.u32 4294901760, %v278_v13  ;;  %v7007_v24 = vsub.f32 %v273_v2, %v6977_v51  ;;  %v9206_v57 = vand.u32 4294901760, %v6956_v14 }
 0x249   : > { %9200 = vst [vmem:[#allocation146_spill] sm:$0xff] %v6985_v63  ;;  %v2403_v0 = vand.u32 4294901760, %v2402_v30  ;;  %v9209_v5 = vand.u32 4294901760, %v6975_v29 }
 0x24a   : > { %2388 = vmatpush2.xpose.msra.mxu0 %v6908_v43  ;;  %2869 = vmatpush2.xpose.msra.mxu1 %v2868_v47  ;;  %v9203_v47 = vand.u32 4294901760, %v6946_v11  ;;  %9204 = vst [vmem:[#allocation147_spill] sm:$0xff] %v7004_v50  ;;  %9205 = vst [vmem:[#allocation148_spill] sm:$0xff] %v7007_v24  ;;  %v2413_v37 = vand.u32 4294901760, %v2412_v45 }
 0x24b   : > { %2390 = vmatprep.subr.mxu0 %v6914_v3  ;;  %2875 = vmatprep.subr.mxu1 %v2874_v41  ;;  %v2418_v3 = vsub.f32 %v6956_v14, %v9206_v57  ;;  %v7014_v41 = vand.u32 4294901760, %v277_v55  ;;  %v2428_v14 = vsub.f32 %v6975_v29, %v9209_v5  ;;  %v9213_v5 = vand.u32 4294901760, %v6996_v28  ;;  %v290_v29 = vld [vmem:[%s5001_s14 + $0xf8] sm:$0xff] }
 0x24c   : > { %v2897_v43 = vsub.f32 %v6946_v11, %v9203_v47  ;;  %v2892_v47 = vand.u32 4294901760, %v2891_v22  ;;  %v9208_v11 = vand.u32 4294901760, %v6963_v27  ;;  %v7029_v22 = vand.u32 4294901760, %v282_v10 }
 0x24d   : > { %9207 = vst [vmem:[#allocation149_spill] sm:$0xff] %v7014_v41  ;;  %v2419_v30 = vand.u32 4294901760, %v2418_v3  ;;  %v2444_v45 = vsub.f32 %v6996_v28, %v9213_v5  ;;  %v2429_v3 = vand.u32 4294901760, %v2428_v14 }
 0x24e   : > { %2392 = vmatpush2.xpose.msra.mxu0 %v6934_v48  ;;  %2881 = vmatpush2.xpose.msra.mxu1 %v2880_v35  ;;  %v2903_v2 = vsub.f32 %v6963_v27, %v9208_v11  ;;  %v2898_v57 = vand.u32 4294901760, %v2897_v43  ;;  %v7027_v35 = vsub.f32 %v278_v13, %v7004_v50  ;;  %9210 = vst [vmem:[#allocation150_spill] sm:$0xff] %v7029_v22  ;;  %v286_v11 = vld [vmem:[%s5001_s14 + $0xd8] sm:$0xff] }
 0x24f   : > { %2887 = vmatprep.subr.mxu1 %v2886_v56  ;;  %2973 = vmatprep.subr.mxu0 %v6221_v39  ;;  %v9211_v56 = vand.u32 4294901760, %v6985_v63  ;;  %v7037_v43 = vsub.f32 %v277_v55, %v7014_v41  ;;  %v7039_v39 = vand.u32 4294901760, %v281_v19  ;;  %v7048_v55 = vsub.f32 %v282_v10, %v7029_v22 }
 0x250   : > { %v2904_v13 = vand.u32 4294901760, %v2903_v2  ;;  %v2445_v10 = vand.u32 4294901760, %v2444_v45 }
 0x251   : > { %2404 = vmatmul.mubr.f32.vlgmr.msra.gmra.mxu0 %v2403_v0  ;;  %v2434_v48 = vsub.f32 %v6985_v63, %v9211_v56  ;;  %9212 = vst [vmem:[#allocation151_spill] sm:$0xff] %v7039_v39  ;;  %v285_v0 = vld [vmem:[%s5001_s14 + $0xd0] sm:$0xff]  ;;  %v7050_v63 = vand.u32 4294901760, %v286_v11  ;;  %v7059_v14 = vsub.f32 %v281_v19, %v7039_v39  ;;  %v7073_v19 = vand.u32 4294901760, %v290_v29 }
 0x252   : > { %2893 = vmatpush2.xpose.msra.mxu1 %v2892_v47  ;;  %2976 = vmatpush1.xpose.msra.mxu0 %v6227_v18  ;;  %v9215_v47 = vand.u32 4294901760, %v7007_v24  ;;  %v289_v56 = vld [vmem:[%s5001_s14 + $0xf0] sm:$0xff]  ;;  %v9219_v45 = vand.u32 4294901760, %v7037_v43 }
 0x253   : > { %2414 = vmatprep.mubr.f32.mxu0 %v2413_v37  ;;  %2899 = vmatprep.subr.mxu1 %v2898_v57  ;;  %9214 = vst [vmem:[#allocation152_spill] sm:$0xff] %v7050_v63  ;;  %v2435_v5 = vand.u32 4294901760, %v2434_v48  ;;  %v7061_v57 = vand.u32 4294901760, %v285_v0  ;;  %v7071_v37 = vsub.f32 %v286_v11, %v7050_v63  ;;  %9218 = vst [vmem:[#allocation154_spill] sm:$0xff] %v7073_v19  ;;  %v7084_v48 = vand.u32 4294901760, %v289_v56 }
 0x254   : > { %2979 = vmatprep.subr.mxu0 %v6238_v8  ;;  %v2450_v2 = vsub.f32 %v7007_v24, %v9215_v47  ;;  %v9217_v47 = vand.u32 4294901760, %v7027_v35  ;;  %v7094_v24 = vsub.f32 %v290_v29, %v7073_v19 }
 0x255   : > { %2420 = vmatmul.mubr.f32.gmra.mxu0 %v2419_v30  ;;  %9216 = vst [vmem:[#allocation153_spill] sm:$0xff] %v7061_v57  ;;  %9220 = vst [vmem:[#allocation155_spill] sm:$0xff] %v7084_v48 }
 0x256   : > { %2905 = vmatpush2.xpose.msra.mxu1 %v2904_v13  ;;  %2982 = vmatpush1.xpose.msra.mxu0 %v6244_v33  ;;  %v2460_v30 = vsub.f32 %v7027_v35, %v9217_v47  ;;  %v2451_v13 = vand.u32 4294901760, %v2450_v2  ;;  %v7082_v47 = vsub.f32 %v285_v0, %v7061_v57  ;;  %v9221_v2 = vand.u32 4294901760, %v7048_v55 }
 0x257   : > { %2430 = vmatprep.mubr.f32.mxu0 %v2429_v3  ;;  %2985 = vmatprep.subr.mxu0 %v6258_v1  ;;  %v2466_v3 = vsub.f32 %v7037_v43, %v9219_v45  ;;  %v8518_v45 = vand.u32 4294901760, %v7071_v37 }
 0x258   : > { %3245 = vmatprep.subr.mxu1 %v6208_v49  ;;  %v2461_v11 = vand.u32 4294901760, %v2460_v30 }
 0x259   : > { %2436 = vmatmul.mubr.f32.gmra.mxu0 %v2435_v5  ;;  %2909 = vmatmul.mubr.f32.vlgmr.msra.gmra.mxu1 %v6902_v46  ;;  %v2476_v5 = vsub.f32 %v7048_v55, %v9221_v2  ;;  %v2467_v0 = vand.u32 4294901760, %v2466_v3  ;;  %v7104_v2 = vsub.f32 %v289_v56, %v7084_v48  ;;  %v8526_v3 = vand.u32 4294901760, %v7094_v24  ;;  %v9245_v46 = vld [vmem:[#allocation42_spill] sm:$0xff] }
 0x25a   : > { %2988 = vmatpush1.xpose.msra.mxu0 %v6266_v31  ;;  %3247 = vmatpush1.xpose.msra.mxu1 %v6213_v17 }
 0x25b   : > { %2446 = vmatprep.mubr.f32.mxu0 %v2445_v10  ;;  %2915 = vmatprep.mubr.f32.mxu1 %v6910_v58  ;;  %v9222_v10 = vand.u32 4294901760, %v7059_v14  ;;  %v8521_v58 = vand.u32 4294901760, %v7082_v47  ;;  %v2477_v29 = vand.u32 4294901760, %v2476_v5  ;;  %v8531_v5 = vand.u32 4294901760, %v7104_v2 }
 0x25c   : > { %2991 = vmatprep.subr.mxu0 %v6277_v54  ;;  %3249 = vmatprep.subr.mxu1 %v6218_v23 }
 0x25d   : > { %2452 = vmatmul.mubr.f32.gmra.mxu0 %v2451_v13  ;;  %2917 = vmatmul.mubr.f32.gmra.mxu1 %v6928_v16  ;;  %v2482_v30 = vsub.f32 %v7059_v14, %v9222_v10  ;;  %v2492_v13 = vsub.f32 %v7071_v37, %v8518_v45  ;;  %v9223_v10 = vld [vmem:[#allocation26_spill] sm:$0xff]  ;;  %v9229_v16 = vld [vmem:[#allocation19_spill] sm:$0xff] }
 0x25e   : > { %2994 = vmatpush1.xpose.msra.mxu0 %v6286_v36  ;;  %3251 = vmatpush1.xpose.msra.mxu1 %v6229_v40 }
 0x25f   : > { %2462 = vmatprep.mubr.f32.mxu0 %v2461_v11  ;;  %2923 = vmatprep.mubr.f32.mxu1 %v6948_v42  ;;  %v2483_v56 = vand.u32 4294901760, %v2482_v30  ;;  %v2498_v11 = vsub.f32 %v7082_v47, %v8521_v58  ;;  %v2493_v45 = vand.u32 4294901760, %v2492_v13  ;;  %v9225_v30 = vld [vmem:[#allocation18_spill] sm:$0xff]  ;;  %v2514_v42 = vsub.f32 %v7104_v2, %v8531_v5  ;;  %v9237_v5 = vld [vmem:[#allocation23_spill] sm:$0xff] }
 0x260   : > { %2997 = vmatprep.subr.mxu0 %v6300_v25  ;;  %3253 = vmatprep.subr.mxu1 %v6234_v6 }
 0x261   : > { %2468 = vmatmul.mubr.f32.gmra.mxu0 %v2467_v0  ;;  %2925 = vmatmul.mubr.f32.gmra.mxu1 %v6958_v34  ;;  %v2508_v0 = vsub.f32 %v7094_v24, %v8526_v3  ;;  %v9224_v34 = vld [vmem:[#allocation34_spill] sm:$0xff]  ;;  %v2499_v58 = vand.u32 4294901760, %v2498_v11  ;;  %v9228_v3 = vld [vmem:[#allocation24_spill] sm:$0xff]  ;;  %v9230_v11 = vld [vmem:[#allocation15_spill] sm:$0xff] }
 0x262   : > { %3000 = vmatpush1.xpose.msra.mxu0 %v6313_v15  ;;  %3255 = vmatpush1.xpose.msra.mxu1 %v9223_v10 }
 0x263   : > { %2478 = vmatprep.mubr.f32.mxu0 %v2477_v29  ;;  %2931 = vmatprep.mubr.f32.mxu1 %v6967_v44  ;;  %v9226_v29 = vld [vmem:[#allocation35_spill] sm:$0xff]  ;;  %v2509_v13 = vand.u32 4294901760, %v2508_v0 }
 0x264   : > { %3003 = vmatprep.subr.mxu0 %v9224_v34  ;;  %3257 = vmatprep.subr.mxu1 %v9225_v30  ;;  %v9227_v44 = vld [vmem:[#allocation27_spill] sm:$0xff] }
 0x265   : > { %2484 = vmatmul.mubr.f32.gmra.mxu0 %v2483_v56  ;;  %2933 = vmatmul.mubr.f32.gmra.mxu1 %v6977_v51  ;;  %v2515_v56 = vand.u32 4294901760, %v2514_v42  ;;  %v9231_v51 = vld [vmem:[#allocation29_spill] sm:$0xff]  ;;  %v9235_v0 = vld [vmem:[#allocation39_spill] sm:$0xff] }
 0x266   : > { %3006 = vmatpush1.xpose.msra.mxu0 %v9226_v29  ;;  %3259 = vmatpush1.xpose.msra.mxu1 %v9227_v44  ;;  %v9234_v42 = vld [vmem:[#allocation21_spill] sm:$0xff] }
 0x267   : > { %2494 = vmatprep.mubr.f32.mxu0 %v2493_v45  ;;  %2939 = vmatprep.mubr.f32.mxu1 %v7004_v50  ;;  %v9232_v45 = vld [vmem:[#allocation20_spill] sm:$0xff]  ;;  %v9243_v50 = vld [vmem:[#allocation117_spill] sm:$0xff] }
 0x268   : > { %3009 = vmatprep.subr.mxu0 %v9228_v3  ;;  %3261 = vmatprep.subr.mxu1 %v9229_v16 }
 0x269   : > { %2500 = vmatmul.mubr.f32.gmra.mxu0 %v2499_v58  ;;  %2941 = vmatmul.mubr.f32.gmra.mxu1 %v7014_v41  ;;  %v9233_v58 = vld [vmem:[#allocation31_spill] sm:$0xff]  ;;  %v9242_v41 = vld [vmem:[#allocation25_spill] sm:$0xff] }
 0x26a   : > { %3012 = vmatpush1.xpose.msra.mxu0 %v9230_v11  ;;  %3263 = vmatpush1.xpose.msra.mxu1 %v9231_v51 }
 0x26b   : > { %2510 = vmatprep.mubr.f32.mxu0 %v2509_v13  ;;  %2947 = vmatprep.mubr.f32.mxu1 %v7029_v22  ;;  %v9236_v13 = vld [vmem:[#allocation17_spill] sm:$0xff]  ;;  %v9241_v22 = vld [vmem:[#allocation90_spill] sm:$0xff] }
 0x26c   : > { %3015 = vmatprep.subr.mxu0 %v6383_v60  ;;  %3265 = vmatprep.subr.mxu1 %v9232_v45 }
 0x26d   : > { %2516 = vmatmul.mubr.f32.gmra.mxu0 %v2515_v56  ;;  %2949 = vmatmul.mubr.f32.gmra.mxu1 %v7039_v39  ;;  %v9238_v56 = vld [vmem:[#allocation128_spill] sm:$0xff]  ;;  %v9239_v39 = vld [vmem:[#allocation38_spill] sm:$0xff] }
 0x26e   : > { %3018 = vmatpush1.xpose.msra.mxu0 %v6389_v7  ;;  %3267 = vmatpush1.xpose.msra.mxu1 %v9233_v58 }
 0x26f   : > { %2955 = vmatprep.mubr.f32.mxu1 %v7050_v63  ;;  %3021 = vmatprep.subr.mxu0 %v6399_v62  ;;  %v9240_v63 = vld [vmem:[#allocation129_spill] sm:$0xff]  ;;  %v9284_v62 = vld [vmem:[#allocation63_spill] sm:$0xff] }
 0x270   : > { %3269 = vmatprep.subr.mxu1 %v9234_v42  ;;  %3165 = vmatprep.mubr.f32.mxu0 %v9235_v0  ;;  %v7198_v42 = vpop.f32.mrf.mxu1 }
 0x271   : > { %2957 = vmatmul.mubr.f32.gmra.mxu1 %v7061_v57  ;;  %v9244_v57 = vand.u32 4294901760, %v9235_v0  ;;  %v9254_v0 = vld [vmem:[#allocation130_spill] sm:$0xff]  ;;  %9277 = vst [vmem:[#allocation34_spill] sm:$0xff] %v7198_v42  ;;  %v9283_v42 = vld [vmem:[#allocation80_spill] sm:$0xff] }
 0x272   : > { %3024 = vmatpush1.xpose.msra.mxu0 %v9236_v13  ;;  %3271 = vmatpush1.xpose.msra.mxu1 %v9237_v5  ;;  %v9273_v13 = vld [vmem:[#allocation53_spill] sm:$0xff] }
 0x273   : > { %2963 = vmatprep.mubr.f32.mxu1 %v7073_v19  ;;  %3027 = vmatprep.subr.mxu0 %v9238_v56  ;;  %v9246_v19 = vld [vmem:[#allocation16_spill] sm:$0xff]  ;;  %v9247_v56 = vld [vmem:[#allocation30_spill] sm:$0xff] }
 0x274   : > { %3273 = vmatprep.subr.mxu1 %v9239_v39  ;;  %v9248_v39 = vld [vmem:[#allocation113_spill] sm:$0xff] }
 0x275   : > { %2965 = vmatmul.mubr.f32.gmra.mxu1 %v7084_v48  ;;  %v9249_v48 = vld [vmem:[#allocation32_spill] sm:$0xff] }
 0x276   : > { %3030 = vmatpush1.xpose.msra.mxu0 %v9240_v63  ;;  %3275 = vmatpush1.xpose.msra.mxu1 %v9241_v22  ;;  %v9250_v63 = vld [vmem:[#allocation123_spill] sm:$0xff]  ;;  %v9251_v22 = vld [vmem:[#allocation33_spill] sm:$0xff] }
 0x277   : > { %3033 = vmatprep.subr.mxu0 %v9242_v41  ;;  %3277 = vmatprep.subr.mxu1 %v9243_v50  ;;  %v9252_v41 = vld [vmem:[#allocation116_spill] sm:$0xff]  ;;  %v9253_v50 = vld [vmem:[#allocation50_spill] sm:$0xff] }
 0x278   : > { %3375 = vmatprep.mubr.f32.mxu1 %v9244_v57  ;;  %v9255_v57 = vld [vmem:[#allocation51_spill] sm:$0xff] }
 0x27a   : > { %3036 = vmatpush1.xpose.msra.mxu0 %v9245_v46  ;;  %3279 = vmatpush1.xpose.msra.mxu1 %v9246_v19  ;;  %v9256_v46 = vld [vmem:[#allocation72_spill] sm:$0xff]  ;;  %v9257_v19 = vld [vmem:[#allocation54_spill] sm:$0xff] }
 0x27b   : > { %3039 = vmatprep.subr.mxu0 %v9247_v56  ;;  %3281 = vmatprep.subr.mxu1 %v9248_v39  ;;  %v9258_v56 = vld [vmem:[#allocation28_spill] sm:$0xff]  ;;  %v9259_v39 = vld [vmem:[#allocation41_spill] sm:$0xff] }
 0x27e   : > { %3042 = vmatpush1.xpose.msra.mxu0 %v9249_v48  ;;  %3283 = vmatpush1.xpose.msra.mxu1 %v9250_v63  ;;  %v9260_v48 = vld [vmem:[#allocation43_spill] sm:$0xff]  ;;  %v9261_v63 = vld [vmem:[#allocation58_spill] sm:$0xff] }
 0x27f   : > { %3045 = vmatprep.subr.mxu0 %v9251_v22  ;;  %3285 = vmatprep.subr.mxu1 %v9252_v41  ;;  %v9262_v22 = vld [vmem:[#allocation45_spill] sm:$0xff]  ;;  %v9263_v41 = vld [vmem:[#allocation46_spill] sm:$0xff] }
 0x282   : > { %3048 = vmatpush1.xpose.msra.mxu0 %v9253_v50  ;;  %3287 = vmatpush1.xpose.msra.mxu1 %v9254_v0  ;;  %v9264_v50 = vld [vmem:[#allocation47_spill] sm:$0xff]  ;;  %v9265_v0 = vld [vmem:[#allocation61_spill] sm:$0xff] }
 0x283   : > { %3051 = vmatprep.subr.mxu0 %v9255_v57  ;;  %3289 = vmatprep.subr.mxu1 %v9256_v46  ;;  %v9266_v57 = vld [vmem:[#allocation36_spill] sm:$0xff]  ;;  %v7185_v46 = vpop.f32.mrf.mxu0 }
 0x284   : > { %9267 = vst [vmem:[#allocation26_spill] sm:$0xff] %v7185_v46 }
 0x286   : > { %3054 = vmatpush1.xpose.msra.mxu0 %v9257_v19  ;;  %3291 = vmatpush1.xpose.msra.mxu1 %v9258_v56  ;;  %v9268_v19 = vld [vmem:[#allocation49_spill] sm:$0xff] }
 0x287   : > { %3057 = vmatprep.subr.mxu0 %v9259_v39  ;;  %3293 = vmatprep.subr.mxu1 %v9260_v48  ;;  %v9269_v56 = vld [vmem:[#allocation37_spill] sm:$0xff] }
 0x288   : > { %v9270_v48 = vld [vmem:[#allocation85_spill] sm:$0xff] }
 0x28a   : > { %3060 = vmatpush1.xpose.msra.mxu0 %v9261_v63  ;;  %3295 = vmatpush1.xpose.msra.mxu1 %v9262_v22  ;;  %v9271_v63 = vld [vmem:[#allocation67_spill] sm:$0xff]  ;;  %v9272_v22 = vld [vmem:[#allocation40_spill] sm:$0xff] }
 0x28b   : > { %3063 = vmatprep.subr.mxu0 %v9263_v41  ;;  %3297 = vmatprep.subr.mxu1 %v9264_v50  ;;  %v9274_v50 = vld [vmem:[#allocation55_spill] sm:$0xff] }
 0x28e   : > { %3066 = vmatpush1.xpose.msra.mxu0 %v9265_v0  ;;  %3299 = vmatpush1.xpose.msra.mxu1 %v9266_v57 }
 0x28f   : > { %3069 = vmatprep.subr.mxu0 %v9268_v19  ;;  %3301 = vmatprep.subr.mxu1 %v9269_v56  ;;  %v9275_v19 = vld [vmem:[#allocation56_spill] sm:$0xff] }
 0x290   : > { %v2011_v39 = vpop.f32.mrf.mxu0  ;;  %v9276_v56 = vld [vmem:[#allocation44_spill] sm:$0xff] }
 0x291   : > { %v2012_v5 = vadd.f32 %v2011_v39, %v9270_v48  ;;  %v9278_v48 = vld [vmem:[#allocation57_spill] sm:$0xff] }
 0x292   : > { %3072 = vmatpush2.xpose.msra.mxu0 %v9271_v63  ;;  %3303 = vmatpush1.xpose.msra.mxu1 %v9272_v22  ;;  %v2013_v41 = vpop.f32.mrf.mxu0  ;;  %v9279_v22 = vld [vmem:[#allocation59_spill] sm:$0xff] }
 0x293   : > { %3075 = vmatprep.subr.mxu0 %v9273_v13  ;;  %3305 = vmatprep.subr.mxu1 %v9274_v50  ;;  %v2014_v57 = vadd.f32 %v2013_v41, %v6696_v59 }
 0x294   : > { %v2019_v0 = vpop.f32.mrf.mxu0 }
 0x295   : > { %v2020_v46 = vadd.f32 %v2019_v0, %v6706_v4  ;;  %v9281_v4 = vld [vmem:[#allocation60_spill] sm:$0xff] }
 0x296   : > { %3078 = vmatpush2.xpose.msra.mxu0 %v9275_v19  ;;  %3307 = vmatpush1.xpose.msra.mxu1 %v9276_v56  ;;  %v2021_v39 = vpop.f32.mrf.mxu0  ;;  %v9282_v0 = vld [vmem:[#allocation48_spill] sm:$0xff] }
 0x297   : > { %3081 = vmatprep.subr.mxu0 %v9278_v48  ;;  %3309 = vmatprep.subr.mxu1 %v9279_v22  ;;  %v2022_v13 = vadd.f32 %v2021_v39, %v6722_v61 }
 0x298   : > { %v2027_v63 = vpop.f32.mrf.mxu0  ;;  %v2204_v50 = vpop.f32.mrf.mxu1 }
 0x299   : > { %v2028_v59 = vadd.f32 %v2027_v63, %v6733_v53  ;;  %v7204_v41 = vadd.f32 %v2204_v50, %v2012_v5  ;;  %v9287_v63 = vld [vmem:[#allocation65_spill] sm:$0xff]  ;;  %v9288_v5 = vld [vmem:[#allocation64_spill] sm:$0xff] }
 0x29a   : > { %3084 = vmatpush2.xpose.msra.mxu0 %v9281_v4  ;;  %3311 = vmatpush2.xpose.msra.mxu1 %v9282_v0  ;;  %v2029_v56 = vpop.f32.mrf.mxu0  ;;  %v2206_v19 = vpop.f32.mrf.mxu1 }
 0x29b   : > { %9280 = vst [vmem:[#allocation18_spill] sm:$0xff] %v7204_v41  ;;  %3087 = vmatprep.subr.mxu0 %v9283_v42  ;;  %3313 = vmatprep.subr.mxu1 %v9284_v62  ;;  %v2030_v22 = vadd.f32 %v2029_v56, %v6748_v32  ;;  %v7211_v48 = vadd.f32 %v2206_v19, %v2014_v57  ;;  %v9289_v42 = vld [vmem:[#allocation52_spill] sm:$0xff] }
 0x29c   : > { %v2035_v61 = vpop.f32.mrf.mxu0  ;;  %v2212_v39 = vpop.f32.mrf.mxu1 }
 0x29d   : > { %9285 = vst [vmem:[#allocation35_spill] sm:$0xff] %v7211_v48  ;;  %v2036_v53 = vadd.f32 %v2035_v61, %v6758_v20  ;;  %v7214_v50 = vadd.f32 %v2212_v39, %v2020_v46  ;;  %v9291_v48 = vld [vmem:[#allocation104_spill] sm:$0xff]  ;;  %v9293_v61 = vld [vmem:[#allocation69_spill] sm:$0xff]  ;;  %v9294_v39 = vld [vmem:[#allocation71_spill] sm:$0xff] }
 0x29e   : > { %3090 = vmatpush2.xpose.msra.mxu0 %v9287_v63  ;;  %3315 = vmatpush2.xpose.msra.mxu1 %v9288_v5  ;;  %v2037_v41 = vpop.f32.mrf.mxu0  ;;  %v2214_v0 = vpop.f32.mrf.mxu1  ;;  %v9295_v63 = vld [vmem:[#allocation89_spill] sm:$0xff] }
 0x29f   : > { %9286 = vst [vmem:[#allocation27_spill] sm:$0xff] %v7214_v50  ;;  %3093 = vmatprep.subr.mxu0 %v6669_v38  ;;  %3317 = vmatprep.subr.mxu1 %v9289_v42  ;;  %v2038_v32 = vadd.f32 %v2037_v41, %v6774_v21  ;;  %v7221_v19 = vadd.f32 %v2214_v0, %v2022_v13  ;;  %v9296_v38 = vld [vmem:[#allocation75_spill] sm:$0xff] }
 0x2a0   : > { %v2043_v56 = vpop.f32.mrf.mxu0  ;;  %v2220_v57 = vpop.f32.mrf.mxu1 }
 0x2a1   : > { %9290 = vst [vmem:[#allocation24_spill] sm:$0xff] %v7221_v19  ;;  %v2044_v20 = vadd.f32 %v2043_v56, %v9291_v48  ;;  %v7224_v46 = vadd.f32 %v2220_v57, %v2028_v59  ;;  %v9299_v56 = vld [vmem:[#allocation78_spill] sm:$0xff]  ;;  %v9300_v57 = vld [vmem:[#allocation77_spill] sm:$0xff] }
 0x2a2   : > { %3096 = vmatpush2.xpose.msra.mxu0 %v9293_v61  ;;  %3319 = vmatpush2.xpose.msra.mxu1 %v9294_v39  ;;  %v2045_v50 = vpop.f32.mrf.mxu0  ;;  %v2222_v5 = vpop.f32.mrf.mxu1  ;;  %v9301_v39 = vld [vmem:[#allocation93_spill] sm:$0xff] }
 0x2a3   : > { %9292 = vst [vmem:[#allocation19_spill] sm:$0xff] %v7224_v46  ;;  %3099 = vmatprep.subr.mxu0 %v9295_v63  ;;  %3321 = vmatprep.subr.mxu1 %v9296_v38  ;;  %v2046_v21 = vadd.f32 %v2045_v50, %v6800_v12  ;;  %v7231_v13 = vadd.f32 %v2222_v5, %v2030_v22  ;;  %v9302_v63 = vld [vmem:[#allocation62_spill] sm:$0xff] }
 0x2a4   : > { %v2051_v41 = vpop.f32.mrf.mxu0  ;;  %v2228_v0 = vpop.f32.mrf.mxu1 }
 0x2a5   : > { %9297 = vst [vmem:[#allocation15_spill] sm:$0xff] %v7231_v13  ;;  %v2052_v48 = vadd.f32 %v2051_v41, %v6807_v26  ;;  %v7234_v59 = vadd.f32 %v2228_v0, %v2036_v53  ;;  %v9305_v41 = vld [vmem:[#allocation79_spill] sm:$0xff]  ;;  %v9306_v0 = vld [vmem:[#allocation81_spill] sm:$0xff] }
 0x2a6   : > { %3102 = vmatpush2.xpose.msra.mxu0 %v9299_v56  ;;  %3323 = vmatpush2.xpose.msra.mxu1 %v9300_v57  ;;  %v2053_v46 = vpop.f32.mrf.mxu0  ;;  %v2230_v19 = vpop.f32.mrf.mxu1  ;;  %v9307_v57 = vld [vmem:[#allocation82_spill] sm:$0xff] }
 0x2a7   : > { %9298 = vst [vmem:[#allocation29_spill] sm:$0xff] %v7234_v59  ;;  %3105 = vmatprep.subr.mxu0 %v9301_v39  ;;  %3325 = vmatprep.subr.mxu1 %v9302_v63  ;;  %v2054_v12 = vadd.f32 %v2053_v46, %v6825_v9  ;;  %v7241_v22 = vadd.f32 %v2230_v19, %v2038_v32  ;;  %v9308_v39 = vld [vmem:[#allocation83_spill] sm:$0xff]  ;;  %v9309_v63 = vld [vmem:[#allocation102_spill] sm:$0xff] }
 0x2a8   : > { %v2059_v50 = vpop.f32.mrf.mxu0  ;;  %v2236_v5 = vpop.f32.mrf.mxu1 }
 0x2a9   : > { %9303 = vst [vmem:[#allocation20_spill] sm:$0xff] %v7241_v22  ;;  %v2060_v26 = vadd.f32 %v2059_v50, %v6832_v52  ;;  %v7244_v53 = vadd.f32 %v2236_v5, %v2044_v20  ;;  %v9311_v22 = vld [vmem:[#allocation125_spill] sm:$0xff]  ;;  %v9313_v50 = vld [vmem:[#allocation84_spill] sm:$0xff] }
 0x2aa   : > { %3108 = vmatpush2.xpose.msra.mxu0 %v9305_v41  ;;  %3327 = vmatpush2.xpose.msra.mxu1 %v9306_v0  ;;  %v2061_v59 = vpop.f32.mrf.mxu0  ;;  %v2238_v13 = vpop.f32.mrf.mxu1  ;;  %v9314_v5 = vld [vmem:[#allocation88_spill] sm:$0xff]  ;;  %v9315_v0 = vld [vmem:[#allocation101_spill] sm:$0xff] }
 0x2ab   : > { %9304 = vst [vmem:[#allocation31_spill] sm:$0xff] %v7244_v53  ;;  %3111 = vmatprep.subr.mxu0 %v9307_v57  ;;  %3329 = vmatprep.subr.mxu1 %v9308_v39  ;;  %v2062_v9 = vadd.f32 %v2061_v59, %v9309_v63  ;;  %v7251_v32 = vadd.f32 %v2238_v13, %v2046_v21  ;;  %v9316_v57 = vld [vmem:[#allocation73_spill] sm:$0xff]  ;;  %v9319_v13 = vld [vmem:[#allocation87_spill] sm:$0xff]  ;;  %v9320_v59 = vld [vmem:[#allocation74_spill] sm:$0xff] }
 0x2ac   : > { %v2067_v19 = vpop.f32.mrf.mxu0  ;;  %v2244_v46 = vpop.f32.mrf.mxu1 }
 0x2ad   : > { %9310 = vst [vmem:[#allocation39_spill] sm:$0xff] %v7251_v32  ;;  %v2068_v52 = vadd.f32 %v2067_v19, %v9311_v22  ;;  %v7254_v20 = vadd.f32 %v2244_v46, %v2052_v48  ;;  %v9321_v22 = vld [vmem:[#allocation107_spill] sm:$0xff]  ;;  %v9322_v19 = vld [vmem:[#allocation92_spill] sm:$0xff] }
 0x2ae   : > { %3114 = vmatpush2.xpose.msra.mxu0 %v9313_v50  ;;  %3331 = vmatpush2.xpose.msra.mxu1 %v9314_v5  ;;  %v2246_v53 = vpop.f32.mrf.mxu1 }
 0x2af   : > { %9312 = vst [vmem:[#allocation85_spill] sm:$0xff] %v7254_v20  ;;  %3117 = vmatprep.subr.mxu0 %v9315_v0  ;;  %3333 = vmatprep.subr.mxu1 %v9316_v57  ;;  %v7260_v39 = vadd.f32 %v2246_v53, %v2054_v12  ;;  %v9325_v57 = vld [vmem:[#allocation94_spill] sm:$0xff]  ;;  %v9326_v12 = vld [vmem:[#allocation96_spill] sm:$0xff]  ;;  %v9328_v53 = vld [vmem:[#allocation97_spill] sm:$0xff] }
 0x2b0   : > { %v2252_v63 = vpop.f32.mrf.mxu1 }
 0x2b1   : > { %9317 = vst [vmem:[#allocation60_spill] sm:$0xff] %v7260_v39  ;;  %v7262_v21 = vadd.f32 %v2252_v63, %v2060_v26  ;;  %v9327_v26 = vld [vmem:[#allocation112_spill] sm:$0xff]  ;;  %v9329_v63 = vld [vmem:[#allocation114_spill] sm:$0xff]  ;;  %v9331_v39 = vld [vmem:[#allocation119_spill] sm:$0xff] }
 0x2b2   : > { %3120 = vmatpush2.xpose.msra.mxu0 %v9319_v13  ;;  %3335 = vmatpush2.xpose.msra.mxu1 %v9320_v59  ;;  %v2254_v48 = vpop.f32.mrf.mxu1 }
 0x2b3   : > { %9318 = vst [vmem:[#allocation63_spill] sm:$0xff] %v7262_v21  ;;  %3123 = vmatprep.subr.mxu0 %v9321_v22  ;;  %3337 = vmatprep.subr.mxu1 %v9322_v19  ;;  %v7268_v46 = vadd.f32 %v2254_v48, %v2062_v9  ;;  %v9330_v21 = vld [vmem:[#allocation100_spill] sm:$0xff]  ;;  %v9332_v19 = vld [vmem:[#allocation86_spill] sm:$0xff]  ;;  %v9333_v9 = vld [vmem:[#allocation103_spill] sm:$0xff] }
 0x2b4   : > { %v2260_v20 = vpop.f32.mrf.mxu1  ;;  %v9336_v48 = vld [vmem:[#allocation91_spill] sm:$0xff] }
 0x2b5   : > { %9323 = vst [vmem:[#allocation52_spill] sm:$0xff] %v7268_v46  ;;  %v7270_v32 = vadd.f32 %v2260_v20, %v2068_v52  ;;  %v9334_v52 = vld [vmem:[#allocation105_spill] sm:$0xff]  ;;  %v9335_v20 = vld [vmem:[#allocation106_spill] sm:$0xff]  ;;  %v9338_v46 = vld [vmem:[#allocation108_spill] sm:$0xff] }
 0x2b6   : > { %3126 = vmatpush2.xpose.msra.mxu0 %v9325_v57  ;;  %3339 = vmatpush2.xpose.msra.mxu1 %v9326_v12 }
 0x2b7   : > { %9324 = vst [vmem:[#allocation104_spill] sm:$0xff] %v7270_v32  ;;  %3129 = vmatprep.subr.mxu0 %v9327_v26  ;;  %3341 = vmatprep.subr.mxu1 %v9328_v53  ;;  %v9337_v32 = vld [vmem:[#allocation111_spill] sm:$0xff]  ;;  %v9339_v53 = vld [vmem:[#allocation118_spill] sm:$0xff] }
 0x2ba   : > { %3132 = vmatpush2.xpose.msra.mxu0 %v9329_v63  ;;  %3343 = vmatpush2.xpose.msra.mxu1 %v9330_v21  ;;  %v9340_v63 = vld [vmem:[#allocation95_spill] sm:$0xff]  ;;  %v9341_v21 = vld [vmem:[#allocation122_spill] sm:$0xff] }
 0x2bb   : > { %3135 = vmatprep.subr.mxu0 %v9331_v39  ;;  %3345 = vmatprep.subr.mxu1 %v9332_v19  ;;  %v9342_v39 = vld [vmem:[#allocation98_spill] sm:$0xff]  ;;  %v9343_v19 = vld [vmem:[#allocation132_spill] sm:$0xff] }
 0x2be   : > { %3138 = vmatpush2.xpose.msra.mxu0 %v9333_v9  ;;  %3347 = vmatpush2.xpose.msra.mxu1 %v9334_v52  ;;  %v9344_v9 = vld [vmem:[#allocation99_spill] sm:$0xff] }
 0x2bf   : > { %3141 = vmatprep.subr.mxu0 %v9335_v20  ;;  %3349 = vmatprep.subr.mxu1 %v9336_v48  ;;  %v9345_v52 = vld [vmem:[#allocation135_spill] sm:$0xff]  ;;  %v9346_v20 = vld [vmem:[#allocation120_spill] sm:$0xff]  ;;  %v9347_v48 = vld [vmem:[#allocation138_spill] sm:$0xff] }
 0x2c2   : > { %3144 = vmatpush2.xpose.msra.mxu0 %v9337_v32  ;;  %3351 = vmatpush2.xpose.msra.mxu1 %v9338_v46  ;;  %v9348_v32 = vld [vmem:[#allocation109_spill] sm:$0xff] }
 0x2c3   : > { %3147 = vmatprep.subr.mxu0 %v9339_v53  ;;  %3353 = vmatprep.subr.mxu1 %v9340_v63  ;;  %v9349_v53 = vld [vmem:[#allocation110_spill] sm:$0xff]  ;;  %v9350_v63 = vld [vmem:[#allocation115_spill] sm:$0xff] }
 0x2c6   : > { %3150 = vmatpush2.xpose.msra.mxu0 %v9341_v21  ;;  %3355 = vmatpush2.xpose.msra.mxu1 %v9342_v39  ;;  %v9351_v21 = vld [vmem:[#allocation76_spill] sm:$0xff] }
 0x2c7   : > { %3153 = vmatprep.subr.mxu0 %v9343_v19  ;;  %3357 = vmatprep.subr.mxu1 %v9344_v9  ;;  %v9352_v39 = vand.u32 4294901760, %v9351_v21  ;;  %v9353_v19 = vld [vmem:[#allocation133_spill] sm:$0xff]  ;;  %v9354_v9 = vld [vmem:[#allocation126_spill] sm:$0xff]  ;;  %v9362_v21 = vld [vmem:[#allocation144_spill] sm:$0xff] }
 0x2ca   : > { %3156 = vmatpush2.xpose.msra.mxu0 %v9345_v52  ;;  %3359 = vmatpush2.xpose.msra.mxu1 %v9346_v20  ;;  %v9355_v52 = vand.u32 4294901760, %v6227_v18  ;;  %v9356_v20 = vld [vmem:[#allocation137_spill] sm:$0xff]  ;;  %v9364_v18 = vld [vmem:[#allocation146_spill] sm:$0xff] }
 0x2cb   : > { %3159 = vmatprep.subr.mxu0 %v9347_v48  ;;  %3361 = vmatprep.subr.mxu1 %v9348_v32  ;;  %v9357_v48 = vld [vmem:[#allocation131_spill] sm:$0xff] }
 0x2ce   : > { %3162 = vmatpush2.xpose.msra.mxu0 %v6963_v27  ;;  %3363 = vmatpush2.xpose.msra.mxu1 %v9349_v53  ;;  %v9358_v27 = vand.u32 4294901760, %v6238_v8  ;;  %v9359_v53 = vld [vmem:[#allocation140_spill] sm:$0xff]  ;;  %v9366_v8 = vand.u32 4294901760, %v6266_v31  ;;  %v9371_v31 = vand.u32 4294901760, %v6286_v36  ;;  %v9375_v36 = vand.u32 4294901760, %v6313_v15 }
 0x2cf   : > { %3365 = vmatprep.subr.mxu1 %v9350_v63  ;;  %3472 = vmatprep.subr.mxu0 %v9352_v39  ;;  %v9360_v63 = vld [vmem:[#allocation136_spill] sm:$0xff]  ;;  %v9361_v39 = vand.u32 4294901760, %v6244_v33  ;;  %v9367_v33 = vand.u32 4294901760, %v9356_v20  ;;  %v9379_v15 = vand.u32 4294901760, %v9226_v29  ;;  %v9392_v29 = vld [vmem:[#allocation22_spill] sm:$0xff] }
 0x2d1   : > { %3168 = vmatmul.mubr.f32.vlgmr.msra.gmra.mxu0 %v9353_v19 }
 0x2d2   : > { %3367 = vmatpush2.xpose.msra.mxu1 %v9354_v9  ;;  %3476 = vmatpush1.xpose.msra.mxu0 %v9355_v52  ;;  %v9363_v9 = vand.u32 4294901760, %v6258_v1  ;;  %v9365_v52 = vand.u32 4294901760, %v9353_v19  ;;  %v9368_v1 = vand.u32 4294901760, %v6277_v54  ;;  %v9373_v54 = vand.u32 4294901760, %v6300_v25 }
 0x2d3   : > { %3175 = vmatprep.mubr.f32.mxu0 %v9356_v20  ;;  %3369 = vmatprep.subr.mxu1 %v9357_v48  ;;  %v9377_v25 = vand.u32 4294901760, %v9224_v34  ;;  %v9381_v34 = vand.u32 4294901760, %v9228_v3  ;;  %v9402_v20 = vld [vmem:[#allocation129_spill] sm:$0xff] }
 0x2d4   : > { %3480 = vmatprep.subr.mxu0 %v9358_v27  ;;  %v9370_v27 = vand.u32 4294901760, %v9359_v53 }
 0x2d5   : > { %3178 = vmatmul.mubr.f32.gmra.mxu0 %v9359_v53  ;;  %v9400_v53 = vld [vmem:[#allocation38_spill] sm:$0xff] }
 0x2d6   : > { %3371 = vmatpush2.xpose.msra.mxu1 %v9360_v63  ;;  %3484 = vmatpush1.xpose.msra.mxu0 %v9361_v39  ;;  %v9403_v39 = vand.u32 4294901760, %v9402_v20  ;;  %v9446_v20 = vld [vmem:[#allocation40_spill] sm:$0xff] }
 0x2d7   : > { %3185 = vmatprep.mubr.f32.mxu0 %v9362_v21  ;;  %3488 = vmatprep.subr.mxu0 %v9363_v9  ;;  %v9401_v9 = vand.u32 4294901760, %v7104_v2 }
 0x2d8   : > { %3791 = vmatprep.subr.mxu1 %v6208_v49  ;;  %v9369_v49 = vld [vmem:[#allocation148_spill] sm:$0xff] }
 0x2d9   : > { %3188 = vmatmul.mubr.f32.gmra.mxu0 %v9364_v18  ;;  %3379 = vmatmul.mubr.f32.vlgmr.msra.gmra.mxu1 %v9365_v52  ;;  %v9407_v52 = vld [vmem:[#allocation117_spill] sm:$0xff] }
 0x2da   : > { %3492 = vmatpush1.xpose.msra.mxu0 %v9366_v8  ;;  %3793 = vmatpush1.xpose.msra.mxu1 %v6213_v17  ;;  %v9372_v17 = vand.u32 4294901760, %v9362_v21  ;;  %v9405_v21 = vld [vmem:[#allocation25_spill] sm:$0xff] }
 0x2db   : > { %3195 = vmatprep.mubr.f32.mxu0 %v6996_v28  ;;  %3387 = vmatprep.mubr.f32.mxu1 %v9367_v33  ;;  %v9410_v33 = vld [vmem:[#allocation16_spill] sm:$0xff] }
 0x2dc   : > { %3496 = vmatprep.subr.mxu0 %v9368_v1  ;;  %3795 = vmatprep.subr.mxu1 %v6218_v23  ;;  %v9374_v23 = vand.u32 4294901760, %v9364_v18  ;;  %v9406_v18 = vand.u32 4294901760, %v9405_v21  ;;  %v9411_v1 = vld [vmem:[#allocation30_spill] sm:$0xff]  ;;  %v9449_v21 = vld [vmem:[#allocation55_spill] sm:$0xff] }
 0x2dd   : > { %3198 = vmatmul.mubr.f32.gmra.mxu0 %v9369_v49  ;;  %3391 = vmatmul.mubr.f32.gmra.mxu1 %v9370_v27  ;;  %v9414_v27 = vld [vmem:[#allocation32_spill] sm:$0xff] }
 0x2de   : > { %3500 = vmatpush1.xpose.msra.mxu0 %v9371_v31  ;;  %3797 = vmatpush1.xpose.msra.mxu1 %v6229_v40  ;;  %v9376_v40 = vand.u32 4294901760, %v6996_v28  ;;  %v9380_v28 = vand.u32 4294901760, %v7027_v35  ;;  %v9415_v31 = vand.u32 4294901760, %v9414_v27  ;;  %v9458_v27 = vld [vmem:[#allocation80_spill] sm:$0xff] }
 0x2df   : > { %3205 = vmatprep.mubr.f32.mxu0 %v7027_v35  ;;  %3399 = vmatprep.mubr.f32.mxu1 %v9372_v17  ;;  %v9385_v35 = vand.u32 4294901760, %v6383_v60  ;;  %v9391_v60 = vld [vmem:[#allocation21_spill] sm:$0xff]  ;;  %v9416_v17 = vld [vmem:[#allocation123_spill] sm:$0xff] }
 0x2e0   : > { %3504 = vmatprep.subr.mxu0 %v9373_v54  ;;  %3799 = vmatprep.subr.mxu1 %v6234_v6  ;;  %v9378_v6 = vand.u32 4294901760, %v9369_v49  ;;  %v9413_v49 = vld [vmem:[#allocation113_spill] sm:$0xff] }
 0x2e1   : > { %3208 = vmatmul.mubr.f32.gmra.mxu0 %v7037_v43  ;;  %3403 = vmatmul.mubr.f32.gmra.mxu1 %v9374_v23  ;;  %v9417_v54 = vld [vmem:[#allocation33_spill] sm:$0xff] }
 0x2e2   : > { %3508 = vmatpush1.xpose.msra.mxu0 %v9375_v36  ;;  %3801 = vmatpush1.xpose.msra.mxu1 %v9223_v10  ;;  %v9382_v10 = vand.u32 4294901760, %v7037_v43  ;;  %v9387_v43 = vand.u32 4294901760, %v6389_v7  ;;  %v9396_v7 = vld [vmem:[#allocation23_spill] sm:$0xff]  ;;  %v9418_v23 = vand.u32 4294901760, %v9417_v54  ;;  %v9419_v36 = vld [vmem:[#allocation116_spill] sm:$0xff] }
 0x2e3   : > { %3215 = vmatprep.mubr.f32.mxu0 %v7048_v55  ;;  %3411 = vmatprep.mubr.f32.mxu1 %v9376_v40  ;;  %v9420_v40 = vld [vmem:[#allocation50_spill] sm:$0xff] }
 0x2e4   : > { %3512 = vmatprep.subr.mxu0 %v9377_v25  ;;  %3803 = vmatprep.subr.mxu1 %v9225_v30  ;;  %v9383_v30 = vand.u32 4294901760, %v9230_v11  ;;  %v9393_v11 = vand.u32 4294901760, %v7082_v47  ;;  %v9421_v25 = vand.u32 4294901760, %v9420_v40 }
 0x2e5   : > { %3218 = vmatmul.mubr.f32.gmra.mxu0 %v7059_v14  ;;  %3415 = vmatmul.mubr.f32.gmra.mxu1 %v9378_v6  ;;  %v9422_v6 = vld [vmem:[#allocation130_spill] sm:$0xff] }
 0x2e6   : > { %3516 = vmatpush1.xpose.msra.mxu0 %v9379_v15  ;;  %3805 = vmatpush1.xpose.msra.mxu1 %v9227_v44  ;;  %v9384_v44 = vand.u32 4294901760, %v7048_v55  ;;  %v9389_v55 = vld [vmem:[#allocation121_spill] sm:$0xff]  ;;  %v9423_v15 = vld [vmem:[#allocation51_spill] sm:$0xff] }
 0x2e7   : > { %3225 = vmatprep.mubr.f32.mxu0 %v7071_v37  ;;  %3423 = vmatprep.mubr.f32.mxu1 %v9380_v28  ;;  %v9390_v3 = vand.u32 4294901760, %v9389_v55  ;;  %v9424_v28 = vand.u32 4294901760, %v9423_v15 }
 0x2e8   : > { %3520 = vmatprep.subr.mxu0 %v9381_v34  ;;  %3807 = vmatprep.subr.mxu1 %v9229_v16  ;;  %v9386_v16 = vand.u32 4294901760, %v7059_v14  ;;  %v9394_v14 = vld [vmem:[#allocation17_spill] sm:$0xff]  ;;  %v9425_v34 = vld [vmem:[#allocation72_spill] sm:$0xff] }
 0x2e9   : > { %3228 = vmatmul.mubr.f32.gmra.mxu0 %v7082_v47  ;;  %3427 = vmatmul.mubr.f32.gmra.mxu1 %v9382_v10  ;;  %v9404_v47 = vld [vmem:[#allocation90_spill] sm:$0xff] }
 0x2ea   : > { %3524 = vmatpush1.xpose.msra.mxu0 %v9383_v30  ;;  %3809 = vmatpush1.xpose.msra.mxu1 %v9231_v51  ;;  %v9388_v51 = vand.u32 4294901760, %v7071_v37  ;;  %v9398_v37 = vld [vmem:[#allocation128_spill] sm:$0xff]  ;;  %v9426_v10 = vld [vmem:[#allocation54_spill] sm:$0xff] }
 0x2eb   : > { %3235 = vmatprep.mubr.f32.mxu0 %v7094_v24  ;;  %3435 = vmatprep.mubr.f32.mxu1 %v9384_v44  ;;  %v9399_v19 = vand.u32 4294901760, %v9398_v37  ;;  %v9427_v30 = vand.u32 4294901760, %v9426_v10  ;;  %v9428_v44 = vld [vmem:[#allocation28_spill] sm:$0xff] }
 0x2ec   : > { %3528 = vmatprep.subr.mxu0 %v9385_v35  ;;  %3811 = vmatprep.subr.mxu1 %v9232_v45  ;;  %v9395_v45 = vand.u32 4294901760, %v9394_v14  ;;  %v9429_v35 = vld [vmem:[#allocation41_spill] sm:$0xff] }
 0x2ed   : > { %3238 = vmatmul.mubr.f32.gmra.mxu0 %v7104_v2  ;;  %3439 = vmatmul.mubr.f32.gmra.mxu1 %v9386_v16  ;;  %v9412_v2 = vand.u32 4294901760, %v9411_v1  ;;  %v9430_v16 = vand.u32 4294901760, %v9429_v35  ;;  %v9438_v14 = vld [vmem:[#allocation61_spill] sm:$0xff]  ;;  %v9455_v1 = vld [vmem:[#allocation59_spill] sm:$0xff] }
 0x2ee   : > { %3532 = vmatpush1.xpose.msra.mxu0 %v9387_v43  ;;  %3813 = vmatpush1.xpose.msra.mxu1 %v9233_v58  ;;  %v9397_v58 = vand.u32 4294901760, %v7094_v24  ;;  %v9408_v24 = vld [vmem:[#allocation42_spill] sm:$0xff]  ;;  %v9431_v43 = vld [vmem:[#allocation43_spill] sm:$0xff] }
 0x2ef   : > { %3447 = vmatprep.mubr.f32.mxu1 %v9388_v51  ;;  %3536 = vmatprep.subr.mxu0 %v9390_v3  ;;  %v9409_v8 = vand.u32 4294901760, %v9408_v24  ;;  %v9432_v51 = vld [vmem:[#allocation58_spill] sm:$0xff]  ;;  %v9434_v3 = vld [vmem:[#allocation45_spill] sm:$0xff]  ;;  %v9452_v24 = vld [vmem:[#allocation44_spill] sm:$0xff] }
 0x2f0   : > { %3815 = vmatprep.subr.mxu1 %v9391_v60  ;;  %3726 = vmatprep.mubr.f32.mxu0 %v9392_v29  ;;  %v9433_v55 = vand.u32 4294901760, %v9432_v51  ;;  %v9435_v60 = vld [vmem:[#allocation46_spill] sm:$0xff]  ;;  %v9483_v51 = vand.u32 4294901760, %v9321_v22 }
 0x2f1   : > { %3451 = vmatmul.mubr.f32.gmra.mxu1 %v9393_v11  ;;  %v9437_v11 = vld [vmem:[#allocation47_spill] sm:$0xff] }
 0x2f2   : > { %3540 = vmatpush1.xpose.msra.mxu0 %v9395_v45  ;;  %3817 = vmatpush1.xpose.msra.mxu1 %v9396_v7  ;;  %v9439_v45 = vand.u32 4294901760, %v9438_v14  ;;  %v9440_v7 = vld [vmem:[#allocation36_spill] sm:$0xff]  ;;  %v9496_v14 = vld [vmem:[#allocation105_spill] sm:$0xff] }
 0x2f3   : > { %3459 = vmatprep.mubr.f32.mxu1 %v9397_v58  ;;  %3544 = vmatprep.subr.mxu0 %v9399_v19  ;;  %v9441_v58 = vld [vmem:[#allocation49_spill] sm:$0xff] }
 0x2f4   : > { %3819 = vmatprep.subr.mxu1 %v9400_v53  ;;  %v9442_v37 = vand.u32 4294901760, %v9441_v58  ;;  %v9443_v19 = vld [vmem:[#allocation37_spill] sm:$0xff]  ;;  %v9444_v53 = vld [vmem:[#allocation67_spill] sm:$0xff] }
 0x2f5   : > { %3463 = vmatmul.mubr.f32.gmra.mxu1 %v9401_v9  ;;  %v9445_v9 = vand.u32 4294901760, %v9444_v53  ;;  %v9504_v53 = vld [vmem:[#allocation95_spill] sm:$0xff] }
 0x2f6   : > { %3548 = vmatpush1.xpose.msra.mxu0 %v9403_v39  ;;  %3821 = vmatpush1.xpose.msra.mxu1 %v9404_v47  ;;  %v9447_v39 = vld [vmem:[#allocation53_spill] sm:$0xff] }
 0x2f7   : > { %3552 = vmatprep.subr.mxu0 %v9406_v18  ;;  %3823 = vmatprep.subr.mxu1 %v9407_v52  ;;  %v9448_v47 = vand.u32 4294901760, %v9447_v39  ;;  %v9450_v18 = vld [vmem:[#allocation56_spill] sm:$0xff]  ;;  %v9507_v39 = vld [vmem:[#allocation98_spill] sm:$0xff] }
 0x2f8   : > { %3919 = vmatprep.mubr.f32.mxu1 %v9392_v29  ;;  %v9436_v29 = vand.u32 4294901760, %v9435_v60  ;;  %v9451_v52 = vand.u32 4294901760, %v9450_v18  ;;  %v9490_v60 = vld [vmem:[#allocation100_spill] sm:$0xff]  ;;  %v9510_v18 = vld [vmem:[#allocation99_spill] sm:$0xff] }
 0x2fa   : > { %3556 = vmatpush1.xpose.msra.mxu0 %v9409_v8  ;;  %3825 = vmatpush1.xpose.msra.mxu1 %v9410_v33  ;;  %v9453_v8 = vld [vmem:[#allocation57_spill] sm:$0xff] }
 0x2fb   : > { %3560 = vmatprep.subr.mxu0 %v9412_v2  ;;  %3827 = vmatprep.subr.mxu1 %v9413_v49  ;;  %v9454_v33 = vand.u32 4294901760, %v9453_v8  ;;  %v9456_v2 = vand.u32 4294901760, %v9281_v4  ;;  %v9457_v49 = vld [vmem:[#allocation48_spill] sm:$0xff]  ;;  %v9465_v4 = vand.u32 4294901760, %v9293_v61  ;;  %v9475_v61 = vld [vmem:[#allocation81_spill] sm:$0xff] }
 0x2fc   : > { %v9513_v8 = vld [vmem:[#allocation120_spill] sm:$0xff] }
 0x2fe   : > { %3564 = vmatpush1.xpose.msra.mxu0 %v9415_v31  ;;  %3829 = vmatpush1.xpose.msra.mxu1 %v9416_v17  ;;  %v9459_v31 = vand.u32 4294901760, %v9458_v27  ;;  %v9460_v17 = vld [vmem:[#allocation65_spill] sm:$0xff]  ;;  %v9519_v27 = vld [vmem:[#allocation115_spill] sm:$0xff] }
 0x2ff   : > { %3568 = vmatprep.subr.mxu0 %v9418_v23  ;;  %3831 = vmatprep.subr.mxu1 %v9419_v36  ;;  %v9461_v54 = vand.u32 4294901760, %v9460_v17  ;;  %v9462_v23 = vld [vmem:[#allocation64_spill] sm:$0xff]  ;;  %v9521_v17 = vld [vmem:[#allocation126_spill] sm:$0xff] }
 0x300   : > { %v9463_v36 = vld [vmem:[#allocation68_spill] sm:$0xff] }
 0x301   : > { %v9464_v40 = vand.u32 4294901760, %v9463_v36  ;;  %v9525_v36 = vld [vmem:[#allocation141_spill] sm:$0xff] }
 0x302   : > { %3572 = vmatpush1.xpose.msra.mxu0 %v9421_v25  ;;  %3833 = vmatpush1.xpose.msra.mxu1 %v9422_v6  ;;  %v9466_v25 = vld [vmem:[#allocation71_spill] sm:$0xff]  ;;  %v9467_v6 = vld [vmem:[#allocation89_spill] sm:$0xff] }
 0x303   : > { %3576 = vmatprep.subr.mxu0 %v9424_v28  ;;  %3835 = vmatprep.subr.mxu1 %v9425_v34  ;;  %v9468_v15 = vand.u32 4294901760, %v9467_v6  ;;  %v9470_v28 = vld [vmem:[#allocation77_spill] sm:$0xff]  ;;  %v9531_v6 = vld [vmem:[#allocation151_spill] sm:$0xff] }
 0x304   : > { %v9471_v34 = vld [vmem:[#allocation93_spill] sm:$0xff] }
 0x305   : > { %v9472_v10 = vand.u32 4294901760, %v9471_v34  ;;  %v9535_v34 = vld [vmem:[#allocation155_spill] sm:$0xff] }
 0x306   : > { %3580 = vmatpush1.xpose.msra.mxu0 %v9427_v30  ;;  %3837 = vmatpush1.xpose.msra.mxu1 %v9428_v44  ;;  %v9473_v30 = vld [vmem:[#allocation62_spill] sm:$0xff] }
 0x307   : > { %3584 = vmatprep.subr.mxu0 %v9430_v16  ;;  %3839 = vmatprep.subr.mxu1 %v9431_v43  ;;  %v9476_v44 = vld [vmem:[#allocation82_spill] sm:$0xff]  ;;  %v9478_v16 = vld [vmem:[#allocation83_spill] sm:$0xff]  ;;  %v9481_v43 = vld [vmem:[#allocation73_spill] sm:$0xff] }
 0x308   : > { %v9477_v35 = vand.u32 4294901760, %v9476_v44 }
 0x30a   : > { %3588 = vmatpush1.xpose.msra.mxu0 %v9433_v55  ;;  %3841 = vmatpush1.xpose.msra.mxu1 %v9434_v3  ;;  %v9484_v55 = vld [vmem:[#allocation92_spill] sm:$0xff]  ;;  %v9488_v3 = vld [vmem:[#allocation114_spill] sm:$0xff] }
 0x30b   : > { %3592 = vmatprep.subr.mxu0 %v9436_v29  ;;  %3843 = vmatprep.subr.mxu1 %v9437_v11  ;;  %v9493_v29 = vld [vmem:[#allocation86_spill] sm:$0xff]  ;;  %v9494_v11 = vld [vmem:[#allocation103_spill] sm:$0xff] }
 0x30e   : > { %3596 = vmatpush1.xpose.msra.mxu0 %v9439_v45  ;;  %3845 = vmatpush1.xpose.msra.mxu1 %v9440_v7  ;;  %v9499_v45 = vld [vmem:[#allocation91_spill] sm:$0xff] }
 0x30f   : > { %3600 = vmatprep.subr.mxu0 %v9442_v37  ;;  %3847 = vmatprep.subr.mxu1 %v9443_v19  ;;  %v9500_v7 = vld [vmem:[#allocation111_spill] sm:$0xff]  ;;  %v9502_v37 = vld [vmem:[#allocation118_spill] sm:$0xff] }
 0x310   : > { %v9501_v58 = vand.u32 4294901760, %v9500_v7  ;;  %v9503_v19 = vand.u32 4294901760, %v9502_v37 }
 0x312   : > { %3604 = vmatpush2.xpose.msra.mxu0 %v9445_v9  ;;  %3849 = vmatpush1.xpose.msra.mxu1 %v9446_v20  ;;  %v9505_v9 = vld [vmem:[#allocation122_spill] sm:$0xff] }
 0x313   : > { %3608 = vmatprep.subr.mxu0 %v9448_v47  ;;  %3851 = vmatprep.subr.mxu1 %v9449_v21  ;;  %v9506_v20 = vand.u32 4294901760, %v9505_v9  ;;  %v9508_v47 = vld [vmem:[#allocation132_spill] sm:$0xff] }
 0x314   : > { %v9509_v21 = vand.u32 4294901760, %v9508_v47 }
 0x316   : > { %3612 = vmatpush2.xpose.msra.mxu0 %v9451_v52  ;;  %3853 = vmatpush1.xpose.msra.mxu1 %v9452_v24  ;;  %v9511_v52 = vld [vmem:[#allocation135_spill] sm:$0xff] }
 0x317   : > { %3616 = vmatprep.subr.mxu0 %v9454_v33  ;;  %3855 = vmatprep.subr.mxu1 %v9455_v1  ;;  %v9512_v24 = vand.u32 4294901760, %v9511_v52  ;;  %v9516_v1 = vld [vmem:[#allocation142_spill] sm:$0xff] }
 0x31a   : > { %3620 = vmatpush2.xpose.msra.mxu0 %v9456_v2  ;;  %3857 = vmatpush2.xpose.msra.mxu1 %v9457_v49  ;;  %v9517_v2 = vand.u32 4294901760, %v9516_v1  ;;  %v9518_v49 = vld [vmem:[#allocation110_spill] sm:$0xff] }
 0x31b   : > { %3624 = vmatprep.subr.mxu0 %v9459_v31  ;;  %3859 = vmatprep.subr.mxu1 %v9284_v62  ;;  %v9469_v62 = vand.u32 4294901760, %v9299_v56  ;;  %v9480_v56 = vand.u32 4294901760, %v9315_v0  ;;  %v9486_v0 = vand.u32 4294901760, %v9327_v26  ;;  %v9520_v31 = vld [vmem:[#allocation124_spill] sm:$0xff] }
 0x31e   : > { %3628 = vmatpush2.xpose.msra.mxu0 %v9461_v54  ;;  %3861 = vmatpush2.xpose.msra.mxu1 %v9462_v23  ;;  %v9522_v54 = vld [vmem:[#allocation127_spill] sm:$0xff]  ;;  %v9523_v23 = vld [vmem:[#allocation134_spill] sm:$0xff] }
 0x31f   : > { %3632 = vmatprep.subr.mxu0 %v9464_v40  ;;  %3863 = vmatprep.subr.mxu1 %v9289_v42  ;;  %v9474_v42 = vand.u32 4294901760, %v9305_v41  ;;  %v9482_v41 = vand.u32 4294901760, %v9319_v13  ;;  %v9489_v13 = vand.u32 4294901760, %v9488_v3  ;;  %v9526_v40 = vld [vmem:[#allocation143_spill] sm:$0xff] }
 0x322   : > { %3636 = vmatpush2.xpose.msra.mxu0 %v9465_v4  ;;  %3865 = vmatpush2.xpose.msra.mxu1 %v9466_v25  ;;  %v9527_v4 = vld [vmem:[#allocation145_spill] sm:$0xff]  ;;  %v9528_v25 = vld [vmem:[#allocation147_spill] sm:$0xff] }
 0x323   : > { %3640 = vmatprep.subr.mxu0 %v9468_v15  ;;  %3867 = vmatprep.subr.mxu1 %v9296_v38  ;;  %v9479_v38 = vand.u32 4294901760, %v9313_v50  ;;  %v9485_v50 = vand.u32 4294901760, %v9325_v57  ;;  %v9495_v57 = vand.u32 4294901760, %v9494_v11  ;;  %v9532_v15 = vld [vmem:[#allocation152_spill] sm:$0xff] }
 0x326   : > { %3644 = vmatpush2.xpose.msra.mxu0 %v9469_v62  ;;  %3869 = vmatpush2.xpose.msra.mxu1 %v9470_v28  ;;  %v9533_v62 = vld [vmem:[#allocation153_spill] sm:$0xff]  ;;  %v9534_v28 = vld [vmem:[#allocation154_spill] sm:$0xff] }
 0x327   : > { %3648 = vmatprep.subr.mxu0 %v9472_v10  ;;  %3871 = vmatprep.subr.mxu1 %v9473_v30  ;;  %v7571_v10 = vpop.f32.mrf.mxu0 }
 0x329   : > { %v7573_v30 = vpop.f32.mrf.mxu0 }
 0x32a   : > { %3652 = vmatpush2.xpose.msra.mxu0 %v9474_v42  ;;  %3873 = vmatpush2.xpose.msra.mxu1 %v9475_v61  ;;  %v7577_v61 = vpop.f32.mrf.mxu1 }
 0x32b   : > { %3656 = vmatprep.subr.mxu0 %v9477_v35  ;;  %3875 = vmatprep.subr.mxu1 %v9478_v16  ;;  %v7575_v42 = vpop.f32.mrf.mxu0  ;;  %9536 = vst [vmem:[#allocation69_spill] sm:$0xff] %v7577_v61 }
 0x32c   : > { %v2910_v35 = vpop.f32.mrf.mxu1 }
 0x32d   : > { %v7579_v44 = vpop.f32.mrf.mxu0 }
 0x32e   : > { %3660 = vmatpush2.xpose.msra.mxu0 %v9479_v38  ;;  %3877 = vmatpush2.xpose.msra.mxu1 %v9314_v5  ;;  %v9487_v5 = vld [vmem:[#allocation97_spill] sm:$0xff]  ;;  %v7583_v38 = vpop.f32.mrf.mxu1 }
 0x32f   : > { %3664 = vmatprep.subr.mxu0 %v9480_v56  ;;  %3879 = vmatprep.subr.mxu1 %v9481_v43  ;;  %v7581_v16 = vpop.f32.mrf.mxu0 }
 0x330   : > { %v7587_v43 = vpop.f32.mrf.mxu1 }
 0x331   : > { %v7585_v56 = vpop.f32.mrf.mxu0 }
 0x332   : > { %3668 = vmatpush2.xpose.msra.mxu0 %v9482_v41  ;;  %3881 = vmatpush2.xpose.msra.mxu1 %v9320_v59  ;;  %v9491_v59 = vld [vmem:[#allocation119_spill] sm:$0xff] }
 0x333   : > { %3672 = vmatprep.subr.mxu0 %v9483_v51  ;;  %3883 = vmatprep.subr.mxu1 %v9484_v55  ;;  %v9492_v22 = vand.u32 4294901760, %v9491_v59  ;;  %v7589_v41 = vpop.f32.mrf.mxu0  ;;  %v7591_v51 = vpop.f32.mrf.mxu1 }
 0x335   : > { %v7593_v55 = vpop.f32.mrf.mxu0 }
 0x336   : > { %3676 = vmatpush2.xpose.msra.mxu0 %v9485_v50  ;;  %3885 = vmatpush2.xpose.msra.mxu1 %v9326_v12  ;;  %v9497_v12 = vld [vmem:[#allocation106_spill] sm:$0xff]  ;;  %v7595_v50 = vpop.f32.mrf.mxu1 }
 0x337   : > { %3680 = vmatprep.subr.mxu0 %v9486_v0  ;;  %3887 = vmatprep.subr.mxu1 %v9487_v5  ;;  %v9498_v26 = vand.u32 4294901760, %v9497_v12  ;;  %v7597_v0 = vpop.f32.mrf.mxu0 }
 0x338   : > { %v7599_v5 = vpop.f32.mrf.mxu1 }
 0x339   : > { %v7601_v3 = vpop.f32.mrf.mxu0 }
 0x33a   : > { %3684 = vmatpush2.xpose.msra.mxu0 %v9489_v13  ;;  %3889 = vmatpush2.xpose.msra.mxu1 %v9490_v60  ;;  %v7603_v13 = vpop.f32.mrf.mxu1 }
 0x33b   : > { %3688 = vmatprep.subr.mxu0 %v9492_v22  ;;  %3891 = vmatprep.subr.mxu1 %v9493_v29  ;;  %v7605_v60 = vpop.f32.mrf.mxu0 }
 0x33c   : > { %v7607_v59 = vpop.f32.mrf.mxu1 }
 0x33d   : > { %v7609_v22 = vpop.f32.mrf.mxu0 }
 0x33e   : > { %3692 = vmatpush2.xpose.msra.mxu0 %v9495_v57  ;;  %3893 = vmatpush2.xpose.msra.mxu1 %v9496_v14  ;;  %v7611_v29 = vpop.f32.mrf.mxu1 }
 0x33f   : > { %3696 = vmatprep.subr.mxu0 %v9498_v26  ;;  %3895 = vmatprep.subr.mxu1 %v9499_v45  ;;  %v7613_v11 = vpop.f32.mrf.mxu0 }
 0x340   : > { %v7615_v57 = vpop.f32.mrf.mxu1 }
 0x341   : > { %v7617_v14 = vpop.f32.mrf.mxu0 }
 0x342   : > { %3700 = vmatpush2.xpose.msra.mxu0 %v9501_v58  ;;  %3897 = vmatpush2.xpose.msra.mxu1 %v9338_v46  ;;  %v9514_v46 = vld [vmem:[#allocation138_spill] sm:$0xff]  ;;  %v7619_v12 = vpop.f32.mrf.mxu1 }
 0x343   : > { %3704 = vmatprep.subr.mxu0 %v9503_v19  ;;  %3899 = vmatprep.subr.mxu1 %v9504_v53  ;;  %v9515_v33 = vand.u32 4294901760, %v9514_v46  ;;  %v7621_v26 = vpop.f32.mrf.mxu0 }
 0x344   : > { %v7623_v45 = vpop.f32.mrf.mxu1 }
 0x345   : > { %v7625_v7 = vpop.f32.mrf.mxu0 }
 0x346   : > { %3708 = vmatpush2.xpose.msra.mxu0 %v9506_v20  ;;  %3901 = vmatpush2.xpose.msra.mxu1 %v9507_v39  ;;  %9537 = vst [vmem:[#allocation75_spill] sm:$0xff] %v7625_v7  ;;  %v7627_v58 = vpop.f32.mrf.mxu1 }
 0x347   : > { %3712 = vmatprep.subr.mxu0 %v9509_v21  ;;  %3903 = vmatprep.subr.mxu1 %v9510_v18  ;;  %9538 = vst [vmem:[#allocation78_spill] sm:$0xff] %v7627_v58  ;;  %v7629_v37 = vpop.f32.mrf.mxu0 }
 0x348   : > { %9539 = vst [vmem:[#allocation79_spill] sm:$0xff] %v7629_v37  ;;  %v7631_v19 = vpop.f32.mrf.mxu1 }
 0x349   : > { %9540 = vst [vmem:[#allocation102_spill] sm:$0xff] %v7631_v19  ;;  %v9553_v19 = vld [vmem:[#allocation35_spill] sm:$0xff] }
 0x34a   : > { %3716 = vmatpush2.xpose.msra.mxu0 %v9512_v24  ;;  %3905 = vmatpush2.xpose.msra.mxu1 %v9513_v8  ;;  %v7633_v9 = vpop.f32.mrf.mxu1 }
 0x34b   : > { %3720 = vmatprep.subr.mxu0 %v9515_v33  ;;  %3907 = vmatprep.subr.mxu1 %v9348_v32  ;;  %v9524_v32 = vld [vmem:[#allocation139_spill] sm:$0xff]  ;;  %9541 = vst [vmem:[#allocation125_spill] sm:$0xff] %v7633_v9 }
 0x34c   : > { %v7635_v39 = vpop.f32.mrf.mxu1 }
 0x34d   : > { %9542 = vst [vmem:[#allocation84_spill] sm:$0xff] %v7635_v39  ;;  %v9552_v39 = vld [vmem:[#allocation18_spill] sm:$0xff] }
 0x34e   : > { %3724 = vmatpush2.xpose.msra.mxu0 %v9517_v2  ;;  %3909 = vmatpush2.xpose.msra.mxu1 %v9518_v49  ;;  %v2406_v9 = vadd.f32 %v7573_v30, %v9552_v39 }
 0x34f   : > { %3911 = vmatprep.subr.mxu1 %v9519_v27 }
 0x350   : > { %v2911_v7 = vadd.f32 %v2910_v35, %v2406_v9 }
 0x351   : > { %3728 = vmatmul.mubr.f32.vlgmr.msra.gmra.mxu0 %v9520_v31 }
 0x352   : > { %3913 = vmatpush2.xpose.msra.mxu1 %v9521_v17  ;;  %3734 = vmatprep.mubr.f32.mxu0 %v9522_v54 }
 0x353   : > { %3915 = vmatprep.subr.mxu1 %v9357_v48  ;;  %v9529_v48 = vld [vmem:[#allocation149_spill] sm:$0xff] }
 0x355   : > { %3736 = vmatmul.mubr.f32.gmra.mxu0 %v9523_v23 }
 0x356   : > { %3917 = vmatpush2.xpose.msra.mxu1 %v9360_v63  ;;  %3742 = vmatprep.mubr.f32.mxu0 %v9524_v32  ;;  %v9530_v63 = vld [vmem:[#allocation150_spill] sm:$0xff] }
 0x359   : > { %3744 = vmatmul.mubr.f32.gmra.mxu0 %v9525_v36  ;;  %3921 = vmatmul.mubr.f32.vlgmr.msra.gmra.mxu1 %v9520_v31 }
 0x35a   : > { %3750 = vmatprep.mubr.f32.mxu0 %v9526_v40  ;;  %3927 = vmatprep.mubr.f32.mxu1 %v9522_v54 }
 0x35d   : > { %3752 = vmatmul.mubr.f32.gmra.mxu0 %v9527_v4  ;;  %3929 = vmatmul.mubr.f32.gmra.mxu1 %v9523_v23 }
 0x35e   : > { %3758 = vmatprep.mubr.f32.mxu0 %v9528_v25  ;;  %3935 = vmatprep.mubr.f32.mxu1 %v9524_v32 }
 0x361   : > { %3760 = vmatmul.mubr.f32.gmra.mxu0 %v9529_v48  ;;  %3937 = vmatmul.mubr.f32.gmra.mxu1 %v9525_v36 }
 0x362   : > { %3766 = vmatprep.mubr.f32.mxu0 %v9530_v63  ;;  %3943 = vmatprep.mubr.f32.mxu1 %v9526_v40 }
 0x365   : > { %3768 = vmatmul.mubr.f32.gmra.mxu0 %v9531_v6  ;;  %3945 = vmatmul.mubr.f32.gmra.mxu1 %v9527_v4 }
 0x366   : > { %3774 = vmatprep.mubr.f32.mxu0 %v9532_v15  ;;  %3951 = vmatprep.mubr.f32.mxu1 %v9528_v25 }
 0x369   : > { %3776 = vmatmul.mubr.f32.gmra.mxu0 %v9533_v62  ;;  %3953 = vmatmul.mubr.f32.gmra.mxu1 %v9529_v48 }
 0x36a   : > { %3782 = vmatprep.mubr.f32.mxu0 %v9534_v28  ;;  %3959 = vmatprep.mubr.f32.mxu1 %v9530_v63 }
 0x36d   : > { %3784 = vmatmul.mubr.f32.gmra.mxu0 %v9535_v34  ;;  %3961 = vmatmul.mubr.f32.gmra.mxu1 %v9531_v6 }
 0x36e   : > { %3967 = vmatprep.mubr.f32.mxu1 %v9532_v15 }
 0x371   : > { %3969 = vmatmul.mubr.f32.gmra.mxu1 %v9533_v62 }
 0x372   : > { %3975 = vmatprep.mubr.f32.mxu1 %v9534_v28 }
 0x375   : > { %3977 = vmatmul.mubr.f32.gmra.mxu1 %v9535_v34 }
 0x391   : > { %v3169_v53 = vpop.f32.mrf.mxu0 }
 0x393   : > { %v3171_v20 = vpop.f32.mrf.mxu0 }
 0x395   : > { %v3179_v47 = vpop.f32.mrf.mxu0 }
 0x397   : > { %v3181_v18 = vpop.f32.mrf.mxu0 }
 0x399   : > { %v3380_v21 = vpop.f32.mrf.mxu1  ;;  %v3189_v24 = vpop.f32.mrf.mxu0 }
 0x39b   : > { %v3382_v52 = vpop.f32.mrf.mxu1  ;;  %v7637_v46 = vpop.f32.mrf.mxu0 }
 0x39d   : > { %v3392_v8 = vpop.f32.mrf.mxu1  ;;  %v7639_v1 = vpop.f32.mrf.mxu0 }
 0x39f   : > { %v3394_v33 = vpop.f32.mrf.mxu1  ;;  %v7641_v49 = vpop.f32.mrf.mxu0 }
 0x3a1   : > { %v3404_v2 = vpop.f32.mrf.mxu1  ;;  %v7645_v31 = vpop.f32.mrf.mxu0 }
 0x3a3   : > { %v7643_v27 = vpop.f32.mrf.mxu1  ;;  %v7649_v54 = vpop.f32.mrf.mxu0 }
 0x3a5   : > { %v7647_v17 = vpop.f32.mrf.mxu1  ;;  %v7653_v32 = vpop.f32.mrf.mxu0 }
 0x3a7   : > { %v7651_v23 = vpop.f32.mrf.mxu1  ;;  %v7657_v40 = vpop.f32.mrf.mxu0 }
 0x3a8   : > { %9543 = vst [vmem:[#allocation88_spill] sm:$0xff] %v7657_v40 }
 0x3a9   : > { %v7655_v36 = vpop.f32.mrf.mxu1  ;;  %v7661_v25 = vpop.f32.mrf.mxu0 }
 0x3aa   : > { %9544 = vst [vmem:[#allocation101_spill] sm:$0xff] %v7661_v25  ;;  %v2408_v25 = vadd.f32 %v7575_v42, %v9553_v19  ;;  %v9557_v42 = vld [vmem:[#allocation19_spill] sm:$0xff] }
 0x3ab   : > { %v7659_v4 = vpop.f32.mrf.mxu1  ;;  %v7665_v63 = vpop.f32.mrf.mxu0  ;;  %v2438_v35 = vadd.f32 %v7585_v56, %v9557_v42  ;;  %v9559_v56 = vld [vmem:[#allocation29_spill] sm:$0xff] }
 0x3ac   : > { %9546 = vst [vmem:[#allocation74_spill] sm:$0xff] %v7665_v63 }
 0x3ad   : > { %v7663_v48 = vpop.f32.mrf.mxu1  ;;  %v7669_v15 = vpop.f32.mrf.mxu0 }
 0x3ae   : > { %9545 = vst [vmem:[#allocation87_spill] sm:$0xff] %v7663_v48  ;;  %9548 = vst [vmem:[#allocation94_spill] sm:$0xff] %v7669_v15 }
 0x3af   : > { %v7667_v6 = vpop.f32.mrf.mxu1  ;;  %v7673_v28 = vpop.f32.mrf.mxu0 }
 0x3b0   : > { %9547 = vst [vmem:[#allocation107_spill] sm:$0xff] %v7667_v6  ;;  %9550 = vst [vmem:[#allocation112_spill] sm:$0xff] %v7673_v28  ;;  %v9555_v6 = vld [vmem:[#allocation27_spill] sm:$0xff]  ;;  %v3170_v28 = vadd.f32 %v3169_v53, %v2911_v7 }
 0x3b1   : > { %v7671_v62 = vpop.f32.mrf.mxu1  ;;  %v2422_v15 = vadd.f32 %v7579_v44, %v9555_v6  ;;  %v9558_v7 = vld [vmem:[#allocation15_spill] sm:$0xff] }
 0x3b2   : > { %9549 = vst [vmem:[#allocation96_spill] sm:$0xff] %v7671_v62  ;;  %v2913_v62 = vadd.f32 %v7583_v38, %v2408_v25  ;;  %v3381_v58 = vadd.f32 %v3380_v21, %v3170_v28  ;;  %v2440_v53 = vadd.f32 %v7589_v41, %v9558_v7  ;;  %v2454_v28 = vadd.f32 %v7593_v55, %v9559_v56  ;;  %v9561_v41 = vld [vmem:[#allocation66_spill] sm:$0xff] }
 0x3b3   : > { %v7675_v34 = vpop.f32.mrf.mxu1  ;;  %v2919_v30 = vadd.f32 %v7587_v43, %v2422_v15 }
 0x3b4   : > { %9551 = vst [vmem:[#allocation108_spill] sm:$0xff] %v7675_v34  ;;  %v9556_v34 = vld [vmem:[#allocation24_spill] sm:$0xff]  ;;  %v3172_v39 = vadd.f32 %v3171_v20, %v2913_v62 }
 0x3b5   : > { %v7681_v61 = vpop.f32.mrf.mxu1  ;;  %v2424_v40 = vadd.f32 %v7581_v16, %v9556_v34  ;;  %v3180_v44 = vadd.f32 %v3179_v47, %v2919_v30  ;;  %v2927_v16 = vadd.f32 %v7595_v50, %v2438_v35  ;;  %v2929_v34 = vadd.f32 %v7599_v5, %v2440_v53 }
 0x3b6   : > { %9554 = vst [vmem:[#allocation109_spill] sm:$0xff] %v7681_v61  ;;  %v3383_v6 = vadd.f32 %v3382_v52, %v3172_v39 }
 0x3b7   : > { %v7691_v19 = vpop.f32.mrf.mxu1  ;;  %v2921_v61 = vadd.f32 %v7591_v51, %v2424_v40  ;;  %v3393_v21 = vadd.f32 %v3392_v8, %v3180_v44  ;;  %v3190_v51 = vadd.f32 %v3189_v24, %v2927_v16  ;;  %v2935_v8 = vadd.f32 %v7603_v13, %v2454_v28 }
 0x3b8   : > { %v3192_v55 = vadd.f32 %v7637_v46, %v2929_v34  ;;  %v9566_v34 = vld [vmem:[#allocation34_spill] sm:$0xff] }
 0x3b9   : > { %v3182_v20 = vadd.f32 %v3181_v18, %v2921_v61  ;;  %v9562_v61 = vld [vmem:[#allocation20_spill] sm:$0xff]  ;;  %v3200_v46 = vadd.f32 %v7639_v1, %v2935_v8 }
 0x3ba   : > { %v2456_v18 = vadd.f32 %v7597_v0, %v9562_v61 }
 0x3bb   : > { %v3395_v50 = vadd.f32 %v3394_v33, %v3182_v20  ;;  %v9563_v33 = vld [vmem:[#allocation26_spill] sm:$0xff]  ;;  %v9565_v20 = vld [vmem:[#allocation39_spill] sm:$0xff] }
 0x3bc   : > { %v2937_v13 = vadd.f32 %v7607_v59, %v2456_v18  ;;  %v3417_v59 = vadd.f32 %v7647_v17, %v3200_v46 }
 0x411   : > { %v3729_v37 = vpop.f32.mrf.mxu0 }
 0x412   : > { %v3730_v38 = vadd.f32 %v3729_v37, %v3381_v58  ;;  %v7700_v58 = vstv %s3983_s26  ;;  %v9560_v37 = vld [vmem:[#allocation70_spill] sm:$0xff] }
 0x413   : > { %v3731_v63 = vpop.f32.mrf.mxu0  ;;  %v1251_v40 = vadd.f32 %v9561_v41, %v9560_v37 }
 0x414   : > { %v3732_v15 = vadd.f32 %v3731_v63, %v3383_v6  ;;  %v3405_v63 = vadd.f32 %v3404_v2, %v3190_v51 }
 0x415   : > { %v3737_v48 = vpop.f32.mrf.mxu0 }
 0x416   : > { %v3738_v30 = vadd.f32 %v3737_v48, %v3393_v21  ;;  %v1524_v48 = vadd.f32 %v9563_v33, %v1251_v40  ;;  %v2472_v21 = vadd.f32 %v7605_v60, %v9565_v20  ;;  %v9567_v60 = vld [vmem:[#allocation85_spill] sm:$0xff] }
 0x417   : > { %v3739_v9 = vpop.f32.mrf.mxu0  ;;  %v9574_v20 = vld [vmem:[#allocation69_spill] sm:$0xff] }
 0x418   : > { %v3740_v42 = vadd.f32 %v3739_v9, %v3395_v50  ;;  %v3407_v9 = vadd.f32 %v7643_v27, %v3192_v55  ;;  %v1749_v51 = vadd.f32 %v9566_v34, %v1524_v48 }
 0x419   : > { %v3745_v25 = vpop.f32.mrf.mxu0  ;;  %v3922_v43 = vpop.f32.mrf.mxu1 }
 0x41a   : > { %v3923_v62 = vadd.f32 %v3922_v43, %v3730_v38  ;;  %v9564_v38 = vld [vmem:[#allocation31_spill] sm:$0xff]  ;;  %v3746_v53 = vadd.f32 %v3745_v25, %v3405_v63 }
 0x41b   : > { %v3747_v47 = vpop.f32.mrf.mxu0  ;;  %v3924_v52 = vpop.f32.mrf.mxu1  ;;  %v2470_v0 = vadd.f32 %v7601_v3, %v9564_v38  ;;  %v3202_v3 = vadd.f32 %v7641_v49, %v2937_v13  ;;  %v2945_v49 = vadd.f32 %v7615_v57, %v2472_v21 }
 0x41c   : > { %v3925_v39 = vadd.f32 %v3924_v52, %v3732_v15  ;;  %v7709_v44 = vmul.f32 %v7700_v58, %v3923_v62  ;;  %v3748_v56 = vadd.f32 %v3747_v47, %v3407_v9 }
 0x41d   : > { %v3753_v5 = vpop.f32.mrf.mxu0  ;;  %v3930_v24 = vpop.f32.mrf.mxu1  ;;  %v2943_v15 = vadd.f32 %v7611_v29, %v2470_v0  ;;  %v2486_v29 = vadd.f32 %v7609_v22, %v9567_v60  ;;  %v3419_v47 = vadd.f32 %v7651_v23, %v3202_v3  ;;  %v3212_v22 = vadd.f32 %v7649_v54, %v2945_v49  ;;  %v9570_v0 = vld [vmem:[#allocation52_spill] sm:$0xff] }
 0x41e   : > { %v3931_v35 = vadd.f32 %v3930_v24, %v3738_v30  ;;  %v7712_v6 = vmul.f32 %v7700_v58, %v3925_v39  ;;  %v3754_v41 = vadd.f32 %v3753_v5, %v3417_v59  ;;  %v9568_v30 = vld [vmem:[#allocation60_spill] sm:$0xff]  ;;  %v2070_v5 = vadd.f32 %v7571_v10, %v1749_v51  ;;  %v9571_v10 = vld [vmem:[#allocation78_spill] sm:$0xff]  ;;  %v9579_v51 = vld [vmem:[#allocation107_spill] sm:$0xff] }
 0x41f   : > { %v3755_v2 = vpop.f32.mrf.mxu0  ;;  %v3932_v7 = vpop.f32.mrf.mxu1  ;;  %v3210_v17 = vadd.f32 %v7645_v31, %v2943_v15  ;;  %v2488_v39 = vadd.f32 %v7613_v11, %v9568_v30  ;;  %v2951_v61 = vadd.f32 %v7619_v12, %v2486_v29  ;;  %v9569_v11 = vld [vmem:[#allocation63_spill] sm:$0xff]  ;;  %v2504_v13 = vadd.f32 %v7621_v26, %v9570_v0  ;;  %v9575_v26 = vld [vmem:[#allocation104_spill] sm:$0xff]  ;;  %v9577_v59 = vld [vmem:[#allocation102_spill] sm:$0xff] }
 0x420   : > { %v3933_v16 = vadd.f32 %v3932_v7, %v3740_v42  ;;  %v4001_v43 = vmax.f32 %v7709_v44, %v7712_v6  ;;  %v7728_v28 = vmul.f32 %v7700_v58, %v3931_v35  ;;  %v3756_v8 = vadd.f32 %v3755_v2, %v3419_v47  ;;  %v9572_v2 = vld [vmem:[#allocation88_spill] sm:$0xff]  ;;  %v9573_v7 = vld [vmem:[#allocation87_spill] sm:$0xff]  ;;  %v9581_v47 = vld [vmem:[#allocation125_spill] sm:$0xff] }
 0x421   : > { %v3761_v62 = vpop.f32.mrf.mxu0  ;;  %v3938_v1 = vpop.f32.mrf.mxu1  ;;  %v3429_v57 = vadd.f32 %v7655_v36, %v3210_v17  ;;  %v2502_v12 = vadd.f32 %v7617_v14, %v9569_v11  ;;  %v2953_v54 = vadd.f32 %v7623_v45, %v2488_v39  ;;  %v3220_v36 = vadd.f32 %v7653_v32, %v2951_v61  ;;  %v9576_v15 = vld [vmem:[#allocation75_spill] sm:$0xff]  ;;  %v9583_v30 = vld [vmem:[#allocation96_spill] sm:$0xff]  ;;  %v9588_v0 = vld [vmem:[#allocation109_spill] sm:$0xff] }
 0x422   : > { %v7731_v27 = vmul.f32 %v7700_v58, %v3933_v16  ;;  %v3939_v25 = vadd.f32 %v3938_v1, %v3746_v53  ;;  %4002 = vmax.xlane.f32.xlu0 %v4001_v43  ;;  %v3431_v35 = vadd.f32 %v7659_v4, %v3212_v22  ;;  %v2263_v21 = vadd.f32 %v9574_v20, %v2070_v5  ;;  %v9578_v1 = vld [vmem:[#allocation101_spill] sm:$0xff]  ;;  %v9585_v5 = vld [vmem:[#allocation94_spill] sm:$0xff] }
 0x423   : > { %v3763_v52 = vpop.f32.mrf.mxu0  ;;  %v3940_v37 = vpop.f32.mrf.mxu1  ;;  %v3762_v33 = vadd.f32 %v3761_v62, %v3429_v57  ;;  %v2959_v46 = vadd.f32 %v9571_v10, %v2502_v12  ;;  %v3222_v14 = vadd.f32 %v9572_v2, %v2953_v54  ;;  %v3441_v45 = vadd.f32 %v9573_v7, %v3220_v36  ;;  %v9586_v36 = vld [vmem:[#allocation108_spill] sm:$0xff] }
 0x424   : > { %v3941_v40 = vadd.f32 %v3940_v37, %v3748_v56  ;;  %v4004_v50 = vmax.f32 %v7728_v28, %v7731_v27  ;;  %v7747_v23 = vmul.f32 %v7700_v58, %v3939_v25  ;;  %v3764_v53 = vadd.f32 %v3763_v52, %v3431_v35  ;;  %v9580_v52 = vld [vmem:[#allocation79_spill] sm:$0xff] }
 0x425   : > { %v3769_v18 = vpop.f32.mrf.mxu0  ;;  %v3946_v31 = vpop.f32.mrf.mxu1  ;;  %v2518_v3 = vadd.f32 %v9576_v15, %v9575_v26  ;;  %v2961_v62 = vadd.f32 %v9577_v59, %v2504_v13  ;;  %v3230_v56 = vadd.f32 %v9578_v1, %v2959_v46  ;;  %v3443_v60 = vadd.f32 %v9579_v51, %v3222_v14  ;;  %v476_v51 = vld [vmem:[#allocation10 + $0x1c8] sm:$0xff] }
 0x426   : > { %v3947_v55 = vadd.f32 %v3946_v31, %v3754_v41  ;;  %4005 = vmax.xlane.f32.xlu0 %v4004_v50  ;;  %v7750_v63 = vmul.f32 %v7700_v58, %v3941_v40  ;;  %v3770_v29 = vadd.f32 %v3769_v18, %v3441_v45  ;;  %v2520_v37 = vadd.f32 %v9580_v52, %v2263_v21  ;;  %v9582_v40 = vld [vmem:[#allocation74_spill] sm:$0xff]  ;;  %v475_v52 = vld [vmem:[#allocation10 + $0x1c0] sm:$0xff] }
 0x427   : > { %v3771_v24 = vpop.f32.mrf.mxu0  ;;  %v3948_v42 = vpop.f32.mrf.mxu1  ;;  %v2967_v41 = vadd.f32 %v9581_v47, %v2518_v3  ;;  %v3232_v50 = vadd.f32 %v9582_v40, %v2961_v62  ;;  %v3453_v39 = vadd.f32 %v9583_v30, %v3230_v56  ;;  %v477_v40 = vld [vmem:[#allocation10 + $0x1d0] sm:$0xff]  ;;  %v468_v30 = vld [vmem:[#allocation10 + $0x188] sm:$0xff] }
 0x428   : > { %v3949_v48 = vadd.f32 %v3948_v42, %v3756_v8  ;;  %v4007_v38 = vmax.f32 %v7747_v23, %v7750_v63  ;;  %v7766_v16 = vmul.f32 %v7700_v58, %v3947_v55  ;;  %v3772_v22 = vadd.f32 %v3771_v24, %v3443_v60  ;;  %v9584_v8 = vld [vmem:[#allocation84_spill] sm:$0xff] }
 0x429   : > { %v3777_v9 = vpop.f32.mrf.mxu0  ;;  %v3954_v32 = vpop.f32.mrf.mxu1  ;;  %v2969_v55 = vadd.f32 %v9584_v8, %v2520_v37  ;;  %v3240_v11 = vadd.f32 %v9585_v5, %v2967_v41  ;;  %v3455_v42 = vadd.f32 %v9586_v36, %v3232_v50  ;;  %v480_v60 = vld [vmem:[#allocation10 + $0x1e8] sm:$0xff]  ;;  %v479_v37 = vld [vmem:[#allocation10 + $0x1e0] sm:$0xff]  ;;  %v481_v50 = vld [vmem:[#allocation10 + $0x1f0] sm:$0xff] }
 0x42a   : > { %v7769_v4 = vmul.f32 %v7700_v58, %v3949_v48  ;;  %v3955_v43 = vadd.f32 %v3954_v32, %v3762_v33  ;;  %4008 = vmax.xlane.f32.xlu1 %v4007_v38  ;;  %v3778_v35 = vadd.f32 %v3777_v9, %v3453_v39  ;;  %v9587_v48 = vld [vmem:[#allocation112_spill] sm:$0xff]  ;;  %v4149_v41 = vpack.c.bf16 %v479_v37, %v475_v52  ;;  %v471_v5 = vld [vmem:[#allocation10 + $0x1a0] sm:$0xff] }
 0x42b   : > { %v3779_v25 = vpop.f32.mrf.mxu0  ;;  %v3956_v34 = vpop.f32.mrf.mxu1  ;;  %v3242_v38 = vadd.f32 %v9587_v48, %v2969_v55  ;;  %v3465_v13 = vadd.f32 %v9588_v0, %v3240_v11  ;;  %v472_v39 = vld [vmem:[#allocation10 + $0x1a8] sm:$0xff]  ;;  %v467_v55 = vld [vmem:[#allocation10 + $0x180] sm:$0xff]  ;;  %v469_v11 = vld [vmem:[#allocation10 + $0x190] sm:$0xff] }
 0x42c   : > { %v3957_v49 = vadd.f32 %v3956_v34, %v3764_v53  ;;  %v4010_v17 = vmax.f32 %v7766_v16, %v7769_v4  ;;  %v7784_v57 = vmul.f32 %v7700_v58, %v3955_v43  ;;  %v3780_v46 = vadd.f32 %v3779_v25, %v3455_v42  ;;  %v460_v36 = vld [vmem:[#allocation10 + $0x148] sm:$0xff]  ;;  %v466_v48 = vld [vmem:[#allocation10 + $0x178] sm:$0xff]  ;;  %v443_v52 = vld [vmem:[#allocation10 + $0xc0] sm:$0xff] }
 0x42d   : > { %v3962_v61 = vpop.f32.mrf.mxu1  ;;  %v3785_v12 = vpop.f32.mrf.mxu0  ;;  %v3467_v32 = vadd.f32 %v7691_v19, %v3242_v38  ;;  %v464_v42 = vld [vmem:[#allocation10 + $0x168] sm:$0xff]  ;;  %v459_v38 = vld [vmem:[#allocation10 + $0x140] sm:$0xff] }
 0x42e   : > { %v7787_v31 = vmul.f32 %v7700_v58, %v3957_v49  ;;  %v3963_v18 = vadd.f32 %v3962_v61, %v3770_v29  ;;  %4011 = vmax.xlane.f32.xlu1 %v4010_v17  ;;  %v3786_v53 = vadd.f32 %v3785_v12, %v3465_v13  ;;  %v478_v29 = vld [vmem:[#allocation10 + $0x1d8] sm:$0xff]  ;;  %v4150_v49 = vpack.c.bf16 %v480_v60, %v476_v51  ;;  %v463_v13 = vld [vmem:[#allocation10 + $0x160] sm:$0xff] }
 0x42f   : > { %v3964_v54 = vpop.f32.mrf.mxu1  ;;  %v3787_v45 = vpop.f32.mrf.mxu0  ;;  %v482_v17 = vld [vmem:[#allocation10 + $0x1f8] sm:$0xff]  ;;  %v4145_v12 = vpack.c.bf16 %v471_v5, %v467_v55  ;;  %v447_v37 = vld [vmem:[#allocation10 + $0xe0] sm:$0xff]  ;;  %v437_v5 = vld [vmem:[#allocation10 + $0x90] sm:$0xff] }
 0x430   : > { %v3965_v33 = vadd.f32 %v3964_v54, %v3772_v22  ;;  %v4013_v24 = vmax.f32 %v7784_v57, %v7787_v31  ;;  %v7797_v2 = vmul.f32 %v7700_v58, %v3963_v18  ;;  %v3788_v26 = vadd.f32 %v3787_v45, %v3467_v32  ;;  %4193 = vmatprep.subr.bf16.mxu0 %v4150_v49  ;;  %v470_v61 = vld [vmem:[#allocation10 + $0x198] sm:$0xff]  ;;  %v473_v54 = vld [vmem:[#allocation10 + $0x1b0] sm:$0xff]  ;;  %v452_v45 = vld [vmem:[#allocation10 + $0x108] sm:$0xff] }
 0x431   : > { %v3970_v10 = vpop.f32.mrf.mxu1  ;;  %v4152_v47 = vpack.c.bf16 %v482_v17, %v478_v29  ;;  %v474_v22 = vld [vmem:[#allocation10 + $0x1b8] sm:$0xff]  ;;  %4194 = vmatpush1.bf16.msra.mxu0 %v4149_v41  ;;  %v4146_v18 = vpack.c.bf16 %v472_v39, %v468_v30  ;;  %v440_v30 = vld [vmem:[#allocation10 + $0xa8] sm:$0xff]  ;;  %v439_v55 = vld [vmem:[#allocation10 + $0xa0] sm:$0xff] }
 0x432   : > { %v7800_v14 = vmul.f32 %v7700_v58, %v3965_v33  ;;  %v3971_v7 = vadd.f32 %v3970_v10, %v3778_v35  ;;  %4014 = vmax.xlane.f32.xlu0 %v4013_v24  ;;  %v4148_v8 = vpack.c.bf16 %v474_v22, %v470_v61  ;;  %v4147_v35 = vpack.c.bf16 %v473_v54, %v469_v11  ;;  %v462_v24 = vld [vmem:[#allocation10 + $0x158] sm:$0xff]  ;;  %v461_v10 = vld [vmem:[#allocation10 + $0x150] sm:$0xff]  ;;  %v428_v54 = vld [vmem:[#allocation10 + $0x48] sm:$0xff] }
 0x433   : > { %v3972_v9 = vpop.f32.mrf.mxu1  ;;  %4266 = vmatprep.subr.bf16.mxu1 %v4152_v47  ;;  %4195 = vmatprep.subr.bf16.mxu0 %v4146_v18  ;;  %v4142_v33 = vpack.c.bf16 %v464_v42, %v460_v36  ;;  %v4144_v0 = vpack.c.bf16 %v466_v48, %v462_v24  ;;  %v454_v32 = vld [vmem:[#allocation10 + $0x118] sm:$0xff]  ;;  %v445_v47 = vld [vmem:[#allocation10 + $0xd0] sm:$0xff]  ;;  %v4133_v61 = vpack.c.bf16 %v447_v37, %v443_v52  ;;  %v432_v36 = vld [vmem:[#allocation10 + $0x68] sm:$0xff] }
 0x434   : > { %v3973_v43 = vadd.f32 %v3972_v9, %v3780_v46  ;;  %v4016_v20 = vmax.f32 %v7797_v2, %v7800_v14  ;;  %v7806_v15 = vmul.f32 %v7700_v58, %v3971_v7  ;;  %v465_v46 = vld [vmem:[#allocation10 + $0x170] sm:$0xff]  ;;  %v4141_v7 = vpack.c.bf16 %v463_v13, %v459_v38  ;;  %v456_v9 = vld [vmem:[#allocation10 + $0x128] sm:$0xff]  ;;  %v446_v51 = vld [vmem:[#allocation10 + $0xd8] sm:$0xff] }
 0x435   : > { %v3978_v21 = vpop.f32.mrf.mxu1  ;;  %4196 = vmatpush1.bf16.msra.mxu0 %v4145_v12  ;;  %v450_v60 = vld [vmem:[#allocation10 + $0xf8] sm:$0xff]  ;;  %v441_v12 = vld [vmem:[#allocation10 + $0xb0] sm:$0xff]  ;;  %v4126_v48 = vpack.c.bf16 %v432_v36, %v428_v54  ;;  %v427_v38 = vld [vmem:[#allocation10 + $0x40] sm:$0xff] }
 0x436   : > { %v7809_v3 = vmul.f32 %v7700_v58, %v3973_v43  ;;  %v3979_v59 = vadd.f32 %v3978_v21, %v3786_v53  ;;  %4017 = vmax.xlane.f32.xlu1 %v4016_v20  ;;  %4197 = vmatprep.subr.bf16.mxu0 %v4142_v33  ;;  %v4143_v53 = vpack.c.bf16 %v465_v46, %v461_v10  ;;  %v458_v20 = vld [vmem:[#allocation10 + $0x138] sm:$0xff]  ;;  %v451_v21 = vld [vmem:[#allocation10 + $0x100] sm:$0xff]  ;;  %v429_v13 = vld [vmem:[#allocation10 + $0x50] sm:$0xff] }
 0x437   : > { %v3980_v62 = vpop.f32.mrf.mxu1  ;;  %v4138_v43 = vpack.c.bf16 %v456_v9, %v452_v45  ;;  %v4136_v41 = vpack.c.bf16 %v450_v60, %v446_v51  ;;  %v442_v39 = vld [vmem:[#allocation10 + $0xb8] sm:$0xff]  ;;  %v4131_v24 = vpack.c.bf16 %v441_v12, %v437_v5  ;;  %v433_v46 = vld [vmem:[#allocation10 + $0x70] sm:$0xff]  ;;  %v424_v45 = vld [vmem:[#allocation10 + $0x28] sm:$0xff] }
 0x438   : > { %v3981_v1 = vadd.f32 %v3980_v62, %v3788_v26  ;;  %v4019_v19 = vmax.f32 %v7806_v15, %v7809_v3  ;;  %v7814_v56 = vmul.f32 %v7700_v58, %v3979_v59  ;;  %v455_v26 = vld [vmem:[#allocation10 + $0x120] sm:$0xff]  ;;  %v4140_v59 = vpack.c.bf16 %v458_v20, %v454_v32  ;;  %v453_v62 = vld [vmem:[#allocation10 + $0x110] sm:$0xff]  ;;  %v430_v42 = vld [vmem:[#allocation10 + $0x58] sm:$0xff] }
 0x439   : > { %4198 = vmatpush1.bf16.msra.mxu0 %v4141_v7  ;;  %v4137_v29 = vpack.c.bf16 %v455_v26, %v451_v21  ;;  %v420_v7 = vld [vmem:[#allocation10 + $0x8] sm:$0xff]  ;;  %v422_v9 = vld [vmem:[#allocation10 + $0x18] sm:$0xff]  ;;  %v419_v21 = vld [vmem:[#allocation10] sm:$0xff] }
 0x43a   : > { %v7817_v25 = vmul.f32 %v7700_v58, %v3981_v1  ;;  %4020 = vmax.xlane.f32.xlu0 %v4019_v19  ;;  %v4151_v58 = vpack.c.bf16 %v481_v50, %v477_v40  ;;  %v457_v1 = vld [vmem:[#allocation10 + $0x130] sm:$0xff]  ;;  %v444_v19 = vld [vmem:[#allocation10 + $0xc8] sm:$0xff]  ;;  %4199 = vmatprep.subr.bf16.mxu0 %v4138_v43  ;;  %v426_v32 = vld [vmem:[#allocation10 + $0x38] sm:$0xff]  ;;  %v4127_v43 = vpack.c.bf16 %v433_v46, %v429_v13 }
 0x43b   : > { %v4139_v49 = vpack.c.bf16 %v457_v1, %v453_v62  ;;  %v449_v40 = vld [vmem:[#allocation10 + $0xf0] sm:$0xff]  ;;  %v436_v50 = vld [vmem:[#allocation10 + $0x88] sm:$0xff]  ;;  %v4122_v20 = vpack.c.bf16 %v424_v45, %v420_v7  ;;  %v423_v26 = vld [vmem:[#allocation10 + $0x20] sm:$0xff]  ;;  %v4124_v62 = vpack.c.bf16 %v426_v32, %v422_v9 }
 0x43c   : > { %v4022_v34 = vmax.f32 %v7814_v56, %v7817_v25  ;;  %4267 = vmatpush1.bf16.msra.mxu1 %v4151_v58  ;;  %v438_v58 = vld [vmem:[#allocation10 + $0x98] sm:$0xff]  ;;  %v4135_v22 = vpack.c.bf16 %v449_v40, %v445_v47  ;;  %v4130_v18 = vpack.c.bf16 %v440_v30, %v436_v50  ;;  %v425_v1 = vld [vmem:[#allocation10 + $0x30] sm:$0xff]  ;;  %v539_v52 = vld [vmem:[#allocation10 + $0x3c0] sm:$0xff] }
 0x43d   : > { %4268 = vmatprep.subr.bf16.mxu1 %v4148_v8  ;;  %4200 = vmatpush1.bf16.msra.mxu0 %v4137_v29  ;;  %v435_v8 = vld [vmem:[#allocation10 + $0x80] sm:$0xff]  ;;  %v4132_v11 = vpack.c.bf16 %v442_v39, %v438_v58  ;;  %v542_v51 = vld [vmem:[#allocation10 + $0x3d8] sm:$0xff]  ;;  %v4121_v29 = vpack.c.bf16 %v423_v26, %v419_v21  ;;  %v541_v47 = vld [vmem:[#allocation10 + $0x3d0] sm:$0xff] }
 0x43e   : > { %4023 = vmax.xlane.f32.xlu1 %v4022_v34  ;;  %v448_v34 = vld [vmem:[#allocation10 + $0xe8] sm:$0xff]  ;;  %v4129_v33 = vpack.c.bf16 %v439_v55, %v435_v8  ;;  %v546_v60 = vld [vmem:[#allocation10 + $0x3f8] sm:$0xff]  ;;  %v543_v37 = vld [vmem:[#allocation10 + $0x3e0] sm:$0xff] }
 0x43f   : > { %v4134_v17 = vpack.c.bf16 %v448_v34, %v444_v19  ;;  %v540_v19 = vld [vmem:[#allocation10 + $0x3c8] sm:$0xff]  ;;  %v545_v40 = vld [vmem:[#allocation10 + $0x3f0] sm:$0xff]  ;;  %v534_v58 = vld [vmem:[#allocation10 + $0x398] sm:$0xff] }
 0x440   : > { %4269 = vmatpush1.bf16.msra.mxu1 %v4147_v35  ;;  %v434_v35 = vld [vmem:[#allocation10 + $0x78] sm:$0xff]  ;;  %v544_v34 = vld [vmem:[#allocation10 + $0x3e8] sm:$0xff]  ;;  %v531_v8 = vld [vmem:[#allocation10 + $0x380] sm:$0xff] }
 0x441   : > { %4270 = vmatprep.subr.bf16.mxu1 %v4144_v0  ;;  %4201 = vmatprep.subr.bf16.mxu0 %v4134_v17  ;;  %v431_v0 = vld [vmem:[#allocation10 + $0x60] sm:$0xff]  ;;  %v4128_v10 = vpack.c.bf16 %v434_v35, %v430_v42  ;;  %v4182_v17 = vpack.c.bf16 %v544_v34, %v540_v19  ;;  %v532_v50 = vld [vmem:[#allocation10 + $0x388] sm:$0xff]  ;;  %v538_v39 = vld [vmem:[#allocation10 + $0x3b8] sm:$0xff] }
 0x442   : > { %4202 = vmatpush1.bf16.msra.mxu0 %v4133_v61  ;;  %v536_v30 = vld [vmem:[#allocation10 + $0x3a8] sm:$0xff]  ;;  %v4181_v61 = vpack.c.bf16 %v543_v37, %v539_v52  ;;  %v535_v55 = vld [vmem:[#allocation10 + $0x3a0] sm:$0xff]  ;;  %v533_v5 = vld [vmem:[#allocation10 + $0x390] sm:$0xff] }
 0x443   : > { %4203 = vmatprep.subr.bf16.mxu0 %v4130_v18  ;;  %v4178_v18 = vpack.c.bf16 %v536_v30, %v532_v50  ;;  %v537_v12 = vld [vmem:[#allocation10 + $0x3b0] sm:$0xff]  ;;  %v524_v54 = vld [vmem:[#allocation10 + $0x348] sm:$0xff]  ;;  %v526_v42 = vld [vmem:[#allocation10 + $0x358] sm:$0xff] }
 0x444   : > { %4271 = vmatpush1.bf16.msra.mxu1 %v4143_v53  ;;  %v4125_v53 = vpack.c.bf16 %v431_v0, %v427_v38  ;;  %v528_v36 = vld [vmem:[#allocation10 + $0x368] sm:$0xff]  ;;  %v530_v35 = vld [vmem:[#allocation10 + $0x378] sm:$0xff] }
 0x445   : > { %4272 = vmatprep.subr.bf16.mxu1 %v4140_v59  ;;  %v421_v59 = vld [vmem:[#allocation10 + $0x10] sm:$0xff]  ;;  %v4176_v38 = vpack.c.bf16 %v530_v35, %v526_v42 }
 0x446   : > { %4204 = vmatpush1.bf16.msra.mxu0 %v4129_v33  ;;  %v4177_v33 = vpack.c.bf16 %v535_v55, %v531_v8  ;;  %v527_v8 = vld [vmem:[#allocation10 + $0x360] sm:$0xff] }
 0x447   : > { %4205 = vmatprep.subr.bf16.mxu0 %v4126_v48  ;;  %v4174_v48 = vpack.c.bf16 %v528_v36, %v524_v54 }
 0x448   : > { %4273 = vmatpush1.bf16.msra.mxu1 %v4139_v49  ;;  %v4123_v49 = vpack.c.bf16 %v425_v1, %v421_v59 }
 0x449   : > { %4274 = vmatprep.subr.bf16.mxu1 %v4136_v41  ;;  %v4184_v41 = vpack.c.bf16 %v546_v60, %v542_v51 }
 0x44a   : > { %4206 = vmatpush1.bf16.msra.mxu0 %v4125_v53 }
 0x44b   : > { %4207 = vmatprep.subr.bf16.mxu0 %v4122_v20 }
 0x44c   : > { %4275 = vmatpush1.bf16.msra.mxu1 %v4135_v22  ;;  %v4183_v22 = vpack.c.bf16 %v545_v40, %v541_v47 }
 0x44d   : > { %4276 = vmatprep.subr.bf16.mxu1 %v4132_v11  ;;  %v4180_v11 = vpack.c.bf16 %v538_v39, %v534_v58 }
 0x44e   : > { %4208 = vmatpush1.bf16.msra.mxu0 %v4121_v29 }
 0x44f   : > { %4209 = vmatprep.subr.bf16.mxu0 %v4182_v17 }
 0x450   : > { %4277 = vmatpush1.bf16.msra.mxu1 %v4131_v24  ;;  %v4179_v24 = vpack.c.bf16 %v537_v12, %v533_v5 }
 0x451   : > { %4278 = vmatprep.subr.bf16.mxu1 %v4128_v10 }
 0x452   : > { %4210 = vmatpush2.bf16.msra.mxu0 %v4181_v61 }
 0x453   : > { %4211 = vmatprep.subr.bf16.mxu0 %v4178_v18 }
 0x454   : > { %4279 = vmatpush1.bf16.msra.mxu1 %v4127_v43 }
 0x455   : > { %4280 = vmatprep.subr.bf16.mxu1 %v4124_v62 }
 0x456   : > { %4212 = vmatpush2.bf16.msra.mxu0 %v4177_v33  ;;  %v518_v33 = vld [vmem:[#allocation10 + $0x318] sm:$0xff] }
 0x457   : > { %4213 = vmatprep.subr.bf16.mxu0 %v4174_v48  ;;  %v522_v48 = vld [vmem:[#allocation10 + $0x338] sm:$0xff] }
 0x458   : > { %4281 = vmatpush1.bf16.msra.mxu1 %v4123_v49 }
 0x459   : > { %4282 = vmatprep.subr.bf16.mxu1 %v4184_v41 }
 0x45c   : > { %4283 = vmatpush2.bf16.msra.mxu1 %v4183_v22 }
 0x45d   : > { %4284 = vmatprep.subr.bf16.mxu1 %v4180_v11  ;;  %v529_v11 = vld [vmem:[#allocation10 + $0x370] sm:$0xff] }
 0x460   : > { %4285 = vmatpush2.bf16.msra.mxu1 %v4179_v24 }
 0x461   : > { %4286 = vmatprep.subr.bf16.mxu1 %v4176_v38  ;;  %v515_v38 = vld [vmem:[#allocation10 + $0x300] sm:$0xff] }
 0x4ab   : > { %v4003_v0 = vpop.xlane.xlu0 %4002 }
 0x4ac   : > { %v4025_v13 = vsub.f32 %v7709_v44, %v4003_v0  ;;  %v4026_v10 = vsub.f32 %v7712_v6, %v4003_v0  ;;  %v519_v0 = vld [vmem:[#allocation10 + $0x320] sm:$0xff] }
 0x4ae   : > { %v4041_v46 = vmul.f32 1.442695, %v4025_v13  ;;  %v4043_v7 = vmul.f32 1.442695, %v4026_v10  ;;  %v4172_v10 = vpack.c.bf16 %v522_v48, %v518_v33  ;;  %v484_v48 = vld [vmem:[#allocation10 + $0x208] sm:$0xff] }
 0x4af   : > { %v4006_v45 = vpop.xlane.xlu0 %4005 }
 0x4b0   : > { %4610 = vpow2.f32 %v4041_v46  ;;  %v4027_v9 = vsub.f32 %v7728_v28, %v4006_v45  ;;  %v4028_v32 = vsub.f32 %v7731_v27, %v4006_v45  ;;  %v4169_v46 = vpack.c.bf16 %v519_v0, %v515_v38  ;;  %v521_v45 = vld [vmem:[#allocation10 + $0x330] sm:$0xff]  ;;  %v488_v38 = vld [vmem:[#allocation10 + $0x228] sm:$0xff]  ;;  %v486_v0 = vld [vmem:[#allocation10 + $0x218] sm:$0xff] }
 0x4b1   : > { %4612 = vpow2.f32 %v4043_v7  ;;  %v517_v7 = vld [vmem:[#allocation10 + $0x310] sm:$0xff] }
 0x4b2   : > { %v4045_v53 = vmul.f32 1.442695, %v4027_v9  ;;  %v4047_v43 = vmul.f32 1.442695, %v4028_v32  ;;  %v4171_v32 = vpack.c.bf16 %v521_v45, %v517_v7  ;;  %v483_v7 = vld [vmem:[#allocation10 + $0x200] sm:$0xff] }
 0x4b3   : > { %v4009_v20 = vpop.xlane.xlu1 %4008  ;;  %v487_v45 = vld [vmem:[#allocation10 + $0x220] sm:$0xff] }
 0x4b4   : > { %4614 = vpow2.f32 %v4045_v53  ;;  %v4029_v21 = vsub.f32 %v7747_v23, %v4009_v20  ;;  %v4030_v26 = vsub.f32 %v7750_v63, %v4009_v20  ;;  %v512_v20 = vld [vmem:[#allocation10 + $0x2e8] sm:$0xff] }
 0x4b5   : > { %4616 = vpow2.f32 %v4047_v43  ;;  %v508_v43 = vld [vmem:[#allocation10 + $0x2c8] sm:$0xff] }
 0x4b6   : > { %v4049_v44 = vmul.f32 1.442695, %v4029_v21  ;;  %v4051_v6 = vmul.f32 1.442695, %v4030_v26  ;;  %v510_v21 = vld [vmem:[#allocation10 + $0x2d8] sm:$0xff]  ;;  %v4166_v26 = vpack.c.bf16 %v512_v20, %v508_v43  ;;  %v485_v43 = vld [vmem:[#allocation10 + $0x210] sm:$0xff] }
 0x4b7   : > { %v4012_v59 = vpop.xlane.xlu1 %4011  ;;  %v489_v20 = vld [vmem:[#allocation10 + $0x230] sm:$0xff] }
 0x4b8   : > { %4618 = vpow2.f32 %v4049_v44  ;;  %v4031_v62 = vsub.f32 %v7766_v16, %v4012_v59  ;;  %v4032_v28 = vsub.f32 %v7769_v4, %v4012_v59  ;;  %v514_v44 = vld [vmem:[#allocation10 + $0x2f8] sm:$0xff]  ;;  %v511_v59 = vld [vmem:[#allocation10 + $0x2e0] sm:$0xff] }
 0x4b9   : > { %4620 = vpow2.f32 %v4051_v6  ;;  %v507_v6 = vld [vmem:[#allocation10 + $0x2c0] sm:$0xff] }
 0x4ba   : > { %v4053_v27 = vmul.f32 1.442695, %v4031_v62  ;;  %v4055_v1 = vmul.f32 1.442695, %v4032_v28  ;;  %v4168_v28 = vpack.c.bf16 %v514_v44, %v510_v21  ;;  %v4155_v21 = vpack.c.bf16 %v489_v20, %v485_v43 }
 0x4bb   : > { %v4015_v19 = vpop.xlane.xlu0 %4014 }
 0x4bc   : > { %4622 = vpow2.f32 %v4053_v27  ;;  %v4033_v34 = vsub.f32 %v7784_v57, %v4015_v19  ;;  %v4034_v23 = vsub.f32 %v7787_v31, %v4015_v19  ;;  %v4165_v27 = vpack.c.bf16 %v511_v59, %v507_v6  ;;  %v513_v19 = vld [vmem:[#allocation10 + $0x2f0] sm:$0xff] }
 0x4bd   : > { %v7831_v51 = vpop.eup %4610  ;;  %4624 = vpow2.f32 %v4055_v1  ;;  %v509_v1 = vld [vmem:[#allocation10 + $0x2d0] sm:$0xff] }
 0x4be   : > { %v7833_v63 = vpop.eup %4612  ;;  %v4057_v60 = vmul.f32 1.442695, %v4033_v34  ;;  %v4059_v29 = vmul.f32 1.442695, %v4034_v23  ;;  %v4167_v23 = vpack.c.bf16 %v513_v19, %v509_v1 }
 0x4bf   : > { %v4018_v49 = vpop.xlane.xlu1 %4017  ;;  %v4073_v16 = vadd.f32 %v7833_v63, %v7831_v51 }
 0x4c0   : > { %4626 = vpow2.f32 %v4057_v60  ;;  %v4035_v4 = vsub.f32 %v7797_v2, %v4018_v49  ;;  %v4036_v17 = vsub.f32 %v7800_v14, %v4018_v49  ;;  %v504_v49 = vld [vmem:[#allocation10 + $0x2a8] sm:$0xff] }
 0x4c1   : > { %v7839_v52 = vpop.eup %4614  ;;  %4628 = vpow2.f32 %v4059_v29  ;;  %4074 = vadd.xlane.f32.xlu0 %v4073_v16  ;;  %v500_v29 = vld [vmem:[#allocation10 + $0x288] sm:$0xff]  ;;  %v502_v16 = vld [vmem:[#allocation10 + $0x298] sm:$0xff] }
 0x4c2   : > { %v7841_v57 = vpop.eup %4616  ;;  %v4061_v31 = vmul.f32 1.442695, %v4035_v4  ;;  %v4063_v37 = vmul.f32 1.442695, %v4036_v17  ;;  %v4162_v4 = vpack.c.bf16 %v504_v49, %v500_v29  ;;  %v506_v17 = vld [vmem:[#allocation10 + $0x2b8] sm:$0xff] }
 0x4c3   : > { %v4021_v47 = vpop.xlane.xlu0 %4020  ;;  %v4076_v41 = vadd.f32 %v7841_v57, %v7839_v52 }
 0x4c4   : > { %4630 = vpow2.f32 %v4061_v31  ;;  %v4037_v40 = vsub.f32 %v7806_v15, %v4021_v47  ;;  %v4038_v50 = vsub.f32 %v7809_v3, %v4021_v47  ;;  %v523_v15 = vld [vmem:[#allocation10 + $0x340] sm:$0xff]  ;;  %v525_v3 = vld [vmem:[#allocation10 + $0x350] sm:$0xff] }
 0x4c5   : > { %v7847_v2 = vpop.eup %4618  ;;  %4632 = vpow2.f32 %v4063_v37  ;;  %4077 = vadd.xlane.f32.xlu1 %v4076_v41  ;;  %v4173_v5 = vpack.c.bf16 %v527_v8, %v523_v15  ;;  %v4175_v42 = vpack.c.bf16 %v529_v11, %v525_v3  ;;  %v499_v31 = vld [vmem:[#allocation10 + $0x280] sm:$0xff]  ;;  %v4164_v41 = vpack.c.bf16 %v506_v17, %v502_v16  ;;  %v494_v15 = vld [vmem:[#allocation10 + $0x258] sm:$0xff] }
 0x4c6   : > { %v7849_v14 = vpop.eup %4620  ;;  %v4065_v30 = vmul.f32 1.442695, %v4037_v40  ;;  %v4067_v58 = vmul.f32 1.442695, %v4038_v50  ;;  %v503_v37 = vld [vmem:[#allocation10 + $0x2a0] sm:$0xff]  ;;  %v501_v50 = vld [vmem:[#allocation10 + $0x290] sm:$0xff] }
 0x4c7   : > { %v4024_v39 = vpop.xlane.xlu1 %4023  ;;  %v4079_v61 = vadd.f32 %v7849_v14, %v7847_v2  ;;  %4214 = vmatpush2.bf16.msra.mxu0 %v4173_v5  ;;  %4287 = vmatpush2.bf16.msra.mxu1 %v4175_v42  ;;  %v4161_v40 = vpack.c.bf16 %v503_v37, %v499_v31  ;;  %v498_v3 = vld [vmem:[#allocation10 + $0x278] sm:$0xff]  ;;  %v491_v5 = vld [vmem:[#allocation10 + $0x240] sm:$0xff] }
 0x4c8   : > { %4634 = vpow2.f32 %v4065_v30  ;;  %v4039_v22 = vsub.f32 %v7814_v56, %v4024_v39  ;;  %v4040_v18 = vsub.f32 %v7817_v25, %v4024_v39  ;;  %v516_v56 = vld [vmem:[#allocation10 + $0x308] sm:$0xff]  ;;  %4288 = vmatprep.subr.bf16.mxu1 %v4172_v10  ;;  %v505_v30 = vld [vmem:[#allocation10 + $0x2b0] sm:$0xff]  ;;  %v495_v11 = vld [vmem:[#allocation10 + $0x260] sm:$0xff]  ;;  %v4154_v10 = vpack.c.bf16 %v488_v38, %v484_v48 }
 0x4c9   : > { %v7855_v55 = vpop.eup %4622  ;;  %4636 = vpow2.f32 %v4067_v58  ;;  %4080 = vadd.xlane.f32.xlu0 %v4079_v61  ;;  %v520_v25 = vld [vmem:[#allocation10 + $0x328] sm:$0xff]  ;;  %v4163_v39 = vpack.c.bf16 %v505_v30, %v501_v50  ;;  %v4157_v42 = vpack.c.bf16 %v495_v11, %v491_v5 }
 0x4ca   : > { %v7857_v12 = vpop.eup %4624  ;;  %v4069_v54 = vmul.f32 1.442695, %v4039_v22  ;;  %v4071_v36 = vmul.f32 1.442695, %v4040_v18  ;;  %v4170_v24 = vpack.c.bf16 %v520_v25, %v516_v56  ;;  %v492_v22 = vld [vmem:[#allocation10 + $0x248] sm:$0xff]  ;;  %v497_v56 = vld [vmem:[#allocation10 + $0x270] sm:$0xff] }
 0x4cb   : > { %v4082_v35 = vadd.f32 %v7857_v12, %v7855_v55  ;;  %4289 = vmatpush2.bf16.msra.mxu1 %v4171_v32  ;;  %v496_v18 = vld [vmem:[#allocation10 + $0x268] sm:$0xff] }
 0x4cc   : > { %4638 = vpow2.f32 %v4069_v54  ;;  %4215 = vmatprep.subr.bf16.mxu0 %v4170_v24  ;;  %4290 = vmatprep.subr.bf16.mxu1 %v4168_v28  ;;  %v4158_v8 = vpack.c.bf16 %v496_v18, %v492_v22 }
 0x4cd   : > { %v7861_v13 = vpop.eup %4626  ;;  %4640 = vpow2.f32 %v4071_v36  ;;  %4083 = vadd.xlane.f32.xlu1 %v4082_v35  ;;  %4216 = vmatpush2.bf16.msra.mxu0 %v4169_v46  ;;  %v4160_v36 = vpack.c.bf16 %v498_v3, %v494_v15  ;;  %v493_v35 = vld [vmem:[#allocation10 + $0x250] sm:$0xff]  ;;  %v490_v46 = vld [vmem:[#allocation10 + $0x238] sm:$0xff] }
 0x4ce   : > { %v7863_v9 = vpop.eup %4628  ;;  %4217 = vmatprep.subr.bf16.mxu0 %v4166_v26  ;;  %v4159_v33 = vpack.c.bf16 %v497_v56, %v493_v35  ;;  %v4156_v32 = vpack.c.bf16 %v490_v46, %v486_v0 }
 0x4cf   : > { %v4085_v53 = vadd.f32 %v7863_v9, %v7861_v13  ;;  %4291 = vmatpush2.bf16.msra.mxu1 %v4167_v23 }
 0x4d0   : > { %4292 = vmatprep.subr.bf16.mxu1 %v4164_v41 }
 0x4d1   : > { %v7867_v62 = vpop.eup %4630  ;;  %4086 = vadd.xlane.f32.xlu0 %v4085_v53  ;;  %4218 = vmatpush2.bf16.msra.mxu0 %v4165_v27  ;;  %v4153_v53 = vpack.c.bf16 %v487_v45, %v483_v7 }
 0x4d2   : > { %v7869_v34 = vpop.eup %4632  ;;  %4219 = vmatprep.subr.bf16.mxu0 %v4162_v4 }
 0x4d3   : > { %v4088_v60 = vadd.f32 %v7869_v34, %v7867_v62  ;;  %4293 = vmatpush2.bf16.msra.mxu1 %v4163_v39 }
 0x4d4   : > { %4294 = vmatprep.subr.bf16.mxu1 %v4160_v36 }
 0x4d5   : > { %v7873_v47 = vpop.eup %4634  ;;  %4089 = vadd.xlane.f32.xlu1 %v4088_v60  ;;  %4220 = vmatpush2.bf16.msra.mxu0 %v4161_v40 }
 0x4d6   : > { %v7875_v58 = vpop.eup %4636  ;;  %4221 = vmatprep.subr.bf16.mxu0 %v4158_v8 }
 0x4d7   : > { %v4091_v61 = vadd.f32 %v7875_v58, %v7873_v47  ;;  %4295 = vmatpush2.bf16.msra.mxu1 %v4159_v33 }
 0x4d8   : > { %4296 = vmatprep.subr.bf16.mxu1 %v4156_v32 }
 0x4d9   : > { %v7879_v54 = vpop.eup %4638  ;;  %4092 = vadd.xlane.f32.xlu0 %v4091_v61  ;;  %4222 = vmatpush2.bf16.msra.mxu0 %v4157_v42 }
 0x4da   : > { %v7881_v25 = vpop.eup %4640  ;;  %4223 = vmatprep.subr.bf16.mxu0 %v4154_v10 }
 0x4db   : > { %v4094_v24 = vadd.f32 %v7881_v25, %v7879_v54  ;;  %4297 = vmatpush2.bf16.msra.mxu1 %v4155_v21 }
 0x4dd   : > { %4095 = vadd.xlane.f32.xlu1 %v4094_v24  ;;  %4224 = vmatpush2.bf16.msra.mxu0 %v4153_v53 }
 0x54a   : > { %v4075_v26 = vpop.xlane.xlu0 %4074 }
 0x54b   : > { %4642 = vrcp.f32 %v4075_v26 }
 0x54e   : > { %v4078_v44 = vpop.xlane.xlu1 %4077 }
 0x54f   : > { %4644 = vrcp.f32 %v4078_v44 }
 0x552   : > { %v4081_v6 = vpop.xlane.xlu0 %4080 }
 0x553   : > { %4646 = vrcp.f32 %v4081_v6 }
 0x556   : > { %v4084_v59 = vpop.xlane.xlu1 %4083 }
 0x557   : > { %4648 = vrcp.f32 %v4084_v59 }
 0x558   : > { %v4643_v28 = vpop.eup %4642 }
 0x559   : > { %v4106_v19 = vmul.f32 %v4643_v28, %v7833_v63  ;;  %v4105_v60 = vmul.f32 %v4643_v28, %v7831_v51 }
 0x55a   : > { %v4087_v27 = vpop.xlane.xlu0 %4086 }
 0x55b   : > { %4650 = vrcp.f32 %v4087_v27 }
 0x55c   : > { %v4645_v1 = vpop.eup %4644 }
 0x55d   : > { %v4108_v23 = vmul.f32 %v4645_v1, %v7841_v57  ;;  %v4107_v29 = vmul.f32 %v4645_v1, %v7839_v52 }
 0x55e   : > { %v4090_v49 = vpop.xlane.xlu1 %4089 }
 0x55f   : > { %4652 = vrcp.f32 %v4090_v49  ;;  %v4186_v16 = vpack.c.bf16 %v4108_v23, %v4106_v19  ;;  %v4185_v4 = vpack.c.bf16 %v4107_v29, %v4105_v60 }
 0x560   : > { %v4647_v17 = vpop.eup %4646 }
 0x561   : > { %4225 = vmatprep.mubr.bf16.mxu0 %v4186_v16  ;;  %4298 = vmatprep.mubr.bf16.mxu1 %v4186_v16  ;;  %v4110_v63 = vmul.f32 %v4647_v17, %v7849_v14  ;;  %v4109_v51 = vmul.f32 %v4647_v17, %v7847_v2 }
 0x562   : > { %v4093_v31 = vpop.xlane.xlu0 %4092  ;;  %4226 = vmatmul.mubr.bf16.vlgmr.msra.gmra.mxu0 %v4185_v4  ;;  %4299 = vmatmul.mubr.bf16.vlgmr.msra.gmra.mxu1 %v4185_v4 }
 0x563   : > { %4654 = vrcp.f32 %v4093_v31 }
 0x564   : > { %v4649_v37 = vpop.eup %4648 }
 0x565   : > { %v4112_v57 = vmul.f32 %v4649_v37, %v7857_v12  ;;  %v4111_v52 = vmul.f32 %v4649_v37, %v7855_v55 }
 0x566   : > { %v4096_v41 = vpop.xlane.xlu1 %4095 }
 0x567   : > { %4656 = vrcp.f32 %v4096_v41  ;;  %v4188_v40 = vpack.c.bf16 %v4112_v57, %v4110_v63  ;;  %v4187_v50 = vpack.c.bf16 %v4111_v52, %v4109_v51 }
 0x568   : > { %v4651_v30 = vpop.eup %4650 }
 0x569   : > { %4235 = vmatprep.mubr.bf16.mxu0 %v4188_v40  ;;  %4308 = vmatprep.mubr.bf16.mxu1 %v4188_v40  ;;  %v4114_v61 = vmul.f32 %v4651_v30, %v7863_v9  ;;  %v4113_v12 = vmul.f32 %v4651_v30, %v7861_v13 }
 0x56a   : > { %4236 = vmatmul.mubr.bf16.gmra.mxu0 %v4187_v50  ;;  %4309 = vmatmul.mubr.bf16.gmra.mxu1 %v4187_v50 }
 0x56c   : > { %v4653_v39 = vpop.eup %4652 }
 0x56d   : > { %v4116_v14 = vmul.f32 %v4653_v39, %v7869_v34  ;;  %v4115_v2 = vmul.f32 %v4653_v39, %v7867_v62 }
 0x56f   : > { %v4190_v22 = vpack.c.bf16 %v4116_v14, %v4114_v61  ;;  %v4189_v55 = vpack.c.bf16 %v4115_v2, %v4113_v12 }
 0x570   : > { %v4655_v18 = vpop.eup %4654 }
 0x571   : > { %4245 = vmatprep.mubr.bf16.mxu0 %v4190_v22  ;;  %4318 = vmatprep.mubr.bf16.mxu1 %v4190_v22  ;;  %v4118_v8 = vmul.f32 %v4655_v18, %v7875_v58  ;;  %v4117_v9 = vmul.f32 %v4655_v18, %v7873_v47 }
 0x572   : > { %4246 = vmatmul.mubr.bf16.gmra.mxu0 %v4189_v55  ;;  %4319 = vmatmul.mubr.bf16.gmra.mxu1 %v4189_v55 }
 0x574   : > { %v4657_v15 = vpop.eup %4656 }
 0x575   : > { %v4120_v3 = vmul.f32 %v4657_v15, %v7881_v25  ;;  %v4119_v34 = vmul.f32 %v4657_v15, %v7879_v54 }
 0x577   : > { %v4192_v13 = vpack.c.bf16 %v4120_v3, %v4118_v8  ;;  %v4191_v5 = vpack.c.bf16 %v4119_v34, %v4117_v9 }
 0x579   : > { %4255 = vmatprep.mubr.bf16.mxu0 %v4192_v13  ;;  %4328 = vmatprep.mubr.bf16.mxu1 %v4192_v13 }
 0x57a   : > { %4256 = vmatmul.mubr.bf16.gmra.mxu0 %v4191_v5  ;;  %4329 = vmatmul.mubr.bf16.gmra.mxu1 %v4191_v5 }
 0x622   : > { %v4227_v62 = vpop.f32.mrf.mxu0  ;;  %v4300_v11 = vpop.f32.mrf.mxu1 }
 0x623   : > { %4339 = vst [vmem:[%s7903_s28] sm:$0xff] %v4227_v62  ;;  %4341 = vst [vmem:[%s7903_s28 + $0x10] sm:$0xff] %v4300_v11 }
 0x624   : > { %v4229_v47 = vpop.f32.mrf.mxu0  ;;  %v4302_v58 = vpop.f32.mrf.mxu1 }
 0x625   : > { %4340 = vst [vmem:[%s7903_s28 + $0x8] sm:$0xff] %v4229_v47  ;;  %4342 = vst [vmem:[%s7903_s28 + $0x18] sm:$0xff] %v4302_v58 }
 0x626   : > { %v4231_v54 = vpop.f32.mrf.mxu0  ;;  %v4304_v36 = vpop.f32.mrf.mxu1 }
 0x627   : > { %4343 = vst [vmem:[%s7903_s28 + $0x20] sm:$0xff] %v4231_v54  ;;  %4345 = vst [vmem:[%s7903_s28 + $0x30] sm:$0xff] %v4304_v36 }
 0x628   : > { %v4233_v42 = vpop.f32.mrf.mxu0  ;;  %v4306_v35 = vpop.f32.mrf.mxu1 }
 0x629   : > { %4344 = vst [vmem:[%s7903_s28 + $0x28] sm:$0xff] %v4233_v42  ;;  %4346 = vst [vmem:[%s7903_s28 + $0x38] sm:$0xff] %v4306_v35 }
 0x62a   : > { %v4237_v56 = vpop.f32.mrf.mxu0  ;;  %v4310_v25 = vpop.f32.mrf.mxu1 }
 0x62b   : > { %4347 = vst [vmem:[%s7903_s28 + $0x40] sm:$0xff] %v4237_v56  ;;  %4349 = vst [vmem:[%s7903_s28 + $0x50] sm:$0xff] %v4310_v25 }
 0x62c   : > { %v4239_v33 = vpop.f32.mrf.mxu0  ;;  %v4312_v24 = vpop.f32.mrf.mxu1 }
 0x62d   : > { %4348 = vst [vmem:[%s7903_s28 + $0x48] sm:$0xff] %v4239_v33  ;;  %4350 = vst [vmem:[%s7903_s28 + $0x58] sm:$0xff] %v4312_v24 }
 0x62e   : > { %v4241_v48 = vpop.f32.mrf.mxu0  ;;  %v4314_v38 = vpop.f32.mrf.mxu1 }
 0x62f   : > { %4351 = vst [vmem:[%s7903_s28 + $0x60] sm:$0xff] %v4241_v48  ;;  %4353 = vst [vmem:[%s7903_s28 + $0x70] sm:$0xff] %v4314_v38 }
 0x630   : > { %v4243_v0 = vpop.f32.mrf.mxu0  ;;  %v4316_v10 = vpop.f32.mrf.mxu1 }
 0x631   : > { %4352 = vst [vmem:[%s7903_s28 + $0x68] sm:$0xff] %v4243_v0  ;;  %4354 = vst [vmem:[%s7903_s28 + $0x78] sm:$0xff] %v4316_v10 }
 0x632   : > { %v4247_v46 = vpop.f32.mrf.mxu0  ;;  %v4320_v7 = vpop.f32.mrf.mxu1 }
 0x633   : > { %4355 = vst [vmem:[%s7903_s28 + $0x80] sm:$0xff] %v4247_v46  ;;  %4357 = vst [vmem:[%s7903_s28 + $0x90] sm:$0xff] %v4320_v7 }
 0x634   : > { %v4249_v45 = vpop.f32.mrf.mxu0  ;;  %v4322_v32 = vpop.f32.mrf.mxu1 }
 0x635   : > { %4356 = vst [vmem:[%s7903_s28 + $0x88] sm:$0xff] %v4249_v45  ;;  %4358 = vst [vmem:[%s7903_s28 + $0x98] sm:$0xff] %v4322_v32 }
 0x636   : > { %v4251_v53 = vpop.f32.mrf.mxu0  ;;  %v4324_v43 = vpop.f32.mrf.mxu1 }
 0x637   : > { %4359 = vst [vmem:[%s7903_s28 + $0xa0] sm:$0xff] %v4251_v53  ;;  %4361 = vst [vmem:[%s7903_s28 + $0xb0] sm:$0xff] %v4324_v43 }
 0x638   : > { %v4253_v20 = vpop.f32.mrf.mxu0  ;;  %v4326_v21 = vpop.f32.mrf.mxu1 }
 0x639   : > { %4360 = vst [vmem:[%s7903_s28 + $0xa8] sm:$0xff] %v4253_v20  ;;  %4362 = vst [vmem:[%s7903_s28 + $0xb8] sm:$0xff] %v4326_v21 }
 0x63a   : > { %v4257_v26 = vpop.f32.mrf.mxu0  ;;  %v4330_v44 = vpop.f32.mrf.mxu1 }
 0x63b   : > { %4363 = vst [vmem:[%s7903_s28 + $0xc0] sm:$0xff] %v4257_v26  ;;  %4365 = vst [vmem:[%s7903_s28 + $0xd0] sm:$0xff] %v4330_v44 }
 0x63c   : > { %v4259_v6 = vpop.f32.mrf.mxu0  ;;  %v4332_v59 = vpop.f32.mrf.mxu1 }
 0x63d   : > { %4364 = vst [vmem:[%s7903_s28 + $0xc8] sm:$0xff] %v4259_v6  ;;  %4366 = vst [vmem:[%s7903_s28 + $0xd8] sm:$0xff] %v4332_v59 }
 0x63e   : > { %v4261_v28 = vpop.f32.mrf.mxu0  ;;  %v4334_v27 = vpop.f32.mrf.mxu1 }
 0x63f   : > { %4367 = vst [vmem:[%s7903_s28 + $0xe0] sm:$0xff] %v4261_v28  ;;  %4369 = vst [vmem:[%s7903_s28 + $0xf0] sm:$0xff] %v4334_v27 }
 0x640   : > { %v4263_v1 = vpop.f32.mrf.mxu0  ;;  %v4336_v19 = vpop.f32.mrf.mxu1 }
 0x641   : > { %4368 = vst [vmem:[%s7903_s28 + $0xe8] sm:$0xff] %v4263_v1  ;;  %4370 = vst [vmem:[%s7903_s28 + $0xf8] sm:$0xff] %v4336_v19 }
 0x642   : > { %4751 = shalt.err (!%p4748_p2)
}
 0x643   : > { %s4752_s9 = scalar_lea.hbm %s7938_s17, 4096  ;;  %s4756_s11 = scalar_lea.hbm %s7996_s5, 16384 }
 0x644   : > { %p4753_p9 = scmp.ne.s32.totalorder %s7938_s17, %s4752_s9  ;;  %p4757_p13 = scmp.lt.s32.totalorder %s7938_s17, %s7996_s5 }
 0x645   : > { %p4758_p7 = scmp.lt.s32.totalorder %s4756_s11, %s4752_s9 }
 0x646   : > { %p4754_p11 = pnand %p4753_p9, %p4965_p5 }
 0x647   : > { %p4759_p3 = por %p4758_p7, %p4757_p13 }
 0x648   : > { %p4755_p12 = pneg %p4754_p11 }
 0x64a   : > { %p4760_p1 = pnand %p4759_p3, %p4755_p12 }
 0x64c   : > { %4763 = shalt.err (!%p4760_p1)
}
 0x64d   : > { %s4830_s28 = smov 512   ;;  %s4831_s30 = smov 32  }
 0x64e   : > { %4533 = dma.vmem_to_hbm [thread:$0]  (%p4965_p5), %s7940_s13, 4096, %s7938_s17, %s4372_s22, %s4830_s28, %s4830_s28, %s4831_s30  }
 0x64f PF: > { %p4555_p4 = scmp.ge.s32.totalorder %s4822_s24, 2  ;;  %s4403_s15 = sand.u32 1, %s4802_s1  }
 0x650   : > { %p9589_p6 = scmp.ne.s32.totalorder %s8556_s29, 0  ;;  %s4404_s16 = scalar_lea.sflag [#allocation7], %s4403_s15 }
 0x652   : > { %p4547_p8 = pnand %p4555_p4, %p9589_p6 }
 0x654   : > { %p4548_p0 = pneg %p4547_p8 }
 0x656   : > { %4797 = dma.done.wait (%p4548_p0), %s4404_s16, 4096  }
 0x657   : > { %4799 = vsyncadd (%p4548_p0), %s4404_s16, 4294963200  ;;  %s24_s24 = sadd.s32 1, %s4822_s24   ;;  %s9590_s1 = smov %s4806_s20 }
 0x658   : > { %p21_p10 = scmp.ge.s32.totalorder %s24_s24, 6   ;;  %s9591_s20 = smov %s4810_s21 }
 0x659   : > { %s9592_s21 = smov %s4974_s10  ;;  %s9593_s22 = smov %s4818_s23 }
 0x65a   : > { %s9594_s23 = smov %s9596_s19  ;;  %23 = sbr.rel (!%p21_p10) target bundleno = 9 (0x9), region = 87 }
 0x65f   :  { %4409 = vsyncpa [#allocation6], 1 }
 0x660   :  { %4411 = vsyncpa [#allocation6 + $0x1], 1 }
 0x661   :  { %4412 = vsyncpa [#allocation9], 1 }
 0x662   :  { %4413 = vsyncpa [#allocation7], 1 }
 0x663   :  { %4415 = vsyncpa [#allocation7 + $0x1], 1 }

// kernel: tpu_custom_call.1
= control target key start
LH: loop header
LB: loop body
LE: loop exit
PB: predicated region body
PF: predicated region fallthrough
CT: control target
= control target key end

     0   :  { %s2069_s0 = inlined_call_operand.<no memory space> [shape: f32[1], index: 0, kind: input, shape index: {}]   ;;  %s2070_s1 = inlined_call_operand.<no memory space> [shape: s32[1], index: 1, kind: input, shape index: {}]   ;;  %s2071_s2 = inlined_call_operand.hbm [shape: f32[1,256,512], index: 2, kind: input, shape index: {}]   ;;  %s2072_s3 = inlined_call_operand.hbm [shape: f32[1,256,512], index: 3, kind: input, shape index: {}]   ;;  %s2073_s4 = inlined_call_operand.hbm [shape: f32[1,256,512], index: 4, kind: input, shape index: {}]   ;;  %s2074_s5 = inlined_call_operand.hbm [shape: f32[1,256,512], index: 5, kind: output, shape index: {}]  }
   0x1   :  { %10 = sst [smem:[#allocation3]] %s2069_s0 }
   0x2   :  { %12 = vsyncpa [#allocation6], 0 }
   0x3   :  { %14 = vsyncpa [#allocation6 + $0x1], 0 }
   0x4   :  { %15 = vsyncpa [#allocation9], 0 }
   0x5   :  { %16 = vsyncpa [#allocation7], 0 }
   0x6   :  { %18 = vsyncpa [#allocation7 + $0x1], 0  ;;  %s1655_s1 = smov 0   ;;  %s1657_s20 = smov 0  }
   0x7   :  { %s1659_s21 = smov 0   ;;  %s1661_s22 = smov 0  }
   0x8   :  { %s1663_s23 = smov 0   ;;  %s1665_s24 = smov 0  }
   0x9 LB: > { %s1288_s0 = sadd.s32 4294967295, %s1612_s24   ;;  %s1289_s25 = sadd.s32 4294967294, %s1612_s24   ;;  %s1612_s24 = sphi %s1665_s24, %s24_s24   ;;  %s1608_s23 = sphi %s1663_s23, %s2090_s23   ;;  %s1604_s22 = sphi %s1661_s22, %s2089_s22   ;;  %s1600_s21 = sphi %s1659_s21, %s2088_s21   ;;  %s1596_s20 = sphi %s1657_s20, %s2087_s20   ;;  %s1592_s1 = sphi %s1655_s1, %s2086_s1  }
   0xa   : > { %p58_p0 = scmp.ne.s32.totalorder %s1596_s20, %s1592_s1  ;;  %p1689_p1 = scmp.eq.s32.totalorder %s1288_s0, 0 }
   0xb   : > { %p1693_p2 = scmp.eq.s32.totalorder %s1288_s0, 3  ;;  %p142_p3 = scmp.eq.s32.totalorder %s1289_s25, 3 }
   0xc   : > { %p1699_p4 = por %p1689_p1, %p58_p0  ;;  %p1290_p5 = scmp.ge.s32.totalorder %s1612_s24, 1 }
   0xd   : > { %p1704_p6 = por %p142_p3, %p58_p0  ;;  %p149_p7 = scmp.lt.s32.totalorder %s1612_s24, 5 }
   0xe   : > { %s1614_s6 = smov [#allocation8]   ;;  %s1615_s9 = smov [#allocation10]  }
   0xf   : > { %s2079_s29 = scalar_select %p1704_p6, 1, 0 }
  0x10   : > { %p1709_p8 = pnand %p1290_p5, %p149_p7  ;;  %s164_s7 = sshll.u32 %s1614_s6, 4  ;;  %s165_s7 = int_to_ptr.vmem [resolvable:$true] %s164_s7 }
  0x11   : > { %s180_s10 = sshll.u32 %s1615_s9, 4  ;;  %s1459_s11 = scalar_lea.vmem %s165_s7, 16384  ;;  %s181_s10 = int_to_ptr.vmem [resolvable:$true] %s180_s10 }
  0x12   : > { %p1325_p9 = pneg %p1709_p8  ;;  %p1460_p12 = scmp.ne.s32.totalorder %s165_s7, %s1459_s11 }
  0x13   : > { %p1467_p3 = scmp.lt.s32.totalorder %s165_s7, %s165_s7  ;;  %p1468_p5 = scmp.lt.s32.totalorder %s1459_s11, %s1459_s11 }
  0x14   : > { %p1717_p10 = pnand %p1325_p9, %p1689_p1 }
  0x15   : > { %p1469_p7 = por %p1468_p5, %p1467_p3 }
  0x16   : > { %p1450_p11 = pneg %p1717_p10 }
  0x18   : > { %p1462_p13 = pnand %p1460_p12, %p1450_p11 }
  0x1a   : > { %p1463_p0 = pneg %p1462_p13 }
  0x1c   : > { %p1470_p9 = pnand %p1469_p7, %p1463_p0 }
  0x1e   : > { %1473 = shalt.err (!%p1470_p9)
}
  0x1f   : > { %s2075_s12 = smov 512   ;;  %s1617_s13 = smov 32  }
  0x20   : > { %1328 = dma.hbm_to_vmem [thread:$0]  (!%p1717_p10), %s2072_s3, 16384, %s165_s7, [#allocation9], %s2075_s12, %s2075_s12, %s1617_s13  }
  0x21   : > { %s1485_s16 = scalar_lea.vmem %s181_s10, 16384  ;;  %p1493_p0 = scmp.lt.s32.totalorder %s181_s10, %s181_s10 }
  0x22   : > { %p1486_p12 = scmp.ne.s32.totalorder %s181_s10, %s1485_s16  ;;  %p1494_p5 = scmp.lt.s32.totalorder %s1485_s16, %s1485_s16 }
  0x24   : > { %p1488_p13 = pnand %p1486_p12, %p1450_p11  ;;  %p1495_p7 = por %p1494_p5, %p1493_p0 }
  0x26   : > { %p1489_p3 = pneg %p1488_p13 }
  0x28   : > { %p1496_p9 = pnand %p1495_p7, %p1489_p3 }
  0x2a   : > { %1499 = shalt.err (!%p1496_p9)
}
  0x2b   : > { %1331 = dma.hbm_to_vmem [thread:$0]  (!%p1717_p10), %s2073_s4, 16384, %s181_s10, [#allocation9], %s2075_s12, %s2075_s12, %s1617_s13  }
  0x2c   : > { %s33_s19 = sadd.s32 1, %s1608_s23  ;;  %s45_s0 = sadd.s32 1, %s1600_s21 }
  0x2d   : > { %p34_p11 = scmp.ge.s32.totalorder %s33_s19, 4  ;;  %p52_p12 = scmp.ne.s32.totalorder %s1600_s21, %s1596_s20 }
  0x2e   : > { %p53_p13 = scmp.eq.s32.totalorder %s1612_s24, 0  ;;  %p1342_p3 = scmp.lt.s32.totalorder %s1612_s24, 4 }
  0x2f   : > { %s2092_s19 = smov (%p34_p11, %s33_s19), 0  ;;  %p1755_p5 = por %p1693_p2, %p52_p12 }
  0x30   : > { %p54_p0 = por %p53_p13, %p52_p12  ;;  %s41_s6 = ssub.s32 %s1608_s23, %s2092_s19 }
  0x31   : > { %s194_s7 = sand.u32 1, %s1600_s21   ;;  %p43_p7 = scmp.eq.s32.totalorder %s41_s6, 0 }
  0x32   : > { %s1294_s8 = sshll.u32 %s194_s7, 8  ;;  %s1310_s9 = sshll.u32 %s1608_s23, 12 }
  0x33   : > { %s1764_s10 = scalar_select %p43_p7, %s1600_s21, %s45_s0  }
  0x34   : > { %s207_s15 = scalar_lea.hbm %s2071_s2, %s1310_s9  ;;  %s198_s16 = scalar_lea.vmem [#allocation5], %s1294_s8 }
  0x35   : > { %s208_s17 = sshll.u32 %s198_s16, 4  ;;  %p1771_p10 = pnand %p1342_p3, %p54_p0  ;;  %s209_s17 = int_to_ptr.vmem [resolvable:$true] %s208_s17 }
  0x36   : > { %s195_s18 = scalar_lea.sflag [#allocation6], %s194_s7  ;;  %s1513_s6 = scalar_lea.vmem %s209_s17, 4096 }
  0x37   : > { %p1502_p2 = pneg %p1771_p10  ;;  %p1514_p9 = scmp.ne.s32.totalorder %s209_s17, %s1513_s6 }
  0x38   : > { %s1618_s0 = smov [#allocation5]  }
  0x39   : > { %p1516_p11 = pnand %p1514_p9, %p1502_p2  ;;  %s1518_s12 = sshll.u32 %s1618_s0, 4  ;;  %s1519_s12 = int_to_ptr.vmem [resolvable:$false] %s1518_s12 }
  0x3a   : > { %s1520_s9 = scalar_lea.vmem %s1519_s12, 8192  ;;  %p1521_p13 = scmp.lt.s32.totalorder %s209_s17, %s1519_s12 }
  0x3b   : > { %p1517_p12 = pneg %p1516_p11  ;;  %p1522_p7 = scmp.lt.s32.totalorder %s1520_s9, %s1513_s6 }
  0x3d   : > { %p1523_p6 = por %p1522_p7, %p1521_p13 }
  0x3f   : > { %p1524_p3 = pnand %p1523_p6, %p1517_p12 }
  0x41   : > { %1527 = shalt.err (!%p1524_p3)
}
  0x42   : > { %s2084_s8 = smov 512   ;;  %220 = sbr.rel (%p1709_p8) target bundleno = 961 (0x3c1), region = 32 }
  0x43   : > { %1335 = dma.hbm_to_vmem [thread:$0]  (!%p1771_p10), %s207_s15, 4096, %s209_s17, %s195_s18, %s2084_s8, %s2084_s8, %s1617_s13  }
  0x44   : > { %s1785_s7 = sand.u32 (!%p1709_p8), 1, %s1596_s20  }
  0x45   : > { %s1299_s12 = sshll.u32 (!%p1709_p8), %s1785_s7, 8  ;;  %s223_s11 = scalar_lea.sflag (!%p1709_p8), [#allocation6], %s1785_s7 }
  0x46   : > { %s1791_s14 = scalar_lea.vmem (!%p1709_p8), [#allocation5], %s1299_s12 }
  0x47   : > { %1579 = dma.done.wait (%p1699_p4), %s223_s11, 4096  }
  0x48   : > { %1581 = vsyncadd (%p1699_p4), %s223_s11, 4294963200 }
  0x49   : > { %1583 = dma.done.wait (%p1689_p1), [#allocation9], 32768  }
  0x4a   : > { %1585 = vsyncadd (%p1689_p1), [#allocation9], 4294934528  ;;  %v352_v0 = vld [vmem:[#allocation8 + $0x1e8] sm:$0xff]  ;;  %v354_v1 = vld [vmem:[#allocation8 + $0x1f8] sm:$0xff]  ;;  %s773_s26 = sld [smem:[#allocation3]]  ;;  %s1981_s28 = scalar_lea.vmem [#allocation11], %s1299_s12 }
  0x4b   : > { %v351_v2 = vld [vmem:[#allocation8 + $0x1e0] sm:$0xff]  ;;  %547 = vmatprep.subr.mxu0 %v352_v0  ;;  %660 = vmatprep.subr.mxu1 %v354_v1  ;;  %v353_v3 = vld [vmem:[#allocation8 + $0x1f0] sm:$0xff]  ;;  %v348_v4 = vld [vmem:[#allocation8 + $0x1c8] sm:$0xff]  ;;  %s1312_s30 = sshll.u32 %s1604_s22, 12  ;;  %s1178_s13 = sshll.u32 %s1981_s28, 4  ;;  %s2018_s13 = int_to_ptr.vmem [resolvable:$true] %s1178_s13 }
  0x4c   : > { %v350_v5 = vld [vmem:[#allocation8 + $0x1d8] sm:$0xff]  ;;  %548 = vmatpush1.xpose.msra.mxu0 %v351_v2  ;;  %661 = vmatpush1.xpose.msra.mxu1 %v353_v3  ;;  %v347_v6 = vld [vmem:[#allocation8 + $0x1c0] sm:$0xff]  ;;  %v349_v7 = vld [vmem:[#allocation8 + $0x1d0] sm:$0xff]  ;;  %s2016_s17 = scalar_lea.hbm %s2074_s5, %s1312_s30  ;;  %s1162_s22 = scalar_lea.sflag [#allocation7], %s1785_s7 }
  0x4d   : > { %549 = vmatprep.subr.mxu0 %v348_v4  ;;  %662 = vmatprep.subr.mxu1 %v350_v5  ;;  %v344_v8 = vld [vmem:[#allocation8 + $0x1a8] sm:$0xff]  ;;  %v346_v9 = vld [vmem:[#allocation8 + $0x1b8] sm:$0xff]  ;;  %v343_v10 = vld [vmem:[#allocation8 + $0x1a0] sm:$0xff]  ;;  %s1528_s27 = scalar_lea.vmem %s2018_s13, 4096  ;;  %s1619_s18 = smov [#allocation11]  }
  0x4e   : > { %v345_v11 = vld [vmem:[#allocation8 + $0x1b0] sm:$0xff]  ;;  %v340_v12 = vld [vmem:[#allocation8 + $0x188] sm:$0xff]  ;;  %v342_v13 = vld [vmem:[#allocation8 + $0x198] sm:$0xff]  ;;  %p1529_p1 = scmp.ne.s32.totalorder %s2018_s13, %s1528_s27  ;;  %s1532_s6 = sshll.u32 %s1619_s18, 4  ;;  %s1533_s6 = int_to_ptr.vmem [resolvable:$false] %s1532_s6 }
  0x4f   : > { %v339_v14 = vld [vmem:[#allocation8 + $0x180] sm:$0xff]  ;;  %v341_v15 = vld [vmem:[#allocation8 + $0x190] sm:$0xff]  ;;  %v336_v16 = vld [vmem:[#allocation8 + $0x168] sm:$0xff]  ;;  %s1534_s0 = scalar_lea.vmem %s1533_s6, 8192  ;;  %p1535_p8 = scmp.lt.s32.totalorder %s2018_s13, %s1533_s6 }
  0x50   : > { %550 = vmatpush1.xpose.msra.mxu0 %v347_v6  ;;  %663 = vmatpush1.xpose.msra.mxu1 %v349_v7  ;;  %v338_v17 = vld [vmem:[#allocation8 + $0x178] sm:$0xff]  ;;  %v335_v18 = vld [vmem:[#allocation8 + $0x160] sm:$0xff]  ;;  %v337_v19 = vld [vmem:[#allocation8 + $0x170] sm:$0xff]  ;;  %p1530_p4 = pnand %p1529_p1, %p1755_p5  ;;  %p1536_p0 = scmp.lt.s32.totalorder %s1534_s0, %s1528_s27 }
  0x51   : > { %551 = vmatprep.subr.mxu0 %v344_v8  ;;  %664 = vmatprep.subr.mxu1 %v346_v9  ;;  %v332_v20 = vld [vmem:[#allocation8 + $0x148] sm:$0xff]  ;;  %v334_v21 = vld [vmem:[#allocation8 + $0x158] sm:$0xff]  ;;  %v331_v22 = vld [vmem:[#allocation8 + $0x140] sm:$0xff] }
  0x52   : > { %v333_v23 = vld [vmem:[#allocation8 + $0x150] sm:$0xff]  ;;  %v328_v24 = vld [vmem:[#allocation8 + $0x128] sm:$0xff]  ;;  %v330_v25 = vld [vmem:[#allocation8 + $0x138] sm:$0xff]  ;;  %p1531_p6 = pneg %p1530_p4  ;;  %p1537_p10 = por %p1536_p0, %p1535_p8 }
  0x53   : > { %v327_v26 = vld [vmem:[#allocation8 + $0x120] sm:$0xff]  ;;  %v329_v27 = vld [vmem:[#allocation8 + $0x130] sm:$0xff]  ;;  %v324_v28 = vld [vmem:[#allocation8 + $0x108] sm:$0xff] }
  0x54   : > { %552 = vmatpush1.xpose.msra.mxu0 %v343_v10  ;;  %665 = vmatpush1.xpose.msra.mxu1 %v345_v11  ;;  %v326_v29 = vld [vmem:[#allocation8 + $0x118] sm:$0xff]  ;;  %v323_v30 = vld [vmem:[#allocation8 + $0x100] sm:$0xff]  ;;  %v325_v31 = vld [vmem:[#allocation8 + $0x110] sm:$0xff]  ;;  %p1538_p2 = pnand %p1537_p10, %p1531_p6 }
  0x55   : > { %553 = vmatprep.subr.mxu0 %v340_v12  ;;  %666 = vmatprep.subr.mxu1 %v342_v13  ;;  %v320_v32 = vld [vmem:[#allocation8 + $0xe8] sm:$0xff]  ;;  %v322_v33 = vld [vmem:[#allocation8 + $0xf8] sm:$0xff]  ;;  %v319_v34 = vld [vmem:[#allocation8 + $0xe0] sm:$0xff] }
  0x56   : > { %v321_v35 = vld [vmem:[#allocation8 + $0xf0] sm:$0xff]  ;;  %v316_v36 = vld [vmem:[#allocation8 + $0xc8] sm:$0xff]  ;;  %v318_v37 = vld [vmem:[#allocation8 + $0xd8] sm:$0xff] }
  0x57   : > { %v315_v38 = vld [vmem:[#allocation8 + $0xc0] sm:$0xff]  ;;  %v317_v39 = vld [vmem:[#allocation8 + $0xd0] sm:$0xff]  ;;  %v312_v40 = vld [vmem:[#allocation8 + $0xa8] sm:$0xff] }
  0x58   : > { %554 = vmatpush1.xpose.msra.mxu0 %v339_v14  ;;  %667 = vmatpush1.xpose.msra.mxu1 %v341_v15  ;;  %v314_v41 = vld [vmem:[#allocation8 + $0xb8] sm:$0xff]  ;;  %v311_v42 = vld [vmem:[#allocation8 + $0xa0] sm:$0xff]  ;;  %v313_v43 = vld [vmem:[#allocation8 + $0xb0] sm:$0xff] }
  0x59   : > { %555 = vmatprep.subr.mxu0 %v336_v16  ;;  %668 = vmatprep.subr.mxu1 %v338_v17  ;;  %v308_v44 = vld [vmem:[#allocation8 + $0x88] sm:$0xff]  ;;  %v310_v45 = vld [vmem:[#allocation8 + $0x98] sm:$0xff]  ;;  %v307_v47 = vld [vmem:[#allocation8 + $0x80] sm:$0xff] }
  0x5a   : > { %v260_v46 = vld [vmem:[%s1791_s14 + $0x8] sm:$0xff]  ;;  %v309_v48 = vld [vmem:[#allocation8 + $0x90] sm:$0xff]  ;;  %v262_v49 = vld [vmem:[%s1791_s14 + $0x18] sm:$0xff] }
  0x5b   : > { %v304_v50 = vld [vmem:[#allocation8 + $0x68] sm:$0xff]  ;;  %v306_v51 = vld [vmem:[#allocation8 + $0x78] sm:$0xff]  ;;  %611 = vmatprep.mubr.f32.mxu0 %v260_v46  ;;  %724 = vmatprep.mubr.f32.mxu1 %v262_v49  ;;  %v303_v52 = vld [vmem:[#allocation8 + $0x60] sm:$0xff] }
  0x5c   : > { %556 = vmatpush1.xpose.msra.mxu0 %v335_v18  ;;  %669 = vmatpush1.xpose.msra.mxu1 %v337_v19  ;;  %v305_v53 = vld [vmem:[#allocation8 + $0x70] sm:$0xff]  ;;  %v300_v54 = vld [vmem:[#allocation8 + $0x48] sm:$0xff]  ;;  %v302_v55 = vld [vmem:[#allocation8 + $0x58] sm:$0xff] }
  0x5d   : > { %557 = vmatprep.subr.mxu0 %v332_v20  ;;  %670 = vmatprep.subr.mxu1 %v334_v21  ;;  %v299_v56 = vld [vmem:[#allocation8 + $0x40] sm:$0xff]  ;;  %v301_v57 = vld [vmem:[#allocation8 + $0x50] sm:$0xff]  ;;  %v296_v58 = vld [vmem:[#allocation8 + $0x28] sm:$0xff] }
  0x5e   : > { %v298_v59 = vld [vmem:[#allocation8 + $0x38] sm:$0xff]  ;;  %v295_v60 = vld [vmem:[#allocation8 + $0x20] sm:$0xff]  ;;  %v297_v61 = vld [vmem:[#allocation8 + $0x30] sm:$0xff] }
  0x5f   : > { %v292_v62 = vld [vmem:[#allocation8 + $0x8] sm:$0xff]  ;;  %v294_v63 = vld [vmem:[#allocation8 + $0x18] sm:$0xff]  ;;  %v291_v0 = vld [vmem:[#allocation8] sm:$0xff] }
  0x60   : > { %558 = vmatpush1.xpose.msra.mxu0 %v331_v22  ;;  %671 = vmatpush1.xpose.msra.mxu1 %v333_v23  ;;  %v293_v1 = vld [vmem:[#allocation8 + $0x10] sm:$0xff]  ;;  %v416_v2 = vld [vmem:[#allocation8 + $0x3e8] sm:$0xff]  ;;  %v418_v3 = vld [vmem:[#allocation8 + $0x3f8] sm:$0xff] }
  0x61   : > { %559 = vmatprep.subr.mxu0 %v328_v24  ;;  %672 = vmatprep.subr.mxu1 %v330_v25  ;;  %v415_v4 = vld [vmem:[#allocation8 + $0x3e0] sm:$0xff]  ;;  %v417_v5 = vld [vmem:[#allocation8 + $0x3f0] sm:$0xff]  ;;  %v412_v6 = vld [vmem:[#allocation8 + $0x3c8] sm:$0xff] }
  0x62   : > { %v414_v7 = vld [vmem:[#allocation8 + $0x3d8] sm:$0xff]  ;;  %v411_v8 = vld [vmem:[#allocation8 + $0x3c0] sm:$0xff]  ;;  %v413_v9 = vld [vmem:[#allocation8 + $0x3d0] sm:$0xff] }
  0x63   : > { %v408_v10 = vld [vmem:[#allocation8 + $0x3a8] sm:$0xff]  ;;  %v410_v11 = vld [vmem:[#allocation8 + $0x3b8] sm:$0xff]  ;;  %v407_v12 = vld [vmem:[#allocation8 + $0x3a0] sm:$0xff] }
  0x64   : > { %560 = vmatpush1.xpose.msra.mxu0 %v327_v26  ;;  %673 = vmatpush1.xpose.msra.mxu1 %v329_v27  ;;  %v409_v13 = vld [vmem:[#allocation8 + $0x3b0] sm:$0xff]  ;;  %v404_v14 = vld [vmem:[#allocation8 + $0x388] sm:$0xff]  ;;  %v406_v15 = vld [vmem:[#allocation8 + $0x398] sm:$0xff] }
  0x65   : > { %561 = vmatprep.subr.mxu0 %v324_v28  ;;  %674 = vmatprep.subr.mxu1 %v326_v29  ;;  %v403_v16 = vld [vmem:[#allocation8 + $0x380] sm:$0xff]  ;;  %v405_v17 = vld [vmem:[#allocation8 + $0x390] sm:$0xff]  ;;  %v400_v18 = vld [vmem:[#allocation8 + $0x368] sm:$0xff] }
  0x66   : > { %v402_v19 = vld [vmem:[#allocation8 + $0x378] sm:$0xff]  ;;  %v399_v20 = vld [vmem:[#allocation8 + $0x360] sm:$0xff]  ;;  %v401_v21 = vld [vmem:[#allocation8 + $0x370] sm:$0xff] }
  0x67   : > { %v396_v22 = vld [vmem:[#allocation8 + $0x348] sm:$0xff]  ;;  %v398_v23 = vld [vmem:[#allocation8 + $0x358] sm:$0xff]  ;;  %v395_v24 = vld [vmem:[#allocation8 + $0x340] sm:$0xff] }
  0x68   : > { %562 = vmatpush1.xpose.msra.mxu0 %v323_v30  ;;  %675 = vmatpush1.xpose.msra.mxu1 %v325_v31  ;;  %v397_v25 = vld [vmem:[#allocation8 + $0x350] sm:$0xff]  ;;  %v392_v26 = vld [vmem:[#allocation8 + $0x328] sm:$0xff]  ;;  %v394_v27 = vld [vmem:[#allocation8 + $0x338] sm:$0xff] }
  0x69   : > { %563 = vmatprep.subr.mxu0 %v320_v32  ;;  %676 = vmatprep.subr.mxu1 %v322_v33  ;;  %v391_v28 = vld [vmem:[#allocation8 + $0x320] sm:$0xff]  ;;  %v393_v29 = vld [vmem:[#allocation8 + $0x330] sm:$0xff]  ;;  %v388_v30 = vld [vmem:[#allocation8 + $0x308] sm:$0xff] }
  0x6a   : > { %v390_v31 = vld [vmem:[#allocation8 + $0x318] sm:$0xff]  ;;  %v387_v32 = vld [vmem:[#allocation8 + $0x300] sm:$0xff]  ;;  %v389_v33 = vld [vmem:[#allocation8 + $0x310] sm:$0xff] }
  0x6b   : > { %v372_v46 = vld [vmem:[#allocation8 + $0x288] sm:$0xff]  ;;  %v373_v49 = vld [vmem:[#allocation8 + $0x290] sm:$0xff] }
  0x6c   : > { %564 = vmatpush1.xpose.msra.mxu0 %v319_v34  ;;  %677 = vmatpush1.xpose.msra.mxu1 %v321_v35  ;;  %v384_v34 = vld [vmem:[#allocation8 + $0x2e8] sm:$0xff]  ;;  %v386_v35 = vld [vmem:[#allocation8 + $0x2f8] sm:$0xff] }
  0x6d   : > { %565 = vmatprep.subr.mxu0 %v316_v36  ;;  %678 = vmatprep.subr.mxu1 %v318_v37  ;;  %v383_v36 = vld [vmem:[#allocation8 + $0x2e0] sm:$0xff]  ;;  %v385_v37 = vld [vmem:[#allocation8 + $0x2f0] sm:$0xff] }
  0x70   : > { %566 = vmatpush1.xpose.msra.mxu0 %v315_v38  ;;  %679 = vmatpush1.xpose.msra.mxu1 %v317_v39  ;;  %v380_v38 = vld [vmem:[#allocation8 + $0x2c8] sm:$0xff]  ;;  %v382_v39 = vld [vmem:[#allocation8 + $0x2d8] sm:$0xff] }
  0x71   : > { %567 = vmatprep.subr.mxu0 %v312_v40  ;;  %680 = vmatprep.subr.mxu1 %v314_v41  ;;  %v379_v40 = vld [vmem:[#allocation8 + $0x2c0] sm:$0xff]  ;;  %v381_v41 = vld [vmem:[#allocation8 + $0x2d0] sm:$0xff] }
  0x74   : > { %568 = vmatpush1.xpose.msra.mxu0 %v311_v42  ;;  %681 = vmatpush1.xpose.msra.mxu1 %v313_v43  ;;  %v376_v42 = vld [vmem:[#allocation8 + $0x2a8] sm:$0xff]  ;;  %v378_v43 = vld [vmem:[#allocation8 + $0x2b8] sm:$0xff] }
  0x75   : > { %569 = vmatprep.subr.mxu0 %v308_v44  ;;  %682 = vmatprep.subr.mxu1 %v310_v45  ;;  %v375_v44 = vld [vmem:[#allocation8 + $0x2a0] sm:$0xff]  ;;  %v377_v45 = vld [vmem:[#allocation8 + $0x2b0] sm:$0xff] }
  0x78   : > { %570 = vmatpush1.xpose.msra.mxu0 %v307_v47  ;;  %683 = vmatpush1.xpose.msra.mxu1 %v309_v48  ;;  %v374_v47 = vld [vmem:[#allocation8 + $0x298] sm:$0xff]  ;;  %v371_v48 = vld [vmem:[#allocation8 + $0x280] sm:$0xff] }
  0x79   : > { %571 = vmatprep.subr.mxu0 %v304_v50  ;;  %684 = vmatprep.subr.mxu1 %v306_v51  ;;  %v368_v50 = vld [vmem:[#allocation8 + $0x268] sm:$0xff]  ;;  %v370_v51 = vld [vmem:[#allocation8 + $0x278] sm:$0xff] }
  0x7c   : > { %572 = vmatpush1.xpose.msra.mxu0 %v303_v52  ;;  %685 = vmatpush1.xpose.msra.mxu1 %v305_v53  ;;  %v367_v52 = vld [vmem:[#allocation8 + $0x260] sm:$0xff]  ;;  %v369_v53 = vld [vmem:[#allocation8 + $0x270] sm:$0xff] }
  0x7d   : > { %573 = vmatprep.subr.mxu0 %v300_v54  ;;  %686 = vmatprep.subr.mxu1 %v302_v55  ;;  %v364_v54 = vld [vmem:[#allocation8 + $0x248] sm:$0xff]  ;;  %v366_v55 = vld [vmem:[#allocation8 + $0x258] sm:$0xff] }
  0x80   : > { %574 = vmatpush1.xpose.msra.mxu0 %v299_v56  ;;  %687 = vmatpush1.xpose.msra.mxu1 %v301_v57  ;;  %v363_v56 = vld [vmem:[#allocation8 + $0x240] sm:$0xff]  ;;  %v365_v57 = vld [vmem:[#allocation8 + $0x250] sm:$0xff] }
  0x81   : > { %575 = vmatprep.subr.mxu0 %v296_v58  ;;  %688 = vmatprep.subr.mxu1 %v298_v59  ;;  %v360_v58 = vld [vmem:[#allocation8 + $0x228] sm:$0xff]  ;;  %v362_v59 = vld [vmem:[#allocation8 + $0x238] sm:$0xff] }
  0x84   : > { %576 = vmatpush1.xpose.msra.mxu0 %v295_v60  ;;  %689 = vmatpush1.xpose.msra.mxu1 %v297_v61  ;;  %v359_v60 = vld [vmem:[#allocation8 + $0x220] sm:$0xff]  ;;  %v361_v61 = vld [vmem:[#allocation8 + $0x230] sm:$0xff] }
  0x85   : > { %577 = vmatprep.subr.mxu0 %v292_v62  ;;  %690 = vmatprep.subr.mxu1 %v294_v63  ;;  %v356_v62 = vld [vmem:[#allocation8 + $0x208] sm:$0xff]  ;;  %v358_v63 = vld [vmem:[#allocation8 + $0x218] sm:$0xff] }
  0x88   : > { %578 = vmatpush1.xpose.msra.mxu0 %v291_v0  ;;  %691 = vmatpush1.xpose.msra.mxu1 %v293_v1  ;;  %v355_v0 = vld [vmem:[#allocation8 + $0x200] sm:$0xff]  ;;  %v357_v1 = vld [vmem:[#allocation8 + $0x210] sm:$0xff] }
  0x89   : > { %579 = vmatprep.subr.mxu0 %v416_v2  ;;  %692 = vmatprep.subr.mxu1 %v418_v3  ;;  %v259_v2 = vld [vmem:[%s1791_s14] sm:$0xff]  ;;  %v261_v3 = vld [vmem:[%s1791_s14 + $0x10] sm:$0xff] }
  0x8c   : > { %580 = vmatpush2.xpose.msra.mxu0 %v415_v4  ;;  %693 = vmatpush2.xpose.msra.mxu1 %v417_v5  ;;  %v264_v4 = vld [vmem:[%s1791_s14 + $0x28] sm:$0xff]  ;;  %v266_v5 = vld [vmem:[%s1791_s14 + $0x38] sm:$0xff] }
  0x8d   : > { %581 = vmatprep.subr.mxu0 %v412_v6  ;;  %694 = vmatprep.subr.mxu1 %v414_v7  ;;  %v263_v6 = vld [vmem:[%s1791_s14 + $0x20] sm:$0xff]  ;;  %v265_v7 = vld [vmem:[%s1791_s14 + $0x30] sm:$0xff] }
  0x90   : > { %582 = vmatpush2.xpose.msra.mxu0 %v411_v8  ;;  %695 = vmatpush2.xpose.msra.mxu1 %v413_v9  ;;  %v268_v8 = vld [vmem:[%s1791_s14 + $0x48] sm:$0xff]  ;;  %v270_v9 = vld [vmem:[%s1791_s14 + $0x58] sm:$0xff] }
  0x91   : > { %583 = vmatprep.subr.mxu0 %v408_v10  ;;  %696 = vmatprep.subr.mxu1 %v410_v11  ;;  %v267_v10 = vld [vmem:[%s1791_s14 + $0x40] sm:$0xff]  ;;  %v269_v11 = vld [vmem:[%s1791_s14 + $0x50] sm:$0xff] }
  0x94   : > { %584 = vmatpush2.xpose.msra.mxu0 %v407_v12  ;;  %697 = vmatpush2.xpose.msra.mxu1 %v409_v13  ;;  %v272_v12 = vld [vmem:[%s1791_s14 + $0x68] sm:$0xff]  ;;  %v274_v13 = vld [vmem:[%s1791_s14 + $0x78] sm:$0xff] }
  0x95   : > { %585 = vmatprep.subr.mxu0 %v404_v14  ;;  %698 = vmatprep.subr.mxu1 %v406_v15  ;;  %v271_v14 = vld [vmem:[%s1791_s14 + $0x60] sm:$0xff]  ;;  %v273_v15 = vld [vmem:[%s1791_s14 + $0x70] sm:$0xff] }
  0x98   : > { %586 = vmatpush2.xpose.msra.mxu0 %v403_v16  ;;  %699 = vmatpush2.xpose.msra.mxu1 %v405_v17  ;;  %v276_v16 = vld [vmem:[%s1791_s14 + $0x88] sm:$0xff]  ;;  %v278_v17 = vld [vmem:[%s1791_s14 + $0x98] sm:$0xff] }
  0x99   : > { %587 = vmatprep.subr.mxu0 %v400_v18  ;;  %700 = vmatprep.subr.mxu1 %v402_v19  ;;  %v275_v18 = vld [vmem:[%s1791_s14 + $0x80] sm:$0xff]  ;;  %v277_v19 = vld [vmem:[%s1791_s14 + $0x90] sm:$0xff] }
  0x9c   : > { %588 = vmatpush2.xpose.msra.mxu0 %v399_v20  ;;  %701 = vmatpush2.xpose.msra.mxu1 %v401_v21  ;;  %v280_v20 = vld [vmem:[%s1791_s14 + $0xa8] sm:$0xff]  ;;  %v282_v21 = vld [vmem:[%s1791_s14 + $0xb8] sm:$0xff] }
  0x9d   : > { %589 = vmatprep.subr.mxu0 %v396_v22  ;;  %702 = vmatprep.subr.mxu1 %v398_v23  ;;  %v279_v22 = vld [vmem:[%s1791_s14 + $0xa0] sm:$0xff]  ;;  %v281_v23 = vld [vmem:[%s1791_s14 + $0xb0] sm:$0xff] }
  0xa0   : > { %590 = vmatpush2.xpose.msra.mxu0 %v395_v24  ;;  %703 = vmatpush2.xpose.msra.mxu1 %v397_v25  ;;  %v284_v24 = vld [vmem:[%s1791_s14 + $0xc8] sm:$0xff]  ;;  %v286_v25 = vld [vmem:[%s1791_s14 + $0xd8] sm:$0xff] }
  0xa1   : > { %591 = vmatprep.subr.mxu0 %v392_v26  ;;  %704 = vmatprep.subr.mxu1 %v394_v27  ;;  %v283_v26 = vld [vmem:[%s1791_s14 + $0xc0] sm:$0xff]  ;;  %v285_v27 = vld [vmem:[%s1791_s14 + $0xd0] sm:$0xff] }
  0xa4   : > { %592 = vmatpush2.xpose.msra.mxu0 %v391_v28  ;;  %705 = vmatpush2.xpose.msra.mxu1 %v393_v29  ;;  %v288_v28 = vld [vmem:[%s1791_s14 + $0xe8] sm:$0xff]  ;;  %v290_v29 = vld [vmem:[%s1791_s14 + $0xf8] sm:$0xff] }
  0xa5   : > { %593 = vmatprep.subr.mxu0 %v388_v30  ;;  %706 = vmatprep.subr.mxu1 %v390_v31  ;;  %v287_v30 = vld [vmem:[%s1791_s14 + $0xe0] sm:$0xff]  ;;  %v289_v31 = vld [vmem:[%s1791_s14 + $0xf0] sm:$0xff] }
  0xa8   : > { %594 = vmatpush2.xpose.msra.mxu0 %v387_v32  ;;  %707 = vmatpush2.xpose.msra.mxu1 %v389_v33 }
  0xa9   : > { %595 = vmatprep.subr.mxu0 %v384_v34  ;;  %708 = vmatprep.subr.mxu1 %v386_v35 }
  0xac   : > { %596 = vmatpush2.xpose.msra.mxu0 %v383_v36  ;;  %709 = vmatpush2.xpose.msra.mxu1 %v385_v37  ;;  %v1833_v37 = vstv %s773_s26 }
  0xad   : > { %597 = vmatprep.subr.mxu0 %v380_v38  ;;  %710 = vmatprep.subr.mxu1 %v382_v39 }
  0xb0   : > { %598 = vmatpush2.xpose.msra.mxu0 %v379_v40  ;;  %711 = vmatpush2.xpose.msra.mxu1 %v381_v41 }
  0xb1   : > { %599 = vmatprep.subr.mxu0 %v376_v42  ;;  %712 = vmatprep.subr.mxu1 %v378_v43 }
  0xb4   : > { %600 = vmatpush2.xpose.msra.mxu0 %v375_v44  ;;  %713 = vmatpush2.xpose.msra.mxu1 %v377_v45 }
  0xb5   : > { %601 = vmatprep.subr.mxu0 %v372_v46  ;;  %714 = vmatprep.subr.mxu1 %v374_v47 }
  0xb8   : > { %602 = vmatpush2.xpose.msra.mxu0 %v371_v48  ;;  %715 = vmatpush2.xpose.msra.mxu1 %v373_v49 }
  0xb9   : > { %603 = vmatprep.subr.mxu0 %v368_v50  ;;  %716 = vmatprep.subr.mxu1 %v370_v51 }
  0xbc   : > { %604 = vmatpush2.xpose.msra.mxu0 %v367_v52  ;;  %717 = vmatpush2.xpose.msra.mxu1 %v369_v53 }
  0xbd   : > { %605 = vmatprep.subr.mxu0 %v364_v54  ;;  %718 = vmatprep.subr.mxu1 %v366_v55 }
  0xc0   : > { %606 = vmatpush2.xpose.msra.mxu0 %v363_v56  ;;  %719 = vmatpush2.xpose.msra.mxu1 %v365_v57 }
  0xc1   : > { %607 = vmatprep.subr.mxu0 %v360_v58  ;;  %720 = vmatprep.subr.mxu1 %v362_v59 }
  0xc4   : > { %608 = vmatpush2.xpose.msra.mxu0 %v359_v60  ;;  %721 = vmatpush2.xpose.msra.mxu1 %v361_v61 }
  0xc5   : > { %609 = vmatprep.subr.mxu0 %v356_v62  ;;  %722 = vmatprep.subr.mxu1 %v358_v63 }
  0xc8   : > { %610 = vmatpush2.xpose.msra.mxu0 %v355_v0  ;;  %723 = vmatpush2.xpose.msra.mxu1 %v357_v1 }
  0xcb   : > { %612 = vmatmul.mubr.f32.vlgmr.msra.gmra.mxu0 %v259_v2  ;;  %725 = vmatmul.mubr.f32.vlgmr.msra.gmra.mxu1 %v261_v3 }
  0xcc   : > { %617 = vmatprep.mubr.f32.mxu0 %v264_v4  ;;  %730 = vmatprep.mubr.f32.mxu1 %v266_v5 }
  0xcf   : > { %618 = vmatmul.mubr.f32.gmra.mxu0 %v263_v6  ;;  %731 = vmatmul.mubr.f32.gmra.mxu1 %v265_v7 }
  0xd0   : > { %623 = vmatprep.mubr.f32.mxu0 %v268_v8  ;;  %736 = vmatprep.mubr.f32.mxu1 %v270_v9 }
  0xd3   : > { %624 = vmatmul.mubr.f32.gmra.mxu0 %v267_v10  ;;  %737 = vmatmul.mubr.f32.gmra.mxu1 %v269_v11 }
  0xd4   : > { %629 = vmatprep.mubr.f32.mxu0 %v272_v12  ;;  %742 = vmatprep.mubr.f32.mxu1 %v274_v13 }
  0xd7   : > { %630 = vmatmul.mubr.f32.gmra.mxu0 %v271_v14  ;;  %743 = vmatmul.mubr.f32.gmra.mxu1 %v273_v15 }
  0xd8   : > { %635 = vmatprep.mubr.f32.mxu0 %v276_v16  ;;  %748 = vmatprep.mubr.f32.mxu1 %v278_v17 }
  0xdb   : > { %636 = vmatmul.mubr.f32.gmra.mxu0 %v275_v18  ;;  %749 = vmatmul.mubr.f32.gmra.mxu1 %v277_v19 }
  0xdc   : > { %641 = vmatprep.mubr.f32.mxu0 %v280_v20  ;;  %754 = vmatprep.mubr.f32.mxu1 %v282_v21 }
  0xdf   : > { %642 = vmatmul.mubr.f32.gmra.mxu0 %v279_v22  ;;  %755 = vmatmul.mubr.f32.gmra.mxu1 %v281_v23 }
  0xe0   : > { %647 = vmatprep.mubr.f32.mxu0 %v284_v24  ;;  %760 = vmatprep.mubr.f32.mxu1 %v286_v25 }
  0xe3   : > { %648 = vmatmul.mubr.f32.gmra.mxu0 %v283_v26  ;;  %761 = vmatmul.mubr.f32.gmra.mxu1 %v285_v27 }
  0xe4   : > { %653 = vmatprep.mubr.f32.mxu0 %v288_v28  ;;  %766 = vmatprep.mubr.f32.mxu1 %v290_v29 }
  0xe7   : > { %654 = vmatmul.mubr.f32.gmra.mxu0 %v287_v30  ;;  %767 = vmatmul.mubr.f32.gmra.mxu1 %v289_v31 }
 0x18b   : > { %v613_v32 = vpop.f32.mrf.mxu0  ;;  %v726_v33 = vpop.f32.mrf.mxu1 }
 0x18c   : > { %v727_v34 = vadd.f32 %v726_v33, %v613_v32 }
 0x18d   : > { %v615_v35 = vpop.f32.mrf.mxu0  ;;  %v728_v36 = vpop.f32.mrf.mxu1 }
 0x18e   : > { %v729_v38 = vadd.f32 %v728_v36, %v615_v35  ;;  %v1836_v42 = vmul.f32 %v1833_v37, %v727_v34 }
 0x18f   : > { %v619_v39 = vpop.f32.mrf.mxu0  ;;  %v732_v40 = vpop.f32.mrf.mxu1 }
 0x190   : > { %v733_v41 = vadd.f32 %v732_v40, %v619_v39  ;;  %v1839_v43 = vmul.f32 %v1833_v37, %v729_v38 }
 0x191   : > { %v621_v44 = vpop.f32.mrf.mxu0  ;;  %v734_v45 = vpop.f32.mrf.mxu1 }
 0x192   : > { %v735_v46 = vadd.f32 %v734_v45, %v621_v44  ;;  %v791_v47 = vmax.f32 %v1836_v42, %v1839_v43  ;;  %v1844_v50 = vmul.f32 %v1833_v37, %v733_v41  ;;  %v476_v44 = vld [vmem:[#allocation10 + $0x1c8] sm:$0xff] }
 0x193   : > { %v625_v48 = vpop.f32.mrf.mxu0  ;;  %v738_v49 = vpop.f32.mrf.mxu1  ;;  %v480_v45 = vld [vmem:[#allocation10 + $0x1e8] sm:$0xff] }
 0x194   : > { %v1847_v51 = vmul.f32 %v1833_v37, %v735_v46  ;;  %v739_v52 = vadd.f32 %v738_v49, %v625_v48  ;;  %792 = vmax.xlane.f32.xlu0 %v791_v47  ;;  %v478_v46 = vld [vmem:[#allocation10 + $0x1d8] sm:$0xff]  ;;  %v940_v47 = vpack.c.bf16 %v480_v45, %v476_v44  ;;  %v475_v49 = vld [vmem:[#allocation10 + $0x1c0] sm:$0xff] }
 0x195   : > { %v627_v53 = vpop.f32.mrf.mxu0  ;;  %v740_v54 = vpop.f32.mrf.mxu1  ;;  %v482_v48 = vld [vmem:[#allocation10 + $0x1f8] sm:$0xff] }
 0x196   : > { %v741_v55 = vadd.f32 %v740_v54, %v627_v53  ;;  %v794_v56 = vmax.f32 %v1844_v50, %v1847_v51  ;;  %v1852_v60 = vmul.f32 %v1833_v37, %v739_v52  ;;  %v479_v52 = vld [vmem:[#allocation10 + $0x1e0] sm:$0xff]  ;;  %v942_v53 = vpack.c.bf16 %v482_v48, %v478_v46  ;;  %983 = vmatprep.subr.bf16.mxu0 %v940_v47  ;;  %v446_v44 = vld [vmem:[#allocation10 + $0xd8] sm:$0xff] }
 0x197   : > { %v631_v57 = vpop.f32.mrf.mxu0  ;;  %v744_v58 = vpop.f32.mrf.mxu1  ;;  %v939_v54 = vpack.c.bf16 %v479_v52, %v475_v49  ;;  %v450_v45 = vld [vmem:[#allocation10 + $0xf8] sm:$0xff]  ;;  %v443_v49 = vld [vmem:[#allocation10 + $0xc0] sm:$0xff] }
 0x198   : > { %v745_v59 = vadd.f32 %v744_v58, %v631_v57  ;;  %795 = vmax.xlane.f32.xlu0 %v794_v56  ;;  %v1855_v61 = vmul.f32 %v1833_v37, %v741_v55  ;;  %v477_v55 = vld [vmem:[#allocation10 + $0x1d0] sm:$0xff]  ;;  %v468_v57 = vld [vmem:[#allocation10 + $0x188] sm:$0xff]  ;;  %1056 = vmatprep.subr.bf16.mxu1 %v942_v53  ;;  %v447_v52 = vld [vmem:[#allocation10 + $0xe0] sm:$0xff] }
 0x199   : > { %v633_v62 = vpop.f32.mrf.mxu0  ;;  %v746_v63 = vpop.f32.mrf.mxu1  ;;  %v481_v56 = vld [vmem:[#allocation10 + $0x1f0] sm:$0xff]  ;;  %v472_v58 = vld [vmem:[#allocation10 + $0x1a8] sm:$0xff]  ;;  %984 = vmatpush1.bf16.msra.mxu0 %v939_v54  ;;  %v926_v54 = vpack.c.bf16 %v450_v45, %v446_v44  ;;  %v542_v44 = vld [vmem:[#allocation10 + $0x3d8] sm:$0xff] }
 0x19a   : > { %v747_v0 = vadd.f32 %v746_v63, %v633_v62  ;;  %v797_v1 = vmax.f32 %v1852_v60, %v1855_v61  ;;  %v1860_v4 = vmul.f32 %v1833_v37, %v745_v59  ;;  %v470_v59 = vld [vmem:[#allocation10 + $0x198] sm:$0xff]  ;;  %v936_v63 = vpack.c.bf16 %v472_v58, %v468_v57  ;;  %v445_v53 = vld [vmem:[#allocation10 + $0xd0] sm:$0xff]  ;;  %v440_v57 = vld [vmem:[#allocation10 + $0xa8] sm:$0xff] }
 0x19b   : > { %v637_v2 = vpop.f32.mrf.mxu0  ;;  %v750_v3 = vpop.f32.mrf.mxu1  ;;  %v474_v62 = vld [vmem:[#allocation10 + $0x1b8] sm:$0xff] }
 0x19c   : > { %v1863_v5 = vmul.f32 %v1833_v37, %v747_v0  ;;  %v751_v6 = vadd.f32 %v750_v3, %v637_v2  ;;  %798 = vmax.xlane.f32.xlu1 %v797_v1  ;;  %v938_v0 = vpack.c.bf16 %v474_v62, %v470_v59  ;;  %v467_v1 = vld [vmem:[#allocation10 + $0x180] sm:$0xff]  ;;  %v469_v3 = vld [vmem:[#allocation10 + $0x190] sm:$0xff]  ;;  %985 = vmatprep.subr.bf16.mxu0 %v936_v63  ;;  %v442_v58 = vld [vmem:[#allocation10 + $0xb8] sm:$0xff] }
 0x19d   : > { %v639_v7 = vpop.f32.mrf.mxu0  ;;  %v752_v8 = vpop.f32.mrf.mxu1  ;;  %v471_v2 = vld [vmem:[#allocation10 + $0x1a0] sm:$0xff]  ;;  %v923_v59 = vpack.c.bf16 %v447_v52, %v443_v49  ;;  %v546_v45 = vld [vmem:[#allocation10 + $0x3f8] sm:$0xff] }
 0x19e   : > { %v753_v9 = vadd.f32 %v752_v8, %v639_v7  ;;  %v800_v10 = vmax.f32 %v1860_v4, %v1863_v5  ;;  %v1868_v13 = vmul.f32 %v1833_v37, %v751_v6  ;;  %v935_v6 = vpack.c.bf16 %v471_v2, %v467_v1  ;;  %v473_v7 = vld [vmem:[#allocation10 + $0x1b0] sm:$0xff]  ;;  %v460_v8 = vld [vmem:[#allocation10 + $0x148] sm:$0xff]  ;;  %v439_v1 = vld [vmem:[#allocation10 + $0xa0] sm:$0xff] }
 0x19f   : > { %v643_v11 = vpop.f32.mrf.mxu0  ;;  %v756_v12 = vpop.f32.mrf.mxu1  ;;  %v437_v2 = vld [vmem:[#allocation10 + $0x90] sm:$0xff]  ;;  %v539_v49 = vld [vmem:[#allocation10 + $0x3c0] sm:$0xff] }
 0x1a0   : > { %v1871_v14 = vmul.f32 %v1833_v37, %v753_v9  ;;  %v757_v15 = vadd.f32 %v756_v12, %v643_v11  ;;  %801 = vmax.xlane.f32.xlu1 %v800_v10  ;;  %v464_v9 = vld [vmem:[#allocation10 + $0x168] sm:$0xff]  ;;  %v937_v10 = vpack.c.bf16 %v473_v7, %v469_v3  ;;  %v462_v12 = vld [vmem:[#allocation10 + $0x158] sm:$0xff]  ;;  %986 = vmatpush1.bf16.msra.mxu0 %v935_v6  ;;  %v441_v6 = vld [vmem:[#allocation10 + $0xb0] sm:$0xff] }
 0x1a1   : > { %v645_v16 = vpop.f32.mrf.mxu0  ;;  %v758_v17 = vpop.f32.mrf.mxu1  ;;  %v932_v11 = vpack.c.bf16 %v464_v9, %v460_v8  ;;  %v428_v7 = vld [vmem:[#allocation10 + $0x48] sm:$0xff]  ;;  %v430_v9 = vld [vmem:[#allocation10 + $0x58] sm:$0xff]  ;;  %v543_v52 = vld [vmem:[#allocation10 + $0x3e0] sm:$0xff] }
 0x1a2   : > { %v759_v18 = vadd.f32 %v758_v17, %v645_v16  ;;  %v803_v19 = vmax.f32 %v1868_v13, %v1871_v14  ;;  %v1876_v22 = vmul.f32 %v1833_v37, %v757_v15  ;;  %v466_v15 = vld [vmem:[#allocation10 + $0x178] sm:$0xff]  ;;  %v459_v16 = vld [vmem:[#allocation10 + $0x140] sm:$0xff]  ;;  %v432_v8 = vld [vmem:[#allocation10 + $0x68] sm:$0xff] }
 0x1a3   : > { %v649_v20 = vpop.f32.mrf.mxu0  ;;  %v762_v21 = vpop.f32.mrf.mxu1  ;;  %v934_v17 = vpack.c.bf16 %v466_v15, %v462_v12  ;;  %987 = vmatprep.subr.bf16.mxu0 %v932_v11  ;;  %v921_v12 = vpack.c.bf16 %v441_v6, %v437_v2  ;;  %v916_v15 = vpack.c.bf16 %v432_v8, %v428_v7  ;;  %v533_v2 = vld [vmem:[#allocation10 + $0x390] sm:$0xff]  ;;  %v524_v7 = vld [vmem:[#allocation10 + $0x348] sm:$0xff] }
 0x1a4   : > { %v1879_v23 = vmul.f32 %v1833_v37, %v759_v18  ;;  %v763_v24 = vadd.f32 %v762_v21, %v649_v20  ;;  %804 = vmax.xlane.f32.xlu0 %v803_v19  ;;  %v463_v18 = vld [vmem:[#allocation10 + $0x160] sm:$0xff]  ;;  %v461_v19 = vld [vmem:[#allocation10 + $0x150] sm:$0xff]  ;;  %v528_v8 = vld [vmem:[#allocation10 + $0x368] sm:$0xff] }
 0x1a5   : > { %v651_v25 = vpop.f32.mrf.mxu0  ;;  %v764_v26 = vpop.f32.mrf.mxu1  ;;  %v465_v20 = vld [vmem:[#allocation10 + $0x170] sm:$0xff]  ;;  %v931_v21 = vpack.c.bf16 %v463_v18, %v459_v16  ;;  %v427_v16 = vld [vmem:[#allocation10 + $0x40] sm:$0xff] }
 0x1a6   : > { %v765_v27 = vadd.f32 %v764_v26, %v651_v25  ;;  %v806_v28 = vmax.f32 %v1876_v22, %v1879_v23  ;;  %v1884_v31 = vmul.f32 %v1833_v37, %v763_v24  ;;  %v452_v24 = vld [vmem:[#allocation10 + $0x108] sm:$0xff]  ;;  %v454_v26 = vld [vmem:[#allocation10 + $0x118] sm:$0xff]  ;;  %v429_v18 = vld [vmem:[#allocation10 + $0x50] sm:$0xff] }
 0x1a7   : > { %v655_v29 = vpop.f32.mrf.mxu0  ;;  %v768_v30 = vpop.f32.mrf.mxu1  ;;  %v456_v25 = vld [vmem:[#allocation10 + $0x128] sm:$0xff]  ;;  %988 = vmatpush1.bf16.msra.mxu0 %v931_v21  ;;  %v537_v6 = vld [vmem:[#allocation10 + $0x3b0] sm:$0xff] }
 0x1a8   : > { %v1887_v32 = vmul.f32 %v1833_v37, %v765_v27  ;;  %v769_v33 = vadd.f32 %v768_v30, %v655_v29  ;;  %807 = vmax.xlane.f32.xlu1 %v806_v28  ;;  %v933_v27 = vpack.c.bf16 %v465_v20, %v461_v19  ;;  %v928_v28 = vpack.c.bf16 %v456_v25, %v452_v24  ;;  %v458_v29 = vld [vmem:[#allocation10 + $0x138] sm:$0xff]  ;;  %v451_v30 = vld [vmem:[#allocation10 + $0x100] sm:$0xff]  ;;  %v433_v20 = vld [vmem:[#allocation10 + $0x70] sm:$0xff] }
 0x1a9   : > { %v657_v34 = vpop.f32.mrf.mxu0  ;;  %v770_v35 = vpop.f32.mrf.mxu1  ;;  %v420_v21 = vld [vmem:[#allocation10 + $0x8] sm:$0xff]  ;;  %v422_v25 = vld [vmem:[#allocation10 + $0x18] sm:$0xff] }
 0x1aa   : > { %v771_v36 = vadd.f32 %v770_v35, %v657_v34  ;;  %v809_v38 = vmax.f32 %v1884_v31, %v1887_v32  ;;  %v1892_v39 = vmul.f32 %v1833_v37, %v769_v33  ;;  %v455_v33 = vld [vmem:[#allocation10 + $0x120] sm:$0xff]  ;;  %v930_v34 = vpack.c.bf16 %v458_v29, %v454_v26  ;;  %v453_v35 = vld [vmem:[#allocation10 + $0x110] sm:$0xff]  ;;  %989 = vmatprep.subr.bf16.mxu0 %v928_v28  ;;  %v424_v24 = vld [vmem:[#allocation10 + $0x28] sm:$0xff] }
 0x1ab   : > { %v927_v46 = vpack.c.bf16 %v455_v33, %v451_v30  ;;  %v426_v26 = vld [vmem:[#allocation10 + $0x38] sm:$0xff]  ;;  %v917_v28 = vpack.c.bf16 %v433_v20, %v429_v18  ;;  %v912_v29 = vpack.c.bf16 %v424_v24, %v420_v21  ;;  %v419_v30 = vld [vmem:[#allocation10] sm:$0xff] }
 0x1ac   : > { %v1895_v40 = vmul.f32 %v1833_v37, %v771_v36  ;;  %810 = vmax.xlane.f32.xlu0 %v809_v38  ;;  %v941_v37 = vpack.c.bf16 %v481_v56, %v477_v55  ;;  %v457_v36 = vld [vmem:[#allocation10 + $0x130] sm:$0xff]  ;;  %v444_v38 = vld [vmem:[#allocation10 + $0xc8] sm:$0xff]  ;;  %v423_v33 = vld [vmem:[#allocation10 + $0x20] sm:$0xff] }
 0x1ad   : > { %v929_v47 = vpack.c.bf16 %v457_v36, %v453_v35  ;;  %v449_v55 = vld [vmem:[#allocation10 + $0xf0] sm:$0xff]  ;;  %v436_v56 = vld [vmem:[#allocation10 + $0x88] sm:$0xff]  ;;  %990 = vmatpush1.bf16.msra.mxu0 %v927_v46  ;;  %v914_v35 = vpack.c.bf16 %v426_v26, %v422_v25  ;;  %v911_v46 = vpack.c.bf16 %v423_v33, %v419_v30 }
 0x1ae   : > { %v812_v41 = vmax.f32 %v1892_v39, %v1895_v40  ;;  %1057 = vmatpush1.bf16.msra.mxu1 %v941_v37  ;;  %v438_v37 = vld [vmem:[#allocation10 + $0x98] sm:$0xff]  ;;  %v925_v62 = vpack.c.bf16 %v449_v55, %v445_v53  ;;  %v920_v63 = vpack.c.bf16 %v440_v57, %v436_v56  ;;  %v425_v36 = vld [vmem:[#allocation10 + $0x30] sm:$0xff]  ;;  %v532_v56 = vld [vmem:[#allocation10 + $0x388] sm:$0xff] }
 0x1af   : > { %1058 = vmatprep.subr.bf16.mxu1 %v938_v0  ;;  %v435_v0 = vld [vmem:[#allocation10 + $0x80] sm:$0xff]  ;;  %v922_v3 = vpack.c.bf16 %v442_v58, %v438_v37  ;;  %v541_v53 = vld [vmem:[#allocation10 + $0x3d0] sm:$0xff]  ;;  %v536_v57 = vld [vmem:[#allocation10 + $0x3a8] sm:$0xff] }
 0x1b0   : > { %813 = vmax.xlane.f32.xlu1 %v812_v41  ;;  %v448_v41 = vld [vmem:[#allocation10 + $0xe8] sm:$0xff]  ;;  %v919_v11 = vpack.c.bf16 %v439_v1, %v435_v0  ;;  %v545_v55 = vld [vmem:[#allocation10 + $0x3f0] sm:$0xff]  ;;  %v534_v37 = vld [vmem:[#allocation10 + $0x398] sm:$0xff] }
 0x1b1   : > { %v924_v48 = vpack.c.bf16 %v448_v41, %v444_v38  ;;  %v540_v38 = vld [vmem:[#allocation10 + $0x3c8] sm:$0xff]  ;;  %v538_v58 = vld [vmem:[#allocation10 + $0x3b8] sm:$0xff]  ;;  %v531_v0 = vld [vmem:[#allocation10 + $0x380] sm:$0xff] }
 0x1b2   : > { %1059 = vmatpush1.bf16.msra.mxu1 %v937_v10  ;;  %v434_v10 = vld [vmem:[#allocation10 + $0x78] sm:$0xff]  ;;  %v544_v41 = vld [vmem:[#allocation10 + $0x3e8] sm:$0xff]  ;;  %v535_v1 = vld [vmem:[#allocation10 + $0x3a0] sm:$0xff] }
 0x1b3   : > { %1060 = vmatprep.subr.bf16.mxu1 %v934_v17  ;;  %991 = vmatprep.subr.bf16.mxu0 %v924_v48  ;;  %v431_v17 = vld [vmem:[#allocation10 + $0x60] sm:$0xff]  ;;  %v918_v19 = vpack.c.bf16 %v434_v10, %v430_v9  ;;  %v972_v48 = vpack.c.bf16 %v544_v41, %v540_v38  ;;  %v526_v9 = vld [vmem:[#allocation10 + $0x358] sm:$0xff] }
 0x1b4   : > { %992 = vmatpush1.bf16.msra.mxu0 %v923_v59  ;;  %v971_v59 = vpack.c.bf16 %v543_v52, %v539_v49  ;;  %v530_v10 = vld [vmem:[#allocation10 + $0x378] sm:$0xff] }
 0x1b5   : > { %993 = vmatprep.subr.bf16.mxu0 %v920_v63  ;;  %v968_v63 = vpack.c.bf16 %v536_v57, %v532_v56 }
 0x1b6   : > { %1061 = vmatpush1.bf16.msra.mxu1 %v933_v27  ;;  %v915_v27 = vpack.c.bf16 %v431_v17, %v427_v16  ;;  %v966_v16 = vpack.c.bf16 %v530_v10, %v526_v9 }
 0x1b7   : > { %1062 = vmatprep.subr.bf16.mxu1 %v930_v34  ;;  %v421_v34 = vld [vmem:[#allocation10 + $0x10] sm:$0xff] }
 0x1b8   : > { %994 = vmatpush1.bf16.msra.mxu0 %v919_v11  ;;  %v967_v11 = vpack.c.bf16 %v535_v1, %v531_v0  ;;  %v527_v0 = vld [vmem:[#allocation10 + $0x360] sm:$0xff] }
 0x1b9   : > { %995 = vmatprep.subr.bf16.mxu0 %v916_v15  ;;  %v964_v15 = vpack.c.bf16 %v528_v8, %v524_v7 }
 0x1ba   : > { %1063 = vmatpush1.bf16.msra.mxu1 %v929_v47  ;;  %v913_v47 = vpack.c.bf16 %v425_v36, %v421_v34 }
 0x1bb   : > { %1064 = vmatprep.subr.bf16.mxu1 %v926_v54  ;;  %v974_v54 = vpack.c.bf16 %v546_v45, %v542_v44 }
 0x1bc   : > { %996 = vmatpush1.bf16.msra.mxu0 %v915_v27 }
 0x1bd   : > { %997 = vmatprep.subr.bf16.mxu0 %v912_v29 }
 0x1be   : > { %1065 = vmatpush1.bf16.msra.mxu1 %v925_v62  ;;  %v973_v62 = vpack.c.bf16 %v545_v55, %v541_v53 }
 0x1bf   : > { %1066 = vmatprep.subr.bf16.mxu1 %v922_v3  ;;  %v970_v3 = vpack.c.bf16 %v538_v58, %v534_v37 }
 0x1c0   : > { %998 = vmatpush1.bf16.msra.mxu0 %v911_v46 }
 0x1c1   : > { %999 = vmatprep.subr.bf16.mxu0 %v972_v48 }
 0x1c2   : > { %1067 = vmatpush1.bf16.msra.mxu1 %v921_v12  ;;  %v969_v12 = vpack.c.bf16 %v537_v6, %v533_v2 }
 0x1c3   : > { %1068 = vmatprep.subr.bf16.mxu1 %v918_v19 }
 0x1c4   : > { %1000 = vmatpush2.bf16.msra.mxu0 %v971_v59 }
 0x1c5   : > { %1001 = vmatprep.subr.bf16.mxu0 %v968_v63 }
 0x1c6   : > { %1069 = vmatpush1.bf16.msra.mxu1 %v917_v28 }
 0x1c7   : > { %1070 = vmatprep.subr.bf16.mxu1 %v914_v35 }
 0x1c8   : > { %1002 = vmatpush2.bf16.msra.mxu0 %v967_v11  ;;  %v518_v11 = vld [vmem:[#allocation10 + $0x318] sm:$0xff] }
 0x1c9   : > { %1003 = vmatprep.subr.bf16.mxu0 %v964_v15  ;;  %v522_v15 = vld [vmem:[#allocation10 + $0x338] sm:$0xff] }
 0x1ca   : > { %1071 = vmatpush1.bf16.msra.mxu1 %v913_v47 }
 0x1cb   : > { %1072 = vmatprep.subr.bf16.mxu1 %v974_v54 }
 0x1ce   : > { %1073 = vmatpush2.bf16.msra.mxu1 %v973_v62 }
 0x1cf   : > { %1074 = vmatprep.subr.bf16.mxu1 %v970_v3  ;;  %v529_v3 = vld [vmem:[#allocation10 + $0x370] sm:$0xff] }
 0x1d2   : > { %1075 = vmatpush2.bf16.msra.mxu1 %v969_v12 }
 0x1d3   : > { %1076 = vmatprep.subr.bf16.mxu1 %v966_v16  ;;  %v515_v16 = vld [vmem:[#allocation10 + $0x300] sm:$0xff] }
 0x21d   : > { %v793_v17 = vpop.xlane.xlu0 %792 }
 0x21e   : > { %v815_v18 = vsub.f32 %v1836_v42, %v793_v17  ;;  %v816_v19 = vsub.f32 %v1839_v43, %v793_v17  ;;  %v519_v17 = vld [vmem:[#allocation10 + $0x320] sm:$0xff] }
 0x220   : > { %v831_v20 = vmul.f32 1.442695, %v815_v18  ;;  %v833_v21 = vmul.f32 1.442695, %v816_v19  ;;  %v962_v19 = vpack.c.bf16 %v522_v15, %v518_v11  ;;  %v484_v15 = vld [vmem:[#allocation10 + $0x208] sm:$0xff] }
 0x221   : > { %v796_v24 = vpop.xlane.xlu0 %795 }
 0x222   : > { %1400 = vpow2.f32 %v831_v20  ;;  %v817_v25 = vsub.f32 %v1844_v50, %v796_v24  ;;  %v818_v26 = vsub.f32 %v1847_v51, %v796_v24  ;;  %v959_v20 = vpack.c.bf16 %v519_v17, %v515_v16  ;;  %v521_v24 = vld [vmem:[#allocation10 + $0x330] sm:$0xff]  ;;  %v488_v16 = vld [vmem:[#allocation10 + $0x228] sm:$0xff]  ;;  %v486_v17 = vld [vmem:[#allocation10 + $0x218] sm:$0xff] }
 0x223   : > { %1402 = vpow2.f32 %v833_v21  ;;  %v517_v21 = vld [vmem:[#allocation10 + $0x310] sm:$0xff] }
 0x224   : > { %v835_v27 = vmul.f32 1.442695, %v817_v25  ;;  %v837_v28 = vmul.f32 1.442695, %v818_v26  ;;  %v961_v26 = vpack.c.bf16 %v521_v24, %v517_v21  ;;  %v483_v21 = vld [vmem:[#allocation10 + $0x200] sm:$0xff] }
 0x225   : > { %v799_v29 = vpop.xlane.xlu1 %798  ;;  %v487_v24 = vld [vmem:[#allocation10 + $0x220] sm:$0xff] }
 0x226   : > { %1404 = vpow2.f32 %v835_v27  ;;  %v819_v30 = vsub.f32 %v1852_v60, %v799_v29  ;;  %v820_v33 = vsub.f32 %v1855_v61, %v799_v29  ;;  %v512_v29 = vld [vmem:[#allocation10 + $0x2e8] sm:$0xff] }
 0x227   : > { %1406 = vpow2.f32 %v837_v28  ;;  %v508_v28 = vld [vmem:[#allocation10 + $0x2c8] sm:$0xff] }
 0x228   : > { %v839_v42 = vmul.f32 1.442695, %v819_v30  ;;  %v841_v43 = vmul.f32 1.442695, %v820_v33  ;;  %v510_v30 = vld [vmem:[#allocation10 + $0x2d8] sm:$0xff]  ;;  %v956_v33 = vpack.c.bf16 %v512_v29, %v508_v28  ;;  %v485_v28 = vld [vmem:[#allocation10 + $0x210] sm:$0xff] }
 0x229   : > { %v802_v34 = vpop.xlane.xlu1 %801  ;;  %v489_v29 = vld [vmem:[#allocation10 + $0x230] sm:$0xff] }
 0x22a   : > { %1408 = vpow2.f32 %v839_v42  ;;  %v821_v35 = vsub.f32 %v1860_v4, %v802_v34  ;;  %v822_v50 = vsub.f32 %v1863_v5, %v802_v34  ;;  %v514_v42 = vld [vmem:[#allocation10 + $0x2f8] sm:$0xff]  ;;  %v511_v34 = vld [vmem:[#allocation10 + $0x2e0] sm:$0xff] }
 0x22b   : > { %1410 = vpow2.f32 %v841_v43  ;;  %v507_v43 = vld [vmem:[#allocation10 + $0x2c0] sm:$0xff] }
 0x22c   : > { %v843_v51 = vmul.f32 1.442695, %v821_v35  ;;  %v845_v36 = vmul.f32 1.442695, %v822_v50  ;;  %v958_v50 = vpack.c.bf16 %v514_v42, %v510_v30  ;;  %v945_v30 = vpack.c.bf16 %v489_v29, %v485_v28 }
 0x22d   : > { %v805_v38 = vpop.xlane.xlu0 %804 }
 0x22e   : > { %1412 = vpow2.f32 %v843_v51  ;;  %v823_v41 = vsub.f32 %v1868_v13, %v805_v38  ;;  %v824_v60 = vsub.f32 %v1871_v14, %v805_v38  ;;  %v955_v51 = vpack.c.bf16 %v511_v34, %v507_v43  ;;  %v513_v38 = vld [vmem:[#allocation10 + $0x2f0] sm:$0xff] }
 0x22f   : > { %v1909_v44 = vpop.eup %1400  ;;  %1414 = vpow2.f32 %v845_v36  ;;  %v509_v36 = vld [vmem:[#allocation10 + $0x2d0] sm:$0xff] }
 0x230   : > { %v1911_v61 = vpop.eup %1402  ;;  %v847_v45 = vmul.f32 1.442695, %v823_v41  ;;  %v849_v46 = vmul.f32 1.442695, %v824_v60  ;;  %v957_v60 = vpack.c.bf16 %v513_v38, %v509_v36 }
 0x231   : > { %v808_v47 = vpop.xlane.xlu1 %807  ;;  %v863_v4 = vadd.f32 %v1911_v61, %v1909_v44 }
 0x232   : > { %1416 = vpow2.f32 %v847_v45  ;;  %v825_v5 = vsub.f32 %v1876_v22, %v808_v47  ;;  %v826_v48 = vsub.f32 %v1879_v23, %v808_v47  ;;  %v504_v47 = vld [vmem:[#allocation10 + $0x2a8] sm:$0xff] }
 0x233   : > { %v1917_v49 = vpop.eup %1404  ;;  %1418 = vpow2.f32 %v849_v46  ;;  %864 = vadd.xlane.f32.xlu0 %v863_v4  ;;  %v500_v46 = vld [vmem:[#allocation10 + $0x288] sm:$0xff]  ;;  %v502_v4 = vld [vmem:[#allocation10 + $0x298] sm:$0xff] }
 0x234   : > { %v1919_v13 = vpop.eup %1406  ;;  %v851_v14 = vmul.f32 1.442695, %v825_v5  ;;  %v853_v52 = vmul.f32 1.442695, %v826_v48  ;;  %v952_v5 = vpack.c.bf16 %v504_v47, %v500_v46  ;;  %v506_v48 = vld [vmem:[#allocation10 + $0x2b8] sm:$0xff] }
 0x235   : > { %v811_v53 = vpop.xlane.xlu0 %810  ;;  %v866_v54 = vadd.f32 %v1919_v13, %v1917_v49 }
 0x236   : > { %1420 = vpow2.f32 %v851_v14  ;;  %v827_v55 = vsub.f32 %v1884_v31, %v811_v53  ;;  %v828_v56 = vsub.f32 %v1887_v32, %v811_v53  ;;  %v523_v31 = vld [vmem:[#allocation10 + $0x340] sm:$0xff]  ;;  %v525_v32 = vld [vmem:[#allocation10 + $0x350] sm:$0xff] }
 0x237   : > { %v1925_v22 = vpop.eup %1408  ;;  %1422 = vpow2.f32 %v853_v52  ;;  %867 = vadd.xlane.f32.xlu1 %v866_v54  ;;  %v963_v2 = vpack.c.bf16 %v527_v0, %v523_v31  ;;  %v965_v9 = vpack.c.bf16 %v529_v3, %v525_v32  ;;  %v499_v14 = vld [vmem:[#allocation10 + $0x280] sm:$0xff]  ;;  %v954_v54 = vpack.c.bf16 %v506_v48, %v502_v4  ;;  %v494_v31 = vld [vmem:[#allocation10 + $0x258] sm:$0xff] }
 0x238   : > { %v1927_v23 = vpop.eup %1410  ;;  %v855_v57 = vmul.f32 1.442695, %v827_v55  ;;  %v857_v37 = vmul.f32 1.442695, %v828_v56  ;;  %v503_v52 = vld [vmem:[#allocation10 + $0x2a0] sm:$0xff]  ;;  %v501_v56 = vld [vmem:[#allocation10 + $0x290] sm:$0xff] }
 0x239   : > { %v814_v58 = vpop.xlane.xlu1 %813  ;;  %v869_v59 = vadd.f32 %v1927_v23, %v1925_v22  ;;  %1004 = vmatpush2.bf16.msra.mxu0 %v963_v2  ;;  %1077 = vmatpush2.bf16.msra.mxu1 %v965_v9  ;;  %v951_v55 = vpack.c.bf16 %v503_v52, %v499_v14  ;;  %v498_v32 = vld [vmem:[#allocation10 + $0x278] sm:$0xff]  ;;  %v491_v2 = vld [vmem:[#allocation10 + $0x240] sm:$0xff] }
 0x23a   : > { %1424 = vpow2.f32 %v855_v57  ;;  %v829_v62 = vsub.f32 %v1892_v39, %v814_v58  ;;  %v830_v63 = vsub.f32 %v1895_v40, %v814_v58  ;;  %v516_v39 = vld [vmem:[#allocation10 + $0x308] sm:$0xff]  ;;  %1078 = vmatprep.subr.bf16.mxu1 %v962_v19  ;;  %v505_v57 = vld [vmem:[#allocation10 + $0x2b0] sm:$0xff]  ;;  %v495_v3 = vld [vmem:[#allocation10 + $0x260] sm:$0xff]  ;;  %v944_v19 = vpack.c.bf16 %v488_v16, %v484_v15 }
 0x23b   : > { %v1933_v1 = vpop.eup %1412  ;;  %1426 = vpow2.f32 %v857_v37  ;;  %870 = vadd.xlane.f32.xlu0 %v869_v59  ;;  %v520_v40 = vld [vmem:[#allocation10 + $0x328] sm:$0xff]  ;;  %v953_v58 = vpack.c.bf16 %v505_v57, %v501_v56  ;;  %v947_v9 = vpack.c.bf16 %v495_v3, %v491_v2 }
 0x23c   : > { %v1935_v6 = vpop.eup %1414  ;;  %v859_v7 = vmul.f32 1.442695, %v829_v62  ;;  %v861_v8 = vmul.f32 1.442695, %v830_v63  ;;  %v960_v12 = vpack.c.bf16 %v520_v40, %v516_v39  ;;  %v492_v62 = vld [vmem:[#allocation10 + $0x248] sm:$0xff]  ;;  %v497_v39 = vld [vmem:[#allocation10 + $0x270] sm:$0xff] }
 0x23d   : > { %v872_v10 = vadd.f32 %v1935_v6, %v1933_v1  ;;  %1079 = vmatpush2.bf16.msra.mxu1 %v961_v26  ;;  %v496_v63 = vld [vmem:[#allocation10 + $0x268] sm:$0xff] }
 0x23e   : > { %1428 = vpow2.f32 %v859_v7  ;;  %1005 = vmatprep.subr.bf16.mxu0 %v960_v12  ;;  %1080 = vmatprep.subr.bf16.mxu1 %v958_v50  ;;  %v948_v0 = vpack.c.bf16 %v496_v63, %v492_v62 }
 0x23f   : > { %v1939_v18 = vpop.eup %1416  ;;  %1430 = vpow2.f32 %v861_v8  ;;  %873 = vadd.xlane.f32.xlu1 %v872_v10  ;;  %1006 = vmatpush2.bf16.msra.mxu0 %v959_v20  ;;  %v950_v8 = vpack.c.bf16 %v498_v32, %v494_v31  ;;  %v493_v10 = vld [vmem:[#allocation10 + $0x250] sm:$0xff]  ;;  %v490_v20 = vld [vmem:[#allocation10 + $0x238] sm:$0xff] }
 0x240   : > { %v1941_v25 = vpop.eup %1418  ;;  %1007 = vmatprep.subr.bf16.mxu0 %v956_v33  ;;  %v949_v11 = vpack.c.bf16 %v497_v39, %v493_v10  ;;  %v946_v26 = vpack.c.bf16 %v490_v20, %v486_v17 }
 0x241   : > { %v875_v27 = vadd.f32 %v1941_v25, %v1939_v18  ;;  %1081 = vmatpush2.bf16.msra.mxu1 %v957_v60 }
 0x242   : > { %1082 = vmatprep.subr.bf16.mxu1 %v954_v54 }
 0x243   : > { %v1945_v35 = vpop.eup %1420  ;;  %876 = vadd.xlane.f32.xlu0 %v875_v27  ;;  %1008 = vmatpush2.bf16.msra.mxu0 %v955_v51  ;;  %v943_v27 = vpack.c.bf16 %v487_v24, %v483_v21 }
 0x244   : > { %v1947_v41 = vpop.eup %1422  ;;  %1009 = vmatprep.subr.bf16.mxu0 %v952_v5 }
 0x245   : > { %v878_v45 = vadd.f32 %v1947_v41, %v1945_v35  ;;  %1083 = vmatpush2.bf16.msra.mxu1 %v953_v58 }
 0x246   : > { %1084 = vmatprep.subr.bf16.mxu1 %v950_v8 }
 0x247   : > { %v1951_v53 = vpop.eup %1424  ;;  %879 = vadd.xlane.f32.xlu1 %v878_v45  ;;  %1010 = vmatpush2.bf16.msra.mxu0 %v951_v55 }
 0x248   : > { %v1953_v37 = vpop.eup %1426  ;;  %1011 = vmatprep.subr.bf16.mxu0 %v948_v0 }
 0x249   : > { %v881_v59 = vadd.f32 %v1953_v37, %v1951_v53  ;;  %1085 = vmatpush2.bf16.msra.mxu1 %v949_v11 }
 0x24a   : > { %1086 = vmatprep.subr.bf16.mxu1 %v946_v26 }
 0x24b   : > { %v1957_v7 = vpop.eup %1428  ;;  %882 = vadd.xlane.f32.xlu0 %v881_v59  ;;  %1012 = vmatpush2.bf16.msra.mxu0 %v947_v9 }
 0x24c   : > { %v1959_v40 = vpop.eup %1430  ;;  %1013 = vmatprep.subr.bf16.mxu0 %v944_v19 }
 0x24d   : > { %v884_v12 = vadd.f32 %v1959_v40, %v1957_v7  ;;  %1087 = vmatpush2.bf16.msra.mxu1 %v945_v30 }
 0x24f   : > { %885 = vadd.xlane.f32.xlu1 %v884_v12  ;;  %1014 = vmatpush2.bf16.msra.mxu0 %v943_v27 }
 0x2bc   : > { %v865_v33 = vpop.xlane.xlu0 %864 }
 0x2bd   : > { %1432 = vrcp.f32 %v865_v33 }
 0x2c0   : > { %v868_v42 = vpop.xlane.xlu1 %867 }
 0x2c1   : > { %1434 = vrcp.f32 %v868_v42 }
 0x2c4   : > { %v871_v43 = vpop.xlane.xlu0 %870 }
 0x2c5   : > { %1436 = vrcp.f32 %v871_v43 }
 0x2c8   : > { %v874_v34 = vpop.xlane.xlu1 %873 }
 0x2c9   : > { %1438 = vrcp.f32 %v874_v34 }
 0x2ca   : > { %v1433_v50 = vpop.eup %1432 }
 0x2cb   : > { %v896_v38 = vmul.f32 %v1433_v50, %v1911_v61  ;;  %v895_v45 = vmul.f32 %v1433_v50, %v1909_v44 }
 0x2cc   : > { %v877_v51 = vpop.xlane.xlu0 %876 }
 0x2cd   : > { %1440 = vrcp.f32 %v877_v51 }
 0x2ce   : > { %v1435_v36 = vpop.eup %1434 }
 0x2cf   : > { %v898_v60 = vmul.f32 %v1435_v36, %v1919_v13  ;;  %v897_v46 = vmul.f32 %v1435_v36, %v1917_v49 }
 0x2d0   : > { %v880_v47 = vpop.xlane.xlu1 %879 }
 0x2d1   : > { %1442 = vrcp.f32 %v880_v47  ;;  %v976_v4 = vpack.c.bf16 %v898_v60, %v896_v38  ;;  %v975_v5 = vpack.c.bf16 %v897_v46, %v895_v45 }
 0x2d2   : > { %v1437_v48 = vpop.eup %1436 }
 0x2d3   : > { %1015 = vmatprep.mubr.bf16.mxu0 %v976_v4  ;;  %1088 = vmatprep.mubr.bf16.mxu1 %v976_v4  ;;  %v900_v61 = vmul.f32 %v1437_v48, %v1927_v23  ;;  %v899_v44 = vmul.f32 %v1437_v48, %v1925_v22 }
 0x2d4   : > { %v883_v14 = vpop.xlane.xlu0 %882  ;;  %1016 = vmatmul.mubr.bf16.vlgmr.msra.gmra.mxu0 %v975_v5  ;;  %1089 = vmatmul.mubr.bf16.vlgmr.msra.gmra.mxu1 %v975_v5 }
 0x2d5   : > { %1444 = vrcp.f32 %v883_v14 }
 0x2d6   : > { %v1439_v52 = vpop.eup %1438 }
 0x2d7   : > { %v902_v13 = vmul.f32 %v1439_v52, %v1935_v6  ;;  %v901_v49 = vmul.f32 %v1439_v52, %v1933_v1 }
 0x2d8   : > { %v886_v54 = vpop.xlane.xlu1 %885 }
 0x2d9   : > { %1446 = vrcp.f32 %v886_v54  ;;  %v978_v55 = vpack.c.bf16 %v902_v13, %v900_v61  ;;  %v977_v56 = vpack.c.bf16 %v901_v49, %v899_v44 }
 0x2da   : > { %v1441_v57 = vpop.eup %1440 }
 0x2db   : > { %1025 = vmatprep.mubr.bf16.mxu0 %v978_v55  ;;  %1098 = vmatprep.mubr.bf16.mxu1 %v978_v55  ;;  %v904_v59 = vmul.f32 %v1441_v57, %v1941_v25  ;;  %v903_v6 = vmul.f32 %v1441_v57, %v1939_v18 }
 0x2dc   : > { %1026 = vmatmul.mubr.bf16.gmra.mxu0 %v977_v56  ;;  %1099 = vmatmul.mubr.bf16.gmra.mxu1 %v977_v56 }
 0x2de   : > { %v1443_v58 = vpop.eup %1442 }
 0x2df   : > { %v906_v23 = vmul.f32 %v1443_v58, %v1947_v41  ;;  %v905_v22 = vmul.f32 %v1443_v58, %v1945_v35 }
 0x2e1   : > { %v980_v62 = vpack.c.bf16 %v906_v23, %v904_v59  ;;  %v979_v1 = vpack.c.bf16 %v905_v22, %v903_v6 }
 0x2e2   : > { %v1445_v63 = vpop.eup %1444 }
 0x2e3   : > { %1035 = vmatprep.mubr.bf16.mxu0 %v980_v62  ;;  %1108 = vmatprep.mubr.bf16.mxu1 %v980_v62  ;;  %v908_v0 = vmul.f32 %v1445_v63, %v1953_v37  ;;  %v907_v25 = vmul.f32 %v1445_v63, %v1951_v53 }
 0x2e4   : > { %1036 = vmatmul.mubr.bf16.gmra.mxu0 %v979_v1  ;;  %1109 = vmatmul.mubr.bf16.gmra.mxu1 %v979_v1 }
 0x2e6   : > { %v1447_v31 = vpop.eup %1446 }
 0x2e7   : > { %v910_v32 = vmul.f32 %v1447_v31, %v1959_v40  ;;  %v909_v41 = vmul.f32 %v1447_v31, %v1957_v7 }
 0x2e9   : > { %v982_v18 = vpack.c.bf16 %v910_v32, %v908_v0  ;;  %v981_v2 = vpack.c.bf16 %v909_v41, %v907_v25 }
 0x2eb   : > { %1045 = vmatprep.mubr.bf16.mxu0 %v982_v18  ;;  %1118 = vmatprep.mubr.bf16.mxu1 %v982_v18 }
 0x2ec   : > { %1046 = vmatmul.mubr.bf16.gmra.mxu0 %v981_v2  ;;  %1119 = vmatmul.mubr.bf16.gmra.mxu1 %v981_v2 }
 0x394   : > { %v1017_v35 = vpop.f32.mrf.mxu0  ;;  %v1090_v3 = vpop.f32.mrf.mxu1 }
 0x395   : > { %1129 = vst [vmem:[%s1981_s28] sm:$0xff] %v1017_v35  ;;  %1131 = vst [vmem:[%s1981_s28 + $0x10] sm:$0xff] %v1090_v3 }
 0x396   : > { %v1019_v53 = vpop.f32.mrf.mxu0  ;;  %v1092_v37 = vpop.f32.mrf.mxu1 }
 0x397   : > { %1130 = vst [vmem:[%s1981_s28 + $0x8] sm:$0xff] %v1019_v53  ;;  %1132 = vst [vmem:[%s1981_s28 + $0x18] sm:$0xff] %v1092_v37 }
 0x398   : > { %v1021_v7 = vpop.f32.mrf.mxu0  ;;  %v1094_v8 = vpop.f32.mrf.mxu1 }
 0x399   : > { %1133 = vst [vmem:[%s1981_s28 + $0x20] sm:$0xff] %v1021_v7  ;;  %1135 = vst [vmem:[%s1981_s28 + $0x30] sm:$0xff] %v1094_v8 }
 0x39a   : > { %v1023_v9 = vpop.f32.mrf.mxu0  ;;  %v1096_v10 = vpop.f32.mrf.mxu1 }
 0x39b   : > { %1134 = vst [vmem:[%s1981_s28 + $0x28] sm:$0xff] %v1023_v9  ;;  %1136 = vst [vmem:[%s1981_s28 + $0x38] sm:$0xff] %v1096_v10 }
 0x39c   : > { %v1027_v39 = vpop.f32.mrf.mxu0  ;;  %v1100_v40 = vpop.f32.mrf.mxu1 }
 0x39d   : > { %1137 = vst [vmem:[%s1981_s28 + $0x40] sm:$0xff] %v1027_v39  ;;  %1139 = vst [vmem:[%s1981_s28 + $0x50] sm:$0xff] %v1100_v40 }
 0x39e   : > { %v1029_v11 = vpop.f32.mrf.mxu0  ;;  %v1102_v12 = vpop.f32.mrf.mxu1 }
 0x39f   : > { %1138 = vst [vmem:[%s1981_s28 + $0x48] sm:$0xff] %v1029_v11  ;;  %1140 = vst [vmem:[%s1981_s28 + $0x58] sm:$0xff] %v1102_v12 }
 0x3a0   : > { %v1031_v15 = vpop.f32.mrf.mxu0  ;;  %v1104_v16 = vpop.f32.mrf.mxu1 }
 0x3a1   : > { %1141 = vst [vmem:[%s1981_s28 + $0x60] sm:$0xff] %v1031_v15  ;;  %1143 = vst [vmem:[%s1981_s28 + $0x70] sm:$0xff] %v1104_v16 }
 0x3a2   : > { %v1033_v17 = vpop.f32.mrf.mxu0  ;;  %v1106_v19 = vpop.f32.mrf.mxu1 }
 0x3a3   : > { %1142 = vst [vmem:[%s1981_s28 + $0x68] sm:$0xff] %v1033_v17  ;;  %1144 = vst [vmem:[%s1981_s28 + $0x78] sm:$0xff] %v1106_v19 }
 0x3a4   : > { %v1037_v20 = vpop.f32.mrf.mxu0  ;;  %v1110_v21 = vpop.f32.mrf.mxu1 }
 0x3a5   : > { %1145 = vst [vmem:[%s1981_s28 + $0x80] sm:$0xff] %v1037_v20  ;;  %1147 = vst [vmem:[%s1981_s28 + $0x90] sm:$0xff] %v1110_v21 }
 0x3a6   : > { %v1039_v24 = vpop.f32.mrf.mxu0  ;;  %v1112_v26 = vpop.f32.mrf.mxu1 }
 0x3a7   : > { %1146 = vst [vmem:[%s1981_s28 + $0x88] sm:$0xff] %v1039_v24  ;;  %1148 = vst [vmem:[%s1981_s28 + $0x98] sm:$0xff] %v1112_v26 }
 0x3a8   : > { %v1041_v27 = vpop.f32.mrf.mxu0  ;;  %v1114_v28 = vpop.f32.mrf.mxu1 }
 0x3a9   : > { %1149 = vst [vmem:[%s1981_s28 + $0xa0] sm:$0xff] %v1041_v27  ;;  %1151 = vst [vmem:[%s1981_s28 + $0xb0] sm:$0xff] %v1114_v28 }
 0x3aa   : > { %v1043_v29 = vpop.f32.mrf.mxu0  ;;  %v1116_v30 = vpop.f32.mrf.mxu1 }
 0x3ab   : > { %1150 = vst [vmem:[%s1981_s28 + $0xa8] sm:$0xff] %v1043_v29  ;;  %1152 = vst [vmem:[%s1981_s28 + $0xb8] sm:$0xff] %v1116_v30 }
 0x3ac   : > { %v1047_v33 = vpop.f32.mrf.mxu0  ;;  %v1120_v42 = vpop.f32.mrf.mxu1 }
 0x3ad   : > { %1153 = vst [vmem:[%s1981_s28 + $0xc0] sm:$0xff] %v1047_v33  ;;  %1155 = vst [vmem:[%s1981_s28 + $0xd0] sm:$0xff] %v1120_v42 }
 0x3ae   : > { %v1049_v43 = vpop.f32.mrf.mxu0  ;;  %v1122_v34 = vpop.f32.mrf.mxu1 }
 0x3af   : > { %1154 = vst [vmem:[%s1981_s28 + $0xc8] sm:$0xff] %v1049_v43  ;;  %1156 = vst [vmem:[%s1981_s28 + $0xd8] sm:$0xff] %v1122_v34 }
 0x3b0   : > { %v1051_v50 = vpop.f32.mrf.mxu0  ;;  %v1124_v51 = vpop.f32.mrf.mxu1 }
 0x3b1   : > { %1157 = vst [vmem:[%s1981_s28 + $0xe0] sm:$0xff] %v1051_v50  ;;  %1159 = vst [vmem:[%s1981_s28 + $0xf0] sm:$0xff] %v1124_v51 }
 0x3b2   : > { %v1053_v36 = vpop.f32.mrf.mxu0  ;;  %v1126_v38 = vpop.f32.mrf.mxu1 }
 0x3b3   : > { %1158 = vst [vmem:[%s1981_s28 + $0xe8] sm:$0xff] %v1053_v36  ;;  %1160 = vst [vmem:[%s1981_s28 + $0xf8] sm:$0xff] %v1126_v38 }
 0x3b4   : > { %1541 = shalt.err (!%p1538_p2)
}
 0x3b5   : > { %s1542_s9 = scalar_lea.hbm %s2016_s17, 4096  ;;  %s1546_s11 = scalar_lea.hbm %s2074_s5, 16384 }
 0x3b6   : > { %p1543_p9 = scmp.ne.s32.totalorder %s2016_s17, %s1542_s9  ;;  %p1547_p13 = scmp.lt.s32.totalorder %s2016_s17, %s2074_s5 }
 0x3b7   : > { %p1548_p7 = scmp.lt.s32.totalorder %s1546_s11, %s1542_s9 }
 0x3b8   : > { %p1544_p11 = pnand %p1543_p9, %p1755_p5 }
 0x3b9   : > { %p1549_p3 = por %p1548_p7, %p1547_p13 }
 0x3ba   : > { %p1545_p12 = pneg %p1544_p11 }
 0x3bc   : > { %p1550_p1 = pnand %p1549_p3, %p1545_p12 }
 0x3be   : > { %1553 = shalt.err (!%p1550_p1)
}
 0x3bf   : > { %s1620_s28 = smov 512   ;;  %s1621_s30 = smov 32  }
 0x3c0   : > { %1323 = dma.vmem_to_hbm [thread:$0]  (%p1755_p5), %s2018_s13, 4096, %s2016_s17, %s1162_s22, %s1620_s28, %s1620_s28, %s1621_s30  }
 0x3c1 PF: > { %p1345_p4 = scmp.ge.s32.totalorder %s1612_s24, 2  ;;  %s1193_s15 = sand.u32 1, %s1592_s1  }
 0x3c2   : > { %p2085_p6 = scmp.ne.s32.totalorder %s2079_s29, 0  ;;  %s1194_s16 = scalar_lea.sflag [#allocation7], %s1193_s15 }
 0x3c4   : > { %p1337_p8 = pnand %p1345_p4, %p2085_p6 }
 0x3c6   : > { %p1338_p0 = pneg %p1337_p8 }
 0x3c8   : > { %1587 = dma.done.wait (%p1338_p0), %s1194_s16, 4096  }
 0x3c9   : > { %1589 = vsyncadd (%p1338_p0), %s1194_s16, 4294963200  ;;  %s24_s24 = sadd.s32 1, %s1612_s24   ;;  %s2086_s1 = smov %s1596_s20 }
 0x3ca   : > { %p21_p10 = scmp.ge.s32.totalorder %s24_s24, 6   ;;  %s2087_s20 = smov %s1600_s21 }
 0x3cb   : > { %s2088_s21 = smov %s1764_s10  ;;  %s2089_s22 = smov %s1608_s23 }
 0x3cc   : > { %s2090_s23 = smov %s2092_s19  ;;  %23 = sbr.rel (!%p21_p10) target bundleno = 9 (0x9), region = 87 }
 0x3d1   :  { %1199 = vsyncpa [#allocation6], 1 }
 0x3d2   :  { %1201 = vsyncpa [#allocation6 + $0x1], 1 }
 0x3d3   :  { %1202 = vsyncpa [#allocation9], 1 }
 0x3d4   :  { %1203 = vsyncpa [#allocation7], 1 }
 0x3d5   :  { %1205 = vsyncpa [#allocation7 + $0x1], 1 }

</bundles_post_ra>
